<compile_context>
chip_gen: v5e
topology: v5e:2x2
jax: 0.10.0
libtpu: 0.0.40
codegen_flags: <defaults>
</compile_context>

<pallas_src>
import jax
import jax.numpy as jnp
from jax.experimental import pallas as pl
from jax.experimental.pallas import tpu as pltpu


# ------------------------------------------------------------------------
# Fused bidirectional GRU kernel.
# grid = (num_chunks,); each grid step runs Tc timesteps with a static loop.
# Hidden state is (B, 2H): cols [:H] = forward dir, cols [H:] = backward dir
# (backward processes the time-reversed sequence; its gi half is pre-reversed
#  and its y output is written back un-reversed via the index_map + row index).
# ------------------------------------------------------------------------
def _bigru_kernel(gi_ref, wr_ref, wz_ref, wn_ref, bhn_ref,
                  yf_ref, yb_ref, hlast_ref, h_scr):
    c = pl.program_id(0)

    @pl.when(c == 0)
    def _():
        h_scr[...] = jnp.zeros_like(h_scr)

    tc = gi_ref.shape[1]
    H2 = h_scr.shape[1]
    H = H2 // 2

    # hoist weight / bias loads out of the inner loop
    wr = wr_ref[...]
    wz = wz_ref[...]
    wn = wn_ref[...]
    bhn = bhn_ref[...]
    h = h_scr[...]                                  # (B, 2H) f32

    # short static inner loop over the time chunk (fully unrolled at trace time)
    for k in range(tc):
        hb = h.astype(wr.dtype)                      # bf16 MXU operand
        gh_r = jnp.dot(hb, wr, preferred_element_type=jnp.float32)
        gh_z = jnp.dot(hb, wz, preferred_element_type=jnp.float32)
        gh_n = jnp.dot(hb, wn, preferred_element_type=jnp.float32) + bhn
        # gi already contains b_ih (all gates) and b_hh for r/z.
        r = jax.nn.sigmoid(gi_ref[0, k] + gh_r)
        z = jax.nn.sigmoid(gi_ref[1, k] + gh_z)
        n = jnp.tanh(gi_ref[2, k] + r * gh_n)
        h = (1.0 - z) * n + z * h
        yf_ref[k] = h[:, :H]                         # fwd output at time t
        yb_ref[tc - 1 - k] = h[:, H:]                # bwd output, un-reversed row

    h_scr[...] = h
    hlast_ref[...] = h      # written every chunk; final chunk leaves [h_fwd, h_bwd]


def bigru(x_emb, p_fwd, p_bwd, *, max_chunk=32):
    """Fused bidirectional GRU.

    x_emb: (B, T, E).  Weights use torch.nn.GRU layout:
      w_ih (3H, E), w_hh (3H, H), b_ih (3H,), b_hh (3H,), gate order [r, z, n].
    Returns y_f (T, B, H), y_b (T, B, H) (both in natural time order) and
    h_last (B, 2H) = [fwd final, bwd final]  (== torch's q_hn concat).
    """
    B, T, E = x_emb.shape
    H = p_fwd['w_hh'].shape[1]
    H2 = 2 * H
    f32, bf16 = jnp.float32, jnp.bfloat16

    tc = min(T, max_chunk)
    while T % tc:
        tc -= 1
    nc = T // tc

    # ---- input projection for ALL timesteps (hoisted out of the recurrence) ----
    x2 = x_emb.reshape(B * T, E).astype(bf16)

    def gi_dir(p):
        w = jnp.transpose(p['w_ih']).astype(bf16)                  # (E, 3H)
        # fold b_ih fully and the r/z halves of b_hh; the n half must stay in
        # the recurrence because of the reset gate.
        bias = p['b_ih'] + jnp.concatenate(
            [p['b_hh'][:2 * H], jnp.zeros((H,), f32)])
        g = jnp.dot(x2, w, preferred_element_type=f32) + bias      # (B*T, 3H)
        return g.reshape(B, T, 3, H)

    gf = gi_dir(p_fwd)                       # (B, T, 3, H)
    gb = gi_dir(p_bwd)[:, ::-1]              # backward direction, time-reversed
    gi = jnp.transpose(jnp.concatenate([gf, gb], axis=-1),
                       (2, 1, 0, 3))         # (3, T, B, 2H)

    # ---- per-gate block-diagonal hidden weights for the [fwd | bwd] concat ----
    zero = jnp.zeros((H, H), f32)

    def blkdiag(g):
        a = jnp.transpose(p_fwd['w_hh'][g * H:(g + 1) * H, :])     # (H, H)
        b = jnp.transpose(p_bwd['w_hh'][g * H:(g + 1) * H, :])
        return jnp.concatenate(
            [jnp.concatenate([a, zero], axis=1),
             jnp.concatenate([zero, b], axis=1)], axis=0).astype(bf16)   # (2H, 2H)

    w_r, w_z, w_n = blkdiag(0), blkdiag(1), blkdiag(2)
    bhn = jnp.concatenate([p_fwd['b_hh'][2 * H:], p_bwd['b_hh'][2 * H:]]
                          ).reshape(1, H2).astype(f32)

    # TODO(synk): for production-size H, set vmem_limit_bytes and single-buffer
    # the constant-index weight specs (v7x has only 64 MiB VMEM).
    y_f, y_b, h_last = pl.pallas_call(
        _bigru_kernel,
        out_shape=(jax.ShapeDtypeStruct((T, B, H), f32),
                   jax.ShapeDtypeStruct((T, B, H), f32),
                   jax.ShapeDtypeStruct((B, H2), f32)),
        grid_spec=pltpu.PrefetchScalarGridSpec(
            num_scalar_prefetch=0,
            grid=(nc,),
            in_specs=[
                pl.BlockSpec((3, tc, B, H2), lambda c: (0, c, 0, 0)),   # gi
                pl.BlockSpec((H2, H2), lambda c: (0, 0)),               # w_r
                pl.BlockSpec((H2, H2), lambda c: (0, 0)),               # w_z
                pl.BlockSpec((H2, H2), lambda c: (0, 0)),               # w_n
                pl.BlockSpec((1, H2), lambda c: (0, 0)),                # bhn
            ],
            out_specs=(
                pl.BlockSpec((tc, B, H), lambda c: (c, 0, 0)),          # y_f
                pl.BlockSpec((tc, B, H), lambda c: (nc - 1 - c, 0, 0)), # y_b
                pl.BlockSpec((B, H2), lambda c: (0, 0)),                # h_last
            ),
            scratch_shapes=[pltpu.VMEM((B, H2), f32)],
        ),
        compiler_params=pltpu.CompilerParams(
            dimension_semantics=("arbitrary",)),
    )(gi, w_r, w_z, w_n, bhn)
    return y_f, y_b, h_last


# ------------------------------------------------------------------------
# Attention + output Linear: whole batch in a single kernel invocation.
# Uses associativity: ms = ((y*mask) @ mix) @ q == mask * (y . (mix @ q)).
# ------------------------------------------------------------------------
def _attention_kernel(yf_ref, yb_ref, mask_ref, qhn_ref, mA_ref, mB_ref,
                      wf_ref, wb_ref, bout_ref, out_ref):
    yf = yf_ref[...]                          # (S, B, H) f32
    yb = yb_ref[...]                          # (S, B, H)
    m = mask_ref[...]                         # (S, B, 1)  padding_mask = (stories <= 0)

    # qmix = mix @ q_hn, split per direction (two tiny bf16 MXU dots)
    q = qhn_ref[...].astype(mA_ref.dtype)     # (B, 2H) bf16
    qf = jnp.dot(q, mA_ref[...], preferred_element_type=jnp.float32)   # (B, H)
    qb = jnp.dot(q, mB_ref[...], preferred_element_type=jnp.float32)   # (B, H)

    # ms = ((y*mask) @ mix @ q) - 100*mask == mask*(y . qmix) - 100*mask
    # (mask is scalar per position, so masking commutes with the dot product;
    #  the y*mask multiply of the reference is preserved exactly this way.)
    ms = (jnp.sum(yf * qf, axis=-1, keepdims=True)
          + jnp.sum(yb * qb, axis=-1, keepdims=True))                  # (S, B, 1)
    ms = ms * m - 100.0 * m

    # TODO(synk): legacy F.softmax(ms) without `dim` on a 3-D tensor picked dim=0
    # in very old torch; we use the intended attention axis (story positions).
    mx = jnp.max(ms, axis=0, keepdims=True)
    e = jnp.exp(ms - mx)
    denom = jnp.sum(e, axis=0, keepdims=True)
    ss = e * pl.reciprocal(denom, approx=True)        # (S, B, 1)

    w = ss * m                                        # weights applied to ym = y*mask
    rf = jnp.sum(yf * w, axis=0)                      # (B, H)
    rb = jnp.sum(yb * w, axis=0)                      # (B, H)

    out = (jnp.dot(rf.astype(wf_ref.dtype), wf_ref[...],
                   preferred_element_type=jnp.float32)
           + jnp.dot(rb.astype(wb_ref.dtype), wb_ref[...],
                     preferred_element_type=jnp.float32)
           + bout_ref[...])                           # (B, Eout)
    out_ref[...] = out.astype(out_ref.dtype)


def attention_output(y_f, y_b, mask_bs, q_hn, mix, w_out, b_out):
    S, B, H = y_f.shape
    H2 = 2 * H
    Eout = w_out.shape[0]
    bf16 = jnp.bfloat16

    mask3 = jnp.transpose(mask_bs)[:, :, None].astype(jnp.float32)   # (S, B, 1)
    mA = jnp.transpose(mix[:H, :]).astype(bf16)                      # (2H, H)
    mB = jnp.transpose(mix[H:, :]).astype(bf16)                      # (2H, H)
    wf = jnp.transpose(w_out[:, :H]).astype(bf16)                    # (H, Eout)
    wb = jnp.transpose(w_out[:, H:]).astype(bf16)                    # (H, Eout)
    bout = b_out.reshape(1, Eout).astype(jnp.float32)

    return pl.pallas_call(
        _attention_kernel,
        out_shape=jax.ShapeDtypeStruct((B, Eout), jnp.float32),
        grid_spec=pltpu.PrefetchScalarGridSpec(
            num_scalar_prefetch=0,
            grid=(1,),
            in_specs=[
                pl.BlockSpec((S, B, H), lambda i: (0, 0, 0)),
                pl.BlockSpec((S, B, H), lambda i: (0, 0, 0)),
                pl.BlockSpec((S, B, 1), lambda i: (0, 0, 0)),
                pl.BlockSpec((B, H2), lambda i: (0, 0)),
                pl.BlockSpec((H2, H), lambda i: (0, 0)),
                pl.BlockSpec((H2, H), lambda i: (0, 0)),
                pl.BlockSpec((H, Eout), lambda i: (0, 0)),
                pl.BlockSpec((H, Eout), lambda i: (0, 0)),
                pl.BlockSpec((1, Eout), lambda i: (0, 0)),
            ],
            out_specs=pl.BlockSpec((B, Eout), lambda i: (0, 0)),
        ),
        compiler_params=pltpu.CompilerParams(
            dimension_semantics=("arbitrary",)),
    )(y_f, y_b, mask3, q_hn, mA, mB, wf, wb, bout)


# ------------------------------------------------------------------------
# Full forward (pack=False, eval mode)
# ------------------------------------------------------------------------
def attentive_reader_forward(params, stories, questions):
    emb = params['embedding']
    s_emb = jnp.take(emb, stories, axis=0)        # (B, S, E)
    q_emb = jnp.take(emb, questions, axis=0)      # (B, Q, E)
    # dropout: identity in eval mode

    y_f, y_b, _ = bigru(s_emb, params['story_fwd'], params['story_bwd'])
    _, _, q_hn = bigru(q_emb, params['q_fwd'], params['q_bwd'])   # (B, 2H)

    padding_mask = (stories <= 0).astype(jnp.float32)             # (B, S)
    return attention_output(y_f, y_b, padding_mask, q_hn,
                            params['mix'], params['w_out'], params['b_out'])


# ------------------------------------------------------------------------
# Deterministic parameter init (shapes follow the module's __init__)
# ------------------------------------------------------------------------
def init_params(key, vocab_size, embedding_size, hidden_size, entity_size,
                init_range=0.01, gru_init_std=0.1):
    keys = jax.random.split(key, 8)

    def u(k, shape):
        return jax.random.uniform(k, shape, jnp.float32, -init_range, init_range)

    def nrm(k, shape):
        return gru_init_std * jax.random.normal(k, shape, jnp.float32)

    H, E = hidden_size, embedding_size
    emb = u(keys[0], (vocab_size, embedding_size))
    emb = emb.at[0, :].set(0.0)   # padding_idx = 0

    def gru_dir(k):
        ks = jax.random.split(k, 4)
        return dict(w_ih=nrm(ks[0], (3 * H, E)),
                    w_hh=nrm(ks[1], (3 * H, H)),
                    b_ih=nrm(ks[2], (3 * H,)),
                    b_hh=nrm(ks[3], (3 * H,)))

    return dict(
        embedding=emb,
        story_fwd=gru_dir(keys[1]),
        story_bwd=gru_dir(keys[2]),
        q_fwd=gru_dir(keys[3]),
        q_bwd=gru_dir(keys[4]),
        w_out=u(keys[5], (entity_size, 2 * H)),
        b_out=jnp.zeros((entity_size,), jnp.float32),
        mix=u(keys[6], (2 * H, 2 * H)),
    )


if __name__ == "__main__":
    B, S, Q, VOCAB, EMB, HID, ENT = 2, 16, 8, 50, 32, 32, 10

    key = jax.random.PRNGKey(0)
    kp, ks, kq = jax.random.split(key, 3)

    params = init_params(kp, VOCAB, EMB, HID, ENT)
    stories = jax.random.randint(ks, (B, S), 1, VOCAB)
    stories = stories.at[:, -3:].set(0)          # trailing padding tokens
    questions = jax.random.randint(kq, (B, Q), 1, VOCAB)

    out = jax.jit(attentive_reader_forward)(params, stories, questions)
    jax.block_until_ready(out)
    assert out.shape == (B, ENT) and out.dtype == jnp.float32
    print("KERNEL_OK")
</pallas_src>

<mosaic_0001>
module attributes {stable_mosaic.version = 11 : i64} {
  func.func @_bigru_kernel(%arg0: i32, %arg1: memref<3x8x2x64xf32, #tpu.memory_space<vmem>>, %arg2: memref<64x64xbf16, #tpu.memory_space<vmem>>, %arg3: memref<64x64xbf16, #tpu.memory_space<vmem>>, %arg4: memref<64x64xbf16, #tpu.memory_space<vmem>>, %arg5: memref<1x64xf32, #tpu.memory_space<vmem>>, %arg6: memref<8x2x32xf32, #tpu.memory_space<vmem>>, %arg7: memref<8x2x32xf32, #tpu.memory_space<vmem>>, %arg8: memref<2x64xf32, #tpu.memory_space<vmem>>, %arg9: memref<2x64xf32, #tpu.memory_space<vmem>>) attributes {dimension_semantics = [#tpu.dimension_semantics<arbitrary>], iteration_bounds = array<i64: 1>, scalar_prefetch = 0 : i64, scratch_operands = 1 : i64, tpu.core_type = #tpu.core_type<tc>, window_params = [{transform_indices = @transform_0, window_bounds = array<i64: 3, 8, 2, 64>}, {pipeline_mode = #tpu.pipeline_mode<synchronous>, transform_indices = @transform_1, window_bounds = array<i64: 64, 64>}, {pipeline_mode = #tpu.pipeline_mode<synchronous>, transform_indices = @transform_2, window_bounds = array<i64: 64, 64>}, {pipeline_mode = #tpu.pipeline_mode<synchronous>, transform_indices = @transform_3, window_bounds = array<i64: 64, 64>}, {pipeline_mode = #tpu.pipeline_mode<synchronous>, transform_indices = @transform_4, window_bounds = array<i64: 1, 64>}, {transform_indices = @transform_5, window_bounds = array<i64: 8, 2, 32>}, {transform_indices = @transform_6, window_bounds = array<i64: 8, 2, 32>}, {pipeline_mode = #tpu.pipeline_mode<synchronous>, transform_indices = @transform_7, window_bounds = array<i64: 2, 64>}]} {
    %c0_i32 = arith.constant 0 : i32
    %0 = arith.cmpi eq, %arg0, %c0_i32 : i32
    %1 = arith.extui %0 : i1 to i32
    %c0_i32_0 = arith.constant 0 : i32
    %2 = arith.cmpi ne, %1, %c0_i32_0 : i32
    scf.if %2 {
      %cst_198 = arith.constant 0.000000e+00 : f32
      %330 = vector.broadcast %cst_198 : f32 to vector<2x64xf32>
      %c0_199 = arith.constant 0 : index
      %c0_200 = arith.constant 0 : index
      %331 = vector.load %arg9[%c0_199, %c0_200] : memref<2x64xf32, #tpu.memory_space<vmem>>, vector<2x64xf32>
      tpu.vector_store %arg9[%c0_199, %c0_200], %330 {strides = array<i32>} : memref<2x64xf32, #tpu.memory_space<vmem>>, vector<2x64xf32>,
    } else {
    }
    %c0 = arith.constant 0 : index
    %c0_1 = arith.constant 0 : index
    %3 = vector.load %arg2[%c0, %c0_1] : memref<64x64xbf16, #tpu.memory_space<vmem>>, vector<64x64xbf16>
    %c0_2 = arith.constant 0 : index
    %c0_3 = arith.constant 0 : index
    %4 = vector.load %arg3[%c0_2, %c0_3] : memref<64x64xbf16, #tpu.memory_space<vmem>>, vector<64x64xbf16>
    %c0_4 = arith.constant 0 : index
    %c0_5 = arith.constant 0 : index
    %5 = vector.load %arg4[%c0_4, %c0_5] : memref<64x64xbf16, #tpu.memory_space<vmem>>, vector<64x64xbf16>
    %c0_6 = arith.constant 0 : index
    %c0_7 = arith.constant 0 : index
    %6 = vector.load %arg5[%c0_6, %c0_7] : memref<1x64xf32, #tpu.memory_space<vmem>>, vector<1x64xf32>
    %c0_8 = arith.constant 0 : index
    %c0_9 = arith.constant 0 : index
    %7 = vector.load %arg9[%c0_8, %c0_9] : memref<2x64xf32, #tpu.memory_space<vmem>>, vector<2x64xf32>
    %8 = arith.truncf %7 : vector<2x64xf32> to vector<2x64xbf16>
    %cst = arith.constant dense<0.000000e+00> : vector<2x64xf32>
    %9 = tpu.matmul %8, %3, %cst {dimension_numbers = #tpu.dot_dimension_numbers<[1], [0], [0], [1], [0, 0, 1, 1], [], []>} : vector<2x64xbf16>, vector<64x64xbf16>, vector<2x64xf32> -> vector<2x64xf32>
    %cst_10 = arith.constant dense<0.000000e+00> : vector<2x64xf32>
    %10 = tpu.matmul %8, %4, %cst_10 {dimension_numbers = #tpu.dot_dimension_numbers<[1], [0], [0], [1], [0, 0, 1, 1], [], []>} : vector<2x64xbf16>, vector<64x64xbf16>, vector<2x64xf32> -> vector<2x64xf32>
    %cst_11 = arith.constant dense<0.000000e+00> : vector<2x64xf32>
    %11 = tpu.matmul %8, %5, %cst_11 {dimension_numbers = #tpu.dot_dimension_numbers<[1], [0], [0], [1], [0, 0, 1, 1], [], []>} : vector<2x64xbf16>, vector<64x64xbf16>, vector<2x64xf32> -> vector<2x64xf32>
    %12 = vector.broadcast %6 : vector<1x64xf32> to vector<2x64xf32>
    %13 = arith.addf %11, %12 : vector<2x64xf32>
    %c0_12 = arith.constant 0 : index
    %c0_13 = arith.constant 0 : index
    %c0_14 = arith.constant 0 : index
    %c0_15 = arith.constant 0 : index
    %14 = vector.load %arg1[%c0_12, %c0_13, %c0_14, %c0_15] : memref<3x8x2x64xf32, #tpu.memory_space<vmem>>, vector<1x1x2x64xf32>
    %15 = vector.shape_cast %14 : vector<1x1x2x64xf32> to vector<2x64xf32>
    %16 = arith.addf %15, %9 : vector<2x64xf32>
    %17 = arith.negf %16 : vector<2x64xf32>
    %18 = math.exp %17 : vector<2x64xf32>
    %cst_16 = arith.constant 1.000000e+00 : f32
    %19 = vector.broadcast %cst_16 : f32 to vector<2x64xf32>
    %20 = arith.addf %19, %18 : vector<2x64xf32>
    %21 = arith.divf %19, %20 : vector<2x64xf32>
    %c1 = arith.constant 1 : index
    %c0_17 = arith.constant 0 : index
    %c0_18 = arith.constant 0 : index
    %c0_19 = arith.constant 0 : index
    %22 = vector.load %arg1[%c1, %c0_17, %c0_18, %c0_19] : memref<3x8x2x64xf32, #tpu.memory_space<vmem>>, vector<1x1x2x64xf32>
    %23 = vector.shape_cast %22 : vector<1x1x2x64xf32> to vector<2x64xf32>
    %24 = arith.addf %23, %10 : vector<2x64xf32>
    %25 = arith.negf %24 : vector<2x64xf32>
    %26 = math.exp %25 : vector<2x64xf32>
    %cst_20 = arith.constant 1.000000e+00 : f32
    %27 = vector.broadcast %cst_20 : f32 to vector<2x64xf32>
    %28 = arith.addf %27, %26 : vector<2x64xf32>
    %29 = arith.divf %27, %28 : vector<2x64xf32>
    %c2 = arith.constant 2 : index
    %c0_21 = arith.constant 0 : index
    %c0_22 = arith.constant 0 : index
    %c0_23 = arith.constant 0 : index
    %30 = vector.load %arg1[%c2, %c0_21, %c0_22, %c0_23] : memref<3x8x2x64xf32, #tpu.memory_space<vmem>>, vector<1x1x2x64xf32>
    %31 = vector.shape_cast %30 : vector<1x1x2x64xf32> to vector<2x64xf32>
    %32 = arith.mulf %21, %13 : vector<2x64xf32>
    %33 = arith.addf %31, %32 : vector<2x64xf32>
    %34 = math.tanh %33 : vector<2x64xf32>
    %cst_24 = arith.constant 1.000000e+00 : f32
    %35 = vector.broadcast %cst_24 : f32 to vector<2x64xf32>
    %36 = arith.subf %35, %29 : vector<2x64xf32>
    %37 = arith.mulf %36, %34 : vector<2x64xf32>
    %38 = arith.mulf %29, %7 : vector<2x64xf32>
    %39 = arith.addf %37, %38 : vector<2x64xf32>
    %40 = vector.extract_strided_slice %39 {offsets = [0, 0], sizes = [2, 32], strides = [1, 1]} : vector<2x64xf32> to vector<2x32xf32>
    %c0_25 = arith.constant 0 : index
    %c0_26 = arith.constant 0 : index
    %c0_27 = arith.constant 0 : index
    %41 = vector.load %arg6[%c0_25, %c0_26, %c0_27] : memref<8x2x32xf32, #tpu.memory_space<vmem>>, vector<1x2x32xf32>
    %42 = vector.shape_cast %41 : vector<1x2x32xf32> to vector<2x32xf32>
    %43 = vector.shape_cast %40 : vector<2x32xf32> to vector<1x2x32xf32>
    tpu.vector_store %arg6[%c0_25, %c0_26, %c0_27], %43 {strides = array<i32>} : memref<8x2x32xf32, #tpu.memory_space<vmem>>, vector<1x2x32xf32>,
    %44 = vector.extract_strided_slice %39 {offsets = [0, 32], sizes = [2, 32], strides = [1, 1]} : vector<2x64xf32> to vector<2x32xf32>
    %c7 = arith.constant 7 : index
    %c0_28 = arith.constant 0 : index
    %c0_29 = arith.constant 0 : index
    %45 = vector.load %arg7[%c7, %c0_28, %c0_29] : memref<8x2x32xf32, #tpu.memory_space<vmem>>, vector<1x2x32xf32>
    %46 = vector.shape_cast %45 : vector<1x2x32xf32> to vector<2x32xf32>
    %47 = vector.shape_cast %44 : vector<2x32xf32> to vector<1x2x32xf32>
    tpu.vector_store %arg7[%c7, %c0_28, %c0_29], %47 {strides = array<i32>} : memref<8x2x32xf32, #tpu.memory_space<vmem>>, vector<1x2x32xf32>,
    %48 = arith.truncf %39 : vector<2x64xf32> to vector<2x64xbf16>
    %cst_30 = arith.constant dense<0.000000e+00> : vector<2x64xf32>
    %49 = tpu.matmul %48, %3, %cst_30 {dimension_numbers = #tpu.dot_dimension_numbers<[1], [0], [0], [1], [0, 0, 1, 1], [], []>} : vector<2x64xbf16>, vector<64x64xbf16>, vector<2x64xf32> -> vector<2x64xf32>
    %cst_31 = arith.constant dense<0.000000e+00> : vector<2x64xf32>
    %50 = tpu.matmul %48, %4, %cst_31 {dimension_numbers = #tpu.dot_dimension_numbers<[1], [0], [0], [1], [0, 0, 1, 1], [], []>} : vector<2x64xbf16>, vector<64x64xbf16>, vector<2x64xf32> -> vector<2x64xf32>
    %cst_32 = arith.constant dense<0.000000e+00> : vector<2x64xf32>
    %51 = tpu.matmul %48, %5, %cst_32 {dimension_numbers = #tpu.dot_dimension_numbers<[1], [0], [0], [1], [0, 0, 1, 1], [], []>} : vector<2x64xbf16>, vector<64x64xbf16>, vector<2x64xf32> -> vector<2x64xf32>
    %52 = vector.broadcast %6 : vector<1x64xf32> to vector<2x64xf32>
    %53 = arith.addf %51, %52 : vector<2x64xf32>
    %c0_33 = arith.constant 0 : index
    %c1_34 = arith.constant 1 : index
    %c0_35 = arith.constant 0 : index
    %c0_36 = arith.constant 0 : index
    %54 = vector.load %arg1[%c0_33, %c1_34, %c0_35, %c0_36] : memref<3x8x2x64xf32, #tpu.memory_space<vmem>>, vector<1x1x2x64xf32>
    %55 = vector.shape_cast %54 : vector<1x1x2x64xf32> to vector<2x64xf32>
    %56 = arith.addf %55, %49 : vector<2x64xf32>
    %57 = arith.negf %56 : vector<2x64xf32>
    %58 = math.exp %57 : vector<2x64xf32>
    %cst_37 = arith.constant 1.000000e+00 : f32
    %59 = vector.broadcast %cst_37 : f32 to vector<2x64xf32>
    %60 = arith.addf %59, %58 : vector<2x64xf32>
    %61 = arith.divf %59, %60 : vector<2x64xf32>
    %c1_38 = arith.constant 1 : index
    %c1_39 = arith.constant 1 : index
    %c0_40 = arith.constant 0 : index
    %c0_41 = arith.constant 0 : index
    %62 = vector.load %arg1[%c1_38, %c1_39, %c0_40, %c0_41] : memref<3x8x2x64xf32, #tpu.memory_space<vmem>>, vector<1x1x2x64xf32>
    %63 = vector.shape_cast %62 : vector<1x1x2x64xf32> to vector<2x64xf32>
    %64 = arith.addf %63, %50 : vector<2x64xf32>
    %65 = arith.negf %64 : vector<2x64xf32>
    %66 = math.exp %65 : vector<2x64xf32>
    %cst_42 = arith.constant 1.000000e+00 : f32
    %67 = vector.broadcast %cst_42 : f32 to vector<2x64xf32>
    %68 = arith.addf %67, %66 : vector<2x64xf32>
    %69 = arith.divf %67, %68 : vector<2x64xf32>
    %c2_43 = arith.constant 2 : index
    %c1_44 = arith.constant 1 : index
    %c0_45 = arith.constant 0 : index
    %c0_46 = arith.constant 0 : index
    %70 = vector.load %arg1[%c2_43, %c1_44, %c0_45, %c0_46] : memref<3x8x2x64xf32, #tpu.memory_space<vmem>>, vector<1x1x2x64xf32>
    %71 = vector.shape_cast %70 : vector<1x1x2x64xf32> to vector<2x64xf32>
    %72 = arith.mulf %61, %53 : vector<2x64xf32>
    %73 = arith.addf %71, %72 : vector<2x64xf32>
    %74 = math.tanh %73 : vector<2x64xf32>
    %cst_47 = arith.constant 1.000000e+00 : f32
    %75 = vector.broadcast %cst_47 : f32 to vector<2x64xf32>
    %76 = arith.subf %75, %69 : vector<2x64xf32>
    %77 = arith.mulf %76, %74 : vector<2x64xf32>
    %78 = arith.mulf %69, %39 : vector<2x64xf32>
    %79 = arith.addf %77, %78 : vector<2x64xf32>
    %80 = vector.extract_strided_slice %79 {offsets = [0, 0], sizes = [2, 32], strides = [1, 1]} : vector<2x64xf32> to vector<2x32xf32>
    %c1_48 = arith.constant 1 : index
    %c0_49 = arith.constant 0 : index
    %c0_50 = arith.constant 0 : index
    %81 = vector.load %arg6[%c1_48, %c0_49, %c0_50] : memref<8x2x32xf32, #tpu.memory_space<vmem>>, vector<1x2x32xf32>
    %82 = vector.shape_cast %81 : vector<1x2x32xf32> to vector<2x32xf32>
    %83 = vector.shape_cast %80 : vector<2x32xf32> to vector<1x2x32xf32>
    tpu.vector_store %arg6[%c1_48, %c0_49, %c0_50], %83 {strides = array<i32>} : memref<8x2x32xf32, #tpu.memory_space<vmem>>, vector<1x2x32xf32>,
    %84 = vector.extract_strided_slice %79 {offsets = [0, 32], sizes = [2, 32], strides = [1, 1]} : vector<2x64xf32> to vector<2x32xf32>
    %c6 = arith.constant 6 : index
    %c0_51 = arith.constant 0 : index
    %c0_52 = arith.constant 0 : index
    %85 = vector.load %arg7[%c6, %c0_51, %c0_52] : memref<8x2x32xf32, #tpu.memory_space<vmem>>, vector<1x2x32xf32>
    %86 = vector.shape_cast %85 : vector<1x2x32xf32> to vector<2x32xf32>
    %87 = vector.shape_cast %84 : vector<2x32xf32> to vector<1x2x32xf32>
    tpu.vector_store %arg7[%c6, %c0_51, %c0_52], %87 {strides = array<i32>} : memref<8x2x32xf32, #tpu.memory_space<vmem>>, vector<1x2x32xf32>,
    %88 = arith.truncf %79 : vector<2x64xf32> to vector<2x64xbf16>
    %cst_53 = arith.constant dense<0.000000e+00> : vector<2x64xf32>
    %89 = tpu.matmul %88, %3, %cst_53 {dimension_numbers = #tpu.dot_dimension_numbers<[1], [0], [0], [1], [0, 0, 1, 1], [], []>} : vector<2x64xbf16>, vector<64x64xbf16>, vector<2x64xf32> -> vector<2x64xf32>
    %cst_54 = arith.constant dense<0.000000e+00> : vector<2x64xf32>
    %90 = tpu.matmul %88, %4, %cst_54 {dimension_numbers = #tpu.dot_dimension_numbers<[1], [0], [0], [1], [0, 0, 1, 1], [], []>} : vector<2x64xbf16>, vector<64x64xbf16>, vector<2x64xf32> -> vector<2x64xf32>
    %cst_55 = arith.constant dense<0.000000e+00> : vector<2x64xf32>
    %91 = tpu.matmul %88, %5, %cst_55 {dimension_numbers = #tpu.dot_dimension_numbers<[1], [0], [0], [1], [0, 0, 1, 1], [], []>} : vector<2x64xbf16>, vector<64x64xbf16>, vector<2x64xf32> -> vector<2x64xf32>
    %92 = vector.broadcast %6 : vector<1x64xf32> to vector<2x64xf32>
    %93 = arith.addf %91, %92 : vector<2x64xf32>
    %c0_56 = arith.constant 0 : index
    %c2_57 = arith.constant 2 : index
    %c0_58 = arith.constant 0 : index
    %c0_59 = arith.constant 0 : index
    %94 = vector.load %arg1[%c0_56, %c2_57, %c0_58, %c0_59] : memref<3x8x2x64xf32, #tpu.memory_space<vmem>>, vector<1x1x2x64xf32>
    %95 = vector.shape_cast %94 : vector<1x1x2x64xf32> to vector<2x64xf32>
    %96 = arith.addf %95, %89 : vector<2x64xf32>
    %97 = arith.negf %96 : vector<2x64xf32>
    %98 = math.exp %97 : vector<2x64xf32>
    %cst_60 = arith.constant 1.000000e+00 : f32
    %99 = vector.broadcast %cst_60 : f32 to vector<2x64xf32>
    %100 = arith.addf %99, %98 : vector<2x64xf32>
    %101 = arith.divf %99, %100 : vector<2x64xf32>
    %c1_61 = arith.constant 1 : index
    %c2_62 = arith.constant 2 : index
    %c0_63 = arith.constant 0 : index
    %c0_64 = arith.constant 0 : index
    %102 = vector.load %arg1[%c1_61, %c2_62, %c0_63, %c0_64] : memref<3x8x2x64xf32, #tpu.memory_space<vmem>>, vector<1x1x2x64xf32>
    %103 = vector.shape_cast %102 : vector<1x1x2x64xf32> to vector<2x64xf32>
    %104 = arith.addf %103, %90 : vector<2x64xf32>
    %105 = arith.negf %104 : vector<2x64xf32>
    %106 = math.exp %105 : vector<2x64xf32>
    %cst_65 = arith.constant 1.000000e+00 : f32
    %107 = vector.broadcast %cst_65 : f32 to vector<2x64xf32>
    %108 = arith.addf %107, %106 : vector<2x64xf32>
    %109 = arith.divf %107, %108 : vector<2x64xf32>
    %c2_66 = arith.constant 2 : index
    %c2_67 = arith.constant 2 : index
    %c0_68 = arith.constant 0 : index
    %c0_69 = arith.constant 0 : index
    %110 = vector.load %arg1[%c2_66, %c2_67, %c0_68, %c0_69] : memref<3x8x2x64xf32, #tpu.memory_space<vmem>>, vector<1x1x2x64xf32>
    %111 = vector.shape_cast %110 : vector<1x1x2x64xf32> to vector<2x64xf32>
    %112 = arith.mulf %101, %93 : vector<2x64xf32>
    %113 = arith.addf %111, %112 : vector<2x64xf32>
    %114 = math.tanh %113 : vector<2x64xf32>
    %cst_70 = arith.constant 1.000000e+00 : f32
    %115 = vector.broadcast %cst_70 : f32 to vector<2x64xf32>
    %116 = arith.subf %115, %109 : vector<2x64xf32>
    %117 = arith.mulf %116, %114 : vector<2x64xf32>
    %118 = arith.mulf %109, %79 : vector<2x64xf32>
    %119 = arith.addf %117, %118 : vector<2x64xf32>
    %120 = vector.extract_strided_slice %119 {offsets = [0, 0], sizes = [2, 32], strides = [1, 1]} : vector<2x64xf32> to vector<2x32xf32>
    %c2_71 = arith.constant 2 : index
    %c0_72 = arith.constant 0 : index
    %c0_73 = arith.constant 0 : index
    %121 = vector.load %arg6[%c2_71, %c0_72, %c0_73] : memref<8x2x32xf32, #tpu.memory_space<vmem>>, vector<1x2x32xf32>
    %122 = vector.shape_cast %121 : vector<1x2x32xf32> to vector<2x32xf32>
    %123 = vector.shape_cast %120 : vector<2x32xf32> to vector<1x2x32xf32>
    tpu.vector_store %arg6[%c2_71, %c0_72, %c0_73], %123 {strides = array<i32>} : memref<8x2x32xf32, #tpu.memory_space<vmem>>, vector<1x2x32xf32>,
    %124 = vector.extract_strided_slice %119 {offsets = [0, 32], sizes = [2, 32], strides = [1, 1]} : vector<2x64xf32> to vector<2x32xf32>
    %c5 = arith.constant 5 : index
    %c0_74 = arith.constant 0 : index
    %c0_75 = arith.constant 0 : index
    %125 = vector.load %arg7[%c5, %c0_74, %c0_75] : memref<8x2x32xf32, #tpu.memory_space<vmem>>, vector<1x2x32xf32>
    %126 = vector.shape_cast %125 : vector<1x2x32xf32> to vector<2x32xf32>
    %127 = vector.shape_cast %124 : vector<2x32xf32> to vector<1x2x32xf32>
    tpu.vector_store %arg7[%c5, %c0_74, %c0_75], %127 {strides = array<i32>} : memref<8x2x32xf32, #tpu.memory_space<vmem>>, vector<1x2x32xf32>,
    %128 = arith.truncf %119 : vector<2x64xf32> to vector<2x64xbf16>
    %cst_76 = arith.constant dense<0.000000e+00> : vector<2x64xf32>
    %129 = tpu.matmul %128, %3, %cst_76 {dimension_numbers = #tpu.dot_dimension_numbers<[1], [0], [0], [1], [0, 0, 1, 1], [], []>} : vector<2x64xbf16>, vector<64x64xbf16>, vector<2x64xf32> -> vector<2x64xf32>
    %cst_77 = arith.constant dense<0.000000e+00> : vector<2x64xf32>
    %130 = tpu.matmul %128, %4, %cst_77 {dimension_numbers = #tpu.dot_dimension_numbers<[1], [0], [0], [1], [0, 0, 1, 1], [], []>} : vector<2x64xbf16>, vector<64x64xbf16>, vector<2x64xf32> -> vector<2x64xf32>
    %cst_78 = arith.constant dense<0.000000e+00> : vector<2x64xf32>
    %131 = tpu.matmul %128, %5, %cst_78 {dimension_numbers = #tpu.dot_dimension_numbers<[1], [0], [0], [1], [0, 0, 1, 1], [], []>} : vector<2x64xbf16>, vector<64x64xbf16>, vector<2x64xf32> -> vector<2x64xf32>
    %132 = vector.broadcast %6 : vector<1x64xf32> to vector<2x64xf32>
    %133 = arith.addf %131, %132 : vector<2x64xf32>
    %c0_79 = arith.constant 0 : index
    %c3 = arith.constant 3 : index
    %c0_80 = arith.constant 0 : index
    %c0_81 = arith.constant 0 : index
    %134 = vector.load %arg1[%c0_79, %c3, %c0_80, %c0_81] : memref<3x8x2x64xf32, #tpu.memory_space<vmem>>, vector<1x1x2x64xf32>
    %135 = vector.shape_cast %134 : vector<1x1x2x64xf32> to vector<2x64xf32>
    %136 = arith.addf %135, %129 : vector<2x64xf32>
    %137 = arith.negf %136 : vector<2x64xf32>
    %138 = math.exp %137 : vector<2x64xf32>
    %cst_82 = arith.constant 1.000000e+00 : f32
    %139 = vector.broadcast %cst_82 : f32 to vector<2x64xf32>
    %140 = arith.addf %139, %138 : vector<2x64xf32>
    %141 = arith.divf %139, %140 : vector<2x64xf32>
    %c1_83 = arith.constant 1 : index
    %c3_84 = arith.constant 3 : index
    %c0_85 = arith.constant 0 : index
    %c0_86 = arith.constant 0 : index
    %142 = vector.load %arg1[%c1_83, %c3_84, %c0_85, %c0_86] : memref<3x8x2x64xf32, #tpu.memory_space<vmem>>, vector<1x1x2x64xf32>
    %143 = vector.shape_cast %142 : vector<1x1x2x64xf32> to vector<2x64xf32>
    %144 = arith.addf %143, %130 : vector<2x64xf32>
    %145 = arith.negf %144 : vector<2x64xf32>
    %146 = math.exp %145 : vector<2x64xf32>
    %cst_87 = arith.constant 1.000000e+00 : f32
    %147 = vector.broadcast %cst_87 : f32 to vector<2x64xf32>
    %148 = arith.addf %147, %146 : vector<2x64xf32>
    %149 = arith.divf %147, %148 : vector<2x64xf32>
    %c2_88 = arith.constant 2 : index
    %c3_89 = arith.constant 3 : index
    %c0_90 = arith.constant 0 : index
    %c0_91 = arith.constant 0 : index
    %150 = vector.load %arg1[%c2_88, %c3_89, %c0_90, %c0_91] : memref<3x8x2x64xf32, #tpu.memory_space<vmem>>, vector<1x1x2x64xf32>
    %151 = vector.shape_cast %150 : vector<1x1x2x64xf32> to vector<2x64xf32>
    %152 = arith.mulf %141, %133 : vector<2x64xf32>
    %153 = arith.addf %151, %152 : vector<2x64xf32>
    %154 = math.tanh %153 : vector<2x64xf32>
    %cst_92 = arith.constant 1.000000e+00 : f32
    %155 = vector.broadcast %cst_92 : f32 to vector<2x64xf32>
    %156 = arith.subf %155, %149 : vector<2x64xf32>
    %157 = arith.mulf %156, %154 : vector<2x64xf32>
    %158 = arith.mulf %149, %119 : vector<2x64xf32>
    %159 = arith.addf %157, %158 : vector<2x64xf32>
    %160 = vector.extract_strided_slice %159 {offsets = [0, 0], sizes = [2, 32], strides = [1, 1]} : vector<2x64xf32> to vector<2x32xf32>
    %c3_93 = arith.constant 3 : index
    %c0_94 = arith.constant 0 : index
    %c0_95 = arith.constant 0 : index
    %161 = vector.load %arg6[%c3_93, %c0_94, %c0_95] : memref<8x2x32xf32, #tpu.memory_space<vmem>>, vector<1x2x32xf32>
    %162 = vector.shape_cast %161 : vector<1x2x32xf32> to vector<2x32xf32>
    %163 = vector.shape_cast %160 : vector<2x32xf32> to vector<1x2x32xf32>
    tpu.vector_store %arg6[%c3_93, %c0_94, %c0_95], %163 {strides = array<i32>} : memref<8x2x32xf32, #tpu.memory_space<vmem>>, vector<1x2x32xf32>,
    %164 = vector.extract_strided_slice %159 {offsets = [0, 32], sizes = [2, 32], strides = [1, 1]} : vector<2x64xf32> to vector<2x32xf32>
    %c4 = arith.constant 4 : index
    %c0_96 = arith.constant 0 : index
    %c0_97 = arith.constant 0 : index
    %165 = vector.load %arg7[%c4, %c0_96, %c0_97] : memref<8x2x32xf32, #tpu.memory_space<vmem>>, vector<1x2x32xf32>
    %166 = vector.shape_cast %165 : vector<1x2x32xf32> to vector<2x32xf32>
    %167 = vector.shape_cast %164 : vector<2x32xf32> to vector<1x2x32xf32>
    tpu.vector_store %arg7[%c4, %c0_96, %c0_97], %167 {strides = array<i32>} : memref<8x2x32xf32, #tpu.memory_space<vmem>>, vector<1x2x32xf32>,
    %168 = arith.truncf %159 : vector<2x64xf32> to vector<2x64xbf16>
    %cst_98 = arith.constant dense<0.000000e+00> : vector<2x64xf32>
    %169 = tpu.matmul %168, %3, %cst_98 {dimension_numbers = #tpu.dot_dimension_numbers<[1], [0], [0], [1], [0, 0, 1, 1], [], []>} : vector<2x64xbf16>, vector<64x64xbf16>, vector<2x64xf32> -> vector<2x64xf32>
    %cst_99 = arith.constant dense<0.000000e+00> : vector<2x64xf32>
    %170 = tpu.matmul %168, %4, %cst_99 {dimension_numbers = #tpu.dot_dimension_numbers<[1], [0], [0], [1], [0, 0, 1, 1], [], []>} : vector<2x64xbf16>, vector<64x64xbf16>, vector<2x64xf32> -> vector<2x64xf32>
    %cst_100 = arith.constant dense<0.000000e+00> : vector<2x64xf32>
    %171 = tpu.matmul %168, %5, %cst_100 {dimension_numbers = #tpu.dot_dimension_numbers<[1], [0], [0], [1], [0, 0, 1, 1], [], []>} : vector<2x64xbf16>, vector<64x64xbf16>, vector<2x64xf32> -> vector<2x64xf32>
    %172 = vector.broadcast %6 : vector<1x64xf32> to vector<2x64xf32>
    %173 = arith.addf %171, %172 : vector<2x64xf32>
    %c0_101 = arith.constant 0 : index
    %c4_102 = arith.constant 4 : index
    %c0_103 = arith.constant 0 : index
    %c0_104 = arith.constant 0 : index
    %174 = vector.load %arg1[%c0_101, %c4_102, %c0_103, %c0_104] : memref<3x8x2x64xf32, #tpu.memory_space<vmem>>, vector<1x1x2x64xf32>
    %175 = vector.shape_cast %174 : vector<1x1x2x64xf32> to vector<2x64xf32>
    %176 = arith.addf %175, %169 : vector<2x64xf32>
    %177 = arith.negf %176 : vector<2x64xf32>
    %178 = math.exp %177 : vector<2x64xf32>
    %cst_105 = arith.constant 1.000000e+00 : f32
    %179 = vector.broadcast %cst_105 : f32 to vector<2x64xf32>
    %180 = arith.addf %179, %178 : vector<2x64xf32>
    %181 = arith.divf %179, %180 : vector<2x64xf32>
    %c1_106 = arith.constant 1 : index
    %c4_107 = arith.constant 4 : index
    %c0_108 = arith.constant 0 : index
    %c0_109 = arith.constant 0 : index
    %182 = vector.load %arg1[%c1_106, %c4_107, %c0_108, %c0_109] : memref<3x8x2x64xf32, #tpu.memory_space<vmem>>, vector<1x1x2x64xf32>
    %183 = vector.shape_cast %182 : vector<1x1x2x64xf32> to vector<2x64xf32>
    %184 = arith.addf %183, %170 : vector<2x64xf32>
    %185 = arith.negf %184 : vector<2x64xf32>
    %186 = math.exp %185 : vector<2x64xf32>
    %cst_110 = arith.constant 1.000000e+00 : f32
    %187 = vector.broadcast %cst_110 : f32 to vector<2x64xf32>
    %188 = arith.addf %187, %186 : vector<2x64xf32>
    %189 = arith.divf %187, %188 : vector<2x64xf32>
    %c2_111 = arith.constant 2 : index
    %c4_112 = arith.constant 4 : index
    %c0_113 = arith.constant 0 : index
    %c0_114 = arith.constant 0 : index
    %190 = vector.load %arg1[%c2_111, %c4_112, %c0_113, %c0_114] : memref<3x8x2x64xf32, #tpu.memory_space<vmem>>, vector<1x1x2x64xf32>
    %191 = vector.shape_cast %190 : vector<1x1x2x64xf32> to vector<2x64xf32>
    %192 = arith.mulf %181, %173 : vector<2x64xf32>
    %193 = arith.addf %191, %192 : vector<2x64xf32>
    %194 = math.tanh %193 : vector<2x64xf32>
    %cst_115 = arith.constant 1.000000e+00 : f32
    %195 = vector.broadcast %cst_115 : f32 to vector<2x64xf32>
    %196 = arith.subf %195, %189 : vector<2x64xf32>
    %197 = arith.mulf %196, %194 : vector<2x64xf32>
    %198 = arith.mulf %189, %159 : vector<2x64xf32>
    %199 = arith.addf %197, %198 : vector<2x64xf32>
    %200 = vector.extract_strided_slice %199 {offsets = [0, 0], sizes = [2, 32], strides = [1, 1]} : vector<2x64xf32> to vector<2x32xf32>
    %c4_116 = arith.constant 4 : index
    %c0_117 = arith.constant 0 : index
    %c0_118 = arith.constant 0 : index
    %201 = vector.load %arg6[%c4_116, %c0_117, %c0_118] : memref<8x2x32xf32, #tpu.memory_space<vmem>>, vector<1x2x32xf32>
    %202 = vector.shape_cast %201 : vector<1x2x32xf32> to vector<2x32xf32>
    %203 = vector.shape_cast %200 : vector<2x32xf32> to vector<1x2x32xf32>
    tpu.vector_store %arg6[%c4_116, %c0_117, %c0_118], %203 {strides = array<i32>} : memref<8x2x32xf32, #tpu.memory_space<vmem>>, vector<1x2x32xf32>,
    %204 = vector.extract_strided_slice %199 {offsets = [0, 32], sizes = [2, 32], strides = [1, 1]} : vector<2x64xf32> to vector<2x32xf32>
    %c3_119 = arith.constant 3 : index
    %c0_120 = arith.constant 0 : index
    %c0_121 = arith.constant 0 : index
    %205 = vector.load %arg7[%c3_119, %c0_120, %c0_121] : memref<8x2x32xf32, #tpu.memory_space<vmem>>, vector<1x2x32xf32>
    %206 = vector.shape_cast %205 : vector<1x2x32xf32> to vector<2x32xf32>
    %207 = vector.shape_cast %204 : vector<2x32xf32> to vector<1x2x32xf32>
    tpu.vector_store %arg7[%c3_119, %c0_120, %c0_121], %207 {strides = array<i32>} : memref<8x2x32xf32, #tpu.memory_space<vmem>>, vector<1x2x32xf32>,
    %208 = arith.truncf %199 : vector<2x64xf32> to vector<2x64xbf16>
    %cst_122 = arith.constant dense<0.000000e+00> : vector<2x64xf32>
    %209 = tpu.matmul %208, %3, %cst_122 {dimension_numbers = #tpu.dot_dimension_numbers<[1], [0], [0], [1], [0, 0, 1, 1], [], []>} : vector<2x64xbf16>, vector<64x64xbf16>, vector<2x64xf32> -> vector<2x64xf32>
    %cst_123 = arith.constant dense<0.000000e+00> : vector<2x64xf32>
    %210 = tpu.matmul %208, %4, %cst_123 {dimension_numbers = #tpu.dot_dimension_numbers<[1], [0], [0], [1], [0, 0, 1, 1], [], []>} : vector<2x64xbf16>, vector<64x64xbf16>, vector<2x64xf32> -> vector<2x64xf32>
    %cst_124 = arith.constant dense<0.000000e+00> : vector<2x64xf32>
    %211 = tpu.matmul %208, %5, %cst_124 {dimension_numbers = #tpu.dot_dimension_numbers<[1], [0], [0], [1], [0, 0, 1, 1], [], []>} : vector<2x64xbf16>, vector<64x64xbf16>, vector<2x64xf32> -> vector<2x64xf32>
    %212 = vector.broadcast %6 : vector<1x64xf32> to vector<2x64xf32>
    %213 = arith.addf %211, %212 : vector<2x64xf32>
    %c0_125 = arith.constant 0 : index
    %c5_126 = arith.constant 5 : index
    %c0_127 = arith.constant 0 : index
    %c0_128 = arith.constant 0 : index
    %214 = vector.load %arg1[%c0_125, %c5_126, %c0_127, %c0_128] : memref<3x8x2x64xf32, #tpu.memory_space<vmem>>, vector<1x1x2x64xf32>
    %215 = vector.shape_cast %214 : vector<1x1x2x64xf32> to vector<2x64xf32>
    %216 = arith.addf %215, %209 : vector<2x64xf32>
    %217 = arith.negf %216 : vector<2x64xf32>
    %218 = math.exp %217 : vector<2x64xf32>
    %cst_129 = arith.constant 1.000000e+00 : f32
    %219 = vector.broadcast %cst_129 : f32 to vector<2x64xf32>
    %220 = arith.addf %219, %218 : vector<2x64xf32>
    %221 = arith.divf %219, %220 : vector<2x64xf32>
    %c1_130 = arith.constant 1 : index
    %c5_131 = arith.constant 5 : index
    %c0_132 = arith.constant 0 : index
    %c0_133 = arith.constant 0 : index
    %222 = vector.load %arg1[%c1_130, %c5_131, %c0_132, %c0_133] : memref<3x8x2x64xf32, #tpu.memory_space<vmem>>, vector<1x1x2x64xf32>
    %223 = vector.shape_cast %222 : vector<1x1x2x64xf32> to vector<2x64xf32>
    %224 = arith.addf %223, %210 : vector<2x64xf32>
    %225 = arith.negf %224 : vector<2x64xf32>
    %226 = math.exp %225 : vector<2x64xf32>
    %cst_134 = arith.constant 1.000000e+00 : f32
    %227 = vector.broadcast %cst_134 : f32 to vector<2x64xf32>
    %228 = arith.addf %227, %226 : vector<2x64xf32>
    %229 = arith.divf %227, %228 : vector<2x64xf32>
    %c2_135 = arith.constant 2 : index
    %c5_136 = arith.constant 5 : index
    %c0_137 = arith.constant 0 : index
    %c0_138 = arith.constant 0 : index
    %230 = vector.load %arg1[%c2_135, %c5_136, %c0_137, %c0_138] : memref<3x8x2x64xf32, #tpu.memory_space<vmem>>, vector<1x1x2x64xf32>
    %231 = vector.shape_cast %230 : vector<1x1x2x64xf32> to vector<2x64xf32>
    %232 = arith.mulf %221, %213 : vector<2x64xf32>
    %233 = arith.addf %231, %232 : vector<2x64xf32>
    %234 = math.tanh %233 : vector<2x64xf32>
    %cst_139 = arith.constant 1.000000e+00 : f32
    %235 = vector.broadcast %cst_139 : f32 to vector<2x64xf32>
    %236 = arith.subf %235, %229 : vector<2x64xf32>
    %237 = arith.mulf %236, %234 : vector<2x64xf32>
    %238 = arith.mulf %229, %199 : vector<2x64xf32>
    %239 = arith.addf %237, %238 : vector<2x64xf32>
    %240 = vector.extract_strided_slice %239 {offsets = [0, 0], sizes = [2, 32], strides = [1, 1]} : vector<2x64xf32> to vector<2x32xf32>
    %c5_140 = arith.constant 5 : index
    %c0_141 = arith.constant 0 : index
    %c0_142 = arith.constant 0 : index
    %241 = vector.load %arg6[%c5_140, %c0_141, %c0_142] : memref<8x2x32xf32, #tpu.memory_space<vmem>>, vector<1x2x32xf32>
    %242 = vector.shape_cast %241 : vector<1x2x32xf32> to vector<2x32xf32>
    %243 = vector.shape_cast %240 : vector<2x32xf32> to vector<1x2x32xf32>
    tpu.vector_store %arg6[%c5_140, %c0_141, %c0_142], %243 {strides = array<i32>} : memref<8x2x32xf32, #tpu.memory_space<vmem>>, vector<1x2x32xf32>,
    %244 = vector.extract_strided_slice %239 {offsets = [0, 32], sizes = [2, 32], strides = [1, 1]} : vector<2x64xf32> to vector<2x32xf32>
    %c2_143 = arith.constant 2 : index
    %c0_144 = arith.constant 0 : index
    %c0_145 = arith.constant 0 : index
    %245 = vector.load %arg7[%c2_143, %c0_144, %c0_145] : memref<8x2x32xf32, #tpu.memory_space<vmem>>, vector<1x2x32xf32>
    %246 = vector.shape_cast %245 : vector<1x2x32xf32> to vector<2x32xf32>
    %247 = vector.shape_cast %244 : vector<2x32xf32> to vector<1x2x32xf32>
    tpu.vector_store %arg7[%c2_143, %c0_144, %c0_145], %247 {strides = array<i32>} : memref<8x2x32xf32, #tpu.memory_space<vmem>>, vector<1x2x32xf32>,
    %248 = arith.truncf %239 : vector<2x64xf32> to vector<2x64xbf16>
    %cst_146 = arith.constant dense<0.000000e+00> : vector<2x64xf32>
    %249 = tpu.matmul %248, %3, %cst_146 {dimension_numbers = #tpu.dot_dimension_numbers<[1], [0], [0], [1], [0, 0, 1, 1], [], []>} : vector<2x64xbf16>, vector<64x64xbf16>, vector<2x64xf32> -> vector<2x64xf32>
    %cst_147 = arith.constant dense<0.000000e+00> : vector<2x64xf32>
    %250 = tpu.matmul %248, %4, %cst_147 {dimension_numbers = #tpu.dot_dimension_numbers<[1], [0], [0], [1], [0, 0, 1, 1], [], []>} : vector<2x64xbf16>, vector<64x64xbf16>, vector<2x64xf32> -> vector<2x64xf32>
    %cst_148 = arith.constant dense<0.000000e+00> : vector<2x64xf32>
    %251 = tpu.matmul %248, %5, %cst_148 {dimension_numbers = #tpu.dot_dimension_numbers<[1], [0], [0], [1], [0, 0, 1, 1], [], []>} : vector<2x64xbf16>, vector<64x64xbf16>, vector<2x64xf32> -> vector<2x64xf32>
    %252 = vector.broadcast %6 : vector<1x64xf32> to vector<2x64xf32>
    %253 = arith.addf %251, %252 : vector<2x64xf32>
    %c0_149 = arith.constant 0 : index
    %c6_150 = arith.constant 6 : index
    %c0_151 = arith.constant 0 : index
    %c0_152 = arith.constant 0 : index
    %254 = vector.load %arg1[%c0_149, %c6_150, %c0_151, %c0_152] : memref<3x8x2x64xf32, #tpu.memory_space<vmem>>, vector<1x1x2x64xf32>
    %255 = vector.shape_cast %254 : vector<1x1x2x64xf32> to vector<2x64xf32>
    %256 = arith.addf %255, %249 : vector<2x64xf32>
    %257 = arith.negf %256 : vector<2x64xf32>
    %258 = math.exp %257 : vector<2x64xf32>
    %cst_153 = arith.constant 1.000000e+00 : f32
    %259 = vector.broadcast %cst_153 : f32 to vector<2x64xf32>
    %260 = arith.addf %259, %258 : vector<2x64xf32>
    %261 = arith.divf %259, %260 : vector<2x64xf32>
    %c1_154 = arith.constant 1 : index
    %c6_155 = arith.constant 6 : index
    %c0_156 = arith.constant 0 : index
    %c0_157 = arith.constant 0 : index
    %262 = vector.load %arg1[%c1_154, %c6_155, %c0_156, %c0_157] : memref<3x8x2x64xf32, #tpu.memory_space<vmem>>, vector<1x1x2x64xf32>
    %263 = vector.shape_cast %262 : vector<1x1x2x64xf32> to vector<2x64xf32>
    %264 = arith.addf %263, %250 : vector<2x64xf32>
    %265 = arith.negf %264 : vector<2x64xf32>
    %266 = math.exp %265 : vector<2x64xf32>
    %cst_158 = arith.constant 1.000000e+00 : f32
    %267 = vector.broadcast %cst_158 : f32 to vector<2x64xf32>
    %268 = arith.addf %267, %266 : vector<2x64xf32>
    %269 = arith.divf %267, %268 : vector<2x64xf32>
    %c2_159 = arith.constant 2 : index
    %c6_160 = arith.constant 6 : index
    %c0_161 = arith.constant 0 : index
    %c0_162 = arith.constant 0 : index
    %270 = vector.load %arg1[%c2_159, %c6_160, %c0_161, %c0_162] : memref<3x8x2x64xf32, #tpu.memory_space<vmem>>, vector<1x1x2x64xf32>
    %271 = vector.shape_cast %270 : vector<1x1x2x64xf32> to vector<2x64xf32>
    %272 = arith.mulf %261, %253 : vector<2x64xf32>
    %273 = arith.addf %271, %272 : vector<2x64xf32>
    %274 = math.tanh %273 : vector<2x64xf32>
    %cst_163 = arith.constant 1.000000e+00 : f32
    %275 = vector.broadcast %cst_163 : f32 to vector<2x64xf32>
    %276 = arith.subf %275, %269 : vector<2x64xf32>
    %277 = arith.mulf %276, %274 : vector<2x64xf32>
    %278 = arith.mulf %269, %239 : vector<2x64xf32>
    %279 = arith.addf %277, %278 : vector<2x64xf32>
    %280 = vector.extract_strided_slice %279 {offsets = [0, 0], sizes = [2, 32], strides = [1, 1]} : vector<2x64xf32> to vector<2x32xf32>
    %c6_164 = arith.constant 6 : index
    %c0_165 = arith.constant 0 : index
    %c0_166 = arith.constant 0 : index
    %281 = vector.load %arg6[%c6_164, %c0_165, %c0_166] : memref<8x2x32xf32, #tpu.memory_space<vmem>>, vector<1x2x32xf32>
    %282 = vector.shape_cast %281 : vector<1x2x32xf32> to vector<2x32xf32>
    %283 = vector.shape_cast %280 : vector<2x32xf32> to vector<1x2x32xf32>
    tpu.vector_store %arg6[%c6_164, %c0_165, %c0_166], %283 {strides = array<i32>} : memref<8x2x32xf32, #tpu.memory_space<vmem>>, vector<1x2x32xf32>,
    %284 = vector.extract_strided_slice %279 {offsets = [0, 32], sizes = [2, 32], strides = [1, 1]} : vector<2x64xf32> to vector<2x32xf32>
    %c1_167 = arith.constant 1 : index
    %c0_168 = arith.constant 0 : index
    %c0_169 = arith.constant 0 : index
    %285 = vector.load %arg7[%c1_167, %c0_168, %c0_169] : memref<8x2x32xf32, #tpu.memory_space<vmem>>, vector<1x2x32xf32>
    %286 = vector.shape_cast %285 : vector<1x2x32xf32> to vector<2x32xf32>
    %287 = vector.shape_cast %284 : vector<2x32xf32> to vector<1x2x32xf32>
    tpu.vector_store %arg7[%c1_167, %c0_168, %c0_169], %287 {strides = array<i32>} : memref<8x2x32xf32, #tpu.memory_space<vmem>>, vector<1x2x32xf32>,
    %288 = arith.truncf %279 : vector<2x64xf32> to vector<2x64xbf16>
    %cst_170 = arith.constant dense<0.000000e+00> : vector<2x64xf32>
    %289 = tpu.matmul %288, %3, %cst_170 {dimension_numbers = #tpu.dot_dimension_numbers<[1], [0], [0], [1], [0, 0, 1, 1], [], []>} : vector<2x64xbf16>, vector<64x64xbf16>, vector<2x64xf32> -> vector<2x64xf32>
    %cst_171 = arith.constant dense<0.000000e+00> : vector<2x64xf32>
    %290 = tpu.matmul %288, %4, %cst_171 {dimension_numbers = #tpu.dot_dimension_numbers<[1], [0], [0], [1], [0, 0, 1, 1], [], []>} : vector<2x64xbf16>, vector<64x64xbf16>, vector<2x64xf32> -> vector<2x64xf32>
    %cst_172 = arith.constant dense<0.000000e+00> : vector<2x64xf32>
    %291 = tpu.matmul %288, %5, %cst_172 {dimension_numbers = #tpu.dot_dimension_numbers<[1], [0], [0], [1], [0, 0, 1, 1], [], []>} : vector<2x64xbf16>, vector<64x64xbf16>, vector<2x64xf32> -> vector<2x64xf32>
    %292 = vector.broadcast %6 : vector<1x64xf32> to vector<2x64xf32>
    %293 = arith.addf %291, %292 : vector<2x64xf32>
    %c0_173 = arith.constant 0 : index
    %c7_174 = arith.constant 7 : index
    %c0_175 = arith.constant 0 : index
    %c0_176 = arith.constant 0 : index
    %294 = vector.load %arg1[%c0_173, %c7_174, %c0_175, %c0_176] : memref<3x8x2x64xf32, #tpu.memory_space<vmem>>, vector<1x1x2x64xf32>
    %295 = vector.shape_cast %294 : vector<1x1x2x64xf32> to vector<2x64xf32>
    %296 = arith.addf %295, %289 : vector<2x64xf32>
    %297 = arith.negf %296 : vector<2x64xf32>
    %298 = math.exp %297 : vector<2x64xf32>
    %cst_177 = arith.constant 1.000000e+00 : f32
    %299 = vector.broadcast %cst_177 : f32 to vector<2x64xf32>
    %300 = arith.addf %299, %298 : vector<2x64xf32>
    %301 = arith.divf %299, %300 : vector<2x64xf32>
    %c1_178 = arith.constant 1 : index
    %c7_179 = arith.constant 7 : index
    %c0_180 = arith.constant 0 : index
    %c0_181 = arith.constant 0 : index
    %302 = vector.load %arg1[%c1_178, %c7_179, %c0_180, %c0_181] : memref<3x8x2x64xf32, #tpu.memory_space<vmem>>, vector<1x1x2x64xf32>
    %303 = vector.shape_cast %302 : vector<1x1x2x64xf32> to vector<2x64xf32>
    %304 = arith.addf %303, %290 : vector<2x64xf32>
    %305 = arith.negf %304 : vector<2x64xf32>
    %306 = math.exp %305 : vector<2x64xf32>
    %cst_182 = arith.constant 1.000000e+00 : f32
    %307 = vector.broadcast %cst_182 : f32 to vector<2x64xf32>
    %308 = arith.addf %307, %306 : vector<2x64xf32>
    %309 = arith.divf %307, %308 : vector<2x64xf32>
    %c2_183 = arith.constant 2 : index
    %c7_184 = arith.constant 7 : index
    %c0_185 = arith.constant 0 : index
    %c0_186 = arith.constant 0 : index
    %310 = vector.load %arg1[%c2_183, %c7_184, %c0_185, %c0_186] : memref<3x8x2x64xf32, #tpu.memory_space<vmem>>, vector<1x1x2x64xf32>
    %311 = vector.shape_cast %310 : vector<1x1x2x64xf32> to vector<2x64xf32>
    %312 = arith.mulf %301, %293 : vector<2x64xf32>
    %313 = arith.addf %311, %312 : vector<2x64xf32>
    %314 = math.tanh %313 : vector<2x64xf32>
    %cst_187 = arith.constant 1.000000e+00 : f32
    %315 = vector.broadcast %cst_187 : f32 to vector<2x64xf32>
    %316 = arith.subf %315, %309 : vector<2x64xf32>
    %317 = arith.mulf %316, %314 : vector<2x64xf32>
    %318 = arith.mulf %309, %279 : vector<2x64xf32>
    %319 = arith.addf %317, %318 : vector<2x64xf32>
    %320 = vector.extract_strided_slice %319 {offsets = [0, 0], sizes = [2, 32], strides = [1, 1]} : vector<2x64xf32> to vector<2x32xf32>
    %c7_188 = arith.constant 7 : index
    %c0_189 = arith.constant 0 : index
    %c0_190 = arith.constant 0 : index
    %321 = vector.load %arg6[%c7_188, %c0_189, %c0_190] : memref<8x2x32xf32, #tpu.memory_space<vmem>>, vector<1x2x32xf32>
    %322 = vector.shape_cast %321 : vector<1x2x32xf32> to vector<2x32xf32>
    %323 = vector.shape_cast %320 : vector<2x32xf32> to vector<1x2x32xf32>
    tpu.vector_store %arg6[%c7_188, %c0_189, %c0_190], %323 {strides = array<i32>} : memref<8x2x32xf32, #tpu.memory_space<vmem>>, vector<1x2x32xf32>,
    %324 = vector.extract_strided_slice %319 {offsets = [0, 32], sizes = [2, 32], strides = [1, 1]} : vector<2x64xf32> to vector<2x32xf32>
    %c0_191 = arith.constant 0 : index
    %c0_192 = arith.constant 0 : index
    %c0_193 = arith.constant 0 : index
    %325 = vector.load %arg7[%c0_191, %c0_192, %c0_193] : memref<8x2x32xf32, #tpu.memory_space<vmem>>, vector<1x2x32xf32>
    %326 = vector.shape_cast %325 : vector<1x2x32xf32> to vector<2x32xf32>
    %327 = vector.shape_cast %324 : vector<2x32xf32> to vector<1x2x32xf32>
    tpu.vector_store %arg7[%c0_191, %c0_192, %c0_193], %327 {strides = array<i32>} : memref<8x2x32xf32, #tpu.memory_space<vmem>>, vector<1x2x32xf32>,
    %c0_194 = arith.constant 0 : index
    %c0_195 = arith.constant 0 : index
    %328 = vector.load %arg9[%c0_194, %c0_195] : memref<2x64xf32, #tpu.memory_space<vmem>>, vector<2x64xf32>
    tpu.vector_store %arg9[%c0_194, %c0_195], %319 {strides = array<i32>} : memref<2x64xf32, #tpu.memory_space<vmem>>, vector<2x64xf32>,
    %c0_196 = arith.constant 0 : index
    %c0_197 = arith.constant 0 : index
    %329 = vector.load %arg8[%c0_196, %c0_197] : memref<2x64xf32, #tpu.memory_space<vmem>>, vector<2x64xf32>
    tpu.vector_store %arg8[%c0_196, %c0_197], %319 {strides = array<i32>} : memref<2x64xf32, #tpu.memory_space<vmem>>, vector<2x64xf32>,
    return
  }
  func.func @transform_0(%arg0: i32) -> (i32, i32, i32, i32) {
    %c0_i32 = arith.constant 0 : i32
    %c0_i32_0 = arith.constant 0 : i32
    %c0_i32_1 = arith.constant 0 : i32
    %c0_i32_2 = arith.constant 0 : i32
    return %c0_i32, %arg0, %c0_i32_0, %c0_i32_1 : i32, i32, i32, i32
  }
  func.func @transform_1(%arg0: i32) -> (i32, i32) {
    %c0_i32 = arith.constant 0 : i32
    %c0_i32_0 = arith.constant 0 : i32
    %c0_i32_1 = arith.constant 0 : i32
    return %c0_i32, %c0_i32_0 : i32, i32
  }
  func.func @transform_2(%arg0: i32) -> (i32, i32) {
    %c0_i32 = arith.constant 0 : i32
    %c0_i32_0 = arith.constant 0 : i32
    %c0_i32_1 = arith.constant 0 : i32
    return %c0_i32, %c0_i32_0 : i32, i32
  }
  func.func @transform_3(%arg0: i32) -> (i32, i32) {
    %c0_i32 = arith.constant 0 : i32
    %c0_i32_0 = arith.constant 0 : i32
    %c0_i32_1 = arith.constant 0 : i32
    return %c0_i32, %c0_i32_0 : i32, i32
  }
  func.func @transform_4(%arg0: i32) -> (i32, i32) {
    %c0_i32 = arith.constant 0 : i32
    %c0_i32_0 = arith.constant 0 : i32
    %c0_i32_1 = arith.constant 0 : i32
    return %c0_i32, %c0_i32_0 : i32, i32
  }
  func.func @transform_5(%arg0: i32) -> (i32, i32, i32) {
    %c0_i32 = arith.constant 0 : i32
    %c0_i32_0 = arith.constant 0 : i32
    %c0_i32_1 = arith.constant 0 : i32
    return %arg0, %c0_i32, %c0_i32_0 : i32, i32, i32
  }
  func.func @transform_6(%arg0: i32) -> (i32, i32, i32) {
    %c0_i32 = arith.constant 0 : i32
    %0 = arith.subi %c0_i32, %arg0 : i32
    %c0_i32_0 = arith.constant 0 : i32
    %c0_i32_1 = arith.constant 0 : i32
    %c0_i32_2 = arith.constant 0 : i32
    return %0, %c0_i32_0, %c0_i32_1 : i32, i32, i32
  }
  func.func @transform_7(%arg0: i32) -> (i32, i32) {
    %c0_i32 = arith.constant 0 : i32
    %c0_i32_0 = arith.constant 0 : i32
    %c0_i32_1 = arith.constant 0 : i32
    return %c0_i32, %c0_i32_0 : i32, i32
  }
}

module attributes {stable_mosaic.version = 11 : i64} {
  func.func @_bigru_kernel(%arg0: i32, %arg1: memref<3x16x2x64xf32, #tpu.memory_space<vmem>>, %arg2: memref<64x64xbf16, #tpu.memory_space<vmem>>, %arg3: memref<64x64xbf16, #tpu.memory_space<vmem>>, %arg4: memref<64x64xbf16, #tpu.memory_space<vmem>>, %arg5: memref<1x64xf32, #tpu.memory_space<vmem>>, %arg6: memref<16x2x32xf32, #tpu.memory_space<vmem>>, %arg7: memref<16x2x32xf32, #tpu.memory_space<vmem>>, %arg8: memref<2x64xf32, #tpu.memory_space<vmem>>, %arg9: memref<2x64xf32, #tpu.memory_space<vmem>>) attributes {dimension_semantics = [#tpu.dimension_semantics<arbitrary>], iteration_bounds = array<i64: 1>, scalar_prefetch = 0 : i64, scratch_operands = 1 : i64, tpu.core_type = #tpu.core_type<tc>, window_params = [{transform_indices = @transform_0, window_bounds = array<i64: 3, 16, 2, 64>}, {pipeline_mode = #tpu.pipeline_mode<synchronous>, transform_indices = @transform_1, window_bounds = array<i64: 64, 64>}, {pipeline_mode = #tpu.pipeline_mode<synchronous>, transform_indices = @transform_2, window_bounds = array<i64: 64, 64>}, {pipeline_mode = #tpu.pipeline_mode<synchronous>, transform_indices = @transform_3, window_bounds = array<i64: 64, 64>}, {pipeline_mode = #tpu.pipeline_mode<synchronous>, transform_indices = @transform_4, window_bounds = array<i64: 1, 64>}, {transform_indices = @transform_5, window_bounds = array<i64: 16, 2, 32>}, {transform_indices = @transform_6, window_bounds = array<i64: 16, 2, 32>}, {pipeline_mode = #tpu.pipeline_mode<synchronous>, transform_indices = @transform_7, window_bounds = array<i64: 2, 64>}]} {
    %c0_i32 = arith.constant 0 : i32
    %0 = arith.cmpi eq, %arg0, %c0_i32 : i32
    %1 = arith.extui %0 : i1 to i32
    %c0_i32_0 = arith.constant 0 : i32
    %2 = arith.cmpi ne, %1, %c0_i32_0 : i32
    scf.if %2 {
      %cst_382 = arith.constant 0.000000e+00 : f32
      %650 = vector.broadcast %cst_382 : f32 to vector<2x64xf32>
      %c0_383 = arith.constant 0 : index
      %c0_384 = arith.constant 0 : index
      %651 = vector.load %arg9[%c0_383, %c0_384] : memref<2x64xf32, #tpu.memory_space<vmem>>, vector<2x64xf32>
      tpu.vector_store %arg9[%c0_383, %c0_384], %650 {strides = array<i32>} : memref<2x64xf32, #tpu.memory_space<vmem>>, vector<2x64xf32>,
    } else {
    }
    %c0 = arith.constant 0 : index
    %c0_1 = arith.constant 0 : index
    %3 = vector.load %arg2[%c0, %c0_1] : memref<64x64xbf16, #tpu.memory_space<vmem>>, vector<64x64xbf16>
    %c0_2 = arith.constant 0 : index
    %c0_3 = arith.constant 0 : index
    %4 = vector.load %arg3[%c0_2, %c0_3] : memref<64x64xbf16, #tpu.memory_space<vmem>>, vector<64x64xbf16>
    %c0_4 = arith.constant 0 : index
    %c0_5 = arith.constant 0 : index
    %5 = vector.load %arg4[%c0_4, %c0_5] : memref<64x64xbf16, #tpu.memory_space<vmem>>, vector<64x64xbf16>
    %c0_6 = arith.constant 0 : index
    %c0_7 = arith.constant 0 : index
    %6 = vector.load %arg5[%c0_6, %c0_7] : memref<1x64xf32, #tpu.memory_space<vmem>>, vector<1x64xf32>
    %c0_8 = arith.constant 0 : index
    %c0_9 = arith.constant 0 : index
    %7 = vector.load %arg9[%c0_8, %c0_9] : memref<2x64xf32, #tpu.memory_space<vmem>>, vector<2x64xf32>
    %8 = arith.truncf %7 : vector<2x64xf32> to vector<2x64xbf16>
    %cst = arith.constant dense<0.000000e+00> : vector<2x64xf32>
    %9 = tpu.matmul %8, %3, %cst {dimension_numbers = #tpu.dot_dimension_numbers<[1], [0], [0], [1], [0, 0, 1, 1], [], []>} : vector<2x64xbf16>, vector<64x64xbf16>, vector<2x64xf32> -> vector<2x64xf32>
    %cst_10 = arith.constant dense<0.000000e+00> : vector<2x64xf32>
    %10 = tpu.matmul %8, %4, %cst_10 {dimension_numbers = #tpu.dot_dimension_numbers<[1], [0], [0], [1], [0, 0, 1, 1], [], []>} : vector<2x64xbf16>, vector<64x64xbf16>, vector<2x64xf32> -> vector<2x64xf32>
    %cst_11 = arith.constant dense<0.000000e+00> : vector<2x64xf32>
    %11 = tpu.matmul %8, %5, %cst_11 {dimension_numbers = #tpu.dot_dimension_numbers<[1], [0], [0], [1], [0, 0, 1, 1], [], []>} : vector<2x64xbf16>, vector<64x64xbf16>, vector<2x64xf32> -> vector<2x64xf32>
    %12 = vector.broadcast %6 : vector<1x64xf32> to vector<2x64xf32>
    %13 = arith.addf %11, %12 : vector<2x64xf32>
    %c0_12 = arith.constant 0 : index
    %c0_13 = arith.constant 0 : index
    %c0_14 = arith.constant 0 : index
    %c0_15 = arith.constant 0 : index
    %14 = vector.load %arg1[%c0_12, %c0_13, %c0_14, %c0_15] : memref<3x16x2x64xf32, #tpu.memory_space<vmem>>, vector<1x1x2x64xf32>
    %15 = vector.shape_cast %14 : vector<1x1x2x64xf32> to vector<2x64xf32>
    %16 = arith.addf %15, %9 : vector<2x64xf32>
    %17 = arith.negf %16 : vector<2x64xf32>
    %18 = math.exp %17 : vector<2x64xf32>
    %cst_16 = arith.constant 1.000000e+00 : f32
    %19 = vector.broadcast %cst_16 : f32 to vector<2x64xf32>
    %20 = arith.addf %19, %18 : vector<2x64xf32>
    %21 = arith.divf %19, %20 : vector<2x64xf32>
    %c1 = arith.constant 1 : index
    %c0_17 = arith.constant 0 : index
    %c0_18 = arith.constant 0 : index
    %c0_19 = arith.constant 0 : index
    %22 = vector.load %arg1[%c1, %c0_17, %c0_18, %c0_19] : memref<3x16x2x64xf32, #tpu.memory_space<vmem>>, vector<1x1x2x64xf32>
    %23 = vector.shape_cast %22 : vector<1x1x2x64xf32> to vector<2x64xf32>
    %24 = arith.addf %23, %10 : vector<2x64xf32>
    %25 = arith.negf %24 : vector<2x64xf32>
    %26 = math.exp %25 : vector<2x64xf32>
    %cst_20 = arith.constant 1.000000e+00 : f32
    %27 = vector.broadcast %cst_20 : f32 to vector<2x64xf32>
    %28 = arith.addf %27, %26 : vector<2x64xf32>
    %29 = arith.divf %27, %28 : vector<2x64xf32>
    %c2 = arith.constant 2 : index
    %c0_21 = arith.constant 0 : index
    %c0_22 = arith.constant 0 : index
    %c0_23 = arith.constant 0 : index
    %30 = vector.load %arg1[%c2, %c0_21, %c0_22, %c0_23] : memref<3x16x2x64xf32, #tpu.memory_space<vmem>>, vector<1x1x2x64xf32>
    %31 = vector.shape_cast %30 : vector<1x1x2x64xf32> to vector<2x64xf32>
    %32 = arith.mulf %21, %13 : vector<2x64xf32>
    %33 = arith.addf %31, %32 : vector<2x64xf32>
    %34 = math.tanh %33 : vector<2x64xf32>
    %cst_24 = arith.constant 1.000000e+00 : f32
    %35 = vector.broadcast %cst_24 : f32 to vector<2x64xf32>
    %36 = arith.subf %35, %29 : vector<2x64xf32>
    %37 = arith.mulf %36, %34 : vector<2x64xf32>
    %38 = arith.mulf %29, %7 : vector<2x64xf32>
    %39 = arith.addf %37, %38 : vector<2x64xf32>
    %40 = vector.extract_strided_slice %39 {offsets = [0, 0], sizes = [2, 32], strides = [1, 1]} : vector<2x64xf32> to vector<2x32xf32>
    %c0_25 = arith.constant 0 : index
    %c0_26 = arith.constant 0 : index
    %c0_27 = arith.constant 0 : index
    %41 = vector.load %arg6[%c0_25, %c0_26, %c0_27] : memref<16x2x32xf32, #tpu.memory_space<vmem>>, vector<1x2x32xf32>
    %42 = vector.shape_cast %41 : vector<1x2x32xf32> to vector<2x32xf32>
    %43 = vector.shape_cast %40 : vector<2x32xf32> to vector<1x2x32xf32>
    tpu.vector_store %arg6[%c0_25, %c0_26, %c0_27], %43 {strides = array<i32>} : memref<16x2x32xf32, #tpu.memory_space<vmem>>, vector<1x2x32xf32>,
    %44 = vector.extract_strided_slice %39 {offsets = [0, 32], sizes = [2, 32], strides = [1, 1]} : vector<2x64xf32> to vector<2x32xf32>
    %c15 = arith.constant 15 : index
    %c0_28 = arith.constant 0 : index
    %c0_29 = arith.constant 0 : index
    %45 = vector.load %arg7[%c15, %c0_28, %c0_29] : memref<16x2x32xf32, #tpu.memory_space<vmem>>, vector<1x2x32xf32>
    %46 = vector.shape_cast %45 : vector<1x2x32xf32> to vector<2x32xf32>
    %47 = vector.shape_cast %44 : vector<2x32xf32> to vector<1x2x32xf32>
    tpu.vector_store %arg7[%c15, %c0_28, %c0_29], %47 {strides = array<i32>} : memref<16x2x32xf32, #tpu.memory_space<vmem>>, vector<1x2x32xf32>,
    %48 = arith.truncf %39 : vector<2x64xf32> to vector<2x64xbf16>
    %cst_30 = arith.constant dense<0.000000e+00> : vector<2x64xf32>
    %49 = tpu.matmul %48, %3, %cst_30 {dimension_numbers = #tpu.dot_dimension_numbers<[1], [0], [0], [1], [0, 0, 1, 1], [], []>} : vector<2x64xbf16>, vector<64x64xbf16>, vector<2x64xf32> -> vector<2x64xf32>
    %cst_31 = arith.constant dense<0.000000e+00> : vector<2x64xf32>
    %50 = tpu.matmul %48, %4, %cst_31 {dimension_numbers = #tpu.dot_dimension_numbers<[1], [0], [0], [1], [0, 0, 1, 1], [], []>} : vector<2x64xbf16>, vector<64x64xbf16>, vector<2x64xf32> -> vector<2x64xf32>
    %cst_32 = arith.constant dense<0.000000e+00> : vector<2x64xf32>
    %51 = tpu.matmul %48, %5, %cst_32 {dimension_numbers = #tpu.dot_dimension_numbers<[1], [0], [0], [1], [0, 0, 1, 1], [], []>} : vector<2x64xbf16>, vector<64x64xbf16>, vector<2x64xf32> -> vector<2x64xf32>
    %52 = vector.broadcast %6 : vector<1x64xf32> to vector<2x64xf32>
    %53 = arith.addf %51, %52 : vector<2x64xf32>
    %c0_33 = arith.constant 0 : index
    %c1_34 = arith.constant 1 : index
    %c0_35 = arith.constant 0 : index
    %c0_36 = arith.constant 0 : index
    %54 = vector.load %arg1[%c0_33, %c1_34, %c0_35, %c0_36] : memref<3x16x2x64xf32, #tpu.memory_space<vmem>>, vector<1x1x2x64xf32>
    %55 = vector.shape_cast %54 : vector<1x1x2x64xf32> to vector<2x64xf32>
    %56 = arith.addf %55, %49 : vector<2x64xf32>
    %57 = arith.negf %56 : vector<2x64xf32>
    %58 = math.exp %57 : vector<2x64xf32>
    %cst_37 = arith.constant 1.000000e+00 : f32
    %59 = vector.broadcast %cst_37 : f32 to vector<2x64xf32>
    %60 = arith.addf %59, %58 : vector<2x64xf32>
    %61 = arith.divf %59, %60 : vector<2x64xf32>
    %c1_38 = arith.constant 1 : index
    %c1_39 = arith.constant 1 : index
    %c0_40 = arith.constant 0 : index
    %c0_41 = arith.constant 0 : index
    %62 = vector.load %arg1[%c1_38, %c1_39, %c0_40, %c0_41] : memref<3x16x2x64xf32, #tpu.memory_space<vmem>>, vector<1x1x2x64xf32>
    %63 = vector.shape_cast %62 : vector<1x1x2x64xf32> to vector<2x64xf32>
    %64 = arith.addf %63, %50 : vector<2x64xf32>
    %65 = arith.negf %64 : vector<2x64xf32>
    %66 = math.exp %65 : vector<2x64xf32>
    %cst_42 = arith.constant 1.000000e+00 : f32
    %67 = vector.broadcast %cst_42 : f32 to vector<2x64xf32>
    %68 = arith.addf %67, %66 : vector<2x64xf32>
    %69 = arith.divf %67, %68 : vector<2x64xf32>
    %c2_43 = arith.constant 2 : index
    %c1_44 = arith.constant 1 : index
    %c0_45 = arith.constant 0 : index
    %c0_46 = arith.constant 0 : index
    %70 = vector.load %arg1[%c2_43, %c1_44, %c0_45, %c0_46] : memref<3x16x2x64xf32, #tpu.memory_space<vmem>>, vector<1x1x2x64xf32>
    %71 = vector.shape_cast %70 : vector<1x1x2x64xf32> to vector<2x64xf32>
    %72 = arith.mulf %61, %53 : vector<2x64xf32>
    %73 = arith.addf %71, %72 : vector<2x64xf32>
    %74 = math.tanh %73 : vector<2x64xf32>
    %cst_47 = arith.constant 1.000000e+00 : f32
    %75 = vector.broadcast %cst_47 : f32 to vector<2x64xf32>
    %76 = arith.subf %75, %69 : vector<2x64xf32>
    %77 = arith.mulf %76, %74 : vector<2x64xf32>
    %78 = arith.mulf %69, %39 : vector<2x64xf32>
    %79 = arith.addf %77, %78 : vector<2x64xf32>
    %80 = vector.extract_strided_slice %79 {offsets = [0, 0], sizes = [2, 32], strides = [1, 1]} : vector<2x64xf32> to vector<2x32xf32>
    %c1_48 = arith.constant 1 : index
    %c0_49 = arith.constant 0 : index
    %c0_50 = arith.constant 0 : index
    %81 = vector.load %arg6[%c1_48, %c0_49, %c0_50] : memref<16x2x32xf32, #tpu.memory_space<vmem>>, vector<1x2x32xf32>
    %82 = vector.shape_cast %81 : vector<1x2x32xf32> to vector<2x32xf32>
    %83 = vector.shape_cast %80 : vector<2x32xf32> to vector<1x2x32xf32>
    tpu.vector_store %arg6[%c1_48, %c0_49, %c0_50], %83 {strides = array<i32>} : memref<16x2x32xf32, #tpu.memory_space<vmem>>, vector<1x2x32xf32>,
    %84 = vector.extract_strided_slice %79 {offsets = [0, 32], sizes = [2, 32], strides = [1, 1]} : vector<2x64xf32> to vector<2x32xf32>
    %c14 = arith.constant 14 : index
    %c0_51 = arith.constant 0 : index
    %c0_52 = arith.constant 0 : index
    %85 = vector.load %arg7[%c14, %c0_51, %c0_52] : memref<16x2x32xf32, #tpu.memory_space<vmem>>, vector<1x2x32xf32>
    %86 = vector.shape_cast %85 : vector<1x2x32xf32> to vector<2x32xf32>
    %87 = vector.shape_cast %84 : vector<2x32xf32> to vector<1x2x32xf32>
    tpu.vector_store %arg7[%c14, %c0_51, %c0_52], %87 {strides = array<i32>} : memref<16x2x32xf32, #tpu.memory_space<vmem>>, vector<1x2x32xf32>,
    %88 = arith.truncf %79 : vector<2x64xf32> to vector<2x64xbf16>
    %cst_53 = arith.constant dense<0.000000e+00> : vector<2x64xf32>
    %89 = tpu.matmul %88, %3, %cst_53 {dimension_numbers = #tpu.dot_dimension_numbers<[1], [0], [0], [1], [0, 0, 1, 1], [], []>} : vector<2x64xbf16>, vector<64x64xbf16>, vector<2x64xf32> -> vector<2x64xf32>
    %cst_54 = arith.constant dense<0.000000e+00> : vector<2x64xf32>
    %90 = tpu.matmul %88, %4, %cst_54 {dimension_numbers = #tpu.dot_dimension_numbers<[1], [0], [0], [1], [0, 0, 1, 1], [], []>} : vector<2x64xbf16>, vector<64x64xbf16>, vector<2x64xf32> -> vector<2x64xf32>
    %cst_55 = arith.constant dense<0.000000e+00> : vector<2x64xf32>
    %91 = tpu.matmul %88, %5, %cst_55 {dimension_numbers = #tpu.dot_dimension_numbers<[1], [0], [0], [1], [0, 0, 1, 1], [], []>} : vector<2x64xbf16>, vector<64x64xbf16>, vector<2x64xf32> -> vector<2x64xf32>
    %92 = vector.broadcast %6 : vector<1x64xf32> to vector<2x64xf32>
    %93 = arith.addf %91, %92 : vector<2x64xf32>
    %c0_56 = arith.constant 0 : index
    %c2_57 = arith.constant 2 : index
    %c0_58 = arith.constant 0 : index
    %c0_59 = arith.constant 0 : index
    %94 = vector.load %arg1[%c0_56, %c2_57, %c0_58, %c0_59] : memref<3x16x2x64xf32, #tpu.memory_space<vmem>>, vector<1x1x2x64xf32>
    %95 = vector.shape_cast %94 : vector<1x1x2x64xf32> to vector<2x64xf32>
    %96 = arith.addf %95, %89 : vector<2x64xf32>
    %97 = arith.negf %96 : vector<2x64xf32>
    %98 = math.exp %97 : vector<2x64xf32>
    %cst_60 = arith.constant 1.000000e+00 : f32
    %99 = vector.broadcast %cst_60 : f32 to vector<2x64xf32>
    %100 = arith.addf %99, %98 : vector<2x64xf32>
    %101 = arith.divf %99, %100 : vector<2x64xf32>
    %c1_61 = arith.constant 1 : index
    %c2_62 = arith.constant 2 : index
    %c0_63 = arith.constant 0 : index
    %c0_64 = arith.constant 0 : index
    %102 = vector.load %arg1[%c1_61, %c2_62, %c0_63, %c0_64] : memref<3x16x2x64xf32, #tpu.memory_space<vmem>>, vector<1x1x2x64xf32>
    %103 = vector.shape_cast %102 : vector<1x1x2x64xf32> to vector<2x64xf32>
    %104 = arith.addf %103, %90 : vector<2x64xf32>
    %105 = arith.negf %104 : vector<2x64xf32>
    %106 = math.exp %105 : vector<2x64xf32>
    %cst_65 = arith.constant 1.000000e+00 : f32
    %107 = vector.broadcast %cst_65 : f32 to vector<2x64xf32>
    %108 = arith.addf %107, %106 : vector<2x64xf32>
    %109 = arith.divf %107, %108 : vector<2x64xf32>
    %c2_66 = arith.constant 2 : index
    %c2_67 = arith.constant 2 : index
    %c0_68 = arith.constant 0 : index
    %c0_69 = arith.constant 0 : index
    %110 = vector.load %arg1[%c2_66, %c2_67, %c0_68, %c0_69] : memref<3x16x2x64xf32, #tpu.memory_space<vmem>>, vector<1x1x2x64xf32>
    %111 = vector.shape_cast %110 : vector<1x1x2x64xf32> to vector<2x64xf32>
    %112 = arith.mulf %101, %93 : vector<2x64xf32>
    %113 = arith.addf %111, %112 : vector<2x64xf32>
    %114 = math.tanh %113 : vector<2x64xf32>
    %cst_70 = arith.constant 1.000000e+00 : f32
    %115 = vector.broadcast %cst_70 : f32 to vector<2x64xf32>
    %116 = arith.subf %115, %109 : vector<2x64xf32>
    %117 = arith.mulf %116, %114 : vector<2x64xf32>
    %118 = arith.mulf %109, %79 : vector<2x64xf32>
    %119 = arith.addf %117, %118 : vector<2x64xf32>
    %120 = vector.extract_strided_slice %119 {offsets = [0, 0], sizes = [2, 32], strides = [1, 1]} : vector<2x64xf32> to vector<2x32xf32>
    %c2_71 = arith.constant 2 : index
    %c0_72 = arith.constant 0 : index
    %c0_73 = arith.constant 0 : index
    %121 = vector.load %arg6[%c2_71, %c0_72, %c0_73] : memref<16x2x32xf32, #tpu.memory_space<vmem>>, vector<1x2x32xf32>
    %122 = vector.shape_cast %121 : vector<1x2x32xf32> to vector<2x32xf32>
    %123 = vector.shape_cast %120 : vector<2x32xf32> to vector<1x2x32xf32>
    tpu.vector_store %arg6[%c2_71, %c0_72, %c0_73], %123 {strides = array<i32>} : memref<16x2x32xf32, #tpu.memory_space<vmem>>, vector<1x2x32xf32>,
    %124 = vector.extract_strided_slice %119 {offsets = [0, 32], sizes = [2, 32], strides = [1, 1]} : vector<2x64xf32> to vector<2x32xf32>
    %c13 = arith.constant 13 : index
    %c0_74 = arith.constant 0 : index
    %c0_75 = arith.constant 0 : index
    %125 = vector.load %arg7[%c13, %c0_74, %c0_75] : memref<16x2x32xf32, #tpu.memory_space<vmem>>, vector<1x2x32xf32>
    %126 = vector.shape_cast %125 : vector<1x2x32xf32> to vector<2x32xf32>
    %127 = vector.shape_cast %124 : vector<2x32xf32> to vector<1x2x32xf32>
    tpu.vector_store %arg7[%c13, %c0_74, %c0_75], %127 {strides = array<i32>} : memref<16x2x32xf32, #tpu.memory_space<vmem>>, vector<1x2x32xf32>,
    %128 = arith.truncf %119 : vector<2x64xf32> to vector<2x64xbf16>
    %cst_76 = arith.constant dense<0.000000e+00> : vector<2x64xf32>
    %129 = tpu.matmul %128, %3, %cst_76 {dimension_numbers = #tpu.dot_dimension_numbers<[1], [0], [0], [1], [0, 0, 1, 1], [], []>} : vector<2x64xbf16>, vector<64x64xbf16>, vector<2x64xf32> -> vector<2x64xf32>
    %cst_77 = arith.constant dense<0.000000e+00> : vector<2x64xf32>
    %130 = tpu.matmul %128, %4, %cst_77 {dimension_numbers = #tpu.dot_dimension_numbers<[1], [0], [0], [1], [0, 0, 1, 1], [], []>} : vector<2x64xbf16>, vector<64x64xbf16>, vector<2x64xf32> -> vector<2x64xf32>
    %cst_78 = arith.constant dense<0.000000e+00> : vector<2x64xf32>
    %131 = tpu.matmul %128, %5, %cst_78 {dimension_numbers = #tpu.dot_dimension_numbers<[1], [0], [0], [1], [0, 0, 1, 1], [], []>} : vector<2x64xbf16>, vector<64x64xbf16>, vector<2x64xf32> -> vector<2x64xf32>
    %132 = vector.broadcast %6 : vector<1x64xf32> to vector<2x64xf32>
    %133 = arith.addf %131, %132 : vector<2x64xf32>
    %c0_79 = arith.constant 0 : index
    %c3 = arith.constant 3 : index
    %c0_80 = arith.constant 0 : index
    %c0_81 = arith.constant 0 : index
    %134 = vector.load %arg1[%c0_79, %c3, %c0_80, %c0_81] : memref<3x16x2x64xf32, #tpu.memory_space<vmem>>, vector<1x1x2x64xf32>
    %135 = vector.shape_cast %134 : vector<1x1x2x64xf32> to vector<2x64xf32>
    %136 = arith.addf %135, %129 : vector<2x64xf32>
    %137 = arith.negf %136 : vector<2x64xf32>
    %138 = math.exp %137 : vector<2x64xf32>
    %cst_82 = arith.constant 1.000000e+00 : f32
    %139 = vector.broadcast %cst_82 : f32 to vector<2x64xf32>
    %140 = arith.addf %139, %138 : vector<2x64xf32>
    %141 = arith.divf %139, %140 : vector<2x64xf32>
    %c1_83 = arith.constant 1 : index
    %c3_84 = arith.constant 3 : index
    %c0_85 = arith.constant 0 : index
    %c0_86 = arith.constant 0 : index
    %142 = vector.load %arg1[%c1_83, %c3_84, %c0_85, %c0_86] : memref<3x16x2x64xf32, #tpu.memory_space<vmem>>, vector<1x1x2x64xf32>
    %143 = vector.shape_cast %142 : vector<1x1x2x64xf32> to vector<2x64xf32>
    %144 = arith.addf %143, %130 : vector<2x64xf32>
    %145 = arith.negf %144 : vector<2x64xf32>
    %146 = math.exp %145 : vector<2x64xf32>
    %cst_87 = arith.constant 1.000000e+00 : f32
    %147 = vector.broadcast %cst_87 : f32 to vector<2x64xf32>
    %148 = arith.addf %147, %146 : vector<2x64xf32>
    %149 = arith.divf %147, %148 : vector<2x64xf32>
    %c2_88 = arith.constant 2 : index
    %c3_89 = arith.constant 3 : index
    %c0_90 = arith.constant 0 : index
    %c0_91 = arith.constant 0 : index
    %150 = vector.load %arg1[%c2_88, %c3_89, %c0_90, %c0_91] : memref<3x16x2x64xf32, #tpu.memory_space<vmem>>, vector<1x1x2x64xf32>
    %151 = vector.shape_cast %150 : vector<1x1x2x64xf32> to vector<2x64xf32>
    %152 = arith.mulf %141, %133 : vector<2x64xf32>
    %153 = arith.addf %151, %152 : vector<2x64xf32>
    %154 = math.tanh %153 : vector<2x64xf32>
    %cst_92 = arith.constant 1.000000e+00 : f32
    %155 = vector.broadcast %cst_92 : f32 to vector<2x64xf32>
    %156 = arith.subf %155, %149 : vector<2x64xf32>
    %157 = arith.mulf %156, %154 : vector<2x64xf32>
    %158 = arith.mulf %149, %119 : vector<2x64xf32>
    %159 = arith.addf %157, %158 : vector<2x64xf32>
    %160 = vector.extract_strided_slice %159 {offsets = [0, 0], sizes = [2, 32], strides = [1, 1]} : vector<2x64xf32> to vector<2x32xf32>
    %c3_93 = arith.constant 3 : index
    %c0_94 = arith.constant 0 : index
    %c0_95 = arith.constant 0 : index
    %161 = vector.load %arg6[%c3_93, %c0_94, %c0_95] : memref<16x2x32xf32, #tpu.memory_space<vmem>>, vector<1x2x32xf32>
    %162 = vector.shape_cast %161 : vector<1x2x32xf32> to vector<2x32xf32>
    %163 = vector.shape_cast %160 : vector<2x32xf32> to vector<1x2x32xf32>
    tpu.vector_store %arg6[%c3_93, %c0_94, %c0_95], %163 {strides = array<i32>} : memref<16x2x32xf32, #tpu.memory_space<vmem>>, vector<1x2x32xf32>,
    %164 = vector.extract_strided_slice %159 {offsets = [0, 32], sizes = [2, 32], strides = [1, 1]} : vector<2x64xf32> to vector<2x32xf32>
    %c12 = arith.constant 12 : index
    %c0_96 = arith.constant 0 : index
    %c0_97 = arith.constant 0 : index
    %165 = vector.load %arg7[%c12, %c0_96, %c0_97] : memref<16x2x32xf32, #tpu.memory_space<vmem>>, vector<1x2x32xf32>
    %166 = vector.shape_cast %165 : vector<1x2x32xf32> to vector<2x32xf32>
    %167 = vector.shape_cast %164 : vector<2x32xf32> to vector<1x2x32xf32>
    tpu.vector_store %arg7[%c12, %c0_96, %c0_97], %167 {strides = array<i32>} : memref<16x2x32xf32, #tpu.memory_space<vmem>>, vector<1x2x32xf32>,
    %168 = arith.truncf %159 : vector<2x64xf32> to vector<2x64xbf16>
    %cst_98 = arith.constant dense<0.000000e+00> : vector<2x64xf32>
    %169 = tpu.matmul %168, %3, %cst_98 {dimension_numbers = #tpu.dot_dimension_numbers<[1], [0], [0], [1], [0, 0, 1, 1], [], []>} : vector<2x64xbf16>, vector<64x64xbf16>, vector<2x64xf32> -> vector<2x64xf32>
    %cst_99 = arith.constant dense<0.000000e+00> : vector<2x64xf32>
    %170 = tpu.matmul %168, %4, %cst_99 {dimension_numbers = #tpu.dot_dimension_numbers<[1], [0], [0], [1], [0, 0, 1, 1], [], []>} : vector<2x64xbf16>, vector<64x64xbf16>, vector<2x64xf32> -> vector<2x64xf32>
    %cst_100 = arith.constant dense<0.000000e+00> : vector<2x64xf32>
    %171 = tpu.matmul %168, %5, %cst_100 {dimension_numbers = #tpu.dot_dimension_numbers<[1], [0], [0], [1], [0, 0, 1, 1], [], []>} : vector<2x64xbf16>, vector<64x64xbf16>, vector<2x64xf32> -> vector<2x64xf32>
    %172 = vector.broadcast %6 : vector<1x64xf32> to vector<2x64xf32>
    %173 = arith.addf %171, %172 : vector<2x64xf32>
    %c0_101 = arith.constant 0 : index
    %c4 = arith.constant 4 : index
    %c0_102 = arith.constant 0 : index
    %c0_103 = arith.constant 0 : index
    %174 = vector.load %arg1[%c0_101, %c4, %c0_102, %c0_103] : memref<3x16x2x64xf32, #tpu.memory_space<vmem>>, vector<1x1x2x64xf32>
    %175 = vector.shape_cast %174 : vector<1x1x2x64xf32> to vector<2x64xf32>
    %176 = arith.addf %175, %169 : vector<2x64xf32>
    %177 = arith.negf %176 : vector<2x64xf32>
    %178 = math.exp %177 : vector<2x64xf32>
    %cst_104 = arith.constant 1.000000e+00 : f32
    %179 = vector.broadcast %cst_104 : f32 to vector<2x64xf32>
    %180 = arith.addf %179, %178 : vector<2x64xf32>
    %181 = arith.divf %179, %180 : vector<2x64xf32>
    %c1_105 = arith.constant 1 : index
    %c4_106 = arith.constant 4 : index
    %c0_107 = arith.constant 0 : index
    %c0_108 = arith.constant 0 : index
    %182 = vector.load %arg1[%c1_105, %c4_106, %c0_107, %c0_108] : memref<3x16x2x64xf32, #tpu.memory_space<vmem>>, vector<1x1x2x64xf32>
    %183 = vector.shape_cast %182 : vector<1x1x2x64xf32> to vector<2x64xf32>
    %184 = arith.addf %183, %170 : vector<2x64xf32>
    %185 = arith.negf %184 : vector<2x64xf32>
    %186 = math.exp %185 : vector<2x64xf32>
    %cst_109 = arith.constant 1.000000e+00 : f32
    %187 = vector.broadcast %cst_109 : f32 to vector<2x64xf32>
    %188 = arith.addf %187, %186 : vector<2x64xf32>
    %189 = arith.divf %187, %188 : vector<2x64xf32>
    %c2_110 = arith.constant 2 : index
    %c4_111 = arith.constant 4 : index
    %c0_112 = arith.constant 0 : index
    %c0_113 = arith.constant 0 : index
    %190 = vector.load %arg1[%c2_110, %c4_111, %c0_112, %c0_113] : memref<3x16x2x64xf32, #tpu.memory_space<vmem>>, vector<1x1x2x64xf32>
    %191 = vector.shape_cast %190 : vector<1x1x2x64xf32> to vector<2x64xf32>
    %192 = arith.mulf %181, %173 : vector<2x64xf32>
    %193 = arith.addf %191, %192 : vector<2x64xf32>
    %194 = math.tanh %193 : vector<2x64xf32>
    %cst_114 = arith.constant 1.000000e+00 : f32
    %195 = vector.broadcast %cst_114 : f32 to vector<2x64xf32>
    %196 = arith.subf %195, %189 : vector<2x64xf32>
    %197 = arith.mulf %196, %194 : vector<2x64xf32>
    %198 = arith.mulf %189, %159 : vector<2x64xf32>
    %199 = arith.addf %197, %198 : vector<2x64xf32>
    %200 = vector.extract_strided_slice %199 {offsets = [0, 0], sizes = [2, 32], strides = [1, 1]} : vector<2x64xf32> to vector<2x32xf32>
    %c4_115 = arith.constant 4 : index
    %c0_116 = arith.constant 0 : index
    %c0_117 = arith.constant 0 : index
    %201 = vector.load %arg6[%c4_115, %c0_116, %c0_117] : memref<16x2x32xf32, #tpu.memory_space<vmem>>, vector<1x2x32xf32>
    %202 = vector.shape_cast %201 : vector<1x2x32xf32> to vector<2x32xf32>
    %203 = vector.shape_cast %200 : vector<2x32xf32> to vector<1x2x32xf32>
    tpu.vector_store %arg6[%c4_115, %c0_116, %c0_117], %203 {strides = array<i32>} : memref<16x2x32xf32, #tpu.memory_space<vmem>>, vector<1x2x32xf32>,
    %204 = vector.extract_strided_slice %199 {offsets = [0, 32], sizes = [2, 32], strides = [1, 1]} : vector<2x64xf32> to vector<2x32xf32>
    %c11 = arith.constant 11 : index
    %c0_118 = arith.constant 0 : index
    %c0_119 = arith.constant 0 : index
    %205 = vector.load %arg7[%c11, %c0_118, %c0_119] : memref<16x2x32xf32, #tpu.memory_space<vmem>>, vector<1x2x32xf32>
    %206 = vector.shape_cast %205 : vector<1x2x32xf32> to vector<2x32xf32>
    %207 = vector.shape_cast %204 : vector<2x32xf32> to vector<1x2x32xf32>
    tpu.vector_store %arg7[%c11, %c0_118, %c0_119], %207 {strides = array<i32>} : memref<16x2x32xf32, #tpu.memory_space<vmem>>, vector<1x2x32xf32>,
    %208 = arith.truncf %199 : vector<2x64xf32> to vector<2x64xbf16>
    %cst_120 = arith.constant dense<0.000000e+00> : vector<2x64xf32>
    %209 = tpu.matmul %208, %3, %cst_120 {dimension_numbers = #tpu.dot_dimension_numbers<[1], [0], [0], [1], [0, 0, 1, 1], [], []>} : vector<2x64xbf16>, vector<64x64xbf16>, vector<2x64xf32> -> vector<2x64xf32>
    %cst_121 = arith.constant dense<0.000000e+00> : vector<2x64xf32>
    %210 = tpu.matmul %208, %4, %cst_121 {dimension_numbers = #tpu.dot_dimension_numbers<[1], [0], [0], [1], [0, 0, 1, 1], [], []>} : vector<2x64xbf16>, vector<64x64xbf16>, vector<2x64xf32> -> vector<2x64xf32>
    %cst_122 = arith.constant dense<0.000000e+00> : vector<2x64xf32>
    %211 = tpu.matmul %208, %5, %cst_122 {dimension_numbers = #tpu.dot_dimension_numbers<[1], [0], [0], [1], [0, 0, 1, 1], [], []>} : vector<2x64xbf16>, vector<64x64xbf16>, vector<2x64xf32> -> vector<2x64xf32>
    %212 = vector.broadcast %6 : vector<1x64xf32> to vector<2x64xf32>
    %213 = arith.addf %211, %212 : vector<2x64xf32>
    %c0_123 = arith.constant 0 : index
    %c5 = arith.constant 5 : index
    %c0_124 = arith.constant 0 : index
    %c0_125 = arith.constant 0 : index
    %214 = vector.load %arg1[%c0_123, %c5, %c0_124, %c0_125] : memref<3x16x2x64xf32, #tpu.memory_space<vmem>>, vector<1x1x2x64xf32>
    %215 = vector.shape_cast %214 : vector<1x1x2x64xf32> to vector<2x64xf32>
    %216 = arith.addf %215, %209 : vector<2x64xf32>
    %217 = arith.negf %216 : vector<2x64xf32>
    %218 = math.exp %217 : vector<2x64xf32>
    %cst_126 = arith.constant 1.000000e+00 : f32
    %219 = vector.broadcast %cst_126 : f32 to vector<2x64xf32>
    %220 = arith.addf %219, %218 : vector<2x64xf32>
    %221 = arith.divf %219, %220 : vector<2x64xf32>
    %c1_127 = arith.constant 1 : index
    %c5_128 = arith.constant 5 : index
    %c0_129 = arith.constant 0 : index
    %c0_130 = arith.constant 0 : index
    %222 = vector.load %arg1[%c1_127, %c5_128, %c0_129, %c0_130] : memref<3x16x2x64xf32, #tpu.memory_space<vmem>>, vector<1x1x2x64xf32>
    %223 = vector.shape_cast %222 : vector<1x1x2x64xf32> to vector<2x64xf32>
    %224 = arith.addf %223, %210 : vector<2x64xf32>
    %225 = arith.negf %224 : vector<2x64xf32>
    %226 = math.exp %225 : vector<2x64xf32>
    %cst_131 = arith.constant 1.000000e+00 : f32
    %227 = vector.broadcast %cst_131 : f32 to vector<2x64xf32>
    %228 = arith.addf %227, %226 : vector<2x64xf32>
    %229 = arith.divf %227, %228 : vector<2x64xf32>
    %c2_132 = arith.constant 2 : index
    %c5_133 = arith.constant 5 : index
    %c0_134 = arith.constant 0 : index
    %c0_135 = arith.constant 0 : index
    %230 = vector.load %arg1[%c2_132, %c5_133, %c0_134, %c0_135] : memref<3x16x2x64xf32, #tpu.memory_space<vmem>>, vector<1x1x2x64xf32>
    %231 = vector.shape_cast %230 : vector<1x1x2x64xf32> to vector<2x64xf32>
    %232 = arith.mulf %221, %213 : vector<2x64xf32>
    %233 = arith.addf %231, %232 : vector<2x64xf32>
    %234 = math.tanh %233 : vector<2x64xf32>
    %cst_136 = arith.constant 1.000000e+00 : f32
    %235 = vector.broadcast %cst_136 : f32 to vector<2x64xf32>
    %236 = arith.subf %235, %229 : vector<2x64xf32>
    %237 = arith.mulf %236, %234 : vector<2x64xf32>
    %238 = arith.mulf %229, %199 : vector<2x64xf32>
    %239 = arith.addf %237, %238 : vector<2x64xf32>
    %240 = vector.extract_strided_slice %239 {offsets = [0, 0], sizes = [2, 32], strides = [1, 1]} : vector<2x64xf32> to vector<2x32xf32>
    %c5_137 = arith.constant 5 : index
    %c0_138 = arith.constant 0 : index
    %c0_139 = arith.constant 0 : index
    %241 = vector.load %arg6[%c5_137, %c0_138, %c0_139] : memref<16x2x32xf32, #tpu.memory_space<vmem>>, vector<1x2x32xf32>
    %242 = vector.shape_cast %241 : vector<1x2x32xf32> to vector<2x32xf32>
    %243 = vector.shape_cast %240 : vector<2x32xf32> to vector<1x2x32xf32>
    tpu.vector_store %arg6[%c5_137, %c0_138, %c0_139], %243 {strides = array<i32>} : memref<16x2x32xf32, #tpu.memory_space<vmem>>, vector<1x2x32xf32>,
    %244 = vector.extract_strided_slice %239 {offsets = [0, 32], sizes = [2, 32], strides = [1, 1]} : vector<2x64xf32> to vector<2x32xf32>
    %c10 = arith.constant 10 : index
    %c0_140 = arith.constant 0 : index
    %c0_141 = arith.constant 0 : index
    %245 = vector.load %arg7[%c10, %c0_140, %c0_141] : memref<16x2x32xf32, #tpu.memory_space<vmem>>, vector<1x2x32xf32>
    %246 = vector.shape_cast %245 : vector<1x2x32xf32> to vector<2x32xf32>
    %247 = vector.shape_cast %244 : vector<2x32xf32> to vector<1x2x32xf32>
    tpu.vector_store %arg7[%c10, %c0_140, %c0_141], %247 {strides = array<i32>} : memref<16x2x32xf32, #tpu.memory_space<vmem>>, vector<1x2x32xf32>,
    %248 = arith.truncf %239 : vector<2x64xf32> to vector<2x64xbf16>
    %cst_142 = arith.constant dense<0.000000e+00> : vector<2x64xf32>
    %249 = tpu.matmul %248, %3, %cst_142 {dimension_numbers = #tpu.dot_dimension_numbers<[1], [0], [0], [1], [0, 0, 1, 1], [], []>} : vector<2x64xbf16>, vector<64x64xbf16>, vector<2x64xf32> -> vector<2x64xf32>
    %cst_143 = arith.constant dense<0.000000e+00> : vector<2x64xf32>
    %250 = tpu.matmul %248, %4, %cst_143 {dimension_numbers = #tpu.dot_dimension_numbers<[1], [0], [0], [1], [0, 0, 1, 1], [], []>} : vector<2x64xbf16>, vector<64x64xbf16>, vector<2x64xf32> -> vector<2x64xf32>
    %cst_144 = arith.constant dense<0.000000e+00> : vector<2x64xf32>
    %251 = tpu.matmul %248, %5, %cst_144 {dimension_numbers = #tpu.dot_dimension_numbers<[1], [0], [0], [1], [0, 0, 1, 1], [], []>} : vector<2x64xbf16>, vector<64x64xbf16>, vector<2x64xf32> -> vector<2x64xf32>
    %252 = vector.broadcast %6 : vector<1x64xf32> to vector<2x64xf32>
    %253 = arith.addf %251, %252 : vector<2x64xf32>
    %c0_145 = arith.constant 0 : index
    %c6 = arith.constant 6 : index
    %c0_146 = arith.constant 0 : index
    %c0_147 = arith.constant 0 : index
    %254 = vector.load %arg1[%c0_145, %c6, %c0_146, %c0_147] : memref<3x16x2x64xf32, #tpu.memory_space<vmem>>, vector<1x1x2x64xf32>
    %255 = vector.shape_cast %254 : vector<1x1x2x64xf32> to vector<2x64xf32>
    %256 = arith.addf %255, %249 : vector<2x64xf32>
    %257 = arith.negf %256 : vector<2x64xf32>
    %258 = math.exp %257 : vector<2x64xf32>
    %cst_148 = arith.constant 1.000000e+00 : f32
    %259 = vector.broadcast %cst_148 : f32 to vector<2x64xf32>
    %260 = arith.addf %259, %258 : vector<2x64xf32>
    %261 = arith.divf %259, %260 : vector<2x64xf32>
    %c1_149 = arith.constant 1 : index
    %c6_150 = arith.constant 6 : index
    %c0_151 = arith.constant 0 : index
    %c0_152 = arith.constant 0 : index
    %262 = vector.load %arg1[%c1_149, %c6_150, %c0_151, %c0_152] : memref<3x16x2x64xf32, #tpu.memory_space<vmem>>, vector<1x1x2x64xf32>
    %263 = vector.shape_cast %262 : vector<1x1x2x64xf32> to vector<2x64xf32>
    %264 = arith.addf %263, %250 : vector<2x64xf32>
    %265 = arith.negf %264 : vector<2x64xf32>
    %266 = math.exp %265 : vector<2x64xf32>
    %cst_153 = arith.constant 1.000000e+00 : f32
    %267 = vector.broadcast %cst_153 : f32 to vector<2x64xf32>
    %268 = arith.addf %267, %266 : vector<2x64xf32>
    %269 = arith.divf %267, %268 : vector<2x64xf32>
    %c2_154 = arith.constant 2 : index
    %c6_155 = arith.constant 6 : index
    %c0_156 = arith.constant 0 : index
    %c0_157 = arith.constant 0 : index
    %270 = vector.load %arg1[%c2_154, %c6_155, %c0_156, %c0_157] : memref<3x16x2x64xf32, #tpu.memory_space<vmem>>, vector<1x1x2x64xf32>
    %271 = vector.shape_cast %270 : vector<1x1x2x64xf32> to vector<2x64xf32>
    %272 = arith.mulf %261, %253 : vector<2x64xf32>
    %273 = arith.addf %271, %272 : vector<2x64xf32>
    %274 = math.tanh %273 : vector<2x64xf32>
    %cst_158 = arith.constant 1.000000e+00 : f32
    %275 = vector.broadcast %cst_158 : f32 to vector<2x64xf32>
    %276 = arith.subf %275, %269 : vector<2x64xf32>
    %277 = arith.mulf %276, %274 : vector<2x64xf32>
    %278 = arith.mulf %269, %239 : vector<2x64xf32>
    %279 = arith.addf %277, %278 : vector<2x64xf32>
    %280 = vector.extract_strided_slice %279 {offsets = [0, 0], sizes = [2, 32], strides = [1, 1]} : vector<2x64xf32> to vector<2x32xf32>
    %c6_159 = arith.constant 6 : index
    %c0_160 = arith.constant 0 : index
    %c0_161 = arith.constant 0 : index
    %281 = vector.load %arg6[%c6_159, %c0_160, %c0_161] : memref<16x2x32xf32, #tpu.memory_space<vmem>>, vector<1x2x32xf32>
    %282 = vector.shape_cast %281 : vector<1x2x32xf32> to vector<2x32xf32>
    %283 = vector.shape_cast %280 : vector<2x32xf32> to vector<1x2x32xf32>
    tpu.vector_store %arg6[%c6_159, %c0_160, %c0_161], %283 {strides = array<i32>} : memref<16x2x32xf32, #tpu.memory_space<vmem>>, vector<1x2x32xf32>,
    %284 = vector.extract_strided_slice %279 {offsets = [0, 32], sizes = [2, 32], strides = [1, 1]} : vector<2x64xf32> to vector<2x32xf32>
    %c9 = arith.constant 9 : index
    %c0_162 = arith.constant 0 : index
    %c0_163 = arith.constant 0 : index
    %285 = vector.load %arg7[%c9, %c0_162, %c0_163] : memref<16x2x32xf32, #tpu.memory_space<vmem>>, vector<1x2x32xf32>
    %286 = vector.shape_cast %285 : vector<1x2x32xf32> to vector<2x32xf32>
    %287 = vector.shape_cast %284 : vector<2x32xf32> to vector<1x2x32xf32>
    tpu.vector_store %arg7[%c9, %c0_162, %c0_163], %287 {strides = array<i32>} : memref<16x2x32xf32, #tpu.memory_space<vmem>>, vector<1x2x32xf32>,
    %288 = arith.truncf %279 : vector<2x64xf32> to vector<2x64xbf16>
    %cst_164 = arith.constant dense<0.000000e+00> : vector<2x64xf32>
    %289 = tpu.matmul %288, %3, %cst_164 {dimension_numbers = #tpu.dot_dimension_numbers<[1], [0], [0], [1], [0, 0, 1, 1], [], []>} : vector<2x64xbf16>, vector<64x64xbf16>, vector<2x64xf32> -> vector<2x64xf32>
    %cst_165 = arith.constant dense<0.000000e+00> : vector<2x64xf32>
    %290 = tpu.matmul %288, %4, %cst_165 {dimension_numbers = #tpu.dot_dimension_numbers<[1], [0], [0], [1], [0, 0, 1, 1], [], []>} : vector<2x64xbf16>, vector<64x64xbf16>, vector<2x64xf32> -> vector<2x64xf32>
    %cst_166 = arith.constant dense<0.000000e+00> : vector<2x64xf32>
    %291 = tpu.matmul %288, %5, %cst_166 {dimension_numbers = #tpu.dot_dimension_numbers<[1], [0], [0], [1], [0, 0, 1, 1], [], []>} : vector<2x64xbf16>, vector<64x64xbf16>, vector<2x64xf32> -> vector<2x64xf32>
    %292 = vector.broadcast %6 : vector<1x64xf32> to vector<2x64xf32>
    %293 = arith.addf %291, %292 : vector<2x64xf32>
    %c0_167 = arith.constant 0 : index
    %c7 = arith.constant 7 : index
    %c0_168 = arith.constant 0 : index
    %c0_169 = arith.constant 0 : index
    %294 = vector.load %arg1[%c0_167, %c7, %c0_168, %c0_169] : memref<3x16x2x64xf32, #tpu.memory_space<vmem>>, vector<1x1x2x64xf32>
    %295 = vector.shape_cast %294 : vector<1x1x2x64xf32> to vector<2x64xf32>
    %296 = arith.addf %295, %289 : vector<2x64xf32>
    %297 = arith.negf %296 : vector<2x64xf32>
    %298 = math.exp %297 : vector<2x64xf32>
    %cst_170 = arith.constant 1.000000e+00 : f32
    %299 = vector.broadcast %cst_170 : f32 to vector<2x64xf32>
    %300 = arith.addf %299, %298 : vector<2x64xf32>
    %301 = arith.divf %299, %300 : vector<2x64xf32>
    %c1_171 = arith.constant 1 : index
    %c7_172 = arith.constant 7 : index
    %c0_173 = arith.constant 0 : index
    %c0_174 = arith.constant 0 : index
    %302 = vector.load %arg1[%c1_171, %c7_172, %c0_173, %c0_174] : memref<3x16x2x64xf32, #tpu.memory_space<vmem>>, vector<1x1x2x64xf32>
    %303 = vector.shape_cast %302 : vector<1x1x2x64xf32> to vector<2x64xf32>
    %304 = arith.addf %303, %290 : vector<2x64xf32>
    %305 = arith.negf %304 : vector<2x64xf32>
    %306 = math.exp %305 : vector<2x64xf32>
    %cst_175 = arith.constant 1.000000e+00 : f32
    %307 = vector.broadcast %cst_175 : f32 to vector<2x64xf32>
    %308 = arith.addf %307, %306 : vector<2x64xf32>
    %309 = arith.divf %307, %308 : vector<2x64xf32>
    %c2_176 = arith.constant 2 : index
    %c7_177 = arith.constant 7 : index
    %c0_178 = arith.constant 0 : index
    %c0_179 = arith.constant 0 : index
    %310 = vector.load %arg1[%c2_176, %c7_177, %c0_178, %c0_179] : memref<3x16x2x64xf32, #tpu.memory_space<vmem>>, vector<1x1x2x64xf32>
    %311 = vector.shape_cast %310 : vector<1x1x2x64xf32> to vector<2x64xf32>
    %312 = arith.mulf %301, %293 : vector<2x64xf32>
    %313 = arith.addf %311, %312 : vector<2x64xf32>
    %314 = math.tanh %313 : vector<2x64xf32>
    %cst_180 = arith.constant 1.000000e+00 : f32
    %315 = vector.broadcast %cst_180 : f32 to vector<2x64xf32>
    %316 = arith.subf %315, %309 : vector<2x64xf32>
    %317 = arith.mulf %316, %314 : vector<2x64xf32>
    %318 = arith.mulf %309, %279 : vector<2x64xf32>
    %319 = arith.addf %317, %318 : vector<2x64xf32>
    %320 = vector.extract_strided_slice %319 {offsets = [0, 0], sizes = [2, 32], strides = [1, 1]} : vector<2x64xf32> to vector<2x32xf32>
    %c7_181 = arith.constant 7 : index
    %c0_182 = arith.constant 0 : index
    %c0_183 = arith.constant 0 : index
    %321 = vector.load %arg6[%c7_181, %c0_182, %c0_183] : memref<16x2x32xf32, #tpu.memory_space<vmem>>, vector<1x2x32xf32>
    %322 = vector.shape_cast %321 : vector<1x2x32xf32> to vector<2x32xf32>
    %323 = vector.shape_cast %320 : vector<2x32xf32> to vector<1x2x32xf32>
    tpu.vector_store %arg6[%c7_181, %c0_182, %c0_183], %323 {strides = array<i32>} : memref<16x2x32xf32, #tpu.memory_space<vmem>>, vector<1x2x32xf32>,
    %324 = vector.extract_strided_slice %319 {offsets = [0, 32], sizes = [2, 32], strides = [1, 1]} : vector<2x64xf32> to vector<2x32xf32>
    %c8 = arith.constant 8 : index
    %c0_184 = arith.constant 0 : index
    %c0_185 = arith.constant 0 : index
    %325 = vector.load %arg7[%c8, %c0_184, %c0_185] : memref<16x2x32xf32, #tpu.memory_space<vmem>>, vector<1x2x32xf32>
    %326 = vector.shape_cast %325 : vector<1x2x32xf32> to vector<2x32xf32>
    %327 = vector.shape_cast %324 : vector<2x32xf32> to vector<1x2x32xf32>
    tpu.vector_store %arg7[%c8, %c0_184, %c0_185], %327 {strides = array<i32>} : memref<16x2x32xf32, #tpu.memory_space<vmem>>, vector<1x2x32xf32>,
    %328 = arith.truncf %319 : vector<2x64xf32> to vector<2x64xbf16>
    %cst_186 = arith.constant dense<0.000000e+00> : vector<2x64xf32>
    %329 = tpu.matmul %328, %3, %cst_186 {dimension_numbers = #tpu.dot_dimension_numbers<[1], [0], [0], [1], [0, 0, 1, 1], [], []>} : vector<2x64xbf16>, vector<64x64xbf16>, vector<2x64xf32> -> vector<2x64xf32>
    %cst_187 = arith.constant dense<0.000000e+00> : vector<2x64xf32>
    %330 = tpu.matmul %328, %4, %cst_187 {dimension_numbers = #tpu.dot_dimension_numbers<[1], [0], [0], [1], [0, 0, 1, 1], [], []>} : vector<2x64xbf16>, vector<64x64xbf16>, vector<2x64xf32> -> vector<2x64xf32>
    %cst_188 = arith.constant dense<0.000000e+00> : vector<2x64xf32>
    %331 = tpu.matmul %328, %5, %cst_188 {dimension_numbers = #tpu.dot_dimension_numbers<[1], [0], [0], [1], [0, 0, 1, 1], [], []>} : vector<2x64xbf16>, vector<64x64xbf16>, vector<2x64xf32> -> vector<2x64xf32>
    %332 = vector.broadcast %6 : vector<1x64xf32> to vector<2x64xf32>
    %333 = arith.addf %331, %332 : vector<2x64xf32>
    %c0_189 = arith.constant 0 : index
    %c8_190 = arith.constant 8 : index
    %c0_191 = arith.constant 0 : index
    %c0_192 = arith.constant 0 : index
    %334 = vector.load %arg1[%c0_189, %c8_190, %c0_191, %c0_192] : memref<3x16x2x64xf32, #tpu.memory_space<vmem>>, vector<1x1x2x64xf32>
    %335 = vector.shape_cast %334 : vector<1x1x2x64xf32> to vector<2x64xf32>
    %336 = arith.addf %335, %329 : vector<2x64xf32>
    %337 = arith.negf %336 : vector<2x64xf32>
    %338 = math.exp %337 : vector<2x64xf32>
    %cst_193 = arith.constant 1.000000e+00 : f32
    %339 = vector.broadcast %cst_193 : f32 to vector<2x64xf32>
    %340 = arith.addf %339, %338 : vector<2x64xf32>
    %341 = arith.divf %339, %340 : vector<2x64xf32>
    %c1_194 = arith.constant 1 : index
    %c8_195 = arith.constant 8 : index
    %c0_196 = arith.constant 0 : index
    %c0_197 = arith.constant 0 : index
    %342 = vector.load %arg1[%c1_194, %c8_195, %c0_196, %c0_197] : memref<3x16x2x64xf32, #tpu.memory_space<vmem>>, vector<1x1x2x64xf32>
    %343 = vector.shape_cast %342 : vector<1x1x2x64xf32> to vector<2x64xf32>
    %344 = arith.addf %343, %330 : vector<2x64xf32>
    %345 = arith.negf %344 : vector<2x64xf32>
    %346 = math.exp %345 : vector<2x64xf32>
    %cst_198 = arith.constant 1.000000e+00 : f32
    %347 = vector.broadcast %cst_198 : f32 to vector<2x64xf32>
    %348 = arith.addf %347, %346 : vector<2x64xf32>
    %349 = arith.divf %347, %348 : vector<2x64xf32>
    %c2_199 = arith.constant 2 : index
    %c8_200 = arith.constant 8 : index
    %c0_201 = arith.constant 0 : index
    %c0_202 = arith.constant 0 : index
    %350 = vector.load %arg1[%c2_199, %c8_200, %c0_201, %c0_202] : memref<3x16x2x64xf32, #tpu.memory_space<vmem>>, vector<1x1x2x64xf32>
    %351 = vector.shape_cast %350 : vector<1x1x2x64xf32> to vector<2x64xf32>
    %352 = arith.mulf %341, %333 : vector<2x64xf32>
    %353 = arith.addf %351, %352 : vector<2x64xf32>
    %354 = math.tanh %353 : vector<2x64xf32>
    %cst_203 = arith.constant 1.000000e+00 : f32
    %355 = vector.broadcast %cst_203 : f32 to vector<2x64xf32>
    %356 = arith.subf %355, %349 : vector<2x64xf32>
    %357 = arith.mulf %356, %354 : vector<2x64xf32>
    %358 = arith.mulf %349, %319 : vector<2x64xf32>
    %359 = arith.addf %357, %358 : vector<2x64xf32>
    %360 = vector.extract_strided_slice %359 {offsets = [0, 0], sizes = [2, 32], strides = [1, 1]} : vector<2x64xf32> to vector<2x32xf32>
    %c8_204 = arith.constant 8 : index
    %c0_205 = arith.constant 0 : index
    %c0_206 = arith.constant 0 : index
    %361 = vector.load %arg6[%c8_204, %c0_205, %c0_206] : memref<16x2x32xf32, #tpu.memory_space<vmem>>, vector<1x2x32xf32>
    %362 = vector.shape_cast %361 : vector<1x2x32xf32> to vector<2x32xf32>
    %363 = vector.shape_cast %360 : vector<2x32xf32> to vector<1x2x32xf32>
    tpu.vector_store %arg6[%c8_204, %c0_205, %c0_206], %363 {strides = array<i32>} : memref<16x2x32xf32, #tpu.memory_space<vmem>>, vector<1x2x32xf32>,
    %364 = vector.extract_strided_slice %359 {offsets = [0, 32], sizes = [2, 32], strides = [1, 1]} : vector<2x64xf32> to vector<2x32xf32>
    %c7_207 = arith.constant 7 : index
    %c0_208 = arith.constant 0 : index
    %c0_209 = arith.constant 0 : index
    %365 = vector.load %arg7[%c7_207, %c0_208, %c0_209] : memref<16x2x32xf32, #tpu.memory_space<vmem>>, vector<1x2x32xf32>
    %366 = vector.shape_cast %365 : vector<1x2x32xf32> to vector<2x32xf32>
    %367 = vector.shape_cast %364 : vector<2x32xf32> to vector<1x2x32xf32>
    tpu.vector_store %arg7[%c7_207, %c0_208, %c0_209], %367 {strides = array<i32>} : memref<16x2x32xf32, #tpu.memory_space<vmem>>, vector<1x2x32xf32>,
    %368 = arith.truncf %359 : vector<2x64xf32> to vector<2x64xbf16>
    %cst_210 = arith.constant dense<0.000000e+00> : vector<2x64xf32>
    %369 = tpu.matmul %368, %3, %cst_210 {dimension_numbers = #tpu.dot_dimension_numbers<[1], [0], [0], [1], [0, 0, 1, 1], [], []>} : vector<2x64xbf16>, vector<64x64xbf16>, vector<2x64xf32> -> vector<2x64xf32>
    %cst_211 = arith.constant dense<0.000000e+00> : vector<2x64xf32>
    %370 = tpu.matmul %368, %4, %cst_211 {dimension_numbers = #tpu.dot_dimension_numbers<[1], [0], [0], [1], [0, 0, 1, 1], [], []>} : vector<2x64xbf16>, vector<64x64xbf16>, vector<2x64xf32> -> vector<2x64xf32>
    %cst_212 = arith.constant dense<0.000000e+00> : vector<2x64xf32>
    %371 = tpu.matmul %368, %5, %cst_212 {dimension_numbers = #tpu.dot_dimension_numbers<[1], [0], [0], [1], [0, 0, 1, 1], [], []>} : vector<2x64xbf16>, vector<64x64xbf16>, vector<2x64xf32> -> vector<2x64xf32>
    %372 = vector.broadcast %6 : vector<1x64xf32> to vector<2x64xf32>
    %373 = arith.addf %371, %372 : vector<2x64xf32>
    %c0_213 = arith.constant 0 : index
    %c9_214 = arith.constant 9 : index
    %c0_215 = arith.constant 0 : index
    %c0_216 = arith.constant 0 : index
    %374 = vector.load %arg1[%c0_213, %c9_214, %c0_215, %c0_216] : memref<3x16x2x64xf32, #tpu.memory_space<vmem>>, vector<1x1x2x64xf32>
    %375 = vector.shape_cast %374 : vector<1x1x2x64xf32> to vector<2x64xf32>
    %376 = arith.addf %375, %369 : vector<2x64xf32>
    %377 = arith.negf %376 : vector<2x64xf32>
    %378 = math.exp %377 : vector<2x64xf32>
    %cst_217 = arith.constant 1.000000e+00 : f32
    %379 = vector.broadcast %cst_217 : f32 to vector<2x64xf32>
    %380 = arith.addf %379, %378 : vector<2x64xf32>
    %381 = arith.divf %379, %380 : vector<2x64xf32>
    %c1_218 = arith.constant 1 : index
    %c9_219 = arith.constant 9 : index
    %c0_220 = arith.constant 0 : index
    %c0_221 = arith.constant 0 : index
    %382 = vector.load %arg1[%c1_218, %c9_219, %c0_220, %c0_221] : memref<3x16x2x64xf32, #tpu.memory_space<vmem>>, vector<1x1x2x64xf32>
    %383 = vector.shape_cast %382 : vector<1x1x2x64xf32> to vector<2x64xf32>
    %384 = arith.addf %383, %370 : vector<2x64xf32>
    %385 = arith.negf %384 : vector<2x64xf32>
    %386 = math.exp %385 : vector<2x64xf32>
    %cst_222 = arith.constant 1.000000e+00 : f32
    %387 = vector.broadcast %cst_222 : f32 to vector<2x64xf32>
    %388 = arith.addf %387, %386 : vector<2x64xf32>
    %389 = arith.divf %387, %388 : vector<2x64xf32>
    %c2_223 = arith.constant 2 : index
    %c9_224 = arith.constant 9 : index
    %c0_225 = arith.constant 0 : index
    %c0_226 = arith.constant 0 : index
    %390 = vector.load %arg1[%c2_223, %c9_224, %c0_225, %c0_226] : memref<3x16x2x64xf32, #tpu.memory_space<vmem>>, vector<1x1x2x64xf32>
    %391 = vector.shape_cast %390 : vector<1x1x2x64xf32> to vector<2x64xf32>
    %392 = arith.mulf %381, %373 : vector<2x64xf32>
    %393 = arith.addf %391, %392 : vector<2x64xf32>
    %394 = math.tanh %393 : vector<2x64xf32>
    %cst_227 = arith.constant 1.000000e+00 : f32
    %395 = vector.broadcast %cst_227 : f32 to vector<2x64xf32>
    %396 = arith.subf %395, %389 : vector<2x64xf32>
    %397 = arith.mulf %396, %394 : vector<2x64xf32>
    %398 = arith.mulf %389, %359 : vector<2x64xf32>
    %399 = arith.addf %397, %398 : vector<2x64xf32>
    %400 = vector.extract_strided_slice %399 {offsets = [0, 0], sizes = [2, 32], strides = [1, 1]} : vector<2x64xf32> to vector<2x32xf32>
    %c9_228 = arith.constant 9 : index
    %c0_229 = arith.constant 0 : index
    %c0_230 = arith.constant 0 : index
    %401 = vector.load %arg6[%c9_228, %c0_229, %c0_230] : memref<16x2x32xf32, #tpu.memory_space<vmem>>, vector<1x2x32xf32>
    %402 = vector.shape_cast %401 : vector<1x2x32xf32> to vector<2x32xf32>
    %403 = vector.shape_cast %400 : vector<2x32xf32> to vector<1x2x32xf32>
    tpu.vector_store %arg6[%c9_228, %c0_229, %c0_230], %403 {strides = array<i32>} : memref<16x2x32xf32, #tpu.memory_space<vmem>>, vector<1x2x32xf32>,
    %404 = vector.extract_strided_slice %399 {offsets = [0, 32], sizes = [2, 32], strides = [1, 1]} : vector<2x64xf32> to vector<2x32xf32>
    %c6_231 = arith.constant 6 : index
    %c0_232 = arith.constant 0 : index
    %c0_233 = arith.constant 0 : index
    %405 = vector.load %arg7[%c6_231, %c0_232, %c0_233] : memref<16x2x32xf32, #tpu.memory_space<vmem>>, vector<1x2x32xf32>
    %406 = vector.shape_cast %405 : vector<1x2x32xf32> to vector<2x32xf32>
    %407 = vector.shape_cast %404 : vector<2x32xf32> to vector<1x2x32xf32>
    tpu.vector_store %arg7[%c6_231, %c0_232, %c0_233], %407 {strides = array<i32>} : memref<16x2x32xf32, #tpu.memory_space<vmem>>, vector<1x2x32xf32>,
    %408 = arith.truncf %399 : vector<2x64xf32> to vector<2x64xbf16>
    %cst_234 = arith.constant dense<0.000000e+00> : vector<2x64xf32>
    %409 = tpu.matmul %408, %3, %cst_234 {dimension_numbers = #tpu.dot_dimension_numbers<[1], [0], [0], [1], [0, 0, 1, 1], [], []>} : vector<2x64xbf16>, vector<64x64xbf16>, vector<2x64xf32> -> vector<2x64xf32>
    %cst_235 = arith.constant dense<0.000000e+00> : vector<2x64xf32>
    %410 = tpu.matmul %408, %4, %cst_235 {dimension_numbers = #tpu.dot_dimension_numbers<[1], [0], [0], [1], [0, 0, 1, 1], [], []>} : vector<2x64xbf16>, vector<64x64xbf16>, vector<2x64xf32> -> vector<2x64xf32>
    %cst_236 = arith.constant dense<0.000000e+00> : vector<2x64xf32>
    %411 = tpu.matmul %408, %5, %cst_236 {dimension_numbers = #tpu.dot_dimension_numbers<[1], [0], [0], [1], [0, 0, 1, 1], [], []>} : vector<2x64xbf16>, vector<64x64xbf16>, vector<2x64xf32> -> vector<2x64xf32>
    %412 = vector.broadcast %6 : vector<1x64xf32> to vector<2x64xf32>
    %413 = arith.addf %411, %412 : vector<2x64xf32>
    %c0_237 = arith.constant 0 : index
    %c10_238 = arith.constant 10 : index
    %c0_239 = arith.constant 0 : index
    %c0_240 = arith.constant 0 : index
    %414 = vector.load %arg1[%c0_237, %c10_238, %c0_239, %c0_240] : memref<3x16x2x64xf32, #tpu.memory_space<vmem>>, vector<1x1x2x64xf32>
    %415 = vector.shape_cast %414 : vector<1x1x2x64xf32> to vector<2x64xf32>
    %416 = arith.addf %415, %409 : vector<2x64xf32>
    %417 = arith.negf %416 : vector<2x64xf32>
    %418 = math.exp %417 : vector<2x64xf32>
    %cst_241 = arith.constant 1.000000e+00 : f32
    %419 = vector.broadcast %cst_241 : f32 to vector<2x64xf32>
    %420 = arith.addf %419, %418 : vector<2x64xf32>
    %421 = arith.divf %419, %420 : vector<2x64xf32>
    %c1_242 = arith.constant 1 : index
    %c10_243 = arith.constant 10 : index
    %c0_244 = arith.constant 0 : index
    %c0_245 = arith.constant 0 : index
    %422 = vector.load %arg1[%c1_242, %c10_243, %c0_244, %c0_245] : memref<3x16x2x64xf32, #tpu.memory_space<vmem>>, vector<1x1x2x64xf32>
    %423 = vector.shape_cast %422 : vector<1x1x2x64xf32> to vector<2x64xf32>
    %424 = arith.addf %423, %410 : vector<2x64xf32>
    %425 = arith.negf %424 : vector<2x64xf32>
    %426 = math.exp %425 : vector<2x64xf32>
    %cst_246 = arith.constant 1.000000e+00 : f32
    %427 = vector.broadcast %cst_246 : f32 to vector<2x64xf32>
    %428 = arith.addf %427, %426 : vector<2x64xf32>
    %429 = arith.divf %427, %428 : vector<2x64xf32>
    %c2_247 = arith.constant 2 : index
    %c10_248 = arith.constant 10 : index
    %c0_249 = arith.constant 0 : index
    %c0_250 = arith.constant 0 : index
    %430 = vector.load %arg1[%c2_247, %c10_248, %c0_249, %c0_250] : memref<3x16x2x64xf32, #tpu.memory_space<vmem>>, vector<1x1x2x64xf32>
    %431 = vector.shape_cast %430 : vector<1x1x2x64xf32> to vector<2x64xf32>
    %432 = arith.mulf %421, %413 : vector<2x64xf32>
    %433 = arith.addf %431, %432 : vector<2x64xf32>
    %434 = math.tanh %433 : vector<2x64xf32>
    %cst_251 = arith.constant 1.000000e+00 : f32
    %435 = vector.broadcast %cst_251 : f32 to vector<2x64xf32>
    %436 = arith.subf %435, %429 : vector<2x64xf32>
    %437 = arith.mulf %436, %434 : vector<2x64xf32>
    %438 = arith.mulf %429, %399 : vector<2x64xf32>
    %439 = arith.addf %437, %438 : vector<2x64xf32>
    %440 = vector.extract_strided_slice %439 {offsets = [0, 0], sizes = [2, 32], strides = [1, 1]} : vector<2x64xf32> to vector<2x32xf32>
    %c10_252 = arith.constant 10 : index
    %c0_253 = arith.constant 0 : index
    %c0_254 = arith.constant 0 : index
    %441 = vector.load %arg6[%c10_252, %c0_253, %c0_254] : memref<16x2x32xf32, #tpu.memory_space<vmem>>, vector<1x2x32xf32>
    %442 = vector.shape_cast %441 : vector<1x2x32xf32> to vector<2x32xf32>
    %443 = vector.shape_cast %440 : vector<2x32xf32> to vector<1x2x32xf32>
    tpu.vector_store %arg6[%c10_252, %c0_253, %c0_254], %443 {strides = array<i32>} : memref<16x2x32xf32, #tpu.memory_space<vmem>>, vector<1x2x32xf32>,
    %444 = vector.extract_strided_slice %439 {offsets = [0, 32], sizes = [2, 32], strides = [1, 1]} : vector<2x64xf32> to vector<2x32xf32>
    %c5_255 = arith.constant 5 : index
    %c0_256 = arith.constant 0 : index
    %c0_257 = arith.constant 0 : index
    %445 = vector.load %arg7[%c5_255, %c0_256, %c0_257] : memref<16x2x32xf32, #tpu.memory_space<vmem>>, vector<1x2x32xf32>
    %446 = vector.shape_cast %445 : vector<1x2x32xf32> to vector<2x32xf32>
    %447 = vector.shape_cast %444 : vector<2x32xf32> to vector<1x2x32xf32>
    tpu.vector_store %arg7[%c5_255, %c0_256, %c0_257], %447 {strides = array<i32>} : memref<16x2x32xf32, #tpu.memory_space<vmem>>, vector<1x2x32xf32>,
    %448 = arith.truncf %439 : vector<2x64xf32> to vector<2x64xbf16>
    %cst_258 = arith.constant dense<0.000000e+00> : vector<2x64xf32>
    %449 = tpu.matmul %448, %3, %cst_258 {dimension_numbers = #tpu.dot_dimension_numbers<[1], [0], [0], [1], [0, 0, 1, 1], [], []>} : vector<2x64xbf16>, vector<64x64xbf16>, vector<2x64xf32> -> vector<2x64xf32>
    %cst_259 = arith.constant dense<0.000000e+00> : vector<2x64xf32>
    %450 = tpu.matmul %448, %4, %cst_259 {dimension_numbers = #tpu.dot_dimension_numbers<[1], [0], [0], [1], [0, 0, 1, 1], [], []>} : vector<2x64xbf16>, vector<64x64xbf16>, vector<2x64xf32> -> vector<2x64xf32>
    %cst_260 = arith.constant dense<0.000000e+00> : vector<2x64xf32>
    %451 = tpu.matmul %448, %5, %cst_260 {dimension_numbers = #tpu.dot_dimension_numbers<[1], [0], [0], [1], [0, 0, 1, 1], [], []>} : vector<2x64xbf16>, vector<64x64xbf16>, vector<2x64xf32> -> vector<2x64xf32>
    %452 = vector.broadcast %6 : vector<1x64xf32> to vector<2x64xf32>
    %453 = arith.addf %451, %452 : vector<2x64xf32>
    %c0_261 = arith.constant 0 : index
    %c11_262 = arith.constant 11 : index
    %c0_263 = arith.constant 0 : index
    %c0_264 = arith.constant 0 : index
    %454 = vector.load %arg1[%c0_261, %c11_262, %c0_263, %c0_264] : memref<3x16x2x64xf32, #tpu.memory_space<vmem>>, vector<1x1x2x64xf32>
    %455 = vector.shape_cast %454 : vector<1x1x2x64xf32> to vector<2x64xf32>
    %456 = arith.addf %455, %449 : vector<2x64xf32>
    %457 = arith.negf %456 : vector<2x64xf32>
    %458 = math.exp %457 : vector<2x64xf32>
    %cst_265 = arith.constant 1.000000e+00 : f32
    %459 = vector.broadcast %cst_265 : f32 to vector<2x64xf32>
    %460 = arith.addf %459, %458 : vector<2x64xf32>
    %461 = arith.divf %459, %460 : vector<2x64xf32>
    %c1_266 = arith.constant 1 : index
    %c11_267 = arith.constant 11 : index
    %c0_268 = arith.constant 0 : index
    %c0_269 = arith.constant 0 : index
    %462 = vector.load %arg1[%c1_266, %c11_267, %c0_268, %c0_269] : memref<3x16x2x64xf32, #tpu.memory_space<vmem>>, vector<1x1x2x64xf32>
    %463 = vector.shape_cast %462 : vector<1x1x2x64xf32> to vector<2x64xf32>
    %464 = arith.addf %463, %450 : vector<2x64xf32>
    %465 = arith.negf %464 : vector<2x64xf32>
    %466 = math.exp %465 : vector<2x64xf32>
    %cst_270 = arith.constant 1.000000e+00 : f32
    %467 = vector.broadcast %cst_270 : f32 to vector<2x64xf32>
    %468 = arith.addf %467, %466 : vector<2x64xf32>
    %469 = arith.divf %467, %468 : vector<2x64xf32>
    %c2_271 = arith.constant 2 : index
    %c11_272 = arith.constant 11 : index
    %c0_273 = arith.constant 0 : index
    %c0_274 = arith.constant 0 : index
    %470 = vector.load %arg1[%c2_271, %c11_272, %c0_273, %c0_274] : memref<3x16x2x64xf32, #tpu.memory_space<vmem>>, vector<1x1x2x64xf32>
    %471 = vector.shape_cast %470 : vector<1x1x2x64xf32> to vector<2x64xf32>
    %472 = arith.mulf %461, %453 : vector<2x64xf32>
    %473 = arith.addf %471, %472 : vector<2x64xf32>
    %474 = math.tanh %473 : vector<2x64xf32>
    %cst_275 = arith.constant 1.000000e+00 : f32
    %475 = vector.broadcast %cst_275 : f32 to vector<2x64xf32>
    %476 = arith.subf %475, %469 : vector<2x64xf32>
    %477 = arith.mulf %476, %474 : vector<2x64xf32>
    %478 = arith.mulf %469, %439 : vector<2x64xf32>
    %479 = arith.addf %477, %478 : vector<2x64xf32>
    %480 = vector.extract_strided_slice %479 {offsets = [0, 0], sizes = [2, 32], strides = [1, 1]} : vector<2x64xf32> to vector<2x32xf32>
    %c11_276 = arith.constant 11 : index
    %c0_277 = arith.constant 0 : index
    %c0_278 = arith.constant 0 : index
    %481 = vector.load %arg6[%c11_276, %c0_277, %c0_278] : memref<16x2x32xf32, #tpu.memory_space<vmem>>, vector<1x2x32xf32>
    %482 = vector.shape_cast %481 : vector<1x2x32xf32> to vector<2x32xf32>
    %483 = vector.shape_cast %480 : vector<2x32xf32> to vector<1x2x32xf32>
    tpu.vector_store %arg6[%c11_276, %c0_277, %c0_278], %483 {strides = array<i32>} : memref<16x2x32xf32, #tpu.memory_space<vmem>>, vector<1x2x32xf32>,
    %484 = vector.extract_strided_slice %479 {offsets = [0, 32], sizes = [2, 32], strides = [1, 1]} : vector<2x64xf32> to vector<2x32xf32>
    %c4_279 = arith.constant 4 : index
    %c0_280 = arith.constant 0 : index
    %c0_281 = arith.constant 0 : index
    %485 = vector.load %arg7[%c4_279, %c0_280, %c0_281] : memref<16x2x32xf32, #tpu.memory_space<vmem>>, vector<1x2x32xf32>
    %486 = vector.shape_cast %485 : vector<1x2x32xf32> to vector<2x32xf32>
    %487 = vector.shape_cast %484 : vector<2x32xf32> to vector<1x2x32xf32>
    tpu.vector_store %arg7[%c4_279, %c0_280, %c0_281], %487 {strides = array<i32>} : memref<16x2x32xf32, #tpu.memory_space<vmem>>, vector<1x2x32xf32>,
    %488 = arith.truncf %479 : vector<2x64xf32> to vector<2x64xbf16>
    %cst_282 = arith.constant dense<0.000000e+00> : vector<2x64xf32>
    %489 = tpu.matmul %488, %3, %cst_282 {dimension_numbers = #tpu.dot_dimension_numbers<[1], [0], [0], [1], [0, 0, 1, 1], [], []>} : vector<2x64xbf16>, vector<64x64xbf16>, vector<2x64xf32> -> vector<2x64xf32>
    %cst_283 = arith.constant dense<0.000000e+00> : vector<2x64xf32>
    %490 = tpu.matmul %488, %4, %cst_283 {dimension_numbers = #tpu.dot_dimension_numbers<[1], [0], [0], [1], [0, 0, 1, 1], [], []>} : vector<2x64xbf16>, vector<64x64xbf16>, vector<2x64xf32> -> vector<2x64xf32>
    %cst_284 = arith.constant dense<0.000000e+00> : vector<2x64xf32>
    %491 = tpu.matmul %488, %5, %cst_284 {dimension_numbers = #tpu.dot_dimension_numbers<[1], [0], [0], [1], [0, 0, 1, 1], [], []>} : vector<2x64xbf16>, vector<64x64xbf16>, vector<2x64xf32> -> vector<2x64xf32>
    %492 = vector.broadcast %6 : vector<1x64xf32> to vector<2x64xf32>
    %493 = arith.addf %491, %492 : vector<2x64xf32>
    %c0_285 = arith.constant 0 : index
    %c12_286 = arith.constant 12 : index
    %c0_287 = arith.constant 0 : index
    %c0_288 = arith.constant 0 : index
    %494 = vector.load %arg1[%c0_285, %c12_286, %c0_287, %c0_288] : memref<3x16x2x64xf32, #tpu.memory_space<vmem>>, vector<1x1x2x64xf32>
    %495 = vector.shape_cast %494 : vector<1x1x2x64xf32> to vector<2x64xf32>
    %496 = arith.addf %495, %489 : vector<2x64xf32>
    %497 = arith.negf %496 : vector<2x64xf32>
    %498 = math.exp %497 : vector<2x64xf32>
    %cst_289 = arith.constant 1.000000e+00 : f32
    %499 = vector.broadcast %cst_289 : f32 to vector<2x64xf32>
    %500 = arith.addf %499, %498 : vector<2x64xf32>
    %501 = arith.divf %499, %500 : vector<2x64xf32>
    %c1_290 = arith.constant 1 : index
    %c12_291 = arith.constant 12 : index
    %c0_292 = arith.constant 0 : index
    %c0_293 = arith.constant 0 : index
    %502 = vector.load %arg1[%c1_290, %c12_291, %c0_292, %c0_293] : memref<3x16x2x64xf32, #tpu.memory_space<vmem>>, vector<1x1x2x64xf32>
    %503 = vector.shape_cast %502 : vector<1x1x2x64xf32> to vector<2x64xf32>
    %504 = arith.addf %503, %490 : vector<2x64xf32>
    %505 = arith.negf %504 : vector<2x64xf32>
    %506 = math.exp %505 : vector<2x64xf32>
    %cst_294 = arith.constant 1.000000e+00 : f32
    %507 = vector.broadcast %cst_294 : f32 to vector<2x64xf32>
    %508 = arith.addf %507, %506 : vector<2x64xf32>
    %509 = arith.divf %507, %508 : vector<2x64xf32>
    %c2_295 = arith.constant 2 : index
    %c12_296 = arith.constant 12 : index
    %c0_297 = arith.constant 0 : index
    %c0_298 = arith.constant 0 : index
    %510 = vector.load %arg1[%c2_295, %c12_296, %c0_297, %c0_298] : memref<3x16x2x64xf32, #tpu.memory_space<vmem>>, vector<1x1x2x64xf32>
    %511 = vector.shape_cast %510 : vector<1x1x2x64xf32> to vector<2x64xf32>
    %512 = arith.mulf %501, %493 : vector<2x64xf32>
    %513 = arith.addf %511, %512 : vector<2x64xf32>
    %514 = math.tanh %513 : vector<2x64xf32>
    %cst_299 = arith.constant 1.000000e+00 : f32
    %515 = vector.broadcast %cst_299 : f32 to vector<2x64xf32>
    %516 = arith.subf %515, %509 : vector<2x64xf32>
    %517 = arith.mulf %516, %514 : vector<2x64xf32>
    %518 = arith.mulf %509, %479 : vector<2x64xf32>
    %519 = arith.addf %517, %518 : vector<2x64xf32>
    %520 = vector.extract_strided_slice %519 {offsets = [0, 0], sizes = [2, 32], strides = [1, 1]} : vector<2x64xf32> to vector<2x32xf32>
    %c12_300 = arith.constant 12 : index
    %c0_301 = arith.constant 0 : index
    %c0_302 = arith.constant 0 : index
    %521 = vector.load %arg6[%c12_300, %c0_301, %c0_302] : memref<16x2x32xf32, #tpu.memory_space<vmem>>, vector<1x2x32xf32>
    %522 = vector.shape_cast %521 : vector<1x2x32xf32> to vector<2x32xf32>
    %523 = vector.shape_cast %520 : vector<2x32xf32> to vector<1x2x32xf32>
    tpu.vector_store %arg6[%c12_300, %c0_301, %c0_302], %523 {strides = array<i32>} : memref<16x2x32xf32, #tpu.memory_space<vmem>>, vector<1x2x32xf32>,
    %524 = vector.extract_strided_slice %519 {offsets = [0, 32], sizes = [2, 32], strides = [1, 1]} : vector<2x64xf32> to vector<2x32xf32>
    %c3_303 = arith.constant 3 : index
    %c0_304 = arith.constant 0 : index
    %c0_305 = arith.constant 0 : index
    %525 = vector.load %arg7[%c3_303, %c0_304, %c0_305] : memref<16x2x32xf32, #tpu.memory_space<vmem>>, vector<1x2x32xf32>
    %526 = vector.shape_cast %525 : vector<1x2x32xf32> to vector<2x32xf32>
    %527 = vector.shape_cast %524 : vector<2x32xf32> to vector<1x2x32xf32>
    tpu.vector_store %arg7[%c3_303, %c0_304, %c0_305], %527 {strides = array<i32>} : memref<16x2x32xf32, #tpu.memory_space<vmem>>, vector<1x2x32xf32>,
    %528 = arith.truncf %519 : vector<2x64xf32> to vector<2x64xbf16>
    %cst_306 = arith.constant dense<0.000000e+00> : vector<2x64xf32>
    %529 = tpu.matmul %528, %3, %cst_306 {dimension_numbers = #tpu.dot_dimension_numbers<[1], [0], [0], [1], [0, 0, 1, 1], [], []>} : vector<2x64xbf16>, vector<64x64xbf16>, vector<2x64xf32> -> vector<2x64xf32>
    %cst_307 = arith.constant dense<0.000000e+00> : vector<2x64xf32>
    %530 = tpu.matmul %528, %4, %cst_307 {dimension_numbers = #tpu.dot_dimension_numbers<[1], [0], [0], [1], [0, 0, 1, 1], [], []>} : vector<2x64xbf16>, vector<64x64xbf16>, vector<2x64xf32> -> vector<2x64xf32>
    %cst_308 = arith.constant dense<0.000000e+00> : vector<2x64xf32>
    %531 = tpu.matmul %528, %5, %cst_308 {dimension_numbers = #tpu.dot_dimension_numbers<[1], [0], [0], [1], [0, 0, 1, 1], [], []>} : vector<2x64xbf16>, vector<64x64xbf16>, vector<2x64xf32> -> vector<2x64xf32>
    %532 = vector.broadcast %6 : vector<1x64xf32> to vector<2x64xf32>
    %533 = arith.addf %531, %532 : vector<2x64xf32>
    %c0_309 = arith.constant 0 : index
    %c13_310 = arith.constant 13 : index
    %c0_311 = arith.constant 0 : index
    %c0_312 = arith.constant 0 : index
    %534 = vector.load %arg1[%c0_309, %c13_310, %c0_311, %c0_312] : memref<3x16x2x64xf32, #tpu.memory_space<vmem>>, vector<1x1x2x64xf32>
    %535 = vector.shape_cast %534 : vector<1x1x2x64xf32> to vector<2x64xf32>
    %536 = arith.addf %535, %529 : vector<2x64xf32>
    %537 = arith.negf %536 : vector<2x64xf32>
    %538 = math.exp %537 : vector<2x64xf32>
    %cst_313 = arith.constant 1.000000e+00 : f32
    %539 = vector.broadcast %cst_313 : f32 to vector<2x64xf32>
    %540 = arith.addf %539, %538 : vector<2x64xf32>
    %541 = arith.divf %539, %540 : vector<2x64xf32>
    %c1_314 = arith.constant 1 : index
    %c13_315 = arith.constant 13 : index
    %c0_316 = arith.constant 0 : index
    %c0_317 = arith.constant 0 : index
    %542 = vector.load %arg1[%c1_314, %c13_315, %c0_316, %c0_317] : memref<3x16x2x64xf32, #tpu.memory_space<vmem>>, vector<1x1x2x64xf32>
    %543 = vector.shape_cast %542 : vector<1x1x2x64xf32> to vector<2x64xf32>
    %544 = arith.addf %543, %530 : vector<2x64xf32>
    %545 = arith.negf %544 : vector<2x64xf32>
    %546 = math.exp %545 : vector<2x64xf32>
    %cst_318 = arith.constant 1.000000e+00 : f32
    %547 = vector.broadcast %cst_318 : f32 to vector<2x64xf32>
    %548 = arith.addf %547, %546 : vector<2x64xf32>
    %549 = arith.divf %547, %548 : vector<2x64xf32>
    %c2_319 = arith.constant 2 : index
    %c13_320 = arith.constant 13 : index
    %c0_321 = arith.constant 0 : index
    %c0_322 = arith.constant 0 : index
    %550 = vector.load %arg1[%c2_319, %c13_320, %c0_321, %c0_322] : memref<3x16x2x64xf32, #tpu.memory_space<vmem>>, vector<1x1x2x64xf32>
    %551 = vector.shape_cast %550 : vector<1x1x2x64xf32> to vector<2x64xf32>
    %552 = arith.mulf %541, %533 : vector<2x64xf32>
    %553 = arith.addf %551, %552 : vector<2x64xf32>
    %554 = math.tanh %553 : vector<2x64xf32>
    %cst_323 = arith.constant 1.000000e+00 : f32
    %555 = vector.broadcast %cst_323 : f32 to vector<2x64xf32>
    %556 = arith.subf %555, %549 : vector<2x64xf32>
    %557 = arith.mulf %556, %554 : vector<2x64xf32>
    %558 = arith.mulf %549, %519 : vector<2x64xf32>
    %559 = arith.addf %557, %558 : vector<2x64xf32>
    %560 = vector.extract_strided_slice %559 {offsets = [0, 0], sizes = [2, 32], strides = [1, 1]} : vector<2x64xf32> to vector<2x32xf32>
    %c13_324 = arith.constant 13 : index
    %c0_325 = arith.constant 0 : index
    %c0_326 = arith.constant 0 : index
    %561 = vector.load %arg6[%c13_324, %c0_325, %c0_326] : memref<16x2x32xf32, #tpu.memory_space<vmem>>, vector<1x2x32xf32>
    %562 = vector.shape_cast %561 : vector<1x2x32xf32> to vector<2x32xf32>
    %563 = vector.shape_cast %560 : vector<2x32xf32> to vector<1x2x32xf32>
    tpu.vector_store %arg6[%c13_324, %c0_325, %c0_326], %563 {strides = array<i32>} : memref<16x2x32xf32, #tpu.memory_space<vmem>>, vector<1x2x32xf32>,
    %564 = vector.extract_strided_slice %559 {offsets = [0, 32], sizes = [2, 32], strides = [1, 1]} : vector<2x64xf32> to vector<2x32xf32>
    %c2_327 = arith.constant 2 : index
    %c0_328 = arith.constant 0 : index
    %c0_329 = arith.constant 0 : index
    %565 = vector.load %arg7[%c2_327, %c0_328, %c0_329] : memref<16x2x32xf32, #tpu.memory_space<vmem>>, vector<1x2x32xf32>
    %566 = vector.shape_cast %565 : vector<1x2x32xf32> to vector<2x32xf32>
    %567 = vector.shape_cast %564 : vector<2x32xf32> to vector<1x2x32xf32>
    tpu.vector_store %arg7[%c2_327, %c0_328, %c0_329], %567 {strides = array<i32>} : memref<16x2x32xf32, #tpu.memory_space<vmem>>, vector<1x2x32xf32>,
    %568 = arith.truncf %559 : vector<2x64xf32> to vector<2x64xbf16>
    %cst_330 = arith.constant dense<0.000000e+00> : vector<2x64xf32>
    %569 = tpu.matmul %568, %3, %cst_330 {dimension_numbers = #tpu.dot_dimension_numbers<[1], [0], [0], [1], [0, 0, 1, 1], [], []>} : vector<2x64xbf16>, vector<64x64xbf16>, vector<2x64xf32> -> vector<2x64xf32>
    %cst_331 = arith.constant dense<0.000000e+00> : vector<2x64xf32>
    %570 = tpu.matmul %568, %4, %cst_331 {dimension_numbers = #tpu.dot_dimension_numbers<[1], [0], [0], [1], [0, 0, 1, 1], [], []>} : vector<2x64xbf16>, vector<64x64xbf16>, vector<2x64xf32> -> vector<2x64xf32>
    %cst_332 = arith.constant dense<0.000000e+00> : vector<2x64xf32>
    %571 = tpu.matmul %568, %5, %cst_332 {dimension_numbers = #tpu.dot_dimension_numbers<[1], [0], [0], [1], [0, 0, 1, 1], [], []>} : vector<2x64xbf16>, vector<64x64xbf16>, vector<2x64xf32> -> vector<2x64xf32>
    %572 = vector.broadcast %6 : vector<1x64xf32> to vector<2x64xf32>
    %573 = arith.addf %571, %572 : vector<2x64xf32>
    %c0_333 = arith.constant 0 : index
    %c14_334 = arith.constant 14 : index
    %c0_335 = arith.constant 0 : index
    %c0_336 = arith.constant 0 : index
    %574 = vector.load %arg1[%c0_333, %c14_334, %c0_335, %c0_336] : memref<3x16x2x64xf32, #tpu.memory_space<vmem>>, vector<1x1x2x64xf32>
    %575 = vector.shape_cast %574 : vector<1x1x2x64xf32> to vector<2x64xf32>
    %576 = arith.addf %575, %569 : vector<2x64xf32>
    %577 = arith.negf %576 : vector<2x64xf32>
    %578 = math.exp %577 : vector<2x64xf32>
    %cst_337 = arith.constant 1.000000e+00 : f32
    %579 = vector.broadcast %cst_337 : f32 to vector<2x64xf32>
    %580 = arith.addf %579, %578 : vector<2x64xf32>
    %581 = arith.divf %579, %580 : vector<2x64xf32>
    %c1_338 = arith.constant 1 : index
    %c14_339 = arith.constant 14 : index
    %c0_340 = arith.constant 0 : index
    %c0_341 = arith.constant 0 : index
    %582 = vector.load %arg1[%c1_338, %c14_339, %c0_340, %c0_341] : memref<3x16x2x64xf32, #tpu.memory_space<vmem>>, vector<1x1x2x64xf32>
    %583 = vector.shape_cast %582 : vector<1x1x2x64xf32> to vector<2x64xf32>
    %584 = arith.addf %583, %570 : vector<2x64xf32>
    %585 = arith.negf %584 : vector<2x64xf32>
    %586 = math.exp %585 : vector<2x64xf32>
    %cst_342 = arith.constant 1.000000e+00 : f32
    %587 = vector.broadcast %cst_342 : f32 to vector<2x64xf32>
    %588 = arith.addf %587, %586 : vector<2x64xf32>
    %589 = arith.divf %587, %588 : vector<2x64xf32>
    %c2_343 = arith.constant 2 : index
    %c14_344 = arith.constant 14 : index
    %c0_345 = arith.constant 0 : index
    %c0_346 = arith.constant 0 : index
    %590 = vector.load %arg1[%c2_343, %c14_344, %c0_345, %c0_346] : memref<3x16x2x64xf32, #tpu.memory_space<vmem>>, vector<1x1x2x64xf32>
    %591 = vector.shape_cast %590 : vector<1x1x2x64xf32> to vector<2x64xf32>
    %592 = arith.mulf %581, %573 : vector<2x64xf32>
    %593 = arith.addf %591, %592 : vector<2x64xf32>
    %594 = math.tanh %593 : vector<2x64xf32>
    %cst_347 = arith.constant 1.000000e+00 : f32
    %595 = vector.broadcast %cst_347 : f32 to vector<2x64xf32>
    %596 = arith.subf %595, %589 : vector<2x64xf32>
    %597 = arith.mulf %596, %594 : vector<2x64xf32>
    %598 = arith.mulf %589, %559 : vector<2x64xf32>
    %599 = arith.addf %597, %598 : vector<2x64xf32>
    %600 = vector.extract_strided_slice %599 {offsets = [0, 0], sizes = [2, 32], strides = [1, 1]} : vector<2x64xf32> to vector<2x32xf32>
    %c14_348 = arith.constant 14 : index
    %c0_349 = arith.constant 0 : index
    %c0_350 = arith.constant 0 : index
    %601 = vector.load %arg6[%c14_348, %c0_349, %c0_350] : memref<16x2x32xf32, #tpu.memory_space<vmem>>, vector<1x2x32xf32>
    %602 = vector.shape_cast %601 : vector<1x2x32xf32> to vector<2x32xf32>
    %603 = vector.shape_cast %600 : vector<2x32xf32> to vector<1x2x32xf32>
    tpu.vector_store %arg6[%c14_348, %c0_349, %c0_350], %603 {strides = array<i32>} : memref<16x2x32xf32, #tpu.memory_space<vmem>>, vector<1x2x32xf32>,
    %604 = vector.extract_strided_slice %599 {offsets = [0, 32], sizes = [2, 32], strides = [1, 1]} : vector<2x64xf32> to vector<2x32xf32>
    %c1_351 = arith.constant 1 : index
    %c0_352 = arith.constant 0 : index
    %c0_353 = arith.constant 0 : index
    %605 = vector.load %arg7[%c1_351, %c0_352, %c0_353] : memref<16x2x32xf32, #tpu.memory_space<vmem>>, vector<1x2x32xf32>
    %606 = vector.shape_cast %605 : vector<1x2x32xf32> to vector<2x32xf32>
    %607 = vector.shape_cast %604 : vector<2x32xf32> to vector<1x2x32xf32>
    tpu.vector_store %arg7[%c1_351, %c0_352, %c0_353], %607 {strides = array<i32>} : memref<16x2x32xf32, #tpu.memory_space<vmem>>, vector<1x2x32xf32>,
    %608 = arith.truncf %599 : vector<2x64xf32> to vector<2x64xbf16>
    %cst_354 = arith.constant dense<0.000000e+00> : vector<2x64xf32>
    %609 = tpu.matmul %608, %3, %cst_354 {dimension_numbers = #tpu.dot_dimension_numbers<[1], [0], [0], [1], [0, 0, 1, 1], [], []>} : vector<2x64xbf16>, vector<64x64xbf16>, vector<2x64xf32> -> vector<2x64xf32>
    %cst_355 = arith.constant dense<0.000000e+00> : vector<2x64xf32>
    %610 = tpu.matmul %608, %4, %cst_355 {dimension_numbers = #tpu.dot_dimension_numbers<[1], [0], [0], [1], [0, 0, 1, 1], [], []>} : vector<2x64xbf16>, vector<64x64xbf16>, vector<2x64xf32> -> vector<2x64xf32>
    %cst_356 = arith.constant dense<0.000000e+00> : vector<2x64xf32>
    %611 = tpu.matmul %608, %5, %cst_356 {dimension_numbers = #tpu.dot_dimension_numbers<[1], [0], [0], [1], [0, 0, 1, 1], [], []>} : vector<2x64xbf16>, vector<64x64xbf16>, vector<2x64xf32> -> vector<2x64xf32>
    %612 = vector.broadcast %6 : vector<1x64xf32> to vector<2x64xf32>
    %613 = arith.addf %611, %612 : vector<2x64xf32>
    %c0_357 = arith.constant 0 : index
    %c15_358 = arith.constant 15 : index
    %c0_359 = arith.constant 0 : index
    %c0_360 = arith.constant 0 : index
    %614 = vector.load %arg1[%c0_357, %c15_358, %c0_359, %c0_360] : memref<3x16x2x64xf32, #tpu.memory_space<vmem>>, vector<1x1x2x64xf32>
    %615 = vector.shape_cast %614 : vector<1x1x2x64xf32> to vector<2x64xf32>
    %616 = arith.addf %615, %609 : vector<2x64xf32>
    %617 = arith.negf %616 : vector<2x64xf32>
    %618 = math.exp %617 : vector<2x64xf32>
    %cst_361 = arith.constant 1.000000e+00 : f32
    %619 = vector.broadcast %cst_361 : f32 to vector<2x64xf32>
    %620 = arith.addf %619, %618 : vector<2x64xf32>
    %621 = arith.divf %619, %620 : vector<2x64xf32>
    %c1_362 = arith.constant 1 : index
    %c15_363 = arith.constant 15 : index
    %c0_364 = arith.constant 0 : index
    %c0_365 = arith.constant 0 : index
    %622 = vector.load %arg1[%c1_362, %c15_363, %c0_364, %c0_365] : memref<3x16x2x64xf32, #tpu.memory_space<vmem>>, vector<1x1x2x64xf32>
    %623 = vector.shape_cast %622 : vector<1x1x2x64xf32> to vector<2x64xf32>
    %624 = arith.addf %623, %610 : vector<2x64xf32>
    %625 = arith.negf %624 : vector<2x64xf32>
    %626 = math.exp %625 : vector<2x64xf32>
    %cst_366 = arith.constant 1.000000e+00 : f32
    %627 = vector.broadcast %cst_366 : f32 to vector<2x64xf32>
    %628 = arith.addf %627, %626 : vector<2x64xf32>
    %629 = arith.divf %627, %628 : vector<2x64xf32>
    %c2_367 = arith.constant 2 : index
    %c15_368 = arith.constant 15 : index
    %c0_369 = arith.constant 0 : index
    %c0_370 = arith.constant 0 : index
    %630 = vector.load %arg1[%c2_367, %c15_368, %c0_369, %c0_370] : memref<3x16x2x64xf32, #tpu.memory_space<vmem>>, vector<1x1x2x64xf32>
    %631 = vector.shape_cast %630 : vector<1x1x2x64xf32> to vector<2x64xf32>
    %632 = arith.mulf %621, %613 : vector<2x64xf32>
    %633 = arith.addf %631, %632 : vector<2x64xf32>
    %634 = math.tanh %633 : vector<2x64xf32>
    %cst_371 = arith.constant 1.000000e+00 : f32
    %635 = vector.broadcast %cst_371 : f32 to vector<2x64xf32>
    %636 = arith.subf %635, %629 : vector<2x64xf32>
    %637 = arith.mulf %636, %634 : vector<2x64xf32>
    %638 = arith.mulf %629, %599 : vector<2x64xf32>
    %639 = arith.addf %637, %638 : vector<2x64xf32>
    %640 = vector.extract_strided_slice %639 {offsets = [0, 0], sizes = [2, 32], strides = [1, 1]} : vector<2x64xf32> to vector<2x32xf32>
    %c15_372 = arith.constant 15 : index
    %c0_373 = arith.constant 0 : index
    %c0_374 = arith.constant 0 : index
    %641 = vector.load %arg6[%c15_372, %c0_373, %c0_374] : memref<16x2x32xf32, #tpu.memory_space<vmem>>, vector<1x2x32xf32>
    %642 = vector.shape_cast %641 : vector<1x2x32xf32> to vector<2x32xf32>
    %643 = vector.shape_cast %640 : vector<2x32xf32> to vector<1x2x32xf32>
    tpu.vector_store %arg6[%c15_372, %c0_373, %c0_374], %643 {strides = array<i32>} : memref<16x2x32xf32, #tpu.memory_space<vmem>>, vector<1x2x32xf32>,
    %644 = vector.extract_strided_slice %639 {offsets = [0, 32], sizes = [2, 32], strides = [1, 1]} : vector<2x64xf32> to vector<2x32xf32>
    %c0_375 = arith.constant 0 : index
    %c0_376 = arith.constant 0 : index
    %c0_377 = arith.constant 0 : index
    %645 = vector.load %arg7[%c0_375, %c0_376, %c0_377] : memref<16x2x32xf32, #tpu.memory_space<vmem>>, vector<1x2x32xf32>
    %646 = vector.shape_cast %645 : vector<1x2x32xf32> to vector<2x32xf32>
    %647 = vector.shape_cast %644 : vector<2x32xf32> to vector<1x2x32xf32>
    tpu.vector_store %arg7[%c0_375, %c0_376, %c0_377], %647 {strides = array<i32>} : memref<16x2x32xf32, #tpu.memory_space<vmem>>, vector<1x2x32xf32>,
    %c0_378 = arith.constant 0 : index
    %c0_379 = arith.constant 0 : index
    %648 = vector.load %arg9[%c0_378, %c0_379] : memref<2x64xf32, #tpu.memory_space<vmem>>, vector<2x64xf32>
    tpu.vector_store %arg9[%c0_378, %c0_379], %639 {strides = array<i32>} : memref<2x64xf32, #tpu.memory_space<vmem>>, vector<2x64xf32>,
    %c0_380 = arith.constant 0 : index
    %c0_381 = arith.constant 0 : index
    %649 = vector.load %arg8[%c0_380, %c0_381] : memref<2x64xf32, #tpu.memory_space<vmem>>, vector<2x64xf32>
    tpu.vector_store %arg8[%c0_380, %c0_381], %639 {strides = array<i32>} : memref<2x64xf32, #tpu.memory_space<vmem>>, vector<2x64xf32>,
    return
  }
  func.func @transform_0(%arg0: i32) -> (i32, i32, i32, i32) {
    %c0_i32 = arith.constant 0 : i32
    %c0_i32_0 = arith.constant 0 : i32
    %c0_i32_1 = arith.constant 0 : i32
    %c0_i32_2 = arith.constant 0 : i32
    return %c0_i32, %arg0, %c0_i32_0, %c0_i32_1 : i32, i32, i32, i32
  }
  func.func @transform_1(%arg0: i32) -> (i32, i32) {
    %c0_i32 = arith.constant 0 : i32
    %c0_i32_0 = arith.constant 0 : i32
    %c0_i32_1 = arith.constant 0 : i32
    return %c0_i32, %c0_i32_0 : i32, i32
  }
  func.func @transform_2(%arg0: i32) -> (i32, i32) {
    %c0_i32 = arith.constant 0 : i32
    %c0_i32_0 = arith.constant 0 : i32
    %c0_i32_1 = arith.constant 0 : i32
    return %c0_i32, %c0_i32_0 : i32, i32
  }
  func.func @transform_3(%arg0: i32) -> (i32, i32) {
    %c0_i32 = arith.constant 0 : i32
    %c0_i32_0 = arith.constant 0 : i32
    %c0_i32_1 = arith.constant 0 : i32
    return %c0_i32, %c0_i32_0 : i32, i32
  }
  func.func @transform_4(%arg0: i32) -> (i32, i32) {
    %c0_i32 = arith.constant 0 : i32
    %c0_i32_0 = arith.constant 0 : i32
    %c0_i32_1 = arith.constant 0 : i32
    return %c0_i32, %c0_i32_0 : i32, i32
  }
  func.func @transform_5(%arg0: i32) -> (i32, i32, i32) {
    %c0_i32 = arith.constant 0 : i32
    %c0_i32_0 = arith.constant 0 : i32
    %c0_i32_1 = arith.constant 0 : i32
    return %arg0, %c0_i32, %c0_i32_0 : i32, i32, i32
  }
  func.func @transform_6(%arg0: i32) -> (i32, i32, i32) {
    %c0_i32 = arith.constant 0 : i32
    %0 = arith.subi %c0_i32, %arg0 : i32
    %c0_i32_0 = arith.constant 0 : i32
    %c0_i32_1 = arith.constant 0 : i32
    %c0_i32_2 = arith.constant 0 : i32
    return %0, %c0_i32_0, %c0_i32_1 : i32, i32, i32
  }
  func.func @transform_7(%arg0: i32) -> (i32, i32) {
    %c0_i32 = arith.constant 0 : i32
    %c0_i32_0 = arith.constant 0 : i32
    %c0_i32_1 = arith.constant 0 : i32
    return %c0_i32, %c0_i32_0 : i32, i32
  }
}

module attributes {stable_mosaic.version = 11 : i64} {
  func.func @_attention_kernel(%arg0: i32, %arg1: memref<16x2x32xf32, #tpu.memory_space<vmem>>, %arg2: memref<16x2x32xf32, #tpu.memory_space<vmem>>, %arg3: memref<16x2x1xf32, #tpu.memory_space<vmem>>, %arg4: memref<2x64xf32, #tpu.memory_space<vmem>>, %arg5: memref<64x32xbf16, #tpu.memory_space<vmem>>, %arg6: memref<64x32xbf16, #tpu.memory_space<vmem>>, %arg7: memref<32x10xbf16, #tpu.memory_space<vmem>>, %arg8: memref<32x10xbf16, #tpu.memory_space<vmem>>, %arg9: memref<1x10xf32, #tpu.memory_space<vmem>>, %arg10: memref<2x10xf32, #tpu.memory_space<vmem>>) attributes {dimension_semantics = [#tpu.dimension_semantics<arbitrary>], iteration_bounds = array<i64: 1>, scalar_prefetch = 0 : i64, scratch_operands = 0 : i64, tpu.core_type = #tpu.core_type<tc>, window_params = [{pipeline_mode = #tpu.pipeline_mode<synchronous>, transform_indices = @transform_0, window_bounds = array<i64: 16, 2, 32>}, {pipeline_mode = #tpu.pipeline_mode<synchronous>, transform_indices = @transform_1, window_bounds = array<i64: 16, 2, 32>}, {pipeline_mode = #tpu.pipeline_mode<synchronous>, transform_indices = @transform_2, window_bounds = array<i64: 16, 2, 1>}, {pipeline_mode = #tpu.pipeline_mode<synchronous>, transform_indices = @transform_3, window_bounds = array<i64: 2, 64>}, {pipeline_mode = #tpu.pipeline_mode<synchronous>, transform_indices = @transform_4, window_bounds = array<i64: 64, 32>}, {pipeline_mode = #tpu.pipeline_mode<synchronous>, transform_indices = @transform_5, window_bounds = array<i64: 64, 32>}, {pipeline_mode = #tpu.pipeline_mode<synchronous>, transform_indices = @transform_6, window_bounds = array<i64: 32, 10>}, {pipeline_mode = #tpu.pipeline_mode<synchronous>, transform_indices = @transform_7, window_bounds = array<i64: 32, 10>}, {pipeline_mode = #tpu.pipeline_mode<synchronous>, transform_indices = @transform_8, window_bounds = array<i64: 1, 10>}, {pipeline_mode = #tpu.pipeline_mode<synchronous>, transform_indices = @transform_9, window_bounds = array<i64: 2, 10>}]} {
    %c0 = arith.constant 0 : index
    %c0_0 = arith.constant 0 : index
    %c0_1 = arith.constant 0 : index
    %0 = vector.load %arg1[%c0, %c0_0, %c0_1] : memref<16x2x32xf32, #tpu.memory_space<vmem>>, vector<16x2x32xf32>
    %c0_2 = arith.constant 0 : index
    %c0_3 = arith.constant 0 : index
    %c0_4 = arith.constant 0 : index
    %1 = vector.load %arg2[%c0_2, %c0_3, %c0_4] : memref<16x2x32xf32, #tpu.memory_space<vmem>>, vector<16x2x32xf32>
    %c0_5 = arith.constant 0 : index
    %c0_6 = arith.constant 0 : index
    %c0_7 = arith.constant 0 : index
    %2 = vector.load %arg3[%c0_5, %c0_6, %c0_7] : memref<16x2x1xf32, #tpu.memory_space<vmem>>, vector<16x2x1xf32>
    %c0_8 = arith.constant 0 : index
    %c0_9 = arith.constant 0 : index
    %3 = vector.load %arg4[%c0_8, %c0_9] : memref<2x64xf32, #tpu.memory_space<vmem>>, vector<2x64xf32>
    %4 = arith.truncf %3 : vector<2x64xf32> to vector<2x64xbf16>
    %c0_10 = arith.constant 0 : index
    %c0_11 = arith.constant 0 : index
    %5 = vector.load %arg5[%c0_10, %c0_11] : memref<64x32xbf16, #tpu.memory_space<vmem>>, vector<64x32xbf16>
    %cst = arith.constant dense<0.000000e+00> : vector<2x32xf32>
    %6 = tpu.matmul %4, %5, %cst {dimension_numbers = #tpu.dot_dimension_numbers<[1], [0], [0], [1], [0, 0, 1, 1], [], []>} : vector<2x64xbf16>, vector<64x32xbf16>, vector<2x32xf32> -> vector<2x32xf32>
    %c0_12 = arith.constant 0 : index
    %c0_13 = arith.constant 0 : index
    %7 = vector.load %arg6[%c0_12, %c0_13] : memref<64x32xbf16, #tpu.memory_space<vmem>>, vector<64x32xbf16>
    %cst_14 = arith.constant dense<0.000000e+00> : vector<2x32xf32>
    %8 = tpu.matmul %4, %7, %cst_14 {dimension_numbers = #tpu.dot_dimension_numbers<[1], [0], [0], [1], [0, 0, 1, 1], [], []>} : vector<2x64xbf16>, vector<64x32xbf16>, vector<2x32xf32> -> vector<2x32xf32>
    %9 = vector.shape_cast %6 : vector<2x32xf32> to vector<1x2x32xf32>
    %10 = vector.broadcast %9 : vector<1x2x32xf32> to vector<16x2x32xf32>
    %11 = arith.mulf %0, %10 : vector<16x2x32xf32>
    %cst_15 = arith.constant dense<0.000000e+00> : vector<16x2xf32>
    %12 = vector.multi_reduction <add>, %11, %cst_15 [2] : vector<16x2x32xf32> to vector<16x2xf32>
    %13 = vector.shape_cast %12 : vector<16x2xf32> to vector<16x2x1xf32>
    %14 = vector.shape_cast %8 : vector<2x32xf32> to vector<1x2x32xf32>
    %15 = vector.broadcast %14 : vector<1x2x32xf32> to vector<16x2x32xf32>
    %16 = arith.mulf %1, %15 : vector<16x2x32xf32>
    %cst_16 = arith.constant dense<0.000000e+00> : vector<16x2xf32>
    %17 = vector.multi_reduction <add>, %16, %cst_16 [2] : vector<16x2x32xf32> to vector<16x2xf32>
    %18 = vector.shape_cast %17 : vector<16x2xf32> to vector<16x2x1xf32>
    %19 = arith.addf %13, %18 : vector<16x2x1xf32>
    %20 = arith.mulf %19, %2 : vector<16x2x1xf32>
    %cst_17 = arith.constant 1.000000e+02 : f32
    %21 = vector.broadcast %cst_17 : f32 to vector<16x2x1xf32>
    %22 = arith.mulf %21, %2 : vector<16x2x1xf32>
    %23 = arith.subf %20, %22 : vector<16x2x1xf32>
    %cst_18 = arith.constant dense<0xFF800000> : vector<2x1xf32>
    %24 = vector.multi_reduction <maximumf>, %23, %cst_18 [0] : vector<16x2x1xf32> to vector<2x1xf32>
    %25 = vector.shape_cast %24 : vector<2x1xf32> to vector<1x2x1xf32>
    %26 = vector.broadcast %25 : vector<1x2x1xf32> to vector<16x2x1xf32>
    %27 = arith.subf %23, %26 : vector<16x2x1xf32>
    %28 = math.exp %27 : vector<16x2x1xf32>
    %cst_19 = arith.constant dense<0.000000e+00> : vector<2x1xf32>
    %29 = vector.multi_reduction <add>, %28, %cst_19 [0] : vector<16x2x1xf32> to vector<2x1xf32>
    %30 = vector.shape_cast %29 : vector<2x1xf32> to vector<1x2x1xf32>
    %31 = tpu.reciprocal %30 {approx = true} : vector<1x2x1xf32> -> vector<1x2x1xf32>
    %32 = vector.broadcast %31 : vector<1x2x1xf32> to vector<16x2x1xf32>
    %33 = arith.mulf %28, %32 : vector<16x2x1xf32>
    %34 = arith.mulf %33, %2 : vector<16x2x1xf32>
    %35 = vector.broadcast %34 : vector<16x2x1xf32> to vector<16x2x32xf32>
    %36 = arith.mulf %0, %35 : vector<16x2x32xf32>
    %cst_20 = arith.constant dense<0.000000e+00> : vector<2x32xf32>
    %37 = vector.multi_reduction <add>, %36, %cst_20 [0] : vector<16x2x32xf32> to vector<2x32xf32>
    %38 = vector.broadcast %34 : vector<16x2x1xf32> to vector<16x2x32xf32>
    %39 = arith.mulf %1, %38 : vector<16x2x32xf32>
    %cst_21 = arith.constant dense<0.000000e+00> : vector<2x32xf32>
    %40 = vector.multi_reduction <add>, %39, %cst_21 [0] : vector<16x2x32xf32> to vector<2x32xf32>
    %41 = arith.truncf %37 : vector<2x32xf32> to vector<2x32xbf16>
    %c0_22 = arith.constant 0 : index
    %c0_23 = arith.constant 0 : index
    %42 = vector.load %arg7[%c0_22, %c0_23] : memref<32x10xbf16, #tpu.memory_space<vmem>>, vector<32x10xbf16>
    %cst_24 = arith.constant dense<0.000000e+00> : vector<2x10xf32>
    %43 = tpu.matmul %41, %42, %cst_24 {dimension_numbers = #tpu.dot_dimension_numbers<[1], [0], [0], [1], [0, 0, 1, 1], [], []>} : vector<2x32xbf16>, vector<32x10xbf16>, vector<2x10xf32> -> vector<2x10xf32>
    %44 = arith.truncf %40 : vector<2x32xf32> to vector<2x32xbf16>
    %c0_25 = arith.constant 0 : index
    %c0_26 = arith.constant 0 : index
    %45 = vector.load %arg8[%c0_25, %c0_26] : memref<32x10xbf16, #tpu.memory_space<vmem>>, vector<32x10xbf16>
    %cst_27 = arith.constant dense<0.000000e+00> : vector<2x10xf32>
    %46 = tpu.matmul %44, %45, %cst_27 {dimension_numbers = #tpu.dot_dimension_numbers<[1], [0], [0], [1], [0, 0, 1, 1], [], []>} : vector<2x32xbf16>, vector<32x10xbf16>, vector<2x10xf32> -> vector<2x10xf32>
    %47 = arith.addf %43, %46 : vector<2x10xf32>
    %c0_28 = arith.constant 0 : index
    %c0_29 = arith.constant 0 : index
    %48 = vector.load %arg9[%c0_28, %c0_29] : memref<1x10xf32, #tpu.memory_space<vmem>>, vector<1x10xf32>
    %49 = vector.broadcast %48 : vector<1x10xf32> to vector<2x10xf32>
    %50 = arith.addf %47, %49 : vector<2x10xf32>
    %c0_30 = arith.constant 0 : index
    %c0_31 = arith.constant 0 : index
    %51 = vector.load %arg10[%c0_30, %c0_31] : memref<2x10xf32, #tpu.memory_space<vmem>>, vector<2x10xf32>
    tpu.vector_store %arg10[%c0_30, %c0_31], %50 {strides = array<i32>} : memref<2x10xf32, #tpu.memory_space<vmem>>, vector<2x10xf32>,
    return
  }
  func.func @transform_0(%arg0: i32) -> (i32, i32, i32) {
    %c0_i32 = arith.constant 0 : i32
    %c0_i32_0 = arith.constant 0 : i32
    %c0_i32_1 = arith.constant 0 : i32
    %c0_i32_2 = arith.constant 0 : i32
    return %c0_i32, %c0_i32_0, %c0_i32_1 : i32, i32, i32
  }
  func.func @transform_1(%arg0: i32) -> (i32, i32, i32) {
    %c0_i32 = arith.constant 0 : i32
    %c0_i32_0 = arith.constant 0 : i32
    %c0_i32_1 = arith.constant 0 : i32
    %c0_i32_2 = arith.constant 0 : i32
    return %c0_i32, %c0_i32_0, %c0_i32_1 : i32, i32, i32
  }
  func.func @transform_2(%arg0: i32) -> (i32, i32, i32) {
    %c0_i32 = arith.constant 0 : i32
    %c0_i32_0 = arith.constant 0 : i32
    %c0_i32_1 = arith.constant 0 : i32
    %c0_i32_2 = arith.constant 0 : i32
    return %c0_i32, %c0_i32_0, %c0_i32_1 : i32, i32, i32
  }
  func.func @transform_3(%arg0: i32) -> (i32, i32) {
    %c0_i32 = arith.constant 0 : i32
    %c0_i32_0 = arith.constant 0 : i32
    %c0_i32_1 = arith.constant 0 : i32
    return %c0_i32, %c0_i32_0 : i32, i32
  }
  func.func @transform_4(%arg0: i32) -> (i32, i32) {
    %c0_i32 = arith.constant 0 : i32
    %c0_i32_0 = arith.constant 0 : i32
    %c0_i32_1 = arith.constant 0 : i32
    return %c0_i32, %c0_i32_0 : i32, i32
  }
  func.func @transform_5(%arg0: i32) -> (i32, i32) {
    %c0_i32 = arith.constant 0 : i32
    %c0_i32_0 = arith.constant 0 : i32
    %c0_i32_1 = arith.constant 0 : i32
    return %c0_i32, %c0_i32_0 : i32, i32
  }
  func.func @transform_6(%arg0: i32) -> (i32, i32) {
    %c0_i32 = arith.constant 0 : i32
    %c0_i32_0 = arith.constant 0 : i32
    %c0_i32_1 = arith.constant 0 : i32
    return %c0_i32, %c0_i32_0 : i32, i32
  }
  func.func @transform_7(%arg0: i32) -> (i32, i32) {
    %c0_i32 = arith.constant 0 : i32
    %c0_i32_0 = arith.constant 0 : i32
    %c0_i32_1 = arith.constant 0 : i32
    return %c0_i32, %c0_i32_0 : i32, i32
  }
  func.func @transform_8(%arg0: i32) -> (i32, i32) {
    %c0_i32 = arith.constant 0 : i32
    %c0_i32_0 = arith.constant 0 : i32
    %c0_i32_1 = arith.constant 0 : i32
    return %c0_i32, %c0_i32_0 : i32, i32
  }
  func.func @transform_9(%arg0: i32) -> (i32, i32) {
    %c0_i32 = arith.constant 0 : i32
    %c0_i32_0 = arith.constant 0 : i32
    %c0_i32_1 = arith.constant 0 : i32
    return %c0_i32, %c0_i32_0 : i32, i32
  }
}

</mosaic_0001>

<bundles_post_ra>
// kernel: attentive_reader_forward.5
= control target key start
LH: loop header
LB: loop body
LE: loop exit
PB: predicated region body
PF: predicated region fallthrough
CT: control target
= control target key end

     0   :  { %s1602_s0 = inlined_call_operand.vmem [shape: f32[16,2,32], index: 0, kind: input, shape index: {}]   ;;  %s1603_s1 = inlined_call_operand.vmem [shape: f32[16,2,32], index: 1, kind: input, shape index: {}]   ;;  %s1604_s2 = inlined_call_operand.vmem [shape: f32[16,2,1], index: 2, kind: input, shape index: {}]   ;;  %s1605_s3 = inlined_call_operand.vmem [shape: f32[2,64], index: 3, kind: input, shape index: {}]   ;;  %s1606_s4 = inlined_call_operand.vmem [shape: bf16[64,32], index: 4, kind: input, shape index: {}]   ;;  %s1607_s5 = inlined_call_operand.vmem [shape: bf16[64,32], index: 5, kind: input, shape index: {}]   ;;  %s1608_s6 = inlined_call_operand.vmem [shape: bf16[32,10], index: 6, kind: input, shape index: {}]   ;;  %s1609_s7 = inlined_call_operand.vmem [shape: bf16[32,10], index: 7, kind: input, shape index: {}]   ;;  %s1610_s8 = inlined_call_operand.vmem [shape: f32[1,10], index: 8, kind: input, shape index: {}]   ;;  %s1611_s9 = inlined_call_operand.hbm [shape: f32[2,10], index: 9, kind: output, shape index: {}]  }
   0x1   :  { %v834_v0 = vld [vmem:[%s1606_s4 + $0x18] sm:$0xff]  ;;  %v833_v2 = vld [vmem:[%s1606_s4 + $0x10] sm:$0xff] }
   0x2   :  { %v838_v1 = vld [vmem:[%s1607_s5 + $0x18] sm:$0xff]  ;;  %124 = vmatpush.bf16.msra.mxu0 %v834_v0  ;;  %v837_v3 = vld [vmem:[%s1607_s5 + $0x10] sm:$0xff] }
   0x3   :  { %169 = vmatpush.bf16.msra.mxu1 %v838_v1 }
   0x4   :  { %14 = vsyncpa [#allocation3], 0  ;;  %v832_v4 = vld [vmem:[%s1606_s4 + $0x8] sm:$0xff]  ;;  %v831_v6 = vld [vmem:[%s1606_s4] sm:$0xff]  ;;  %vm116_vm0 = vcmask 523264   ;;  %vm194_vm1 = vcmask 254976  }
   0x5   :  { %v836_v5 = vld [vmem:[%s1607_s5 + $0x8] sm:$0xff]  ;;  %v82_v7 = vld [vmem:[%s1605_s3] sm:$0x3]  ;;  %v996_v11 = vld [vmem:[%s1602_s0 + $0x4] sm:$0x3]  ;;  %vm371_vm2 = vcmask 1024  }
   0x6   :  { %125 = vmatpush.bf16.msra.mxu0 %v833_v2  ;;  %v835_v8 = vld [vmem:[%s1607_s5] sm:$0xff]  ;;  %v83_v9 = vpack.c.bf16 %v82_v7, %v82_v7  ;;  %v991_v10 = vld [vmem:[%s1602_s0 + $0x8] sm:$0x3]  ;;  %v1019_v21 = vld [vmem:[%s1602_s0 + $0xa] sm:$0x3]  ;;  %vm711_vm3 = vcmask 261120  }
   0x7   :  { %170 = vmatpush.bf16.msra.mxu1 %v837_v3  ;;  %v1001_v12 = vld [vmem:[%s1602_s0] sm:$0x3]  ;;  %1635 = vst [vmem:[#allocation5_spill] sm:$0xff] %v1019_v21  ;;  %v1024_v22 = vld [vmem:[%s1602_s0 + $0x6] sm:$0x3]  ;;  %s910_s29 = smov [#allocation2]  }
   0x8   :  { %v1029_v23 = vld [vmem:[%s1602_s0 + $0x2] sm:$0x3]  ;;  %v1040_v29 = vld [vmem:[%s1603_s1] sm:$0x3]  ;;  %v1048_v33 = vld [vmem:[%s1602_s0 + $0xe] sm:$0x3] }
   0x9   :  { %1636 = vst [vmem:[#allocation6_spill] sm:$0xff] %v1048_v33  ;;  %v1055_v35 = vld [vmem:[%s1602_s0 + $0xc] sm:$0x3]  ;;  %v1065_v39 = vld [vmem:[%s1603_s1 + $0x6] sm:$0x3]  ;;  %s768_s3 = sshll.u32 %s910_s29, 4  ;;  %s769_s3 = int_to_ptr.vmem [resolvable:$true] %s768_s3 }
   0xa   :  { %126 = vmatpush.bf16.msra.mxu0 %v832_v4  ;;  %1637 = vst [vmem:[#allocation7_spill] sm:$0xff] %v1055_v35  ;;  %v1070_v40 = vld [vmem:[%s1603_s1 + $0x4] sm:$0x3]  ;;  %v1076_v42 = vld [vmem:[%s1603_s1 + $0x2] sm:$0x3]  ;;  %s770_s10 = sshll.u32 %s1611_s9, 4  ;;  %s771_s10 = int_to_ptr.hbm [resolvable:$true] %s770_s10 }
   0xb   :  { %171 = vmatpush.bf16.msra.mxu1 %v836_v5  ;;  %v1091_v50 = vld [vmem:[%s1603_s1 + $0xc] sm:$0x3]  ;;  %v1096_v51 = vld [vmem:[%s1603_s1 + $0xa] sm:$0x3]  ;;  %v1101_v52 = vld [vmem:[%s1603_s1 + $0x8] sm:$0x3] }
   0xc   :  { %1638 = vst [vmem:[#allocation8_spill] sm:$0xff] %v1091_v50  ;;  %v1115_v59 = vld [vmem:[%s1602_s0 + $0x12] sm:$0x3]  ;;  %v1120_v60 = vld [vmem:[%s1602_s0 + $0x10] sm:$0x3]  ;;  %vm761_vm4 = vcmask 74752  }
   0xd   :  { %1639 = vst [vmem:[#allocation9_spill] sm:$0xff] %v1096_v51  ;;  %v1125_v61 = vld [vmem:[%s1603_s1 + $0xe] sm:$0x3]  ;;  %v1139_v4 = vld [vmem:[%s1603_s1 + $0x10] sm:$0x3] }
   0xe   :  { %127 = vmatpush.bf16.msra.mxu0 %v831_v6  ;;  %1640 = vst [vmem:[#allocation10_spill] sm:$0xff] %v1101_v52  ;;  %v1144_v5 = vld [vmem:[%s1602_s0 + $0x16] sm:$0x3]  ;;  %v1149_v6 = vld [vmem:[%s1602_s0 + $0x14] sm:$0x3] }
   0xf   :  { %172 = vmatpush.bf16.msra.mxu1 %v835_v8  ;;  %1641 = vst [vmem:[#allocation11_spill] sm:$0xff] %v1115_v59 }
  0x10   :  { %1642 = vst [vmem:[#allocation12_spill] sm:$0xff] %v1120_v60 }
  0x11   :  { %795 = vmatmul.msk.bf16.vlgmr.msra.gmra.mxu0 %vm116_vm0, %v83_v9  ;;  %1643 = vst [vmem:[#allocation13_spill] sm:$0xff] %v1125_v61 }
  0x12   :  { %812 = vmatmul.msk.bf16.vlgmr.msra.gmra.mxu1 %vm116_vm0, %v83_v9  ;;  %1644 = vst [vmem:[#allocation14_spill] sm:$0xff] %v1139_v4 }
  0x13   :  { %1645 = vst [vmem:[#allocation15_spill] sm:$0xff] %v1144_v5 }
  0x14   :  { %1646 = vst [vmem:[#allocation16_spill] sm:$0xff] %v1149_v6 }
  0x8e   :  { %v1003_v13 = vpop.f32.mrf.mxu0 }
  0x8f   :  { %v182_v14 = vmul.f32 %v1003_v13, %v991_v10  ;;  %v180_v15 = vmul.f32 %v1003_v13, %v996_v11  ;;  %v178_v16 = vmul.f32 %v1003_v13, %v1001_v12  ;;  %v1011_v17 = vpop.f32.mrf.mxu1  ;;  %v183_v24 = vmul.f32 %v1003_v13, %v1019_v21 }
  0x90   :  { %v181_v25 = vmul.f32 %v1003_v13, %v1024_v22  ;;  %v179_v27 = vmul.f32 %v1003_v13, %v1029_v23  ;;  %v243_v34 = vmul.f32 %v1011_v17, %v1040_v29  ;;  %v185_v36 = vmul.f32 %v1003_v13, %v1048_v33 }
  0x91   :  { %v207_v18 = vsel %vm194_vm1, %v182_v14, 0.0  ;;  %v201_v19 = vsel %vm194_vm1, %v180_v15, 0.0  ;;  %v195_v20 = vsel %vm194_vm1, %v178_v16, 0.0  ;;  %v210_v30 = vsel %vm194_vm1, %v183_v24, 0.0 }
  0x92   :  { %208 = vadd.xlane.f32.xlu2 %v207_v18  ;;  %202 = vadd.xlane.f32.xlu1 %v201_v19  ;;  %v204_v31 = vsel %vm194_vm1, %v181_v25, 0.0  ;;  %v198_v32 = vsel %vm194_vm1, %v179_v27, 0.0  ;;  %v184_v37 = vmul.f32 %v1003_v13, %v1055_v35  ;;  %v259_v38 = vsel %vm194_vm1, %v243_v34, 0.0  ;;  %v1163_v18 = vld [vmem:[%s1603_s1 + $0x16] sm:$0x3] }
  0x93   :  { %196 = vadd.xlane.f32.xlu0 %v195_v20  ;;  %v216_v41 = vsel %vm194_vm1, %v185_v36, 0.0  ;;  %v246_v44 = vmul.f32 %v1011_v17, %v1065_v39  ;;  %v245_v45 = vmul.f32 %v1011_v17, %v1070_v40  ;;  %v244_v46 = vmul.f32 %v1011_v17, %v1076_v42  ;;  %1647 = vst [vmem:[#allocation17_spill] sm:$0xff] %v1163_v18  ;;  %v1168_v19 = vld [vmem:[%s1603_s1 + $0x14] sm:$0x3]  ;;  %v1173_v20 = vld [vmem:[%s1603_s1 + $0x12] sm:$0x3] }
  0x94   :  { %v213_v43 = vsel %vm194_vm1, %v184_v37, 0.0  ;;  %v249_v53 = vmul.f32 %v1011_v17, %v1091_v50  ;;  %v248_v54 = vmul.f32 %v1011_v17, %v1096_v51  ;;  %v247_v55 = vmul.f32 %v1011_v17, %v1101_v52  ;;  %1648 = vst [vmem:[#allocation18_spill] sm:$0xff] %v1168_v19  ;;  %v1197_v34 = vld [vmem:[%s1602_s0 + $0x18] sm:$0x3] }
  0x95   :  { %v268_v47 = vsel %vm194_vm1, %v246_v44, 0.0  ;;  %v265_v48 = vsel %vm194_vm1, %v245_v45, 0.0  ;;  %v262_v49 = vsel %vm194_vm1, %v244_v46, 0.0  ;;  %v187_v62 = vmul.f32 %v1003_v13, %v1115_v59  ;;  %1649 = vst [vmem:[#allocation19_spill] sm:$0xff] %v1173_v20  ;;  %v1211_v45 = vld [vmem:[%s1603_s1 + $0x1a] sm:$0x3] }
  0x96   :  { %v131_v26 = vpop.f32.mrf.mxu0  ;;  %v277_v56 = vsel %vm194_vm1, %v249_v53, 0.0  ;;  %v274_v57 = vsel %vm194_vm1, %v248_v54, 0.0  ;;  %v271_v58 = vsel %vm194_vm1, %v247_v55, 0.0  ;;  %v186_v63 = vmul.f32 %v1003_v13, %v1120_v60  ;;  %1652 = vst [vmem:[#allocation22_spill] sm:$0xff] %v1197_v34  ;;  %v1216_v46 = vld [vmem:[%s1603_s1 + $0x18] sm:$0x3] }
  0x97   :  { %v176_v28 = vpop.f32.mrf.mxu1  ;;  %v250_v0 = vmul.f32 %v1011_v17, %v1125_v61  ;;  %v222_v1 = vsel %vm194_vm1, %v187_v62, 0.0  ;;  %v251_v7 = vmul.f32 %v1011_v17, %v1139_v4  ;;  %v189_v8 = vmul.f32 %v1003_v13, %v1144_v5  ;;  %1653 = vst [vmem:[#allocation23_spill] sm:$0xff] %v1211_v45  ;;  %v1343_v59 = vld [vmem:[%s1604_s2 + $0x1a] sm:$0x3] }
  0x98   :  { %v219_v2 = vsel %vm194_vm1, %v186_v63, 0.0  ;;  %v188_v9 = vmul.f32 %v1003_v13, %v1149_v6  ;;  %v254_v24 = vmul.f32 %v1011_v17, %v1163_v18  ;;  %v253_v25 = vmul.f32 %v1011_v17, %v1168_v19  ;;  %1654 = vst [vmem:[#allocation24_spill] sm:$0xff] %v1216_v46  ;;  %v1335_v6 = vld [vmem:[%s1604_s2 + $0x16] sm:$0x3] }
  0x99   :  { %v280_v3 = vsel %vm194_vm1, %v250_v0, 0.0  ;;  %v283_v14 = vsel %vm194_vm1, %v251_v7, 0.0  ;;  %v228_v15 = vsel %vm194_vm1, %v189_v8, 0.0  ;;  %v252_v26 = vmul.f32 %v1011_v17, %v1173_v20 }
  0x9a   :  { %211 = vadd.xlane.f32.xlu2 %v210_v30  ;;  %205 = vadd.xlane.f32.xlu1 %v204_v31  ;;  %v225_v16 = vsel %vm194_vm1, %v188_v9, 0.0  ;;  %v292_v27 = vsel %vm194_vm1, %v254_v24, 0.0  ;;  %v289_v28 = vsel %vm194_vm1, %v253_v25, 0.0  ;;  %v1187_v31 = vld [vmem:[%s1602_s0 + $0x1c] sm:$0x3] }
  0x9b   :  { %199 = vadd.xlane.f32.xlu0 %v198_v32  ;;  %v286_v30 = vsel %vm194_vm1, %v252_v26, 0.0  ;;  %1650 = vst [vmem:[#allocation20_spill] sm:$0xff] %v1187_v31  ;;  %v1192_v32 = vld [vmem:[%s1602_s0 + $0x1a] sm:$0x3]  ;;  %v192_v36 = vmul.f32 %v1003_v13, %v1187_v31  ;;  %v1326_v31 = vld [vmem:[%s1604_s2 + $0xe] sm:$0x3] }
  0x9c   :  { %1651 = vst [vmem:[#allocation21_spill] sm:$0xff] %v1192_v32  ;;  %v191_v37 = vmul.f32 %v1003_v13, %v1192_v32 }
  0xa2   :  { %260 = vadd.xlane.f32.xlu2 %v259_v38  ;;  %217 = vadd.xlane.f32.xlu1 %v216_v41  ;;  %v190_v38 = vmul.f32 %v1003_v13, %v1197_v34  ;;  %v237_v41 = vsel %vm194_vm1, %v192_v36, 0.0 }
  0xa3   :  { %214 = vadd.xlane.f32.xlu0 %v213_v43  ;;  %v234_v43 = vsel %vm194_vm1, %v191_v37, 0.0 }
  0xa4   :  { %v231_v44 = vsel %vm194_vm1, %v190_v38, 0.0 }
  0xaa   :  { %269 = vadd.xlane.f32.xlu2 %v268_v47  ;;  %266 = vadd.xlane.f32.xlu1 %v265_v48  ;;  %v1221_v47 = vld [vmem:[%s1602_s0 + $0x1e] sm:$0x3]  ;;  %v256_v48 = vmul.f32 %v1011_v17, %v1211_v45  ;;  %v1319_v45 = vld [vmem:[%s1604_s2 + $0xc] sm:$0x3] }
  0xab   :  { %263 = vadd.xlane.f32.xlu0 %v262_v49  ;;  %1655 = vst [vmem:[#allocation25_spill] sm:$0xff] %v1221_v47  ;;  %v255_v49 = vmul.f32 %v1011_v17, %v1216_v46  ;;  %v193_v53 = vmul.f32 %v1003_v13, %v1221_v47  ;;  %v345_v5 = vmul.f32 100.0, %v1319_v45 }
  0xac   :  { %v298_v54 = vsel %vm194_vm1, %v256_v48, 0.0 }
  0xad   :  { %v295_v55 = vsel %vm194_vm1, %v255_v49, 0.0 }
  0xb2   :  { %278 = vadd.xlane.f32.xlu2 %v277_v56  ;;  %275 = vadd.xlane.f32.xlu1 %v274_v57  ;;  %v240_v56 = vsel %vm194_vm1, %v193_v53, 0.0  ;;  %v1235_v57 = vld [vmem:[%s1603_s1 + $0x1e] sm:$0x3] }
  0xb3   :  { %272 = vadd.xlane.f32.xlu0 %v271_v58  ;;  %1656 = vst [vmem:[#allocation26_spill] sm:$0xff] %v1235_v57  ;;  %v1240_v58 = vld [vmem:[%s1603_s1 + $0x1c] sm:$0x3]  ;;  %v258_v13 = vmul.f32 %v1011_v17, %v1235_v57 }
  0xb4   :  { %1657 = vst [vmem:[#allocation27_spill] sm:$0xff] %v1240_v58  ;;  %v257_v62 = vmul.f32 %v1011_v17, %v1240_v58 }
  0xb5   :  { %v304_v63 = vsel %vm194_vm1, %v258_v13, 0.0 }
  0xb6   :  { %v301_v0 = vsel %vm194_vm1, %v257_v62, 0.0  ;;  %v1293_v62 = vld [vmem:[%s1604_s2 + $0x10] sm:$0x3] }
  0xb7   :  { %v347_v32 = vmul.f32 100.0, %v1293_v62 }
  0xba   :  { %223 = vadd.xlane.f32.xlu2 %v222_v1  ;;  %220 = vadd.xlane.f32.xlu1 %v219_v2 }
  0xbb   :  { %281 = vadd.xlane.f32.xlu0 %v280_v3 }
  0xc2   :  { %284 = vadd.xlane.f32.xlu2 %v283_v14  ;;  %229 = vadd.xlane.f32.xlu1 %v228_v15 }
  0xc3   :  { %226 = vadd.xlane.f32.xlu0 %v225_v16 }
  0xca   :  { %293 = vadd.xlane.f32.xlu2 %v292_v27  ;;  %290 = vadd.xlane.f32.xlu1 %v289_v28  ;;  %v1255_v27 = vld [vmem:[%s1604_s2] sm:$0x3]  ;;  %v1260_v28 = vld [vmem:[%s1604_s2 + $0x8] sm:$0x3] }
  0xcb   :  { %287 = vadd.xlane.f32.xlu0 %v286_v30  ;;  %v339_v30 = vmul.f32 100.0, %v1255_v27 }
  0xd2   :  { %238 = vadd.xlane.f32.xlu2 %v237_v41  ;;  %235 = vadd.xlane.f32.xlu1 %v234_v43  ;;  %v343_v43 = vmul.f32 100.0, %v1260_v28 }
  0xd3   :  { %232 = vadd.xlane.f32.xlu0 %v231_v44 }
  0xda   :  { %299 = vadd.xlane.f32.xlu2 %v298_v54  ;;  %296 = vadd.xlane.f32.xlu1 %v295_v55 }
  0xdb   :  { %241 = vadd.xlane.f32.xlu0 %v240_v56 }
  0xe2   :  { %305 = vadd.xlane.f32.xlu1 %v304_v63 }
  0xe3   :  { %302 = vadd.xlane.f32.xlu0 %v301_v0 }
 0x105   :  { %v209_v1 = vpop.xlane.xlu2 %208  ;;  %v1248_v2 = vpop.xlane.xlu1 %202 }
 0x106   :  { %v197_v3 = vpop.xlane.xlu0 %196 }
 0x10d   :  { %v212_v7 = vpop.xlane.xlu2 %211  ;;  %v206_v8 = vpop.xlane.xlu1 %205 }
 0x10e   :  { %v200_v9 = vpop.xlane.xlu0 %199 }
 0x115   :  { %v261_v14 = vpop.xlane.xlu2 %260  ;;  %v218_v15 = vpop.xlane.xlu1 %217 }
 0x116   :  { %v215_v16 = vpop.xlane.xlu0 %214  ;;  %v307_v26 = vadd.f32 %v261_v14, %v197_v3 }
 0x118   :  { %v323_v36 = vmul.f32 %v307_v26, %v1255_v27 }
 0x11a   :  { %v1265_v48 = vsub.f32 %v323_v36, %v339_v30 }
 0x11c   :  { %v1272_v54 = vsel %vm371_vm2, %v1265_v48, -inf }
 0x11d   :  { %v270_v24 = vpop.xlane.xlu2 %269  ;;  %v1250_v25 = vpop.xlane.xlu1 %266 }
 0x11e   :  { %v264_v17 = vpop.xlane.xlu0 %263  ;;  %v310_v19 = vadd.f32 %v270_v24, %v206_v8  ;;  %v346_v24 = vmul.f32 100.0, %v1326_v31 }
 0x125   :  { %v279_v37 = vpop.xlane.xlu2 %278  ;;  %v276_v38 = vpop.xlane.xlu1 %275 }
 0x126   :  { %v273_v41 = vpop.xlane.xlu0 %272  ;;  %v312_v36 = vadd.f32 %v276_v38, %v212_v7  ;;  %v313_v8 = vadd.f32 %v279_v37, %v215_v16 }
 0x127   :  { %v311_v44 = vadd.f32 %v273_v41, %v209_v1  ;;  %v1283_v41 = vld [vmem:[%s1604_s2 + $0xa] sm:$0x3] }
 0x128   :  { %v344_v7 = vmul.f32 100.0, %v1283_v41  ;;  %v328_v38 = vmul.f32 %v312_v36, %v1283_v41 }
 0x129   :  { %v327_v49 = vmul.f32 %v311_v44, %v1260_v28 }
 0x12b   :  { %v1268_v53 = vsub.f32 %v327_v49, %v343_v43  ;;  %v308_v43 = vadd.f32 %v264_v17, %v200_v9  ;;  %v1288_v49 = vld [vmem:[%s1604_s2 + $0x2] sm:$0x3]  ;;  %v1300_v9 = vld [vmem:[%s1604_s2 + $0x12] sm:$0x3] }
 0x12c   :  { %v348_v46 = vmul.f32 100.0, %v1300_v9 }
 0x12d   :  { %v1276_v55 = vsel %vm371_vm2, %v1268_v53, -inf  ;;  %v224_v56 = vpop.xlane.xlu2 %223  ;;  %v221_v13 = vpop.xlane.xlu1 %220  ;;  %v324_v36 = vmul.f32 %v308_v43, %v1288_v49  ;;  %v1330_v43 = vsub.f32 %v328_v38, %v344_v7  ;;  %v1353_v38 = vld [vmem:[%s1604_s2 + $0x18] sm:$0x3] }
 0x12e   :  { %v282_v63 = vpop.xlane.xlu0 %281 }
 0x12f   :  { %v314_v20 = vadd.f32 %v282_v63, %v218_v15  ;;  %v309_v15 = vadd.f32 %v1250_v25, %v1248_v2  ;;  %v350_v63 = vmul.f32 100.0, %v1335_v6  ;;  %v378_v16 = vsel %vm371_vm2, %v1330_v43, -inf  ;;  %v1368_v2 = vld [vmem:[%s1604_s2 + $0x14] sm:$0x3] }
 0x131   :  { %v330_v4 = vmul.f32 %v314_v20, %v1326_v31 }
 0x133   :  { %v1384_v35 = vsub.f32 %v330_v4, %v346_v24 }
 0x135   :  { %v285_v0 = vpop.xlane.xlu2 %284  ;;  %v230_v1 = vpop.xlane.xlu1 %229 }
 0x136   :  { %v227_v3 = vpop.xlane.xlu0 %226  ;;  %v315_v44 = vadd.f32 %v285_v0, %v221_v13  ;;  %v1307_v0 = vld [vmem:[%s1604_s2 + $0x6] sm:$0x3] }
 0x137   :  { %v342_v18 = vmul.f32 100.0, %v1307_v0 }
 0x138   :  { %v331_v58 = vmul.f32 %v315_v44, %v1293_v62 }
 0x13a   :  { %v1348_v7 = vsub.f32 %v331_v58, %v347_v32  ;;  %v352_v58 = vmul.f32 100.0, %v1343_v59 }
 0x13d   :  { %v294_v14 = vpop.xlane.xlu2 %293  ;;  %v291_v26 = vpop.xlane.xlu1 %290 }
 0x13e   :  { %v288_v30 = vpop.xlane.xlu0 %287  ;;  %v318_v61 = vadd.f32 %v294_v14, %v230_v1  ;;  %v317_v32 = vadd.f32 %v291_v26, %v227_v3  ;;  %v329_v3 = vmul.f32 %v313_v8, %v1319_v45  ;;  %v384_v14 = vsel %vm371_vm2, %v1348_v7, -inf }
 0x13f   :  { %v316_v57 = vadd.f32 %v288_v30, %v224_v56  ;;  %v1312_v56 = vld [vmem:[%s1604_s2 + $0x4] sm:$0x3]  ;;  %v340_v30 = vmul.f32 100.0, %v1288_v49  ;;  %v349_v8 = vmul.f32 100.0, %v1368_v2 }
 0x140   :  { %v341_v44 = vmul.f32 100.0, %v1312_v56  ;;  %v334_v20 = vmul.f32 %v318_v61, %v1335_v6  ;;  %v333_v50 = vmul.f32 %v317_v32, %v1368_v2 }
 0x141   :  { %v332_v34 = vmul.f32 %v316_v57, %v1300_v9  ;;  %v1345_v57 = vsub.f32 %v324_v36, %v340_v30  ;;  %v326_v30 = vmul.f32 %v310_v19, %v1307_v0 }
 0x142   :  { %v1398_v32 = vsub.f32 %v334_v20, %v350_v63 }
 0x143   :  { %v1358_v33 = vsub.f32 %v332_v34, %v348_v46  ;;  %v351_v34 = vmul.f32 100.0, %v1353_v38  ;;  %v373_v1 = vsel %vm371_vm2, %v1345_v57, -inf }
 0x145   :  { %v1302_v17 = vpop.xlane.xlu2 %238  ;;  %v236_v13 = vpop.xlane.xlu1 %235  ;;  %v386_v26 = vsel %vm371_vm2, %v1358_v33, -inf }
 0x146   :  { %v233_v47 = vpop.xlane.xlu0 %232 }
 0x14d   :  { %v300_v37 = vpop.xlane.xlu2 %299  ;;  %v297_v36 = vpop.xlane.xlu1 %296 }
 0x14e   :  { %v320_v25 = vadd.f32 %v300_v37, %v236_v13  ;;  %v319_v46 = vadd.f32 %v297_v36, %v233_v47  ;;  %v242_v19 = vpop.xlane.xlu0 %241  ;;  %v909_v37 = vmov 0   ;;  %v325_v47 = vmul.f32 %v309_v15, %v1312_v56  ;;  %v1396_v15 = vld [vmem:[%s1604_s2 + $0x1e] sm:$0x3] }
 0x14f   :  { %847 = vset.pattern.permute.xlu1 %v909_v37  ;;  %846 = vset.pattern.permute.xlu0 %v909_v37  ;;  %v379_v36 = vmax.f32 %v373_v1, %v378_v16  ;;  %v358_v16 = vsub.f32 %v326_v30, %v342_v18  ;;  %v382_v18 = vsel %vm371_vm2, %v1384_v35, -inf  ;;  %v354_v63 = vmul.f32 100.0, %v1396_v15 }
 0x150   :  { %v336_v60 = vmul.f32 %v320_v25, %v1343_v59  ;;  %v335_v13 = vmul.f32 %v319_v46, %v1353_v38  ;;  %845 = vset.pattern.permute.xlu2 %v909_v37  ;;  %v361_v25 = vsub.f32 %v329_v3, %v345_v5  ;;  %v1658_v46 = vmax.f32 %v1272_v54, %v1276_v55  ;;  %v1407_v5 = vld [vmem:[%s1604_s2 + $0x1c] sm:$0x3] }
 0x151   :  { %v387_v52 = vmax.f32 %v379_v36, %v386_v26  ;;  %v357_v54 = vsub.f32 %v325_v47, %v341_v44  ;;  %v1409_v55 = vsub.f32 %v333_v50, %v349_v8  ;;  %v353_v20 = vmul.f32 100.0, %v1407_v5 }
 0x152   :  { %v1386_v61 = vsub.f32 %v336_v60, %v352_v58  ;;  %v1388_v51 = vsub.f32 %v335_v13, %v351_v34  ;;  %v385_v21 = vmax.f32 %v1658_v46, %v384_v14  ;;  %v380_v3 = vsel %vm371_vm2, %v361_v25, -inf }
 0x153   :  { %v375_v50 = vsel %vm371_vm2, %v358_v16, -inf  ;;  %v374_v44 = vsel %vm371_vm2, %v357_v54, -inf }
 0x154   :  { %v394_v60 = vsel %vm371_vm2, %v1386_v61, -inf  ;;  %v392_v4 = vsel %vm371_vm2, %v1388_v51, -inf  ;;  %v383_v13 = vmax.f32 %v375_v50, %v382_v18  ;;  %v381_v47 = vmax.f32 %v374_v44, %v380_v3 }
 0x155   :  { %v395_v24 = vmax.f32 %v387_v52, %v394_v60  ;;  %v393_v58 = vmax.f32 %v385_v21, %v392_v4  ;;  %v306_v34 = vpop.xlane.xlu1 %305  ;;  %v390_v21 = vsel %vm371_vm2, %v1398_v32, -inf }
 0x156   :  { %v322_v30 = vadd.f32 %v306_v34, %v242_v19  ;;  %v303_v1 = vpop.xlane.xlu0 %302  ;;  %v388_v19 = vsel %vm371_vm2, %v1409_v55, -inf  ;;  %v391_v8 = vmax.f32 %v383_v13, %v390_v21 }
 0x157   :  { %v400_v14 = vmax.f32 %v393_v58, %v395_v24  ;;  %v321_v26 = vadd.f32 %v303_v1, %v1302_v17  ;;  %v389_v46 = vmax.f32 %v381_v47, %v388_v19 }
 0x158   :  { %v338_v52 = vmul.f32 %v322_v30, %v1396_v15 }
 0x159   :  { %v337_v37 = vmul.f32 %v321_v26, %v1407_v5 }
 0x15a   :  { %v1425_v36 = vsub.f32 %v338_v52, %v354_v63 }
 0x15b   :  { %v1427_v17 = vsub.f32 %v337_v37, %v353_v20 }
 0x15c   :  { %v398_v60 = vsel %vm371_vm2, %v1425_v36, -inf }
 0x15d   :  { %v399_v4 = vmax.f32 %v391_v8, %v398_v60  ;;  %v396_v24 = vsel %vm371_vm2, %v1427_v17, -inf }
 0x15e   :  { %v397_v58 = vmax.f32 %v389_v46, %v396_v24 }
 0x160   :  { %v401_v34 = vmax.f32 %v397_v58, %v399_v4 }
 0x162   :  { %v1433_v18 = vmax.f32 %v400_v14, %v401_v34 }
 0x164   :  { %v403_v30 = vsub.f32 %v1265_v48, %v1433_v18  ;;  %v404_v63 = vsub.f32 %v1345_v57, %v1433_v18  ;;  %v405_v1 = vsub.f32 %v357_v54, %v1433_v18  ;;  %v406_v3 = vsub.f32 %v358_v16, %v1433_v18 }
 0x165   :  { %v407_v20 = vsub.f32 %v1268_v53, %v1433_v18  ;;  %v408_v21 = vsub.f32 %v1330_v43, %v1433_v18  ;;  %v409_v48 = vsub.f32 %v361_v25, %v1433_v18  ;;  %v410_v57 = vsub.f32 %v1384_v35, %v1433_v18 }
 0x166   :  { %v419_v26 = vmul.f32 1.442695, %v403_v30  ;;  %v421_v50 = vmul.f32 1.442695, %v404_v63  ;;  %v423_v14 = vmul.f32 1.442695, %v405_v1  ;;  %v411_v53 = vsub.f32 %v1348_v7, %v1433_v18 }
 0x167   :  { %v425_v52 = vmul.f32 1.442695, %v406_v3  ;;  %v427_v44 = vmul.f32 1.442695, %v407_v20  ;;  %v429_v16 = vmul.f32 1.442695, %v408_v21  ;;  %v412_v25 = vsub.f32 %v1358_v33, %v1433_v18 }
 0x168   :  { %849 = vpow2.f32 %v419_v26  ;;  %v431_v54 = vmul.f32 1.442695, %v409_v48  ;;  %v433_v19 = vmul.f32 1.442695, %v410_v57  ;;  %v413_v8 = vsub.f32 %v1409_v55, %v1433_v18 }
 0x169   :  { %851 = vpow2.f32 %v421_v50  ;;  %v435_v46 = vmul.f32 1.442695, %v411_v53  ;;  %v414_v24 = vsub.f32 %v1398_v32, %v1433_v18  ;;  %v437_v58 = vmul.f32 1.442695, %v412_v25 }
 0x16a   :  { %853 = vpow2.f32 %v423_v14  ;;  %v415_v55 = vsub.f32 %v1388_v51, %v1433_v18  ;;  %v439_v1 = vmul.f32 1.442695, %v413_v8  ;;  %v416_v32 = vsub.f32 %v1386_v61, %v1433_v18 }
 0x16b   :  { %855 = vpow2.f32 %v425_v52  ;;  %v441_v50 = vmul.f32 1.442695, %v414_v24  ;;  %v417_v51 = vsub.f32 %v1427_v17, %v1433_v18  ;;  %v418_v53 = vsub.f32 %v1425_v36, %v1433_v18 }
 0x16c   :  { %857 = vpow2.f32 %v427_v44  ;;  %v443_v48 = vmul.f32 1.442695, %v415_v55  ;;  %v445_v61 = vmul.f32 1.442695, %v416_v32 }
 0x16d   :  { %859 = vpow2.f32 %v429_v16 }
 0x16e   :  { %v1450_v13 = vpop.eup %849  ;;  %861 = vpow2.f32 %v431_v54 }
 0x16f   :  { %v1452_v43 = vpop.eup %851  ;;  %v451_v37 = vsel %vm371_vm2, %v1450_v13, 0.0  ;;  %863 = vpow2.f32 %v433_v19 }
 0x170   :  { %v1458_v35 = vpop.eup %853  ;;  %v452_v47 = vsel %vm371_vm2, %v1452_v43, 0.0  ;;  %865 = vpow2.f32 %v435_v46  ;;  %v449_v46 = vmul.f32 1.442695, %v418_v53 }
 0x171   :  { %v1462_v7 = vpop.eup %855  ;;  %v453_v60 = vadd.f32 %v452_v47, %v451_v37  ;;  %v454_v33 = vsel %vm371_vm2, %v1458_v35, 0.0  ;;  %867 = vpow2.f32 %v437_v58  ;;  %v447_v37 = vmul.f32 1.442695, %v417_v51 }
 0x172   :  { %v1468_v4 = vpop.eup %857  ;;  %v456_v30 = vsel %vm371_vm2, %v1462_v7, 0.0  ;;  %869 = vpow2.f32 %v439_v1 }
 0x173   :  { %v455_v34 = vadd.f32 %v454_v33, %v453_v60  ;;  %v860_v63 = vpop.eup %859  ;;  %v458_v20 = vsel %vm371_vm2, %v1468_v4, 0.0  ;;  %871 = vpow2.f32 %v441_v50 }
 0x174   :  { %v1478_v26 = vpop.eup %861  ;;  %v460_v14 = vsel %vm371_vm2, %v860_v63, 0.0  ;;  %873 = vpow2.f32 %v443_v48 }
 0x175   :  { %v457_v3 = vadd.f32 %v456_v30, %v455_v34  ;;  %v864_v52 = vpop.eup %863  ;;  %v462_v57 = vsel %vm371_vm2, %v1478_v26, 0.0  ;;  %875 = vpow2.f32 %v445_v61 }
 0x176   :  { %v866_v16 = vpop.eup %865  ;;  %v464_v25 = vsel %vm371_vm2, %v864_v52, 0.0  ;;  %877 = vpow2.f32 %v447_v37 }
 0x177   :  { %v459_v21 = vadd.f32 %v458_v20, %v457_v3  ;;  %v868_v19 = vpop.eup %867  ;;  %v466_v17 = vsel %vm371_vm2, %v866_v16, 0.0  ;;  %879 = vpow2.f32 %v449_v46 }
 0x178   :  { %v870_v8 = vpop.eup %869  ;;  %v468_v33 = vsel %vm371_vm2, %v868_v19, 0.0 }
 0x179   :  { %v461_v44 = vadd.f32 %v460_v14, %v459_v21  ;;  %v872_v24 = vpop.eup %871  ;;  %v470_v18 = vsel %vm371_vm2, %v870_v8, 0.0 }
 0x17a   :  { %v874_v58 = vpop.eup %873  ;;  %v472_v30 = vsel %vm371_vm2, %v872_v24, 0.0 }
 0x17b   :  { %v463_v54 = vadd.f32 %v462_v57, %v461_v44  ;;  %v876_v55 = vpop.eup %875  ;;  %v474_v3 = vsel %vm371_vm2, %v874_v58, 0.0 }
 0x17c   :  { %v878_v20 = vpop.eup %877  ;;  %v476_v50 = vsel %vm371_vm2, %v876_v55, 0.0 }
 0x17d   :  { %v465_v47 = vadd.f32 %v464_v25, %v463_v54  ;;  %v880_v21 = vpop.eup %879  ;;  %v478_v51 = vsel %vm371_vm2, %v878_v20, 0.0 }
 0x17e   :  { %v480_v44 = vsel %vm371_vm2, %v880_v21, 0.0 }
 0x17f   :  { %v467_v60 = vadd.f32 %v466_v17, %v465_v47 }
 0x181   :  { %v469_v36 = vadd.f32 %v468_v33, %v467_v60 }
 0x183   :  { %v471_v34 = vadd.f32 %v470_v18, %v469_v36 }
 0x185   :  { %v473_v1 = vadd.f32 %v472_v30, %v471_v34 }
 0x187   :  { %v475_v32 = vadd.f32 %v474_v3, %v473_v1 }
 0x189   :  { %v477_v14 = vadd.f32 %v476_v50, %v475_v32 }
 0x18b   :  { %v479_v48 = vadd.f32 %v478_v51, %v477_v14 }
 0x18d   :  { %v481_v57 = vadd.f32 %v480_v44, %v479_v48 }
 0x18f   :  { %881 = vrcp.f32 %v481_v57 }
 0x195   :  { %v882_v53 = vpop.eup %881 }
 0x196   :  { %v485_v61 = vmul.f32 %v882_v53, %v1458_v35  ;;  %v484_v54 = vmul.f32 %v882_v53, %v1452_v43  ;;  %v483_v25 = vmul.f32 %v882_v53, %v1450_v13  ;;  %v488_v37 = vmul.f32 %v882_v53, %v860_v63 }
 0x197   :  { %v491_v47 = vmul.f32 %v882_v53, %v866_v16  ;;  %v486_v17 = vmul.f32 %v882_v53, %v1462_v7  ;;  %v490_v46 = vmul.f32 %v882_v53, %v864_v52  ;;  %v494_v60 = vmul.f32 %v882_v53, %v872_v24 }
 0x198   :  { %v501_v33 = vmul.f32 %v485_v61, %v1312_v56  ;;  %v500_v36 = vmul.f32 %v484_v54, %v1288_v49  ;;  %v499_v18 = vmul.f32 %v483_v25, %v1255_v27  ;;  %v487_v35 = vmul.f32 %v882_v53, %v1468_v4  ;;  %v841_v25 = vld [vmem:[%s1609_s7] sm:$0xff] }
 0x199   :  { %v493_v34 = vmul.f32 %v882_v53, %v870_v8  ;;  %v497_v43 = vmul.f32 %v882_v53, %v878_v20  ;;  %v489_v13 = vmul.f32 %v882_v53, %v1478_v26  ;;  %v496_v63 = vmul.f32 %v882_v53, %v876_v55 }
 0x19a   :  { %527 = vperm.xlu1 %847, %v501_v33   ;;  %522 = vperm.xlu0 %846, %v500_v36   ;;  %v492_v16 = vmul.f32 %v882_v53, %v868_v19  ;;  %v495_v7 = vmul.f32 %v882_v53, %v874_v58  ;;  %v498_v52 = vmul.f32 %v882_v53, %v880_v21  ;;  %v1661_v33 = vld [vmem:[#allocation9_spill] sm:$0xff] }
 0x19b   :  { %517 = vperm.xlu2 %845, %v499_v18   ;;  %v504_v24 = vmul.f32 %v488_v37, %v1283_v41  ;;  %v507_v56 = vmul.f32 %v491_v47, %v1293_v62  ;;  %v502_v49 = vmul.f32 %v486_v17, %v1307_v0  ;;  %v506_v27 = vmul.f32 %v490_v46, %v1326_v31  ;;  %v839_v37 = vld [vmem:[%s1608_s6] sm:$0xff] }
 0x19c   :  { %v510_v4 = vmul.f32 %v494_v60, %v1335_v6  ;;  %v503_v8 = vmul.f32 %v487_v35, %v1260_v28  ;;  %v509_v26 = vmul.f32 %v493_v34, %v1368_v2  ;;  %v513_v41 = vmul.f32 %v497_v43, %v1407_v5  ;;  %v1660_v46 = vld [vmem:[#allocation5_spill] sm:$0xff] }
 0x19d   :  { %v505_v62 = vmul.f32 %v489_v13, %v1319_v45  ;;  %v512_v0 = vmul.f32 %v496_v63, %v1343_v59  ;;  %v508_v31 = vmul.f32 %v492_v16, %v1300_v9  ;;  %v511_v6 = vmul.f32 %v495_v7, %v1353_v38  ;;  %v1662_v63 = vld [vmem:[#allocation7_spill] sm:$0xff]  ;;  %v1663_v7 = vld [vmem:[#allocation8_spill] sm:$0xff] }
 0x19e   :  { %v514_v28 = vmul.f32 %v498_v52, %v1396_v15 }
 0x1a2   :  { %542 = vperm.xlu1 %847, %v504_v24   ;;  %557 = vperm.xlu0 %846, %v507_v56  }
 0x1a3   :  { %532 = vperm.xlu2 %845, %v502_v49  }
 0x1aa   :  { %552 = vperm.xlu1 %847, %v506_v27   ;;  %572 = vperm.xlu0 %846, %v510_v4  }
 0x1ab   :  { %537 = vperm.xlu2 %845, %v503_v8  }
 0x1b2   :  { %567 = vperm.xlu1 %847, %v509_v26   ;;  %587 = vperm.xlu0 %846, %v513_v41   ;;  %v1664_v26 = vld [vmem:[#allocation12_spill] sm:$0xff] }
 0x1b3   :  { %547 = vperm.xlu2 %845, %v505_v62   ;;  %v1665_v62 = vld [vmem:[#allocation14_spill] sm:$0xff] }
 0x1ba   :  { %582 = vperm.xlu1 %847, %v512_v0  }
 0x1bb   :  { %562 = vperm.xlu2 %845, %v508_v31   ;;  %v1666_v31 = vld [vmem:[#allocation6_spill] sm:$0xff] }
 0x1c3   :  { %577 = vperm.xlu2 %845, %v511_v6  }
 0x1cb   :  { %592 = vperm.xlu2 %845, %v514_v28   ;;  %v1667_v28 = vld [vmem:[#allocation13_spill] sm:$0xff] }
 0x1f5   :  { %v518_v2 = vpop.permute.xlu2 %517 }
 0x1f6   :  { %v595_v45 = vmul.f32 %v518_v2, %v1001_v12  ;;  %v642_v58 = vmul.f32 %v518_v2, %v1040_v29 }
 0x1f8   :  { %v611_v15 = vsel %vm194_vm1, %v595_v45, 0.0  ;;  %v658_v3 = vsel %vm194_vm1, %v642_v58, 0.0 }
 0x1fd   :  { %v533_v19 = vpop.permute.xlu2 %532 }
 0x1fe   :  { %v598_v32 = vmul.f32 %v533_v19, %v1024_v22  ;;  %v645_v12 = vmul.f32 %v533_v19, %v1065_v39  ;;  %v842_v22 = vld [vmem:[%s1609_s7 + $0x8] sm:$0xff] }
 0x1ff   :  { %v840_v39 = vld [vmem:[%s1608_s6 + $0x8] sm:$0xff]  ;;  %721 = vmatpush.bf16.msra.mxu2 %v842_v22 }
 0x200   :  { %v616_v57 = vsel %vm194_vm1, %v598_v32, 0.0  ;;  %749 = vmatpush.bf16.msra.mxu3 %v840_v39 }
 0x203   :  { %722 = vmatpush.bf16.msra.mxu2 %v841_v25  ;;  %v1675_v25 = vld [vmem:[#allocation24_spill] sm:$0xff] }
 0x204   :  { %750 = vmatpush.bf16.msra.mxu3 %v839_v37 }
 0x205   :  { %v538_v5 = vpop.permute.xlu2 %537 }
 0x20c   :  { %v528_v30 = vpop.permute.xlu1 %527  ;;  %v523_v55 = vpop.permute.xlu0 %522 }
 0x20d   :  { %v597_v59 = vmul.f32 %v528_v30, %v996_v11  ;;  %v644_v9 = vmul.f32 %v528_v30, %v1070_v40  ;;  %v596_v1 = vmul.f32 %v523_v55, %v1029_v23  ;;  %v643_v38 = vmul.f32 %v523_v55, %v1076_v42  ;;  %v548_v20 = vpop.permute.xlu2 %547  ;;  %v1659_v23 = vld [vmem:[#allocation10_spill] sm:$0xff]  ;;  %v1668_v30 = vld [vmem:[#allocation11_spill] sm:$0xff] }
 0x20e   :  { %v599_v40 = vmul.f32 %v538_v5, %v991_v10  ;;  %v646_v14 = vmul.f32 %v538_v5, %v1659_v23  ;;  %v663_v10 = vsel %vm194_vm1, %v645_v12, 0.0  ;;  %v601_v16 = vmul.f32 %v548_v20, %v1662_v63  ;;  %v1676_v63 = vld [vmem:[#allocation20_spill] sm:$0xff] }
 0x20f   :  { %v612_v29 = vsel %vm194_vm1, %v596_v1, 0.0  ;;  %v659_v50 = vsel %vm194_vm1, %v643_v38, 0.0  ;;  %v614_v42 = vsel %vm194_vm1, %v597_v59, 0.0  ;;  %v661_v51 = vsel %vm194_vm1, %v644_v9, 0.0  ;;  %v1669_v59 = vld [vmem:[#allocation19_spill] sm:$0xff] }
 0x210   :  { %v613_v11 = vadd.f32 %v612_v29, %v611_v15  ;;  %v660_v21 = vadd.f32 %v659_v50, %v658_v3  ;;  %v618_v47 = vsel %vm194_vm1, %v599_v40, 0.0  ;;  %v665_v17 = vsel %vm194_vm1, %v646_v14, 0.0  ;;  %v1670_v40 = vld [vmem:[#allocation15_spill] sm:$0xff]  ;;  %v1671_v14 = vld [vmem:[#allocation17_spill] sm:$0xff] }
 0x211   :  { %v648_v52 = vmul.f32 %v548_v20, %v1663_v7  ;;  %v622_v27 = vsel %vm194_vm1, %v601_v16, 0.0  ;;  %v1677_v7 = vld [vmem:[#allocation27_spill] sm:$0xff] }
 0x212   :  { %v615_v48 = vadd.f32 %v614_v42, %v613_v11  ;;  %v662_v44 = vadd.f32 %v661_v51, %v660_v21  ;;  %v1672_v51 = vld [vmem:[#allocation16_spill] sm:$0xff] }
 0x213   :  { %v669_v4 = vsel %vm194_vm1, %v648_v52, 0.0 }
 0x214   :  { %v543_v53 = vpop.permute.xlu1 %542  ;;  %v617_v61 = vadd.f32 %v616_v57, %v615_v48  ;;  %v664_v54 = vadd.f32 %v663_v10, %v662_v44  ;;  %v558_v34 = vpop.permute.xlu0 %557  ;;  %v1673_v44 = vld [vmem:[#allocation18_spill] sm:$0xff] }
 0x215   :  { %v600_v60 = vmul.f32 %v543_v53, %v1660_v46  ;;  %v647_v36 = vmul.f32 %v543_v53, %v1661_v33  ;;  %v563_v24 = vpop.permute.xlu2 %562  ;;  %v603_v41 = vmul.f32 %v558_v34, %v1664_v26  ;;  %v650_v0 = vmul.f32 %v558_v34, %v1665_v62  ;;  %v1680_v26 = vld [vmem:[#allocation25_spill] sm:$0xff]  ;;  %v1681_v62 = vld [vmem:[#allocation26_spill] sm:$0xff] }
 0x216   :  { %v619_v18 = vadd.f32 %v618_v47, %v617_v61  ;;  %v666_v35 = vadd.f32 %v665_v17, %v664_v54  ;;  %v604_v55 = vmul.f32 %v563_v24, %v1668_v30  ;;  %v651_v9 = vmul.f32 %v563_v24, %v1669_v59  ;;  %v1674_v61 = vld [vmem:[#allocation22_spill] sm:$0xff]  ;;  %v1678_v24 = vld [vmem:[#allocation21_spill] sm:$0xff] }
 0x217   :  { %v620_v43 = vsel %vm194_vm1, %v600_v60, 0.0  ;;  %v667_v13 = vsel %vm194_vm1, %v647_v36, 0.0  ;;  %v626_v3 = vsel %vm194_vm1, %v603_v41, 0.0  ;;  %v673_v20 = vsel %vm194_vm1, %v650_v0, 0.0 }
 0x218   :  { %v621_v56 = vadd.f32 %v620_v43, %v619_v18  ;;  %v668_v49 = vadd.f32 %v667_v13, %v666_v35  ;;  %v628_v50 = vsel %vm194_vm1, %v604_v55, 0.0  ;;  %v675_v11 = vsel %vm194_vm1, %v651_v9, 0.0 }
 0x21a   :  { %v623_v19 = vadd.f32 %v622_v27, %v621_v56  ;;  %v670_v5 = vadd.f32 %v669_v4, %v668_v49  ;;  %v1679_v49 = vld [vmem:[#allocation23_spill] sm:$0xff] }
 0x21c   :  { %v553_v8 = vpop.permute.xlu1 %552  ;;  %v573_v15 = vpop.permute.xlu0 %572 }
 0x21d   :  { %v602_v6 = vmul.f32 %v553_v8, %v1666_v31  ;;  %v649_v2 = vmul.f32 %v553_v8, %v1667_v28  ;;  %v578_v29 = vpop.permute.xlu2 %577  ;;  %v606_v23 = vmul.f32 %v573_v15, %v1670_v40  ;;  %v653_v42 = vmul.f32 %v573_v15, %v1671_v14  ;;  %v848_v15 = vld [vmem:[%s1610_s8] ss:$0 sm:$0xff] }
 0x21e   :  { %v607_v54 = vmul.f32 %v578_v29, %v1674_v61  ;;  %v654_v37 = vmul.f32 %v578_v29, %v1675_v25 }
 0x21f   :  { %v624_v45 = vsel %vm194_vm1, %v602_v6, 0.0  ;;  %v671_v58 = vsel %vm194_vm1, %v649_v2, 0.0  ;;  %v632_v46 = vsel %vm194_vm1, %v606_v23, 0.0  ;;  %v679_v60 = vsel %vm194_vm1, %v653_v42, 0.0 }
 0x220   :  { %v625_v1 = vadd.f32 %v624_v45, %v623_v19  ;;  %v672_v38 = vadd.f32 %v671_v58, %v670_v5  ;;  %v634_v35 = vsel %vm194_vm1, %v607_v54, 0.0  ;;  %v681_v34 = vsel %vm194_vm1, %v654_v37, 0.0 }
 0x222   :  { %v627_v32 = vadd.f32 %v626_v3, %v625_v1  ;;  %v674_v12 = vadd.f32 %v673_v20, %v672_v38 }
 0x224   :  { %v568_v21 = vpop.permute.xlu1 %567  ;;  %v629_v39 = vadd.f32 %v628_v50, %v627_v32  ;;  %v676_v57 = vadd.f32 %v675_v11, %v674_v12  ;;  %v588_v18 = vpop.permute.xlu0 %587 }
 0x225   :  { %v605_v48 = vmul.f32 %v568_v21, %v1672_v51  ;;  %v652_v22 = vmul.f32 %v568_v21, %v1673_v44  ;;  %v593_v43 = vpop.permute.xlu2 %592  ;;  %v609_v16 = vmul.f32 %v588_v18, %v1676_v63  ;;  %v656_v52 = vmul.f32 %v588_v18, %v1677_v7 }
 0x226   :  { %v610_v41 = vmul.f32 %v593_v43, %v1680_v26  ;;  %v657_v0 = vmul.f32 %v593_v43, %v1681_v62 }
 0x227   :  { %v630_v10 = vsel %vm194_vm1, %v605_v48, 0.0  ;;  %v677_v53 = vsel %vm194_vm1, %v652_v22, 0.0  ;;  %v638_v19 = vsel %vm194_vm1, %v609_v16, 0.0  ;;  %v685_v5 = vsel %vm194_vm1, %v656_v52, 0.0 }
 0x228   :  { %v631_v47 = vadd.f32 %v630_v10, %v629_v39  ;;  %v678_v17 = vadd.f32 %v677_v53, %v676_v57  ;;  %v640_v30 = vsel %vm194_vm1, %v610_v41, 0.0  ;;  %v687_v55 = vsel %vm194_vm1, %v657_v0, 0.0 }
 0x22a   :  { %v633_v33 = vadd.f32 %v632_v46, %v631_v47  ;;  %v680_v36 = vadd.f32 %v679_v60, %v678_v17 }
 0x22c   :  { %v583_v13 = vpop.permute.xlu1 %582  ;;  %v635_v4 = vadd.f32 %v634_v35, %v633_v33  ;;  %v682_v8 = vadd.f32 %v681_v34, %v680_v36 }
 0x22d   :  { %v608_v56 = vmul.f32 %v583_v13, %v1678_v24  ;;  %v655_v27 = vmul.f32 %v583_v13, %v1679_v49 }
 0x22f   :  { %v636_v31 = vsel %vm194_vm1, %v608_v56, 0.0  ;;  %v683_v6 = vsel %vm194_vm1, %v655_v27, 0.0 }
 0x230   :  { %v637_v28 = vadd.f32 %v636_v31, %v635_v4  ;;  %v684_v2 = vadd.f32 %v683_v6, %v682_v8 }
 0x232   :  { %v639_v45 = vadd.f32 %v638_v19, %v637_v28  ;;  %v686_v58 = vadd.f32 %v685_v5, %v684_v2 }
 0x234   :  { %v688_v59 = vadd.f32 %v687_v55, %v686_v58  ;;  %v641_v9 = vadd.f32 %v640_v30, %v639_v45 }
 0x236   :  { %v694_v1 = vpack.c.bf16 %v688_v59, %v688_v59  ;;  %v689_v38 = vpack.c.bf16 %v641_v9, %v641_v9 }
 0x238   :  { %821 = vmatmul.msk.bf16.vlgmr.msra.gmra.mxu2 %vm711_vm3, %v694_v1  ;;  %830 = vmatmul.msk.bf16.vlgmr.msra.gmra.mxu3 %vm711_vm3, %v689_v38 }
 0x2bb   :  { %v724_v3 = vpop.f32.mrf.mxu2  ;;  %v752_v20 = vpop.f32.mrf.mxu3 }
 0x2bc   :  { %v753_v32 = vadd.f32 %v752_v20, %v724_v3 }
 0x2be   :  { %v760_v12 = vadd.f32 %v848_v15, %v753_v32 }
 0x2c0   :  { %762 = vst.msk [vmem:[#allocation2] sm:$0x3] %vm761_vm4, %v760_v12 }
 0x2c1   :  { %773 = dma.vmem_to_hbm [thread:$0]  %s769_s3, 32, %s771_s10, [#allocation3]  }
 0x2c3   :  { %v726_v29 = vpop.f32.mrf.mxu2  ;;  %v754_v50 = vpop.f32.mrf.mxu3 }
 0x2c4   :  { %907 = dma.done.wait [#allocation3], 32  }
 0x2c5   :  { %908 = vsyncadd [#allocation3], 4294967264 }
 0x2c6   :  { %778 = vsyncpa [#allocation3], 1 }

// kernel: attentive_reader_forward.4
= control target key start
LH: loop header
LB: loop body
LE: loop exit
PB: predicated region body
PF: predicated region fallthrough
CT: control target
= control target key end

     0   :  { %13 = vsyncpa [#allocation4], 0  ;;  %vm32_vm0 = vcmask 517120   ;;  %v1278_v2 = vmov 0.0   ;;  %s1681_s0 = inlined_call_operand.vmem [shape: f32[3,8,2,64], index: 0, kind: input, shape index: {}]   ;;  %s1682_s1 = inlined_call_operand.vmem [shape: bf16[64,64], index: 1, kind: input, shape index: {}]   ;;  %s1683_s2 = inlined_call_operand.vmem [shape: bf16[64,64], index: 2, kind: input, shape index: {}]   ;;  %s1684_s3 = inlined_call_operand.vmem [shape: bf16[64,64], index: 3, kind: input, shape index: {}]   ;;  %s1685_s4 = inlined_call_operand.vmem [shape: f32[1,64], index: 4, kind: input, shape index: {}]   ;;  %s1686_s5 = inlined_call_operand.hbm [shape: f32[8,2,32], index: 5, kind: output, shape index: {0}]   ;;  %s1687_s6 = inlined_call_operand.hbm [shape: f32[8,2,32], index: 6, kind: output, shape index: {1}]   ;;  %s1688_s7 = inlined_call_operand.vmem [shape: f32[2,64], index: 7, kind: output, shape index: {2}]  }
   0x1   :  { %v1327_v0 = vld [vmem:[%s1682_s1 + $0x18] sm:$0xff]  ;;  %33 = vst.msk [vmem:[#allocation2] sm:$0x3] %vm32_vm0, %v1278_v2  ;;  %v1340_v3 = vld [vmem:[%s1682_s1 + $0x10] sm:$0xff] }
   0x2   :  { %v1332_v1 = vld [vmem:[%s1683_s2 + $0x18] sm:$0xff]  ;;  %93 = vmatpush.bf16.msra.mxu0 %v1327_v0  ;;  %v1345_v4 = vld [vmem:[%s1683_s2 + $0x10] sm:$0xff]  ;;  %247 = vmatpush.bf16.msra.mxu3 %v1327_v0 }
   0x3   :  { %130 = vmatpush.bf16.msra.mxu1 %v1332_v1  ;;  %v1350_v5 = vld [vmem:[%s1684_s3 + $0x18] sm:$0xff]  ;;  %v1357_v6 = vld [vmem:[%s1684_s3 + $0x10] sm:$0xff] }
   0x4   :  { %170 = vmatpush.bf16.msra.mxu2 %v1350_v5 }
   0x5   :  { %14 = vsyncpa [#allocation6], 0  ;;  %v1364_v7 = vld [vmem:[%s1682_s1 + $0x8] sm:$0xff]  ;;  %v1383_v10 = vld [vmem:[%s1682_s1] sm:$0xff]  ;;  %vm85_vm1 = vcmask 523264   ;;  %vm231_vm10 = vcmask 254976  }
   0x6   :  { %94 = vmatpush.bf16.msra.mxu0 %v1340_v3  ;;  %v1369_v8 = vld [vmem:[%s1683_s2 + $0x8] sm:$0xff]  ;;  %248 = vmatpush.bf16.msra.mxu3 %v1340_v3  ;;  %v1388_v11 = vld [vmem:[%s1683_s2] sm:$0xff]  ;;  %v1067_v16 = vld [vmem:[%s1681_s0 + $0x10] sm:$0x3]  ;;  %s1279_s30 = smov 96   ;;  %s1281_s27 = smov 32  }
   0x7   :  { %131 = vmatpush.bf16.msra.mxu1 %v1345_v4  ;;  %v1376_v9 = vld [vmem:[%s1684_s3 + $0x8] sm:$0xff]  ;;  %v1397_v13 = vld [vmem:[%s1684_s3] sm:$0xff]  ;;  %v1075_v63 = vld [vmem:[%s1681_s0 + $0x12] sm:$0x3]  ;;  %s1282_s28 = smov 2   ;;  %s992_s12 = sshll.u32 %s1687_s6, 4  ;;  %s993_s12 = int_to_ptr.hbm [resolvable:$true] %s992_s12 }
   0x8   :  { %171 = vmatpush.bf16.msra.mxu2 %v1357_v6  ;;  %v1390_v12 = vld [vmem:[#allocation2] sm:$0x3] }
   0x9   :  { %v60_v14 = vpack.c.bf16 %v1390_v12, %v1390_v12  ;;  %v179_v15 = vld [vmem:[%s1681_s0] sm:$0x3] }
   0xa   :  { %95 = vmatpush.bf16.msra.mxu0 %v1364_v7  ;;  %249 = vmatpush.bf16.msra.mxu3 %v1364_v7  ;;  %v1445_v35 = vld [vmem:[%s1685_s4] ss:$0 sm:$0xff] }
   0xb   :  { %132 = vmatpush.bf16.msra.mxu1 %v1369_v8  ;;  %v1069_v47 = vld [vmem:[%s1681_s0 + $0x20] sm:$0x3] }
   0xc   :  { %172 = vmatpush.bf16.msra.mxu2 %v1376_v9 }
   0xe   :  { %96 = vmatpush.bf16.msra.mxu0 %v1383_v10  ;;  %250 = vmatpush.bf16.msra.mxu3 %v1383_v10 }
   0xf   :  { %133 = vmatpush.bf16.msra.mxu1 %v1388_v11 }
  0x10   :  { %173 = vmatpush.bf16.msra.mxu2 %v1397_v13 }
  0x11   :  { %1031 = vmatmul.msk.bf16.vlgmr.msra.gmra.mxu0 %vm85_vm1, %v60_v14 }
  0x12   :  { %260 = vmatpush.bf16.msrb.mxu0 %v1332_v1  ;;  %1048 = vmatmul.msk.bf16.vlgmr.msra.gmra.mxu1 %vm85_vm1, %v60_v14 }
  0x13   :  { %273 = vmatpush.bf16.msrb.mxu1 %v1350_v5  ;;  %364 = vmatpush.bf16.msrb.mxu3 %v1332_v1 }
  0x14   :  { %351 = vmatpush.bf16.msrb.mxu2 %v1327_v0 }
  0x15   :  { %1065 = vmatmul.msk.bf16.vlgmr.msra.gmra.mxu2 %vm85_vm1, %v60_v14 }
  0x16   :  { %261 = vmatpush.bf16.msrb.mxu0 %v1345_v4 }
  0x17   :  { %274 = vmatpush.bf16.msrb.mxu1 %v1357_v6  ;;  %365 = vmatpush.bf16.msrb.mxu3 %v1345_v4 }
  0x18   :  { %352 = vmatpush.bf16.msrb.mxu2 %v1340_v3 }
  0x1a   :  { %262 = vmatpush.bf16.msrb.mxu0 %v1369_v8 }
  0x1b   :  { %275 = vmatpush.bf16.msrb.mxu1 %v1376_v9  ;;  %366 = vmatpush.bf16.msrb.mxu3 %v1369_v8 }
  0x1c   :  { %353 = vmatpush.bf16.msrb.mxu2 %v1364_v7 }
  0x1e   :  { %263 = vmatpush.bf16.msrb.mxu0 %v1388_v11 }
  0x1f   :  { %276 = vmatpush.bf16.msrb.mxu1 %v1397_v13  ;;  %367 = vmatpush.bf16.msrb.mxu3 %v1388_v11 }
  0x20   :  { %354 = vmatpush.bf16.msrb.mxu2 %v1383_v10 }
  0x22   :  { %377 = vmatpush.bf16.msra.mxu0 %v1350_v5 }
  0x23   :  { %455 = vmatpush.bf16.msra.mxu1 %v1327_v0 }
  0x24   :  { %468 = vmatpush.bf16.msra.mxu2 %v1332_v1 }
  0x26   :  { %378 = vmatpush.bf16.msra.mxu0 %v1357_v6 }
  0x27   :  { %456 = vmatpush.bf16.msra.mxu1 %v1340_v3 }
  0x28   :  { %469 = vmatpush.bf16.msra.mxu2 %v1345_v4 }
  0x2a   :  { %379 = vmatpush.bf16.msra.mxu0 %v1376_v9 }
  0x2b   :  { %457 = vmatpush.bf16.msra.mxu1 %v1364_v7 }
  0x2c   :  { %470 = vmatpush.bf16.msra.mxu2 %v1369_v8 }
  0x2e   :  { %380 = vmatpush.bf16.msra.mxu0 %v1397_v13 }
  0x2f   :  { %458 = vmatpush.bf16.msra.mxu1 %v1383_v10 }
  0x30   :  { %471 = vmatpush.bf16.msra.mxu2 %v1388_v11 }
  0x8e   :  { %v98_v17 = vpop.f32.mrf.mxu0 }
  0x8f   :  { %v135_v18 = vpop.f32.mrf.mxu1  ;;  %v180_v19 = vadd.f32 %v179_v15, %v98_v17 }
  0x90   :  { %v202_v20 = vadd.f32 %v1067_v16, %v135_v18  ;;  %v1073_v16 = vld [vmem:[%s1681_s0 + $0x2] sm:$0x3] }
  0x91   :  { %v1066_v21 = vmul.f32 -1.442695, %v180_v19 }
  0x92   :  { %v1068_v22 = vmul.f32 -1.442695, %v202_v20 }
  0x93   :  { %1145 = vpow2.f32 %v1066_v21 }
  0x94   :  { %1147 = vpow2.f32 %v1068_v22 }
  0x96   :  { %v100_v23 = vpop.f32.mrf.mxu0 }
  0x97   :  { %v137_v24 = vpop.f32.mrf.mxu1 }
  0x98   :  { %v175_v25 = vpop.f32.mrf.mxu2 }
  0x99   :  { %v1146_v26 = vpop.eup %1145  ;;  %v176_v42 = vadd.f32 %v1445_v35, %v175_v25 }
  0x9a   :  { %v1148_v27 = vpop.eup %1147  ;;  %v184_v28 = vadd.f32 1.0, %v1146_v26 }
  0x9b   :  { %v206_v29 = vadd.f32 1.0, %v1148_v27 }
  0x9c   :  { %1149 = vrcp.f32 %v184_v28  ;;  %v196_v38 = vand.u32 2147483648, %v184_v28  ;;  %v194_v40 = vand.u32 2147483647, %v184_v28  ;;  %vm190_vm3 = vweird.f32 %v184_v28 }
  0x9d   :  { %1151 = vrcp.f32 %v206_v29  ;;  %vm212_vm6 = vweird.f32 %v206_v29  ;;  %v218_v50 = vand.u32 2147483648, %v206_v29  ;;  %v216_v51 = vand.u32 2147483647, %v206_v29 }
  0x9e   :  { %v197_v44 = vor.u32 1.1754944e-38, %v196_v38  ;;  %vm195_vm5 = vcmp.eq.f32.partialorder %v194_v40, 8.507059e+37 }
  0x9f   :  { %v219_v54 = vor.u32 1.1754944e-38, %v218_v50  ;;  %vm217_vm9 = vcmp.eq.f32.partialorder %v216_v51, 8.507059e+37 }
  0xa0   :  { %v177_v30 = vpop.f32.mrf.mxu2 }
  0xa2   :  { %v1150_v31 = vpop.eup %1149 }
  0xa3   :  { %v1152_v32 = vpop.eup %1151  ;;  %v186_v33 = vmul.f32 %v1150_v31, %v184_v28  ;;  %vm191_vm2 = vweird.f32 %v1150_v31 }
  0xa4   :  { %v208_v34 = vmul.f32 %v1152_v32, %v206_v29  ;;  %vm192_vm4 = vmor %vm190_vm3, %vm191_vm2  ;;  %vm213_vm7 = vweird.f32 %v1152_v32 }
  0xa5   :  { %v187_v36 = vsub.f32 1.0, %v186_v33  ;;  %vm214_vm8 = vmor %vm212_vm6, %vm213_vm7 }
  0xa6   :  { %v209_v37 = vsub.f32 1.0, %v208_v34 }
  0xa7   :  { %v188_v39 = vmul.f32 %v1150_v31, %v187_v36 }
  0xa8   :  { %v210_v41 = vmul.f32 %v1152_v32, %v209_v37 }
  0xa9   :  { %v189_v43 = vadd.f32 %v1150_v31, %v188_v39 }
  0xaa   :  { %v211_v48 = vadd.f32 %v1152_v32, %v210_v41 }
  0xab   :  { %v193_v45 = vsel %vm192_vm4, %v1150_v31, %v189_v43 }
  0xac   :  { %v198_v46 = vsel %vm195_vm5, %v197_v44, %v193_v45  ;;  %v215_v53 = vsel %vm214_vm8, %v1152_v32, %v211_v48  ;;  %v1077_v44 = vld [vmem:[%s1681_s0 + $0x22] sm:$0x3] }
  0xad   :  { %v224_v49 = vmul.f32 %v198_v46, %v176_v42  ;;  %v220_v55 = vsel %vm217_vm9, %v219_v54, %v215_v53 }
  0xae   :  { %v227_v56 = vsub.f32 1.0, %v220_v55  ;;  %v229_v59 = vmul.f32 %v220_v55, %v1390_v12 }
  0xaf   :  { %v225_v52 = vadd.f32 %v1069_v47, %v224_v49 }
  0xb1   :  { %1153 = vtanh.f32 %v225_v52 }
  0xb7   :  { %v1154_v57 = vpop.eup %1153 }
  0xb8   :  { %v228_v58 = vmul.f32 %v1154_v57, %v227_v56 }
  0xba   :  { %v1452_v60 = vadd.f32 %v229_v59, %v228_v58 }
  0xbc   :  { %234 = vrot.lane.b32.xlu0 %v1452_v60, %s1279_s30  ;;  %232 = vst.msk [vmem:[#allocation3] sm:$0x3] %vm231_vm10, %v1452_v60  ;;  %v239_v61 = vpack.c.bf16 %v1452_v60, %v1452_v60 }
  0xbe   :  { %1070 = vmatmul.msk.bf16.vlgmr.msra.gmra.mxu3 %vm85_vm1, %v239_v61  ;;  %1071 = vmatmul.msk.bf16.vlgmr.msrb.gmra.mxu0 %vm85_vm1, %v239_v61 }
  0xbf   :  { %1072 = vmatmul.msk.bf16.vlgmr.msrb.gmra.mxu1 %vm85_vm1, %v239_v61  ;;  %481 = vmatpush.bf16.msra.mxu3 %v1350_v5  ;;  %v1083_v61 = vld [vmem:[%s1681_s0 + $0x14] sm:$0x3] }
  0xc0   :  { %559 = vmatpush.bf16.msrb.mxu0 %v1327_v0  ;;  %572 = vmatpush.bf16.msrb.mxu1 %v1332_v1 }
  0xc3   :  { %482 = vmatpush.bf16.msra.mxu3 %v1357_v6 }
  0xc4   :  { %560 = vmatpush.bf16.msrb.mxu0 %v1340_v3  ;;  %573 = vmatpush.bf16.msrb.mxu1 %v1345_v4 }
  0xc7   :  { %483 = vmatpush.bf16.msra.mxu3 %v1376_v9 }
  0xc8   :  { %561 = vmatpush.bf16.msrb.mxu0 %v1364_v7  ;;  %574 = vmatpush.bf16.msrb.mxu1 %v1369_v8 }
  0xcb   :  { %484 = vmatpush.bf16.msra.mxu3 %v1397_v13 }
  0xcc   :  { %562 = vmatpush.bf16.msrb.mxu0 %v1383_v10  ;;  %575 = vmatpush.bf16.msrb.mxu1 %v1388_v11 }
 0x12e   :  { %v235_v62 = vpop.permute.xlu0 %234 }
 0x12f   :  { %238 = vst.msk [vmem:[#allocation5 + $0xe] sm:$0x3] %vm231_vm10, %v235_v62 }
 0x13b   :  { %v265_v2 = vpop.f32.mrf.mxu0 }
 0x13c   :  { %v306_v12 = vadd.f32 %v1075_v63, %v265_v2  ;;  %v278_v14 = vpop.f32.mrf.mxu1 }
 0x13d   :  { %v279_v40 = vadd.f32 %v1445_v35, %v278_v14 }
 0x13e   :  { %v1076_v15 = vmul.f32 -1.442695, %v306_v12 }
 0x140   :  { %1155 = vpow2.f32 %v1076_v15 }
 0x141   :  { %v252_v17 = vpop.f32.mrf.mxu3 }
 0x142   :  { %v284_v18 = vadd.f32 %v1073_v16, %v252_v17 }
 0x143   :  { %v267_v19 = vpop.f32.mrf.mxu0 }
 0x144   :  { %v1074_v20 = vmul.f32 -1.442695, %v284_v18  ;;  %v280_v21 = vpop.f32.mrf.mxu1 }
 0x146   :  { %v1156_v22 = vpop.eup %1155  ;;  %1157 = vpow2.f32 %v1074_v20 }
 0x147   :  { %v310_v23 = vadd.f32 1.0, %v1156_v22 }
 0x149   :  { %v254_v24 = vpop.f32.mrf.mxu3  ;;  %1159 = vrcp.f32 %v310_v23  ;;  %v322_v45 = vand.u32 2147483648, %v310_v23  ;;  %vm316_vm2 = vweird.f32 %v310_v23  ;;  %v320_v47 = vand.u32 2147483647, %v310_v23 }
 0x14b   :  { %v323_v50 = vor.u32 1.1754944e-38, %v322_v45  ;;  %vm321_vm4 = vcmp.eq.f32.partialorder %v320_v47, 8.507059e+37 }
 0x14c   :  { %v1158_v25 = vpop.eup %1157 }
 0x14d   :  { %v288_v26 = vadd.f32 1.0, %v1158_v25 }
 0x14f   :  { %1161 = vrcp.f32 %v288_v26  ;;  %v1160_v27 = vpop.eup %1159  ;;  %v300_v33 = vand.u32 2147483648, %v288_v26  ;;  %v298_v36 = vand.u32 2147483647, %v288_v26  ;;  %vm294_vm12 = vweird.f32 %v288_v26 }
 0x150   :  { %v312_v28 = vmul.f32 %v1160_v27, %v310_v23  ;;  %vm317_vm15 = vweird.f32 %v1160_v27 }
 0x151   :  { %v301_v39 = vor.u32 1.1754944e-38, %v300_v33  ;;  %vm299_vm14 = vcmp.eq.f32.partialorder %v298_v36, 8.507059e+37  ;;  %vm318_vm3 = vmor %vm316_vm2, %vm317_vm15 }
 0x152   :  { %v313_v31 = vsub.f32 1.0, %v312_v28 }
 0x154   :  { %v314_v37 = vmul.f32 %v1160_v27, %v313_v31 }
 0x155   :  { %v1162_v29 = vpop.eup %1161 }
 0x156   :  { %v290_v30 = vmul.f32 %v1162_v29, %v288_v26  ;;  %vm295_vm11 = vweird.f32 %v1162_v29  ;;  %v315_v43 = vadd.f32 %v1160_v27, %v314_v37 }
 0x157   :  { %vm296_vm13 = vmor %vm294_vm12, %vm295_vm11 }
 0x158   :  { %v291_v32 = vsub.f32 1.0, %v290_v30  ;;  %v319_v49 = vsel %vm318_vm3, %v1160_v27, %v315_v43 }
 0x159   :  { %v324_v51 = vsel %vm321_vm4, %v323_v50, %v319_v49 }
 0x15a   :  { %v292_v34 = vmul.f32 %v1162_v29, %v291_v32  ;;  %v331_v52 = vsub.f32 1.0, %v324_v51  ;;  %v333_v55 = vmul.f32 %v324_v51, %v1452_v60  ;;  %v1081_v60 = vld [vmem:[%s1681_s0 + $0x4] sm:$0x3] }
 0x15c   :  { %v293_v38 = vadd.f32 %v1162_v29, %v292_v34 }
 0x15e   :  { %v297_v41 = vsel %vm296_vm13, %v1162_v29, %v293_v38 }
 0x15f   :  { %v302_v42 = vsel %vm299_vm14, %v301_v39, %v297_v41 }
 0x160   :  { %v328_v46 = vmul.f32 %v302_v42, %v279_v40  ;;  %v1085_v40 = vld [vmem:[%s1681_s0 + $0x24] sm:$0x3] }
 0x162   :  { %v329_v48 = vadd.f32 %v1077_v44, %v328_v46 }
 0x164   :  { %1163 = vtanh.f32 %v329_v48 }
 0x16a   :  { %v1164_v53 = vpop.eup %1163 }
 0x16b   :  { %v332_v54 = vmul.f32 %v1164_v53, %v331_v52 }
 0x16d   :  { %v1487_v56 = vadd.f32 %v333_v55, %v332_v54  ;;  %v1089_v55 = vld [vmem:[%s1681_s0 + $0x6] sm:$0x3] }
 0x16f   :  { %338 = vrot.lane.b32.xlu0 %v1487_v56, %s1279_s30  ;;  %336 = vst.msk [vmem:[#allocation3 + $0x2] sm:$0x3] %vm231_vm10, %v1487_v56  ;;  %v343_v57 = vpack.c.bf16 %v1487_v56, %v1487_v56 }
 0x171   :  { %1078 = vmatmul.msk.bf16.vlgmr.msrb.gmra.mxu2 %vm85_vm1, %v343_v57  ;;  %1079 = vmatmul.msk.bf16.vlgmr.msrb.gmra.mxu3 %vm85_vm1, %v343_v57 }
 0x172   :  { %1080 = vmatmul.msk.bf16.vlgmr.msra.gmra.mxu0 %vm85_vm1, %v343_v57  ;;  %585 = vmatpush.bf16.msrb.mxu2 %v1350_v5 }
 0x173   :  { %663 = vmatpush.bf16.msrb.mxu3 %v1327_v0  ;;  %676 = vmatpush.bf16.msra.mxu0 %v1332_v1 }
 0x176   :  { %586 = vmatpush.bf16.msrb.mxu2 %v1357_v6 }
 0x177   :  { %664 = vmatpush.bf16.msrb.mxu3 %v1340_v3  ;;  %677 = vmatpush.bf16.msra.mxu0 %v1345_v4 }
 0x17a   :  { %587 = vmatpush.bf16.msrb.mxu2 %v1376_v9 }
 0x17b   :  { %665 = vmatpush.bf16.msrb.mxu3 %v1364_v7  ;;  %678 = vmatpush.bf16.msra.mxu0 %v1369_v8 }
 0x17e   :  { %588 = vmatpush.bf16.msrb.mxu2 %v1397_v13 }
 0x17f   :  { %666 = vmatpush.bf16.msrb.mxu3 %v1383_v10  ;;  %679 = vmatpush.bf16.msra.mxu0 %v1388_v11 }
 0x1e1   :  { %v339_v58 = vpop.permute.xlu0 %338 }
 0x1e2   :  { %342 = vst.msk [vmem:[#allocation5 + $0xc] sm:$0x3] %vm231_vm10, %v339_v58 }
 0x1ef   :  { %v382_v59 = vpop.f32.mrf.mxu0 }
 0x1f0   :  { %v383_v36 = vadd.f32 %v1445_v35, %v382_v59  ;;  %v1091_v59 = vld [vmem:[%s1681_s0 + $0x16] sm:$0x3] }
 0x1f4   :  { %v356_v62 = vpop.f32.mrf.mxu2  ;;  %v369_v63 = vpop.f32.mrf.mxu3 }
 0x1f5   :  { %v388_v2 = vadd.f32 %v1081_v60, %v356_v62  ;;  %v410_v12 = vadd.f32 %v1083_v61, %v369_v63 }
 0x1f7   :  { %v1082_v14 = vmul.f32 -1.442695, %v388_v2  ;;  %v1084_v15 = vmul.f32 -1.442695, %v410_v12  ;;  %v384_v16 = vpop.f32.mrf.mxu0 }
 0x1f9   :  { %1165 = vpow2.f32 %v1082_v14 }
 0x1fa   :  { %1167 = vpow2.f32 %v1084_v15 }
 0x1fc   :  { %v358_v17 = vpop.f32.mrf.mxu2  ;;  %v371_v18 = vpop.f32.mrf.mxu3 }
 0x1ff   :  { %v1166_v19 = vpop.eup %1165 }
 0x200   :  { %v1168_v20 = vpop.eup %1167  ;;  %v392_v21 = vadd.f32 1.0, %v1166_v19 }
 0x201   :  { %v414_v22 = vadd.f32 1.0, %v1168_v20 }
 0x202   :  { %1169 = vrcp.f32 %v392_v21  ;;  %v404_v28 = vand.u32 2147483648, %v392_v21  ;;  %v402_v31 = vand.u32 2147483647, %v392_v21  ;;  %vm398_vm6 = vweird.f32 %v392_v21 }
 0x203   :  { %1171 = vrcp.f32 %v414_v22  ;;  %v426_v41 = vand.u32 2147483648, %v414_v22  ;;  %vm420_vm11 = vweird.f32 %v414_v22  ;;  %v424_v43 = vand.u32 2147483647, %v414_v22 }
 0x204   :  { %v405_v34 = vor.u32 1.1754944e-38, %v404_v28  ;;  %vm403_vm8 = vcmp.eq.f32.partialorder %v402_v31, 8.507059e+37 }
 0x205   :  { %v427_v46 = vor.u32 1.1754944e-38, %v426_v41  ;;  %vm425_vm13 = vcmp.eq.f32.partialorder %v424_v43, 8.507059e+37 }
 0x208   :  { %v1170_v23 = vpop.eup %1169 }
 0x209   :  { %v1172_v24 = vpop.eup %1171  ;;  %v394_v25 = vmul.f32 %v1170_v23, %v392_v21  ;;  %vm399_vm5 = vweird.f32 %v1170_v23 }
 0x20a   :  { %v416_v26 = vmul.f32 %v1172_v24, %v414_v22  ;;  %vm400_vm7 = vmor %vm398_vm6, %vm399_vm5  ;;  %vm421_vm9 = vweird.f32 %v1172_v24 }
 0x20b   :  { %v395_v27 = vsub.f32 1.0, %v394_v25  ;;  %vm422_vm12 = vmor %vm420_vm11, %vm421_vm9 }
 0x20c   :  { %v417_v29 = vsub.f32 1.0, %v416_v26 }
 0x20d   :  { %v396_v30 = vmul.f32 %v1170_v23, %v395_v27 }
 0x20e   :  { %v418_v32 = vmul.f32 %v1172_v24, %v417_v29 }
 0x20f   :  { %v397_v33 = vadd.f32 %v1170_v23, %v396_v30 }
 0x210   :  { %v419_v39 = vadd.f32 %v1172_v24, %v418_v32 }
 0x211   :  { %v401_v37 = vsel %vm400_vm7, %v1170_v23, %v397_v33  ;;  %v1093_v33 = vld [vmem:[%s1681_s0 + $0x26] sm:$0x3] }
 0x212   :  { %v406_v38 = vsel %vm403_vm8, %v405_v34, %v401_v37  ;;  %v423_v45 = vsel %vm422_vm12, %v1172_v24, %v419_v39 }
 0x213   :  { %v432_v42 = vmul.f32 %v406_v38, %v383_v36  ;;  %v428_v47 = vsel %vm425_vm13, %v427_v46, %v423_v45 }
 0x214   :  { %v435_v48 = vsub.f32 1.0, %v428_v47  ;;  %v437_v51 = vmul.f32 %v428_v47, %v1487_v56 }
 0x215   :  { %v433_v44 = vadd.f32 %v1085_v40, %v432_v42 }
 0x217   :  { %1173 = vtanh.f32 %v433_v44 }
 0x21d   :  { %v1174_v49 = vpop.eup %1173 }
 0x21e   :  { %v436_v50 = vmul.f32 %v1174_v49, %v435_v48 }
 0x220   :  { %v1522_v52 = vadd.f32 %v437_v51, %v436_v50 }
 0x222   :  { %442 = vrot.lane.b32.xlu1 %v1522_v52, %s1279_s30  ;;  %440 = vst.msk [vmem:[#allocation3 + $0x4] sm:$0x3] %vm231_vm10, %v1522_v52  ;;  %v447_v53 = vpack.c.bf16 %v1522_v52, %v1522_v52 }
 0x224   :  { %1086 = vmatmul.msk.bf16.vlgmr.msra.gmra.mxu1 %vm85_vm1, %v447_v53  ;;  %1087 = vmatmul.msk.bf16.vlgmr.msra.gmra.mxu2 %vm85_vm1, %v447_v53 }
 0x225   :  { %1088 = vmatmul.msk.bf16.vlgmr.msra.gmra.mxu3 %vm85_vm1, %v447_v53  ;;  %689 = vmatpush.bf16.msra.mxu1 %v1350_v5 }
 0x226   :  { %767 = vmatpush.bf16.msra.mxu2 %v1327_v0  ;;  %780 = vmatpush.bf16.msra.mxu3 %v1332_v1 }
 0x229   :  { %690 = vmatpush.bf16.msra.mxu1 %v1357_v6 }
 0x22a   :  { %768 = vmatpush.bf16.msra.mxu2 %v1340_v3  ;;  %781 = vmatpush.bf16.msra.mxu3 %v1345_v4 }
 0x22d   :  { %691 = vmatpush.bf16.msra.mxu1 %v1376_v9 }
 0x22e   :  { %769 = vmatpush.bf16.msra.mxu2 %v1364_v7  ;;  %782 = vmatpush.bf16.msra.mxu3 %v1369_v8 }
 0x231   :  { %692 = vmatpush.bf16.msra.mxu1 %v1397_v13 }
 0x232   :  { %770 = vmatpush.bf16.msra.mxu2 %v1383_v10  ;;  %783 = vmatpush.bf16.msra.mxu3 %v1388_v11 }
 0x294   :  { %v443_v54 = vpop.permute.xlu1 %442 }
 0x295   :  { %446 = vst.msk [vmem:[#allocation5 + $0xa] sm:$0x3] %vm231_vm10, %v443_v54 }
 0x2a1   :  { %v460_v56 = vpop.f32.mrf.mxu1 }
 0x2a2   :  { %v492_v57 = vadd.f32 %v1089_v55, %v460_v56 }
 0x2a4   :  { %v1090_v58 = vmul.f32 -1.442695, %v492_v57 }
 0x2a6   :  { %1175 = vpow2.f32 %v1090_v58 }
 0x2a7   :  { %v473_v60 = vpop.f32.mrf.mxu2 }
 0x2a8   :  { %v514_v61 = vadd.f32 %v1091_v59, %v473_v60  ;;  %v486_v62 = vpop.f32.mrf.mxu3 }
 0x2a9   :  { %v462_v63 = vpop.f32.mrf.mxu1  ;;  %v487_v30 = vadd.f32 %v1445_v35, %v486_v62 }
 0x2aa   :  { %v1092_v2 = vmul.f32 -1.442695, %v514_v61 }
 0x2ac   :  { %v1176_v12 = vpop.eup %1175  ;;  %1177 = vpow2.f32 %v1092_v2 }
 0x2ad   :  { %v496_v14 = vadd.f32 1.0, %v1176_v12 }
 0x2af   :  { %1179 = vrcp.f32 %v496_v14  ;;  %v475_v15 = vpop.f32.mrf.mxu2  ;;  %v508_v22 = vand.u32 2147483648, %v496_v14  ;;  %v506_v24 = vand.u32 2147483647, %v496_v14  ;;  %vm502_vm15 = vweird.f32 %v496_v14 }
 0x2b0   :  { %v488_v16 = vpop.f32.mrf.mxu3 }
 0x2b1   :  { %v509_v28 = vor.u32 1.1754944e-38, %v508_v22  ;;  %vm507_vm3 = vcmp.eq.f32.partialorder %v506_v24, 8.507059e+37  ;;  %v1101_v22 = vld [vmem:[%s1681_s0 + $0x28] sm:$0x3] }
 0x2b2   :  { %v1178_v17 = vpop.eup %1177 }
 0x2b3   :  { %v518_v18 = vadd.f32 1.0, %v1178_v17 }
 0x2b5   :  { %v1180_v19 = vpop.eup %1179  ;;  %1181 = vrcp.f32 %v518_v18  ;;  %v530_v37 = vand.u32 2147483648, %v518_v18  ;;  %v528_v38 = vand.u32 2147483647, %v518_v18  ;;  %vm524_vm5 = vweird.f32 %v518_v18 }
 0x2b6   :  { %v498_v20 = vmul.f32 %v1180_v19, %v496_v14  ;;  %vm503_vm14 = vweird.f32 %v1180_v19 }
 0x2b7   :  { %vm504_vm2 = vmor %vm502_vm15, %vm503_vm14  ;;  %v531_v42 = vor.u32 1.1754944e-38, %v530_v37  ;;  %vm529_vm7 = vcmp.eq.f32.partialorder %v528_v38, 8.507059e+37 }
 0x2b8   :  { %v499_v21 = vsub.f32 1.0, %v498_v20 }
 0x2ba   :  { %v500_v23 = vmul.f32 %v1180_v19, %v499_v21 }
 0x2bb   :  { %v1182_v25 = vpop.eup %1181 }
 0x2bc   :  { %v520_v26 = vmul.f32 %v1182_v25, %v518_v18  ;;  %v501_v27 = vadd.f32 %v1180_v19, %v500_v23  ;;  %vm525_vm4 = vweird.f32 %v1182_v25 }
 0x2bd   :  { %vm526_vm6 = vmor %vm524_vm5, %vm525_vm4 }
 0x2be   :  { %v521_v29 = vsub.f32 1.0, %v520_v26  ;;  %v505_v31 = vsel %vm504_vm2, %v1180_v19, %v501_v27 }
 0x2bf   :  { %v510_v32 = vsel %vm507_vm3, %v509_v28, %v505_v31 }
 0x2c0   :  { %v522_v34 = vmul.f32 %v1182_v25, %v521_v29  ;;  %v536_v36 = vmul.f32 %v510_v32, %v487_v30 }
 0x2c2   :  { %v537_v39 = vadd.f32 %v1093_v33, %v536_v36  ;;  %v523_v40 = vadd.f32 %v1182_v25, %v522_v34 }
 0x2c4   :  { %1183 = vtanh.f32 %v537_v39  ;;  %v527_v41 = vsel %vm526_vm6, %v1182_v25, %v523_v40  ;;  %v1107_v39 = vld [vmem:[%s1681_s0 + $0x1a] sm:$0x3] }
 0x2c5   :  { %v532_v43 = vsel %vm529_vm7, %v531_v42, %v527_v41 }
 0x2c6   :  { %v539_v44 = vsub.f32 1.0, %v532_v43  ;;  %v541_v47 = vmul.f32 %v532_v43, %v1522_v52 }
 0x2ca   :  { %v1184_v45 = vpop.eup %1183 }
 0x2cb   :  { %v540_v46 = vmul.f32 %v1184_v45, %v539_v44 }
 0x2cd   :  { %v1557_v48 = vadd.f32 %v541_v47, %v540_v46 }
 0x2cf   :  { %546 = vrot.lane.b32.xlu1 %v1557_v48, %s1279_s30  ;;  %544 = vst.msk [vmem:[#allocation3 + $0x6] sm:$0x3] %vm231_vm10, %v1557_v48  ;;  %v551_v49 = vpack.c.bf16 %v1557_v48, %v1557_v48 }
 0x2d1   :  { %1094 = vmatmul.msk.bf16.vlgmr.msrb.gmra.mxu0 %vm85_vm1, %v551_v49  ;;  %1095 = vmatmul.msk.bf16.vlgmr.msrb.gmra.mxu1 %vm85_vm1, %v551_v49 }
 0x2d2   :  { %1096 = vmatmul.msk.bf16.vlgmr.msrb.gmra.mxu2 %vm85_vm1, %v551_v49  ;;  %793 = vmatpush.bf16.msrb.mxu0 %v1350_v5 }
 0x2d3   :  { %871 = vmatpush.bf16.msrb.mxu1 %v1327_v0  ;;  %884 = vmatpush.bf16.msrb.mxu2 %v1332_v1  ;;  %v1097_v1 = vld [vmem:[%s1681_s0 + $0x8] sm:$0x3] }
 0x2d6   :  { %794 = vmatpush.bf16.msrb.mxu0 %v1357_v6 }
 0x2d7   :  { %872 = vmatpush.bf16.msrb.mxu1 %v1340_v3  ;;  %885 = vmatpush.bf16.msrb.mxu2 %v1345_v4  ;;  %v1099_v3 = vld [vmem:[%s1681_s0 + $0x18] sm:$0x3] }
 0x2da   :  { %795 = vmatpush.bf16.msrb.mxu0 %v1376_v9 }
 0x2db   :  { %873 = vmatpush.bf16.msrb.mxu1 %v1364_v7  ;;  %886 = vmatpush.bf16.msrb.mxu2 %v1369_v8 }
 0x2de   :  { %796 = vmatpush.bf16.msrb.mxu0 %v1397_v13 }
 0x2df   :  { %874 = vmatpush.bf16.msrb.mxu1 %v1383_v10  ;;  %887 = vmatpush.bf16.msrb.mxu2 %v1388_v11 }
 0x341   :  { %v547_v0 = vpop.permute.xlu1 %546 }
 0x342   :  { %550 = vst.msk [vmem:[#allocation5 + $0x8] sm:$0x3] %vm231_vm10, %v547_v0 }
 0x34e   :  { %v564_v4 = vpop.f32.mrf.mxu0  ;;  %v577_v7 = vpop.f32.mrf.mxu1 }
 0x34f   :  { %v596_v8 = vadd.f32 %v1097_v1, %v564_v4  ;;  %v618_v50 = vadd.f32 %v1099_v3, %v577_v7 }
 0x351   :  { %v1098_v51 = vmul.f32 -1.442695, %v596_v8  ;;  %v1100_v52 = vmul.f32 -1.442695, %v618_v50 }
 0x353   :  { %1185 = vpow2.f32 %v1098_v51 }
 0x354   :  { %1187 = vpow2.f32 %v1100_v52 }
 0x355   :  { %v590_v10 = vpop.f32.mrf.mxu2 }
 0x356   :  { %v566_v11 = vpop.f32.mrf.mxu0  ;;  %v579_v53 = vpop.f32.mrf.mxu1  ;;  %v591_v19 = vadd.f32 %v1445_v35, %v590_v10 }
 0x359   :  { %v1186_v54 = vpop.eup %1185 }
 0x35a   :  { %v1188_v55 = vpop.eup %1187  ;;  %v600_v56 = vadd.f32 1.0, %v1186_v54 }
 0x35b   :  { %v622_v57 = vadd.f32 1.0, %v1188_v55 }
 0x35c   :  { %1189 = vrcp.f32 %v600_v56  ;;  %v612_v12 = vand.u32 2147483648, %v600_v56  ;;  %v610_v15 = vand.u32 2147483647, %v600_v56  ;;  %vm606_vm9 = vweird.f32 %v600_v56 }
 0x35d   :  { %1191 = vrcp.f32 %v622_v57  ;;  %v592_v58 = vpop.f32.mrf.mxu2  ;;  %v634_v25 = vand.u32 2147483648, %v622_v57  ;;  %vm628_vm14 = vweird.f32 %v622_v57  ;;  %v632_v26 = vand.u32 2147483647, %v622_v57 }
 0x35e   :  { %v613_v18 = vor.u32 1.1754944e-38, %v612_v12  ;;  %vm611_vm12 = vcmp.eq.f32.partialorder %v610_v15, 8.507059e+37 }
 0x35f   :  { %v635_v29 = vor.u32 1.1754944e-38, %v634_v25  ;;  %vm633_vm2 = vcmp.eq.f32.partialorder %v632_v26, 8.507059e+37 }
 0x362   :  { %v1190_v59 = vpop.eup %1189 }
 0x363   :  { %v1192_v60 = vpop.eup %1191  ;;  %v602_v61 = vmul.f32 %v1190_v59, %v600_v56  ;;  %vm607_vm8 = vweird.f32 %v1190_v59 }
 0x364   :  { %v624_v62 = vmul.f32 %v1192_v60, %v622_v57  ;;  %vm608_vm11 = vmor %vm606_vm9, %vm607_vm8  ;;  %vm629_vm13 = vweird.f32 %v1192_v60 }
 0x365   :  { %v603_v63 = vsub.f32 1.0, %v602_v61  ;;  %vm630_vm15 = vmor %vm628_vm14, %vm629_vm13 }
 0x366   :  { %v625_v2 = vsub.f32 1.0, %v624_v62 }
 0x367   :  { %v604_v14 = vmul.f32 %v1190_v59, %v603_v63 }
 0x368   :  { %v626_v16 = vmul.f32 %v1192_v60, %v625_v2 }
 0x369   :  { %v605_v17 = vadd.f32 %v1190_v59, %v604_v14 }
 0x36a   :  { %v627_v23 = vadd.f32 %v1192_v60, %v626_v16 }
 0x36b   :  { %v609_v20 = vsel %vm608_vm11, %v1190_v59, %v605_v17  ;;  %v1109_v59 = vld [vmem:[%s1681_s0 + $0x2a] sm:$0x3] }
 0x36c   :  { %v614_v21 = vsel %vm611_vm12, %v613_v18, %v609_v20  ;;  %v631_v28 = vsel %vm630_vm15, %v1192_v60, %v627_v23  ;;  %v1113_v23 = vld [vmem:[%s1681_s0 + $0xc] sm:$0x3] }
 0x36d   :  { %v640_v24 = vmul.f32 %v614_v21, %v591_v19  ;;  %v636_v30 = vsel %vm633_vm2, %v635_v29, %v631_v28 }
 0x36e   :  { %v643_v31 = vsub.f32 1.0, %v636_v30  ;;  %v645_v34 = vmul.f32 %v636_v30, %v1557_v48 }
 0x36f   :  { %v641_v27 = vadd.f32 %v1101_v22, %v640_v24  ;;  %v1115_v24 = vld [vmem:[%s1681_s0 + $0x1c] sm:$0x3] }
 0x371   :  { %1193 = vtanh.f32 %v641_v27 }
 0x377   :  { %v1194_v32 = vpop.eup %1193 }
 0x378   :  { %v644_v33 = vmul.f32 %v1194_v32, %v643_v31 }
 0x37a   :  { %v1592_v36 = vadd.f32 %v645_v34, %v644_v33 }
 0x37c   :  { %650 = vrot.lane.b32.xlu2 %v1592_v36, %s1279_s30  ;;  %648 = vst.msk [vmem:[#allocation3 + $0x8] sm:$0x3] %vm231_vm10, %v1592_v36  ;;  %v655_v37 = vpack.c.bf16 %v1592_v36, %v1592_v36 }
 0x37e   :  { %1102 = vmatmul.msk.bf16.vlgmr.msrb.gmra.mxu3 %vm85_vm1, %v655_v37  ;;  %1103 = vmatmul.msk.bf16.vlgmr.msra.gmra.mxu0 %vm85_vm1, %v655_v37 }
 0x37f   :  { %1104 = vmatmul.msk.bf16.vlgmr.msra.gmra.mxu1 %vm85_vm1, %v655_v37  ;;  %897 = vmatpush.bf16.msrb.mxu3 %v1350_v5  ;;  %v1105_v5 = vld [vmem:[%s1681_s0 + $0xa] sm:$0x3] }
 0x383   :  { %898 = vmatpush.bf16.msrb.mxu3 %v1357_v6 }
 0x387   :  { %899 = vmatpush.bf16.msrb.mxu3 %v1376_v9 }
 0x38b   :  { %900 = vmatpush.bf16.msrb.mxu3 %v1397_v13 }
 0x3d6   :  { %v651_v38 = vpop.permute.xlu2 %650 }
 0x3d7   :  { %654 = vst.msk [vmem:[#allocation5 + $0x6] sm:$0x3] %vm231_vm10, %v651_v38 }
 0x3fb   :  { %v681_v40 = vpop.f32.mrf.mxu0 }
 0x3fc   :  { %v722_v41 = vadd.f32 %v1107_v39, %v681_v40  ;;  %v694_v42 = vpop.f32.mrf.mxu1 }
 0x3fd   :  { %v695_v55 = vadd.f32 %v1445_v35, %v694_v42 }
 0x3fe   :  { %v1108_v43 = vmul.f32 -1.442695, %v722_v41 }
 0x400   :  { %1195 = vpow2.f32 %v1108_v43 }
 0x401   :  { %v668_v6 = vpop.f32.mrf.mxu3 }
 0x402   :  { %v700_v9 = vadd.f32 %v1105_v5, %v668_v6 }
 0x403   :  { %v683_v44 = vpop.f32.mrf.mxu0 }
 0x404   :  { %v1106_v13 = vmul.f32 -1.442695, %v700_v9  ;;  %v696_v45 = vpop.f32.mrf.mxu1 }
 0x406   :  { %v1196_v46 = vpop.eup %1195  ;;  %1197 = vpow2.f32 %v1106_v13 }
 0x407   :  { %v726_v47 = vadd.f32 1.0, %v1196_v46 }
 0x409   :  { %v670_v48 = vpop.f32.mrf.mxu3  ;;  %1199 = vrcp.f32 %v726_v47  ;;  %v738_v60 = vand.u32 2147483648, %v726_v47  ;;  %vm732_vm8 = vweird.f32 %v726_v47  ;;  %v736_v62 = vand.u32 2147483647, %v726_v47 }
 0x40b   :  { %v739_v12 = vor.u32 1.1754944e-38, %v738_v60  ;;  %vm737_vm11 = vcmp.eq.f32.partialorder %v736_v62, 8.507059e+37 }
 0x40c   :  { %v1198_v49 = vpop.eup %1197 }
 0x40d   :  { %v704_v0 = vadd.f32 1.0, %v1198_v49 }
 0x40f   :  { %1201 = vrcp.f32 %v704_v0  ;;  %v1200_v1 = vpop.eup %1199  ;;  %v716_v51 = vand.u32 2147483648, %v704_v0  ;;  %v714_v10 = vand.u32 2147483647, %v704_v0  ;;  %vm710_vm4 = vweird.f32 %v704_v0 }
 0x410   :  { %v728_v3 = vmul.f32 %v1200_v1, %v726_v47  ;;  %vm733_vm7 = vweird.f32 %v1200_v1 }
 0x411   :  { %v717_v54 = vor.u32 1.1754944e-38, %v716_v51  ;;  %vm715_vm6 = vcmp.eq.f32.partialorder %v714_v10, 8.507059e+37  ;;  %vm734_vm9 = vmor %vm732_vm8, %vm733_vm7 }
 0x412   :  { %v729_v8 = vsub.f32 1.0, %v728_v3 }
 0x414   :  { %v730_v11 = vmul.f32 %v1200_v1, %v729_v8 }
 0x415   :  { %v1202_v4 = vpop.eup %1201 }
 0x416   :  { %v706_v7 = vmul.f32 %v1202_v4, %v704_v0  ;;  %vm711_vm3 = vweird.f32 %v1202_v4  ;;  %v731_v58 = vadd.f32 %v1200_v1, %v730_v11 }
 0x417   :  { %vm712_vm5 = vmor %vm710_vm4, %vm711_vm3 }
 0x418   :  { %v707_v50 = vsub.f32 1.0, %v706_v7  ;;  %v735_v2 = vsel %vm734_vm9, %v1200_v1, %v731_v58  ;;  %v1117_v1 = vld [vmem:[%s1681_s0 + $0x2c] sm:$0x3] }
 0x419   :  { %v740_v14 = vsel %vm737_vm11, %v739_v12, %v735_v2 }
 0x41a   :  { %v708_v52 = vmul.f32 %v1202_v4, %v707_v50  ;;  %v747_v15 = vsub.f32 1.0, %v740_v14  ;;  %v749_v18 = vmul.f32 %v740_v14, %v1592_v36 }
 0x41c   :  { %v709_v53 = vadd.f32 %v1202_v4, %v708_v52 }
 0x41e   :  { %v713_v56 = vsel %vm712_vm5, %v1202_v4, %v709_v53 }
 0x41f   :  { %v718_v57 = vsel %vm715_vm6, %v717_v54, %v713_v56 }
 0x420   :  { %v744_v61 = vmul.f32 %v718_v57, %v695_v55  ;;  %v1121_v57 = vld [vmem:[%s1681_s0 + $0xe] sm:$0x3] }
 0x422   :  { %v745_v63 = vadd.f32 %v1109_v59, %v744_v61  ;;  %v1123_v61 = vld [vmem:[%s1681_s0 + $0x1e] sm:$0x3] }
 0x424   :  { %1203 = vtanh.f32 %v745_v63 }
 0x42a   :  { %v1204_v16 = vpop.eup %1203 }
 0x42b   :  { %v748_v17 = vmul.f32 %v1204_v16, %v747_v15 }
 0x42d   :  { %v1619_v19 = vadd.f32 %v749_v18, %v748_v17 }
 0x42f   :  { %754 = vrot.lane.b32.xlu2 %v1619_v19, %s1279_s30  ;;  %752 = vst.msk [vmem:[#allocation3 + $0xa] sm:$0x3] %vm231_vm10, %v1619_v19  ;;  %v759_v20 = vpack.c.bf16 %v1619_v19, %v1619_v19 }
 0x431   :  { %1110 = vmatmul.msk.bf16.vlgmr.msra.gmra.mxu2 %vm85_vm1, %v759_v20  ;;  %1111 = vmatmul.msk.bf16.vlgmr.msra.gmra.mxu3 %vm85_vm1, %v759_v20 }
 0x432   :  { %1112 = vmatmul.msk.bf16.vlgmr.msrb.gmra.mxu0 %vm85_vm1, %v759_v20 }
 0x489   :  { %v755_v21 = vpop.permute.xlu2 %754 }
 0x48a   :  { %758 = vst.msk [vmem:[#allocation5 + $0x4] sm:$0x3] %vm231_vm10, %v755_v21 }
 0x4af   :  { %v798_v22 = vpop.f32.mrf.mxu0 }
 0x4b0   :  { %v799_v47 = vadd.f32 %v1445_v35, %v798_v22 }
 0x4b4   :  { %v772_v25 = vpop.f32.mrf.mxu2  ;;  %v785_v26 = vpop.f32.mrf.mxu3 }
 0x4b5   :  { %v804_v27 = vadd.f32 %v1113_v23, %v772_v25  ;;  %v826_v28 = vadd.f32 %v1115_v24, %v785_v26 }
 0x4b7   :  { %v1114_v29 = vmul.f32 -1.442695, %v804_v27  ;;  %v1116_v30 = vmul.f32 -1.442695, %v826_v28  ;;  %v800_v31 = vpop.f32.mrf.mxu0 }
 0x4b9   :  { %1205 = vpow2.f32 %v1114_v29 }
 0x4ba   :  { %1207 = vpow2.f32 %v1116_v30 }
 0x4bc   :  { %v774_v32 = vpop.f32.mrf.mxu2  ;;  %v787_v33 = vpop.f32.mrf.mxu3 }
 0x4bd   :  { %v1225_v32 = vld [vmem:[%s1685_s4] ss:$0 sm:$0xff]  ;;  %s1280_s4 = smov [#allocation3]  }
 0x4be   :  { %s973_s3 = sshll.u32 %s1280_s4, 4  ;;  %s974_s3 = int_to_ptr.vmem [resolvable:$true] %s973_s3 }
 0x4bf   :  { %v1206_v34 = vpop.eup %1205 }
 0x4c0   :  { %v1208_v36 = vpop.eup %1207  ;;  %v808_v37 = vadd.f32 1.0, %v1206_v34 }
 0x4c1   :  { %v830_v38 = vadd.f32 1.0, %v1208_v36 }
 0x4c2   :  { %1209 = vrcp.f32 %v808_v37  ;;  %v820_v5 = vand.u32 2147483648, %v808_v37  ;;  %v818_v44 = vand.u32 2147483647, %v808_v37  ;;  %vm814_vm13 = vweird.f32 %v808_v37 }
 0x4c3   :  { %1211 = vrcp.f32 %v830_v38  ;;  %v842_v3 = vand.u32 2147483648, %v830_v38  ;;  %vm836_vm3 = vweird.f32 %v830_v38  ;;  %v840_v7 = vand.u32 2147483647, %v830_v38 }
 0x4c4   :  { %v821_v46 = vor.u32 1.1754944e-38, %v820_v5  ;;  %vm819_vm15 = vcmp.eq.f32.partialorder %v818_v44, 8.507059e+37 }
 0x4c5   :  { %v843_v51 = vor.u32 1.1754944e-38, %v842_v3  ;;  %vm841_vm5 = vcmp.eq.f32.partialorder %v840_v7, 8.507059e+37 }
 0x4c8   :  { %v1210_v39 = vpop.eup %1209 }
 0x4c9   :  { %v1212_v40 = vpop.eup %1211  ;;  %v810_v41 = vmul.f32 %v1210_v39, %v808_v37  ;;  %vm815_vm12 = vweird.f32 %v1210_v39  ;;  %v1125_v37 = vld [vmem:[%s1681_s0 + $0x2e] sm:$0x3]  ;;  %s975_s0 = sshll.u32 %s1686_s5, 4  ;;  %s1283_s5 = smov [#allocation5]   ;;  %s976_s0 = int_to_ptr.hbm [resolvable:$true] %s975_s0 }
 0x4ca   :  { %v832_v42 = vmul.f32 %v1212_v40, %v830_v38  ;;  %vm816_vm14 = vmor %vm814_vm13, %vm815_vm12  ;;  %vm837_vm2 = vweird.f32 %v1212_v40  ;;  %s990_s9 = sshll.u32 %s1283_s5, 4  ;;  %s991_s9 = int_to_ptr.vmem [resolvable:$true] %s990_s9 }
 0x4cb   :  { %v811_v43 = vsub.f32 1.0, %v810_v41  ;;  %vm838_vm4 = vmor %vm836_vm3, %vm837_vm2 }
 0x4cc   :  { %v833_v6 = vsub.f32 1.0, %v832_v42 }
 0x4cd   :  { %v812_v9 = vmul.f32 %v1210_v39, %v811_v43 }
 0x4ce   :  { %v834_v13 = vmul.f32 %v1212_v40, %v833_v6 }
 0x4cf   :  { %v813_v45 = vadd.f32 %v1210_v39, %v812_v9 }
 0x4d0   :  { %v835_v0 = vadd.f32 %v1212_v40, %v834_v13 }
 0x4d1   :  { %v817_v48 = vsel %vm816_vm14, %v1210_v39, %v813_v45 }
 0x4d2   :  { %v822_v49 = vsel %vm819_vm15, %v821_v46, %v817_v48  ;;  %v839_v50 = vsel %vm838_vm4, %v1212_v40, %v835_v0 }
 0x4d3   :  { %v848_v4 = vmul.f32 %v822_v49, %v799_v47  ;;  %v844_v35 = vsel %vm841_vm5, %v843_v51, %v839_v50 }
 0x4d4   :  { %v851_v52 = vsub.f32 1.0, %v844_v35  ;;  %v853_v53 = vmul.f32 %v844_v35, %v1619_v19 }
 0x4d5   :  { %v849_v8 = vadd.f32 %v1117_v1, %v848_v4 }
 0x4d7   :  { %1213 = vtanh.f32 %v849_v8 }
 0x4dd   :  { %v1214_v10 = vpop.eup %1213 }
 0x4de   :  { %v852_v11 = vmul.f32 %v1214_v10, %v851_v52 }
 0x4e0   :  { %v1642_v54 = vadd.f32 %v853_v53, %v852_v11 }
 0x4e2   :  { %858 = vrot.lane.b32.xlu0 %v1642_v54, %s1279_s30  ;;  %856 = vst.msk [vmem:[#allocation3 + $0xc] sm:$0x3] %vm231_vm10, %v1642_v54  ;;  %v863_v55 = vpack.c.bf16 %v1642_v54, %v1642_v54 }
 0x4e4   :  { %1118 = vmatmul.msk.bf16.vlgmr.msrb.gmra.mxu1 %vm85_vm1, %v863_v55  ;;  %1119 = vmatmul.msk.bf16.vlgmr.msrb.gmra.mxu2 %vm85_vm1, %v863_v55 }
 0x4e5   :  { %1120 = vmatmul.msk.bf16.vlgmr.msrb.gmra.mxu3 %vm85_vm1, %v863_v55 }
 0x554   :  { %v859_v56 = vpop.permute.xlu0 %858 }
 0x555   :  { %862 = vst.msk [vmem:[#allocation5 + $0x2] sm:$0x3] %vm231_vm10, %v859_v56 }
 0x561   :  { %v876_v58 = vpop.f32.mrf.mxu1 }
 0x562   :  { %v908_v59 = vadd.f32 %v1121_v57, %v876_v58 }
 0x564   :  { %v1122_v60 = vmul.f32 -1.442695, %v908_v59 }
 0x566   :  { %1215 = vpow2.f32 %v1122_v60 }
 0x567   :  { %v889_v62 = vpop.f32.mrf.mxu2 }
 0x568   :  { %v930_v63 = vadd.f32 %v1123_v61, %v889_v62  ;;  %v902_v2 = vpop.f32.mrf.mxu3 }
 0x569   :  { %v878_v12 = vpop.f32.mrf.mxu1  ;;  %v903_v33 = vadd.f32 %v1225_v32, %v902_v2 }
 0x56a   :  { %v1124_v14 = vmul.f32 -1.442695, %v930_v63 }
 0x56c   :  { %v1216_v15 = vpop.eup %1215  ;;  %1217 = vpow2.f32 %v1124_v14 }
 0x56d   :  { %v912_v16 = vadd.f32 1.0, %v1216_v15 }
 0x56f   :  { %1219 = vrcp.f32 %v912_v16  ;;  %v891_v17 = vpop.f32.mrf.mxu2  ;;  %v924_v24 = vand.u32 2147483648, %v912_v16  ;;  %v922_v26 = vand.u32 2147483647, %v912_v16  ;;  %vm918_vm6 = vweird.f32 %v912_v16 }
 0x570   :  { %v904_v18 = vpop.f32.mrf.mxu3 }
 0x571   :  { %v925_v30 = vor.u32 1.1754944e-38, %v924_v24  ;;  %vm923_vm8 = vcmp.eq.f32.partialorder %v922_v26, 8.507059e+37 }
 0x572   :  { %v1218_v19 = vpop.eup %1217 }
 0x573   :  { %v934_v20 = vadd.f32 1.0, %v1218_v19 }
 0x575   :  { %v1220_v21 = vpop.eup %1219  ;;  %1221 = vrcp.f32 %v934_v20  ;;  %v946_v40 = vand.u32 2147483648, %v934_v20  ;;  %v944_v41 = vand.u32 2147483647, %v934_v20  ;;  %vm940_vm11 = vweird.f32 %v934_v20 }
 0x576   :  { %v914_v22 = vmul.f32 %v1220_v21, %v912_v16  ;;  %vm919_vm1 = vweird.f32 %v1220_v21 }
 0x577   :  { %vm920_vm7 = vmor %vm918_vm6, %vm919_vm1  ;;  %v947_v6 = vor.u32 1.1754944e-38, %v946_v40  ;;  %vm945_vm13 = vcmp.eq.f32.partialorder %v944_v41, 8.507059e+37 }
 0x578   :  { %v915_v23 = vsub.f32 1.0, %v914_v22 }
 0x57a   :  { %v916_v25 = vmul.f32 %v1220_v21, %v915_v23 }
 0x57b   :  { %v1222_v27 = vpop.eup %1221 }
 0x57c   :  { %v936_v28 = vmul.f32 %v1222_v27, %v934_v20  ;;  %v917_v29 = vadd.f32 %v1220_v21, %v916_v25  ;;  %vm941_vm9 = vweird.f32 %v1222_v27 }
 0x57d   :  { %vm942_vm12 = vmor %vm940_vm11, %vm941_vm9 }
 0x57e   :  { %v937_v31 = vsub.f32 1.0, %v936_v28  ;;  %v921_v34 = vsel %vm920_vm7, %v1220_v21, %v917_v29 }
 0x57f   :  { %v926_v36 = vsel %vm923_vm8, %v925_v30, %v921_v34 }
 0x580   :  { %v938_v38 = vmul.f32 %v1222_v27, %v937_v31  ;;  %v952_v39 = vmul.f32 %v926_v36, %v903_v33 }
 0x582   :  { %v953_v42 = vadd.f32 %v1125_v37, %v952_v39  ;;  %v939_v43 = vadd.f32 %v1222_v27, %v938_v38 }
 0x584   :  { %1223 = vtanh.f32 %v953_v42  ;;  %v943_v5 = vsel %vm942_vm12, %v1222_v27, %v939_v43 }
 0x585   :  { %v948_v9 = vsel %vm945_vm13, %v947_v6, %v943_v5 }
 0x586   :  { %v955_v44 = vsub.f32 1.0, %v948_v9  ;;  %v957_v46 = vmul.f32 %v948_v9, %v1642_v54 }
 0x58a   :  { %v1224_v13 = vpop.eup %1223 }
 0x58b   :  { %v956_v45 = vmul.f32 %v1224_v13, %v955_v44 }
 0x58d   :  { %v958_v47 = vadd.f32 %v957_v46, %v956_v45 }
 0x58f   :  { %962 = vrot.lane.b32.xlu1 %v958_v47, %s1279_s30  ;;  %960 = vst.msk [vmem:[#allocation3 + $0xe] sm:$0x3] %vm231_vm10, %v958_v47 }
 0x590   :  { %967 = vst.msk [vmem:[#allocation2] sm:$0x3] %vm32_vm0, %v958_v47  ;;  %981 = dma.vmem_to_hbm [thread:$0]  %s974_s3, 256, %s976_s0, [#allocation4], %s1281_s27, %s1281_s27, %s1282_s28  }
 0x591   :  { %968 = vst.msk [vmem:[%s1688_s7] sm:$0x3] %vm32_vm0, %v958_v47 }
 0x601   :  { %v963_v48 = vpop.permute.xlu1 %962 }
 0x602   :  { %965 = vst.msk [vmem:[#allocation5] sm:$0x3] %vm231_vm10, %v963_v48 }
 0x603   :  { %998 = dma.vmem_to_hbm [thread:$0]  %s991_s9, 256, %s993_s12, [#allocation6], %s1281_s27, %s1281_s27, %s1282_s28  }
 0x604   :  { %1274 = dma.done.wait [#allocation4], 256  }
 0x605   :  { %1275 = vsyncadd [#allocation4], 4294967040 }
 0x606   :  { %1276 = dma.done.wait [#allocation6], 256  }
 0x607   :  { %1277 = vsyncadd [#allocation6], 4294967040 }
 0x608   :  { %1011 = vsyncpa [#allocation4], 1 }
 0x609   :  { %1012 = vsyncpa [#allocation6], 1 }

// kernel: attentive_reader_forward.3
= control target key start
LH: loop header
LB: loop body
LE: loop exit
PB: predicated region body
PF: predicated region fallthrough
CT: control target
= control target key end

     0   :  { %vm43_vm0 = vcmask 517120   ;;  %v2281_v2 = vmov 0.0   ;;  %s3123_s0 = inlined_call_operand.vmem [shape: f32[3,16,2,64], index: 0, kind: input, shape index: {}]   ;;  %s3124_s1 = inlined_call_operand.vmem [shape: bf16[64,64], index: 1, kind: input, shape index: {}]   ;;  %s3125_s2 = inlined_call_operand.vmem [shape: bf16[64,64], index: 2, kind: input, shape index: {}]   ;;  %s3126_s3 = inlined_call_operand.vmem [shape: bf16[64,64], index: 3, kind: input, shape index: {}]   ;;  %s3127_s4 = inlined_call_operand.vmem [shape: f32[1,64], index: 4, kind: input, shape index: {}]   ;;  %s3128_s5 = inlined_call_operand.vmem [shape: f32[16,2,32], index: 5, kind: output, shape index: {0}]   ;;  %s3129_s6 = inlined_call_operand.vmem [shape: f32[16,2,32], index: 6, kind: output, shape index: {1}]   ;;  %s3130_s7 = inlined_call_operand.hbm [shape: f32[2,64], index: 7, kind: output, shape index: {2}]  }
   0x1   :  { %v2327_v0 = vld [vmem:[%s3124_s1 + $0x18] sm:$0xff]  ;;  %44 = vst.msk [vmem:[#allocation2] sm:$0x3] %vm43_vm0, %v2281_v2  ;;  %v2340_v3 = vld [vmem:[%s3124_s1 + $0x10] sm:$0xff] }
   0x2   :  { %v2332_v1 = vld [vmem:[%s3125_s2 + $0x18] sm:$0xff]  ;;  %104 = vmatpush.bf16.msra.mxu0 %v2327_v0  ;;  %v2345_v4 = vld [vmem:[%s3125_s2 + $0x10] sm:$0xff]  ;;  %258 = vmatpush.bf16.msra.mxu3 %v2327_v0 }
   0x3   :  { %141 = vmatpush.bf16.msra.mxu1 %v2332_v1  ;;  %v2350_v5 = vld [vmem:[%s3126_s3 + $0x18] sm:$0xff]  ;;  %v2357_v6 = vld [vmem:[%s3126_s3 + $0x10] sm:$0xff] }
   0x4   :  { %181 = vmatpush.bf16.msra.mxu2 %v2350_v5 }
   0x5   :  { %13 = vsyncpa [#allocation4], 0  ;;  %v2364_v7 = vld [vmem:[%s3124_s1 + $0x8] sm:$0xff]  ;;  %v2383_v10 = vld [vmem:[%s3124_s1] sm:$0xff]  ;;  %vm96_vm1 = vcmask 523264   ;;  %vm242_vm10 = vcmask 254976  }
   0x6   :  { %105 = vmatpush.bf16.msra.mxu0 %v2340_v3  ;;  %v2369_v8 = vld [vmem:[%s3125_s2 + $0x8] sm:$0xff]  ;;  %259 = vmatpush.bf16.msra.mxu3 %v2340_v3  ;;  %v2388_v11 = vld [vmem:[%s3125_s2] sm:$0xff]  ;;  %s2282_s10 = smov 96   ;;  %s1831_s8 = sshll.u32 %s3130_s7, 4  ;;  %s1832_s8 = int_to_ptr.hbm [resolvable:$true] %s1831_s8 }
   0x7   :  { %142 = vmatpush.bf16.msra.mxu1 %v2345_v4  ;;  %v2376_v9 = vld [vmem:[%s3126_s3 + $0x8] sm:$0xff]  ;;  %v2397_v13 = vld [vmem:[%s3126_s3] sm:$0xff] }
   0x8   :  { %182 = vmatpush.bf16.msra.mxu2 %v2357_v6  ;;  %v2390_v12 = vld [vmem:[#allocation2] sm:$0x3]  ;;  %v1919_v63 = vld [vmem:[%s3123_s0 + $0x22] sm:$0x3] }
   0x9   :  { %v71_v14 = vpack.c.bf16 %v2390_v12, %v2390_v12  ;;  %v190_v15 = vld [vmem:[%s3123_s0] sm:$0x3] }
   0xa   :  { %106 = vmatpush.bf16.msra.mxu0 %v2364_v7  ;;  %260 = vmatpush.bf16.msra.mxu3 %v2364_v7  ;;  %v1910_v16 = vld [vmem:[%s3123_s0 + $0x20] sm:$0x3] }
   0xb   :  { %143 = vmatpush.bf16.msra.mxu1 %v2369_v8  ;;  %v2445_v35 = vld [vmem:[%s3127_s4] ss:$0 sm:$0xff] }
   0xc   :  { %183 = vmatpush.bf16.msra.mxu2 %v2376_v9  ;;  %v1912_v47 = vld [vmem:[%s3123_s0 + $0x40] sm:$0x3] }
   0xe   :  { %107 = vmatpush.bf16.msra.mxu0 %v2383_v10  ;;  %261 = vmatpush.bf16.msra.mxu3 %v2383_v10 }
   0xf   :  { %144 = vmatpush.bf16.msra.mxu1 %v2388_v11 }
  0x10   :  { %184 = vmatpush.bf16.msra.mxu2 %v2397_v13 }
  0x11   :  { %1874 = vmatmul.msk.bf16.vlgmr.msra.gmra.mxu0 %vm96_vm1, %v71_v14 }
  0x12   :  { %271 = vmatpush.bf16.msrb.mxu0 %v2332_v1  ;;  %1891 = vmatmul.msk.bf16.vlgmr.msra.gmra.mxu1 %vm96_vm1, %v71_v14 }
  0x13   :  { %284 = vmatpush.bf16.msrb.mxu1 %v2350_v5  ;;  %375 = vmatpush.bf16.msrb.mxu3 %v2332_v1 }
  0x14   :  { %362 = vmatpush.bf16.msrb.mxu2 %v2327_v0 }
  0x15   :  { %1908 = vmatmul.msk.bf16.vlgmr.msra.gmra.mxu2 %vm96_vm1, %v71_v14 }
  0x16   :  { %272 = vmatpush.bf16.msrb.mxu0 %v2345_v4 }
  0x17   :  { %285 = vmatpush.bf16.msrb.mxu1 %v2357_v6  ;;  %376 = vmatpush.bf16.msrb.mxu3 %v2345_v4 }
  0x18   :  { %363 = vmatpush.bf16.msrb.mxu2 %v2340_v3 }
  0x1a   :  { %273 = vmatpush.bf16.msrb.mxu0 %v2369_v8 }
  0x1b   :  { %286 = vmatpush.bf16.msrb.mxu1 %v2376_v9  ;;  %377 = vmatpush.bf16.msrb.mxu3 %v2369_v8 }
  0x1c   :  { %364 = vmatpush.bf16.msrb.mxu2 %v2364_v7 }
  0x1e   :  { %274 = vmatpush.bf16.msrb.mxu0 %v2388_v11 }
  0x1f   :  { %287 = vmatpush.bf16.msrb.mxu1 %v2397_v13  ;;  %378 = vmatpush.bf16.msrb.mxu3 %v2388_v11 }
  0x20   :  { %365 = vmatpush.bf16.msrb.mxu2 %v2383_v10 }
  0x22   :  { %388 = vmatpush.bf16.msra.mxu0 %v2350_v5 }
  0x23   :  { %466 = vmatpush.bf16.msra.mxu1 %v2327_v0 }
  0x24   :  { %479 = vmatpush.bf16.msra.mxu2 %v2332_v1 }
  0x26   :  { %389 = vmatpush.bf16.msra.mxu0 %v2357_v6 }
  0x27   :  { %467 = vmatpush.bf16.msra.mxu1 %v2340_v3 }
  0x28   :  { %480 = vmatpush.bf16.msra.mxu2 %v2345_v4 }
  0x2a   :  { %390 = vmatpush.bf16.msra.mxu0 %v2376_v9 }
  0x2b   :  { %468 = vmatpush.bf16.msra.mxu1 %v2364_v7 }
  0x2c   :  { %481 = vmatpush.bf16.msra.mxu2 %v2369_v8 }
  0x2e   :  { %391 = vmatpush.bf16.msra.mxu0 %v2397_v13 }
  0x2f   :  { %469 = vmatpush.bf16.msra.mxu1 %v2383_v10 }
  0x30   :  { %482 = vmatpush.bf16.msra.mxu2 %v2388_v11 }
  0x8e   :  { %v109_v17 = vpop.f32.mrf.mxu0 }
  0x8f   :  { %v146_v18 = vpop.f32.mrf.mxu1  ;;  %v191_v19 = vadd.f32 %v190_v15, %v109_v17 }
  0x90   :  { %v213_v20 = vadd.f32 %v1910_v16, %v146_v18  ;;  %v1917_v16 = vld [vmem:[%s3123_s0 + $0x2] sm:$0x3] }
  0x91   :  { %v1909_v21 = vmul.f32 -1.442695, %v191_v19 }
  0x92   :  { %v1911_v22 = vmul.f32 -1.442695, %v213_v20 }
  0x93   :  { %2079 = vpow2.f32 %v1909_v21 }
  0x94   :  { %2081 = vpow2.f32 %v1911_v22 }
  0x96   :  { %v111_v23 = vpop.f32.mrf.mxu0 }
  0x97   :  { %v148_v24 = vpop.f32.mrf.mxu1 }
  0x98   :  { %v186_v25 = vpop.f32.mrf.mxu2 }
  0x99   :  { %v2080_v26 = vpop.eup %2079  ;;  %v187_v42 = vadd.f32 %v2445_v35, %v186_v25 }
  0x9a   :  { %v2082_v27 = vpop.eup %2081  ;;  %v195_v28 = vadd.f32 1.0, %v2080_v26 }
  0x9b   :  { %v217_v29 = vadd.f32 1.0, %v2082_v27 }
  0x9c   :  { %2083 = vrcp.f32 %v195_v28  ;;  %v207_v38 = vand.u32 2147483648, %v195_v28  ;;  %v205_v40 = vand.u32 2147483647, %v195_v28  ;;  %vm201_vm3 = vweird.f32 %v195_v28 }
  0x9d   :  { %2085 = vrcp.f32 %v217_v29  ;;  %vm223_vm6 = vweird.f32 %v217_v29  ;;  %v229_v50 = vand.u32 2147483648, %v217_v29  ;;  %v227_v51 = vand.u32 2147483647, %v217_v29 }
  0x9e   :  { %v208_v44 = vor.u32 1.1754944e-38, %v207_v38  ;;  %vm206_vm5 = vcmp.eq.f32.partialorder %v205_v40, 8.507059e+37 }
  0x9f   :  { %v230_v54 = vor.u32 1.1754944e-38, %v229_v50  ;;  %vm228_vm9 = vcmp.eq.f32.partialorder %v227_v51, 8.507059e+37 }
  0xa0   :  { %v188_v30 = vpop.f32.mrf.mxu2 }
  0xa2   :  { %v2084_v31 = vpop.eup %2083 }
  0xa3   :  { %v2086_v32 = vpop.eup %2085  ;;  %v197_v33 = vmul.f32 %v2084_v31, %v195_v28  ;;  %vm202_vm2 = vweird.f32 %v2084_v31 }
  0xa4   :  { %v219_v34 = vmul.f32 %v2086_v32, %v217_v29  ;;  %vm203_vm4 = vmor %vm201_vm3, %vm202_vm2  ;;  %vm224_vm7 = vweird.f32 %v2086_v32 }
  0xa5   :  { %v198_v36 = vsub.f32 1.0, %v197_v33  ;;  %vm225_vm8 = vmor %vm223_vm6, %vm224_vm7 }
  0xa6   :  { %v220_v37 = vsub.f32 1.0, %v219_v34 }
  0xa7   :  { %v199_v39 = vmul.f32 %v2084_v31, %v198_v36 }
  0xa8   :  { %v221_v41 = vmul.f32 %v2086_v32, %v220_v37 }
  0xa9   :  { %v200_v43 = vadd.f32 %v2084_v31, %v199_v39 }
  0xaa   :  { %v222_v48 = vadd.f32 %v2086_v32, %v221_v41 }
  0xab   :  { %v204_v45 = vsel %vm203_vm4, %v2084_v31, %v200_v43 }
  0xac   :  { %v209_v46 = vsel %vm206_vm5, %v208_v44, %v204_v45  ;;  %v226_v53 = vsel %vm225_vm8, %v2086_v32, %v222_v48  ;;  %v1921_v44 = vld [vmem:[%s3123_s0 + $0x42] sm:$0x3] }
  0xad   :  { %v235_v49 = vmul.f32 %v209_v46, %v187_v42  ;;  %v231_v55 = vsel %vm228_vm9, %v230_v54, %v226_v53 }
  0xae   :  { %v238_v56 = vsub.f32 1.0, %v231_v55  ;;  %v240_v59 = vmul.f32 %v231_v55, %v2390_v12 }
  0xaf   :  { %v236_v52 = vadd.f32 %v1912_v47, %v235_v49 }
  0xb1   :  { %2087 = vtanh.f32 %v236_v52 }
  0xb7   :  { %v2088_v57 = vpop.eup %2087 }
  0xb8   :  { %v239_v58 = vmul.f32 %v2088_v57, %v238_v56 }
  0xba   :  { %v2452_v60 = vadd.f32 %v240_v59, %v239_v58 }
  0xbc   :  { %245 = vrot.lane.b32.xlu0 %v2452_v60, %s2282_s10  ;;  %243 = vst.msk [vmem:[%s3128_s5] sm:$0x3] %vm242_vm10, %v2452_v60  ;;  %v250_v61 = vpack.c.bf16 %v2452_v60, %v2452_v60 }
  0xbe   :  { %1914 = vmatmul.msk.bf16.vlgmr.msra.gmra.mxu3 %vm96_vm1, %v250_v61  ;;  %1915 = vmatmul.msk.bf16.vlgmr.msrb.gmra.mxu0 %vm96_vm1, %v250_v61 }
  0xbf   :  { %1916 = vmatmul.msk.bf16.vlgmr.msrb.gmra.mxu1 %vm96_vm1, %v250_v61  ;;  %492 = vmatpush.bf16.msra.mxu3 %v2350_v5  ;;  %v1929_v61 = vld [vmem:[%s3123_s0 + $0x24] sm:$0x3] }
  0xc0   :  { %570 = vmatpush.bf16.msrb.mxu0 %v2327_v0  ;;  %583 = vmatpush.bf16.msrb.mxu1 %v2332_v1 }
  0xc3   :  { %493 = vmatpush.bf16.msra.mxu3 %v2357_v6 }
  0xc4   :  { %571 = vmatpush.bf16.msrb.mxu0 %v2340_v3  ;;  %584 = vmatpush.bf16.msrb.mxu1 %v2345_v4 }
  0xc7   :  { %494 = vmatpush.bf16.msra.mxu3 %v2376_v9 }
  0xc8   :  { %572 = vmatpush.bf16.msrb.mxu0 %v2364_v7  ;;  %585 = vmatpush.bf16.msrb.mxu1 %v2369_v8 }
  0xcb   :  { %495 = vmatpush.bf16.msra.mxu3 %v2397_v13 }
  0xcc   :  { %573 = vmatpush.bf16.msrb.mxu0 %v2383_v10  ;;  %586 = vmatpush.bf16.msrb.mxu1 %v2388_v11 }
 0x12e   :  { %v246_v62 = vpop.permute.xlu0 %245 }
 0x12f   :  { %1913 = vst.msk [vmem:[%s3129_s6 + $0x1e] sm:$0x3] %vm242_vm10, %v246_v62 }
 0x13b   :  { %v276_v2 = vpop.f32.mrf.mxu0 }
 0x13c   :  { %v317_v12 = vadd.f32 %v1919_v63, %v276_v2  ;;  %v289_v14 = vpop.f32.mrf.mxu1 }
 0x13d   :  { %v290_v40 = vadd.f32 %v2445_v35, %v289_v14 }
 0x13e   :  { %v1920_v15 = vmul.f32 -1.442695, %v317_v12 }
 0x140   :  { %2089 = vpow2.f32 %v1920_v15 }
 0x141   :  { %v263_v17 = vpop.f32.mrf.mxu3 }
 0x142   :  { %v295_v18 = vadd.f32 %v1917_v16, %v263_v17 }
 0x143   :  { %v278_v19 = vpop.f32.mrf.mxu0 }
 0x144   :  { %v1918_v20 = vmul.f32 -1.442695, %v295_v18  ;;  %v291_v21 = vpop.f32.mrf.mxu1 }
 0x146   :  { %v2090_v22 = vpop.eup %2089  ;;  %2091 = vpow2.f32 %v1918_v20 }
 0x147   :  { %v321_v23 = vadd.f32 1.0, %v2090_v22 }
 0x149   :  { %v265_v24 = vpop.f32.mrf.mxu3  ;;  %2093 = vrcp.f32 %v321_v23  ;;  %v333_v45 = vand.u32 2147483648, %v321_v23  ;;  %vm327_vm2 = vweird.f32 %v321_v23  ;;  %v331_v47 = vand.u32 2147483647, %v321_v23 }
 0x14b   :  { %v334_v50 = vor.u32 1.1754944e-38, %v333_v45  ;;  %vm332_vm4 = vcmp.eq.f32.partialorder %v331_v47, 8.507059e+37 }
 0x14c   :  { %v2092_v25 = vpop.eup %2091 }
 0x14d   :  { %v299_v26 = vadd.f32 1.0, %v2092_v25 }
 0x14f   :  { %2095 = vrcp.f32 %v299_v26  ;;  %v2094_v27 = vpop.eup %2093  ;;  %v311_v33 = vand.u32 2147483648, %v299_v26  ;;  %v309_v36 = vand.u32 2147483647, %v299_v26  ;;  %vm305_vm12 = vweird.f32 %v299_v26 }
 0x150   :  { %v323_v28 = vmul.f32 %v2094_v27, %v321_v23  ;;  %vm328_vm15 = vweird.f32 %v2094_v27 }
 0x151   :  { %v312_v39 = vor.u32 1.1754944e-38, %v311_v33  ;;  %vm310_vm14 = vcmp.eq.f32.partialorder %v309_v36, 8.507059e+37  ;;  %vm329_vm3 = vmor %vm327_vm2, %vm328_vm15 }
 0x152   :  { %v324_v31 = vsub.f32 1.0, %v323_v28 }
 0x154   :  { %v325_v37 = vmul.f32 %v2094_v27, %v324_v31 }
 0x155   :  { %v2096_v29 = vpop.eup %2095 }
 0x156   :  { %v301_v30 = vmul.f32 %v2096_v29, %v299_v26  ;;  %vm306_vm11 = vweird.f32 %v2096_v29  ;;  %v326_v43 = vadd.f32 %v2094_v27, %v325_v37 }
 0x157   :  { %vm307_vm13 = vmor %vm305_vm12, %vm306_vm11 }
 0x158   :  { %v302_v32 = vsub.f32 1.0, %v301_v30  ;;  %v330_v49 = vsel %vm329_vm3, %v2094_v27, %v326_v43 }
 0x159   :  { %v335_v51 = vsel %vm332_vm4, %v334_v50, %v330_v49 }
 0x15a   :  { %v303_v34 = vmul.f32 %v2096_v29, %v302_v32  ;;  %v342_v52 = vsub.f32 1.0, %v335_v51  ;;  %v344_v55 = vmul.f32 %v335_v51, %v2452_v60  ;;  %v1927_v60 = vld [vmem:[%s3123_s0 + $0x4] sm:$0x3] }
 0x15c   :  { %v304_v38 = vadd.f32 %v2096_v29, %v303_v34 }
 0x15e   :  { %v308_v41 = vsel %vm307_vm13, %v2096_v29, %v304_v38 }
 0x15f   :  { %v313_v42 = vsel %vm310_vm14, %v312_v39, %v308_v41 }
 0x160   :  { %v339_v46 = vmul.f32 %v313_v42, %v290_v40  ;;  %v1931_v40 = vld [vmem:[%s3123_s0 + $0x44] sm:$0x3] }
 0x162   :  { %v340_v48 = vadd.f32 %v1921_v44, %v339_v46 }
 0x164   :  { %2097 = vtanh.f32 %v340_v48 }
 0x16a   :  { %v2098_v53 = vpop.eup %2097 }
 0x16b   :  { %v343_v54 = vmul.f32 %v2098_v53, %v342_v52 }
 0x16d   :  { %v2493_v56 = vadd.f32 %v344_v55, %v343_v54  ;;  %v1937_v55 = vld [vmem:[%s3123_s0 + $0x6] sm:$0x3] }
 0x16f   :  { %349 = vrot.lane.b32.xlu0 %v2493_v56, %s2282_s10  ;;  %1922 = vst.msk [vmem:[%s3128_s5 + $0x2] sm:$0x3] %vm242_vm10, %v2493_v56  ;;  %v354_v57 = vpack.c.bf16 %v2493_v56, %v2493_v56 }
 0x171   :  { %1924 = vmatmul.msk.bf16.vlgmr.msrb.gmra.mxu2 %vm96_vm1, %v354_v57  ;;  %1925 = vmatmul.msk.bf16.vlgmr.msrb.gmra.mxu3 %vm96_vm1, %v354_v57 }
 0x172   :  { %1926 = vmatmul.msk.bf16.vlgmr.msra.gmra.mxu0 %vm96_vm1, %v354_v57  ;;  %596 = vmatpush.bf16.msrb.mxu2 %v2350_v5 }
 0x173   :  { %674 = vmatpush.bf16.msrb.mxu3 %v2327_v0  ;;  %687 = vmatpush.bf16.msra.mxu0 %v2332_v1 }
 0x176   :  { %597 = vmatpush.bf16.msrb.mxu2 %v2357_v6 }
 0x177   :  { %675 = vmatpush.bf16.msrb.mxu3 %v2340_v3  ;;  %688 = vmatpush.bf16.msra.mxu0 %v2345_v4 }
 0x17a   :  { %598 = vmatpush.bf16.msrb.mxu2 %v2376_v9 }
 0x17b   :  { %676 = vmatpush.bf16.msrb.mxu3 %v2364_v7  ;;  %689 = vmatpush.bf16.msra.mxu0 %v2369_v8 }
 0x17e   :  { %599 = vmatpush.bf16.msrb.mxu2 %v2397_v13 }
 0x17f   :  { %677 = vmatpush.bf16.msrb.mxu3 %v2383_v10  ;;  %690 = vmatpush.bf16.msra.mxu0 %v2388_v11 }
 0x1e1   :  { %v350_v58 = vpop.permute.xlu0 %349 }
 0x1e2   :  { %1923 = vst.msk [vmem:[%s3129_s6 + $0x1c] sm:$0x3] %vm242_vm10, %v350_v58 }
 0x1ef   :  { %v393_v59 = vpop.f32.mrf.mxu0 }
 0x1f0   :  { %v394_v36 = vadd.f32 %v2445_v35, %v393_v59  ;;  %v1939_v59 = vld [vmem:[%s3123_s0 + $0x26] sm:$0x3] }
 0x1f4   :  { %v367_v62 = vpop.f32.mrf.mxu2  ;;  %v380_v63 = vpop.f32.mrf.mxu3 }
 0x1f5   :  { %v399_v2 = vadd.f32 %v1927_v60, %v367_v62  ;;  %v421_v12 = vadd.f32 %v1929_v61, %v380_v63 }
 0x1f7   :  { %v1928_v14 = vmul.f32 -1.442695, %v399_v2  ;;  %v1930_v15 = vmul.f32 -1.442695, %v421_v12  ;;  %v395_v16 = vpop.f32.mrf.mxu0 }
 0x1f9   :  { %2099 = vpow2.f32 %v1928_v14 }
 0x1fa   :  { %2101 = vpow2.f32 %v1930_v15 }
 0x1fc   :  { %v369_v17 = vpop.f32.mrf.mxu2  ;;  %v382_v18 = vpop.f32.mrf.mxu3 }
 0x1ff   :  { %v2100_v19 = vpop.eup %2099 }
 0x200   :  { %v2102_v20 = vpop.eup %2101  ;;  %v403_v21 = vadd.f32 1.0, %v2100_v19 }
 0x201   :  { %v425_v22 = vadd.f32 1.0, %v2102_v20 }
 0x202   :  { %2103 = vrcp.f32 %v403_v21  ;;  %v415_v28 = vand.u32 2147483648, %v403_v21  ;;  %v413_v31 = vand.u32 2147483647, %v403_v21  ;;  %vm409_vm6 = vweird.f32 %v403_v21 }
 0x203   :  { %2105 = vrcp.f32 %v425_v22  ;;  %v437_v41 = vand.u32 2147483648, %v425_v22  ;;  %vm431_vm11 = vweird.f32 %v425_v22  ;;  %v435_v43 = vand.u32 2147483647, %v425_v22 }
 0x204   :  { %v416_v34 = vor.u32 1.1754944e-38, %v415_v28  ;;  %vm414_vm8 = vcmp.eq.f32.partialorder %v413_v31, 8.507059e+37 }
 0x205   :  { %v438_v46 = vor.u32 1.1754944e-38, %v437_v41  ;;  %vm436_vm13 = vcmp.eq.f32.partialorder %v435_v43, 8.507059e+37 }
 0x208   :  { %v2104_v23 = vpop.eup %2103 }
 0x209   :  { %v2106_v24 = vpop.eup %2105  ;;  %v405_v25 = vmul.f32 %v2104_v23, %v403_v21  ;;  %vm410_vm5 = vweird.f32 %v2104_v23 }
 0x20a   :  { %v427_v26 = vmul.f32 %v2106_v24, %v425_v22  ;;  %vm411_vm7 = vmor %vm409_vm6, %vm410_vm5  ;;  %vm432_vm9 = vweird.f32 %v2106_v24 }
 0x20b   :  { %v406_v27 = vsub.f32 1.0, %v405_v25  ;;  %vm433_vm12 = vmor %vm431_vm11, %vm432_vm9 }
 0x20c   :  { %v428_v29 = vsub.f32 1.0, %v427_v26 }
 0x20d   :  { %v407_v30 = vmul.f32 %v2104_v23, %v406_v27 }
 0x20e   :  { %v429_v32 = vmul.f32 %v2106_v24, %v428_v29 }
 0x20f   :  { %v408_v33 = vadd.f32 %v2104_v23, %v407_v30 }
 0x210   :  { %v430_v39 = vadd.f32 %v2106_v24, %v429_v32 }
 0x211   :  { %v412_v37 = vsel %vm411_vm7, %v2104_v23, %v408_v33  ;;  %v1941_v33 = vld [vmem:[%s3123_s0 + $0x46] sm:$0x3] }
 0x212   :  { %v417_v38 = vsel %vm414_vm8, %v416_v34, %v412_v37  ;;  %v434_v45 = vsel %vm433_vm12, %v2106_v24, %v430_v39 }
 0x213   :  { %v443_v42 = vmul.f32 %v417_v38, %v394_v36  ;;  %v439_v47 = vsel %vm436_vm13, %v438_v46, %v434_v45 }
 0x214   :  { %v446_v48 = vsub.f32 1.0, %v439_v47  ;;  %v448_v51 = vmul.f32 %v439_v47, %v2493_v56 }
 0x215   :  { %v444_v44 = vadd.f32 %v1931_v40, %v443_v42 }
 0x217   :  { %2107 = vtanh.f32 %v444_v44 }
 0x21d   :  { %v2108_v49 = vpop.eup %2107 }
 0x21e   :  { %v447_v50 = vmul.f32 %v2108_v49, %v446_v48 }
 0x220   :  { %v2534_v52 = vadd.f32 %v448_v51, %v447_v50  ;;  %v1947_v51 = vld [vmem:[%s3123_s0 + $0x8] sm:$0x3] }
 0x222   :  { %453 = vrot.lane.b32.xlu1 %v2534_v52, %s2282_s10  ;;  %1932 = vst.msk [vmem:[%s3128_s5 + $0x4] sm:$0x3] %vm242_vm10, %v2534_v52  ;;  %v458_v53 = vpack.c.bf16 %v2534_v52, %v2534_v52 }
 0x224   :  { %1934 = vmatmul.msk.bf16.vlgmr.msra.gmra.mxu1 %vm96_vm1, %v458_v53  ;;  %1935 = vmatmul.msk.bf16.vlgmr.msra.gmra.mxu2 %vm96_vm1, %v458_v53 }
 0x225   :  { %1936 = vmatmul.msk.bf16.vlgmr.msra.gmra.mxu3 %vm96_vm1, %v458_v53  ;;  %700 = vmatpush.bf16.msra.mxu1 %v2350_v5 }
 0x226   :  { %778 = vmatpush.bf16.msra.mxu2 %v2327_v0  ;;  %791 = vmatpush.bf16.msra.mxu3 %v2332_v1 }
 0x229   :  { %701 = vmatpush.bf16.msra.mxu1 %v2357_v6 }
 0x22a   :  { %779 = vmatpush.bf16.msra.mxu2 %v2340_v3  ;;  %792 = vmatpush.bf16.msra.mxu3 %v2345_v4 }
 0x22d   :  { %702 = vmatpush.bf16.msra.mxu1 %v2376_v9 }
 0x22e   :  { %780 = vmatpush.bf16.msra.mxu2 %v2364_v7  ;;  %793 = vmatpush.bf16.msra.mxu3 %v2369_v8 }
 0x231   :  { %703 = vmatpush.bf16.msra.mxu1 %v2397_v13 }
 0x232   :  { %781 = vmatpush.bf16.msra.mxu2 %v2383_v10  ;;  %794 = vmatpush.bf16.msra.mxu3 %v2388_v11 }
 0x294   :  { %v454_v54 = vpop.permute.xlu1 %453 }
 0x295   :  { %1933 = vst.msk [vmem:[%s3129_s6 + $0x1a] sm:$0x3] %vm242_vm10, %v454_v54 }
 0x2a1   :  { %v471_v56 = vpop.f32.mrf.mxu1 }
 0x2a2   :  { %v503_v57 = vadd.f32 %v1937_v55, %v471_v56 }
 0x2a4   :  { %v1938_v58 = vmul.f32 -1.442695, %v503_v57 }
 0x2a6   :  { %2109 = vpow2.f32 %v1938_v58 }
 0x2a7   :  { %v484_v60 = vpop.f32.mrf.mxu2 }
 0x2a8   :  { %v525_v61 = vadd.f32 %v1939_v59, %v484_v60  ;;  %v497_v62 = vpop.f32.mrf.mxu3 }
 0x2a9   :  { %v473_v63 = vpop.f32.mrf.mxu1  ;;  %v498_v30 = vadd.f32 %v2445_v35, %v497_v62 }
 0x2aa   :  { %v1940_v2 = vmul.f32 -1.442695, %v525_v61 }
 0x2ac   :  { %v2110_v12 = vpop.eup %2109  ;;  %2111 = vpow2.f32 %v1940_v2 }
 0x2ad   :  { %v507_v14 = vadd.f32 1.0, %v2110_v12 }
 0x2af   :  { %2113 = vrcp.f32 %v507_v14  ;;  %v486_v15 = vpop.f32.mrf.mxu2  ;;  %v519_v22 = vand.u32 2147483648, %v507_v14  ;;  %v517_v24 = vand.u32 2147483647, %v507_v14  ;;  %vm513_vm15 = vweird.f32 %v507_v14 }
 0x2b0   :  { %v499_v16 = vpop.f32.mrf.mxu3 }
 0x2b1   :  { %v520_v28 = vor.u32 1.1754944e-38, %v519_v22  ;;  %vm518_vm3 = vcmp.eq.f32.partialorder %v517_v24, 8.507059e+37 }
 0x2b2   :  { %v2112_v17 = vpop.eup %2111 }
 0x2b3   :  { %v529_v18 = vadd.f32 1.0, %v2112_v17 }
 0x2b5   :  { %v2114_v19 = vpop.eup %2113  ;;  %2115 = vrcp.f32 %v529_v18  ;;  %v541_v37 = vand.u32 2147483648, %v529_v18  ;;  %v539_v38 = vand.u32 2147483647, %v529_v18  ;;  %vm535_vm5 = vweird.f32 %v529_v18 }
 0x2b6   :  { %v509_v20 = vmul.f32 %v2114_v19, %v507_v14  ;;  %vm514_vm14 = vweird.f32 %v2114_v19 }
 0x2b7   :  { %vm515_vm2 = vmor %vm513_vm15, %vm514_vm14  ;;  %v542_v42 = vor.u32 1.1754944e-38, %v541_v37  ;;  %vm540_vm7 = vcmp.eq.f32.partialorder %v539_v38, 8.507059e+37 }
 0x2b8   :  { %v510_v21 = vsub.f32 1.0, %v509_v20 }
 0x2ba   :  { %v511_v23 = vmul.f32 %v2114_v19, %v510_v21 }
 0x2bb   :  { %v2116_v25 = vpop.eup %2115 }
 0x2bc   :  { %v531_v26 = vmul.f32 %v2116_v25, %v529_v18  ;;  %v512_v27 = vadd.f32 %v2114_v19, %v511_v23  ;;  %vm536_vm4 = vweird.f32 %v2116_v25 }
 0x2bd   :  { %vm537_vm6 = vmor %vm535_vm5, %vm536_vm4 }
 0x2be   :  { %v532_v29 = vsub.f32 1.0, %v531_v26  ;;  %v516_v31 = vsel %vm515_vm2, %v2114_v19, %v512_v27 }
 0x2bf   :  { %v521_v32 = vsel %vm518_vm3, %v520_v28, %v516_v31 }
 0x2c0   :  { %v533_v34 = vmul.f32 %v2116_v25, %v532_v29  ;;  %v547_v36 = vmul.f32 %v521_v32, %v498_v30  ;;  %v1951_v30 = vld [vmem:[%s3123_s0 + $0x48] sm:$0x3] }
 0x2c2   :  { %v548_v39 = vadd.f32 %v1941_v33, %v547_v36  ;;  %v534_v40 = vadd.f32 %v2116_v25, %v533_v34 }
 0x2c4   :  { %2117 = vtanh.f32 %v548_v39  ;;  %v538_v41 = vsel %vm537_vm6, %v2116_v25, %v534_v40 }
 0x2c5   :  { %v543_v43 = vsel %vm540_vm7, %v542_v42, %v538_v41 }
 0x2c6   :  { %v550_v44 = vsub.f32 1.0, %v543_v43  ;;  %v552_v47 = vmul.f32 %v543_v43, %v2534_v52  ;;  %v1949_v52 = vld [vmem:[%s3123_s0 + $0x28] sm:$0x3] }
 0x2ca   :  { %v2118_v45 = vpop.eup %2117 }
 0x2cb   :  { %v551_v46 = vmul.f32 %v2118_v45, %v550_v44 }
 0x2cd   :  { %v2575_v48 = vadd.f32 %v552_v47, %v551_v46 }
 0x2cf   :  { %557 = vrot.lane.b32.xlu1 %v2575_v48, %s2282_s10  ;;  %1942 = vst.msk [vmem:[%s3128_s5 + $0x6] sm:$0x3] %vm242_vm10, %v2575_v48  ;;  %v562_v49 = vpack.c.bf16 %v2575_v48, %v2575_v48 }
 0x2d1   :  { %1944 = vmatmul.msk.bf16.vlgmr.msrb.gmra.mxu0 %vm96_vm1, %v562_v49  ;;  %1945 = vmatmul.msk.bf16.vlgmr.msrb.gmra.mxu1 %vm96_vm1, %v562_v49 }
 0x2d2   :  { %1946 = vmatmul.msk.bf16.vlgmr.msrb.gmra.mxu2 %vm96_vm1, %v562_v49  ;;  %804 = vmatpush.bf16.msrb.mxu0 %v2350_v5 }
 0x2d3   :  { %882 = vmatpush.bf16.msrb.mxu1 %v2327_v0  ;;  %895 = vmatpush.bf16.msrb.mxu2 %v2332_v1 }
 0x2d6   :  { %805 = vmatpush.bf16.msrb.mxu0 %v2357_v6 }
 0x2d7   :  { %883 = vmatpush.bf16.msrb.mxu1 %v2340_v3  ;;  %896 = vmatpush.bf16.msrb.mxu2 %v2345_v4 }
 0x2da   :  { %806 = vmatpush.bf16.msrb.mxu0 %v2376_v9 }
 0x2db   :  { %884 = vmatpush.bf16.msrb.mxu1 %v2364_v7  ;;  %897 = vmatpush.bf16.msrb.mxu2 %v2369_v8 }
 0x2de   :  { %807 = vmatpush.bf16.msrb.mxu0 %v2397_v13 }
 0x2df   :  { %885 = vmatpush.bf16.msrb.mxu1 %v2383_v10  ;;  %898 = vmatpush.bf16.msrb.mxu2 %v2388_v11 }
 0x341   :  { %v558_v50 = vpop.permute.xlu1 %557 }
 0x342   :  { %1943 = vst.msk [vmem:[%s3129_s6 + $0x18] sm:$0x3] %vm242_vm10, %v558_v50 }
 0x34e   :  { %v575_v53 = vpop.f32.mrf.mxu0  ;;  %v588_v54 = vpop.f32.mrf.mxu1 }
 0x34f   :  { %v607_v55 = vadd.f32 %v1947_v51, %v575_v53  ;;  %v629_v56 = vadd.f32 %v1949_v52, %v588_v54 }
 0x351   :  { %v1948_v57 = vmul.f32 -1.442695, %v607_v55  ;;  %v1950_v58 = vmul.f32 -1.442695, %v629_v56 }
 0x353   :  { %2119 = vpow2.f32 %v1948_v57 }
 0x354   :  { %2121 = vpow2.f32 %v1950_v58 }
 0x355   :  { %v601_v59 = vpop.f32.mrf.mxu2 }
 0x356   :  { %v577_v60 = vpop.f32.mrf.mxu0  ;;  %v590_v61 = vpop.f32.mrf.mxu1  ;;  %v602_v27 = vadd.f32 %v2445_v35, %v601_v59 }
 0x359   :  { %v2120_v62 = vpop.eup %2119 }
 0x35a   :  { %v2122_v63 = vpop.eup %2121  ;;  %v611_v2 = vadd.f32 1.0, %v2120_v62 }
 0x35b   :  { %v633_v12 = vadd.f32 1.0, %v2122_v63 }
 0x35c   :  { %2123 = vrcp.f32 %v611_v2  ;;  %v623_v21 = vand.u32 2147483648, %v611_v2  ;;  %v621_v23 = vand.u32 2147483647, %v611_v2  ;;  %vm617_vm9 = vweird.f32 %v611_v2 }
 0x35d   :  { %2125 = vrcp.f32 %v633_v12  ;;  %v603_v14 = vpop.f32.mrf.mxu2  ;;  %v645_v33 = vand.u32 2147483648, %v633_v12  ;;  %vm639_vm14 = vweird.f32 %v633_v12  ;;  %v643_v34 = vand.u32 2147483647, %v633_v12 }
 0x35e   :  { %v624_v26 = vor.u32 1.1754944e-38, %v623_v21  ;;  %vm622_vm12 = vcmp.eq.f32.partialorder %v621_v23, 8.507059e+37 }
 0x35f   :  { %v646_v38 = vor.u32 1.1754944e-38, %v645_v33  ;;  %vm644_vm2 = vcmp.eq.f32.partialorder %v643_v34, 8.507059e+37  ;;  %v2674_v33 = vld [vmem:[%s3126_s3 + $0x18] sm:$0xff] }
 0x360   :  { %v2680_v34 = vld [vmem:[%s3124_s1 + $0x18] sm:$0xff] }
 0x362   :  { %v2124_v15 = vpop.eup %2123 }
 0x363   :  { %v2126_v16 = vpop.eup %2125  ;;  %v613_v17 = vmul.f32 %v2124_v15, %v611_v2  ;;  %vm618_vm8 = vweird.f32 %v2124_v15 }
 0x364   :  { %v635_v18 = vmul.f32 %v2126_v16, %v633_v12  ;;  %vm619_vm11 = vmor %vm617_vm9, %vm618_vm8  ;;  %vm640_vm13 = vweird.f32 %v2126_v16 }
 0x365   :  { %v614_v19 = vsub.f32 1.0, %v613_v17  ;;  %vm641_vm15 = vmor %vm639_vm14, %vm640_vm13 }
 0x366   :  { %v636_v20 = vsub.f32 1.0, %v635_v18 }
 0x367   :  { %v615_v22 = vmul.f32 %v2124_v15, %v614_v19  ;;  %v1961_v19 = vld [vmem:[%s3123_s0 + $0x4a] sm:$0x3] }
 0x368   :  { %v637_v24 = vmul.f32 %v2126_v16, %v636_v20 }
 0x369   :  { %v616_v25 = vadd.f32 %v2124_v15, %v615_v22 }
 0x36a   :  { %v638_v31 = vadd.f32 %v2126_v16, %v637_v24 }
 0x36b   :  { %v620_v28 = vsel %vm619_vm11, %v2124_v15, %v616_v25 }
 0x36c   :  { %v625_v29 = vsel %vm622_vm12, %v624_v26, %v620_v28  ;;  %v642_v37 = vsel %vm641_vm15, %v2126_v16, %v638_v31 }
 0x36d   :  { %v651_v32 = vmul.f32 %v625_v29, %v602_v27  ;;  %v647_v39 = vsel %vm644_vm2, %v646_v38, %v642_v37  ;;  %v2692_v37 = vld [vmem:[%s3126_s3 + $0x10] sm:$0xff] }
 0x36e   :  { %v654_v40 = vsub.f32 1.0, %v647_v39  ;;  %v656_v43 = vmul.f32 %v647_v39, %v2575_v48  ;;  %v2698_v38 = vld [vmem:[%s3124_s1 + $0x10] sm:$0xff] }
 0x36f   :  { %v652_v36 = vadd.f32 %v1951_v30, %v651_v32  ;;  %v2704_v39 = vld [vmem:[%s3125_s2 + $0x10] sm:$0xff] }
 0x371   :  { %2127 = vtanh.f32 %v652_v36  ;;  %v2686_v36 = vld [vmem:[%s3125_s2 + $0x18] sm:$0xff] }
 0x377   :  { %v2128_v41 = vpop.eup %2127 }
 0x378   :  { %v655_v42 = vmul.f32 %v2128_v41, %v654_v40  ;;  %v2711_v40 = vld [vmem:[%s3124_s1 + $0x8] sm:$0xff] }
 0x379   :  { %v2717_v41 = vld [vmem:[%s3125_s2 + $0x8] sm:$0xff] }
 0x37a   :  { %v2616_v44 = vadd.f32 %v656_v43, %v655_v42  ;;  %v1967_v43 = vld [vmem:[%s3123_s0 + $0xc] sm:$0x3] }
 0x37c   :  { %661 = vrot.lane.b32.xlu2 %v2616_v44, %s2282_s10  ;;  %1952 = vst.msk [vmem:[%s3128_s5 + $0x8] sm:$0x3] %vm242_vm10, %v2616_v44  ;;  %v666_v45 = vpack.c.bf16 %v2616_v44, %v2616_v44 }
 0x37e   :  { %1954 = vmatmul.msk.bf16.vlgmr.msrb.gmra.mxu3 %vm96_vm1, %v666_v45  ;;  %1955 = vmatmul.msk.bf16.vlgmr.msra.gmra.mxu0 %vm96_vm1, %v666_v45 }
 0x37f   :  { %1956 = vmatmul.msk.bf16.vlgmr.msra.gmra.mxu1 %vm96_vm1, %v666_v45  ;;  %908 = vmatpush.bf16.msrb.mxu3 %v2350_v5 }
 0x380   :  { %986 = vmatpush.bf16.msra.mxu0 %v2327_v0  ;;  %999 = vmatpush.bf16.msra.mxu1 %v2332_v1  ;;  %v1959_v1 = vld [vmem:[%s3123_s0 + $0x2a] sm:$0x3] }
 0x383   :  { %909 = vmatpush.bf16.msrb.mxu3 %v2357_v6 }
 0x384   :  { %987 = vmatpush.bf16.msra.mxu0 %v2340_v3  ;;  %1000 = vmatpush.bf16.msra.mxu1 %v2345_v4 }
 0x387   :  { %910 = vmatpush.bf16.msrb.mxu3 %v2376_v9 }
 0x388   :  { %988 = vmatpush.bf16.msra.mxu0 %v2364_v7  ;;  %1001 = vmatpush.bf16.msra.mxu1 %v2369_v8  ;;  %v1957_v7 = vld [vmem:[%s3123_s0 + $0xa] sm:$0x3] }
 0x38b   :  { %911 = vmatpush.bf16.msrb.mxu3 %v2397_v13 }
 0x38c   :  { %989 = vmatpush.bf16.msra.mxu0 %v2383_v10  ;;  %1002 = vmatpush.bf16.msra.mxu1 %v2388_v11 }
 0x3d6   :  { %v662_v0 = vpop.permute.xlu2 %661 }
 0x3d7   :  { %1953 = vst.msk [vmem:[%s3129_s6 + $0x16] sm:$0x3] %vm242_vm10, %v662_v0 }
 0x3fb   :  { %v692_v3 = vpop.f32.mrf.mxu0 }
 0x3fc   :  { %v733_v4 = vadd.f32 %v1959_v1, %v692_v3  ;;  %v705_v5 = vpop.f32.mrf.mxu1 }
 0x3fd   :  { %v706_v15 = vadd.f32 %v2445_v35, %v705_v5 }
 0x3fe   :  { %v1960_v6 = vmul.f32 -1.442695, %v733_v4 }
 0x400   :  { %2129 = vpow2.f32 %v1960_v6 }
 0x401   :  { %v679_v8 = vpop.f32.mrf.mxu3 }
 0x402   :  { %v711_v46 = vadd.f32 %v1957_v7, %v679_v8 }
 0x403   :  { %v694_v47 = vpop.f32.mrf.mxu0 }
 0x404   :  { %v1958_v48 = vmul.f32 -1.442695, %v711_v46  ;;  %v707_v49 = vpop.f32.mrf.mxu1 }
 0x406   :  { %v2130_v50 = vpop.eup %2129  ;;  %2131 = vpow2.f32 %v1958_v48 }
 0x407   :  { %v737_v51 = vadd.f32 1.0, %v2130_v50 }
 0x409   :  { %v681_v52 = vpop.f32.mrf.mxu3  ;;  %2133 = vrcp.f32 %v737_v51  ;;  %v749_v20 = vand.u32 2147483648, %v737_v51  ;;  %vm743_vm8 = vweird.f32 %v737_v51  ;;  %v747_v22 = vand.u32 2147483647, %v737_v51 }
 0x40b   :  { %v750_v25 = vor.u32 1.1754944e-38, %v749_v20  ;;  %vm748_vm11 = vcmp.eq.f32.partialorder %v747_v22, 8.507059e+37 }
 0x40c   :  { %v2132_v53 = vpop.eup %2131 }
 0x40d   :  { %v715_v54 = vadd.f32 1.0, %v2132_v53 }
 0x40f   :  { %2135 = vrcp.f32 %v715_v54  ;;  %v2134_v55 = vpop.eup %2133  ;;  %v727_v61 = vand.u32 2147483648, %v715_v54  ;;  %v725_v63 = vand.u32 2147483647, %v715_v54  ;;  %vm721_vm4 = vweird.f32 %v715_v54 }
 0x410   :  { %v739_v56 = vmul.f32 %v2134_v55, %v737_v51  ;;  %vm744_vm7 = vweird.f32 %v2134_v55 }
 0x411   :  { %v728_v14 = vor.u32 1.1754944e-38, %v727_v61  ;;  %vm726_vm6 = vcmp.eq.f32.partialorder %v725_v63, 8.507059e+37  ;;  %vm745_vm9 = vmor %vm743_vm8, %vm744_vm7  ;;  %v1971_v63 = vld [vmem:[%s3123_s0 + $0x4c] sm:$0x3] }
 0x412   :  { %v740_v59 = vsub.f32 1.0, %v739_v56 }
 0x414   :  { %v741_v2 = vmul.f32 %v2134_v55, %v740_v59 }
 0x415   :  { %v2136_v57 = vpop.eup %2135 }
 0x416   :  { %v717_v58 = vmul.f32 %v2136_v57, %v715_v54  ;;  %vm722_vm3 = vweird.f32 %v2136_v57  ;;  %v742_v18 = vadd.f32 %v2134_v55, %v741_v2 }
 0x417   :  { %vm723_vm5 = vmor %vm721_vm4, %vm722_vm3 }
 0x418   :  { %v718_v60 = vsub.f32 1.0, %v717_v58  ;;  %v746_v24 = vsel %vm745_vm9, %v2134_v55, %v742_v18 }
 0x419   :  { %v751_v26 = vsel %vm748_vm11, %v750_v25, %v746_v24  ;;  %v2761_v24 = vld [vmem:[%s3126_s3 + $0x8] sm:$0xff]  ;;  %v2769_v25 = vld [vmem:[%s3126_s3] sm:$0xff] }
 0x41a   :  { %v719_v62 = vmul.f32 %v2136_v57, %v718_v60  ;;  %v758_v27 = vsub.f32 1.0, %v751_v26  ;;  %v760_v30 = vmul.f32 %v751_v26, %v2616_v44  ;;  %v1969_v44 = vld [vmem:[%s3123_s0 + $0x2c] sm:$0x3]  ;;  %v2775_v26 = vld [vmem:[%s3124_s1] sm:$0xff] }
 0x41c   :  { %v720_v12 = vadd.f32 %v2136_v57, %v719_v62 }
 0x41e   :  { %v724_v16 = vsel %vm723_vm5, %v2136_v57, %v720_v12 }
 0x41f   :  { %v729_v17 = vsel %vm726_vm6, %v728_v14, %v724_v16 }
 0x420   :  { %v755_v21 = vmul.f32 %v729_v17, %v706_v15 }
 0x422   :  { %v756_v23 = vadd.f32 %v1961_v19, %v755_v21 }
 0x424   :  { %2137 = vtanh.f32 %v756_v23 }
 0x42a   :  { %v2138_v28 = vpop.eup %2137 }
 0x42b   :  { %v759_v29 = vmul.f32 %v2138_v28, %v758_v27  ;;  %v2781_v27 = vld [vmem:[%s3125_s2] sm:$0xff] }
 0x42d   :  { %v2657_v31 = vadd.f32 %v760_v30, %v759_v29  ;;  %v1977_v29 = vld [vmem:[%s3123_s0 + $0xe] sm:$0x3] }
 0x42f   :  { %765 = vrot.lane.b32.xlu2 %v2657_v31, %s2282_s10  ;;  %1962 = vst.msk [vmem:[%s3128_s5 + $0xa] sm:$0x3] %vm242_vm10, %v2657_v31  ;;  %v770_v32 = vpack.c.bf16 %v2657_v31, %v2657_v31 }
 0x431   :  { %1964 = vmatmul.msk.bf16.vlgmr.msra.gmra.mxu2 %vm96_vm1, %v770_v32  ;;  %1965 = vmatmul.msk.bf16.vlgmr.msra.gmra.mxu3 %vm96_vm1, %v770_v32 }
 0x432   :  { %1966 = vmatmul.msk.bf16.vlgmr.msrb.gmra.mxu0 %vm96_vm1, %v770_v32  ;;  %1012 = vmatpush.bf16.msra.mxu2 %v2674_v33 }
 0x433   :  { %1090 = vmatpush.bf16.msra.mxu3 %v2680_v34  ;;  %1103 = vmatpush.bf16.msrb.mxu0 %v2686_v36 }
 0x436   :  { %1013 = vmatpush.bf16.msra.mxu2 %v2692_v37 }
 0x437   :  { %1091 = vmatpush.bf16.msra.mxu3 %v2698_v38  ;;  %1104 = vmatpush.bf16.msrb.mxu0 %v2704_v39 }
 0x43a   :  { %1014 = vmatpush.bf16.msra.mxu2 %v2376_v9 }
 0x43b   :  { %1092 = vmatpush.bf16.msra.mxu3 %v2711_v40  ;;  %1105 = vmatpush.bf16.msrb.mxu0 %v2717_v41 }
 0x43e   :  { %1015 = vmatpush.bf16.msra.mxu2 %v2397_v13 }
 0x43f   :  { %1093 = vmatpush.bf16.msra.mxu3 %v2383_v10  ;;  %1106 = vmatpush.bf16.msrb.mxu0 %v2388_v11 }
 0x489   :  { %v766_v9 = vpop.permute.xlu2 %765 }
 0x48a   :  { %1963 = vst.msk [vmem:[%s3129_s6 + $0x14] sm:$0x3] %vm242_vm10, %v766_v9  ;;  %v1979_v9 = vld [vmem:[%s3123_s0 + $0x2e] sm:$0x3] }
 0x4af   :  { %v809_v42 = vpop.f32.mrf.mxu0 }
 0x4b0   :  { %v810_v59 = vadd.f32 %v2445_v35, %v809_v42 }
 0x4b4   :  { %v783_v13 = vpop.f32.mrf.mxu2  ;;  %v796_v45 = vpop.f32.mrf.mxu3 }
 0x4b5   :  { %v815_v10 = vadd.f32 %v1967_v43, %v783_v13  ;;  %v837_v0 = vadd.f32 %v1969_v44, %v796_v45 }
 0x4b7   :  { %v1968_v11 = vmul.f32 -1.442695, %v815_v10  ;;  %v1970_v1 = vmul.f32 -1.442695, %v837_v0  ;;  %v811_v3 = vpop.f32.mrf.mxu0 }
 0x4b9   :  { %2139 = vpow2.f32 %v1968_v11 }
 0x4ba   :  { %2141 = vpow2.f32 %v1970_v1 }
 0x4bc   :  { %v785_v4 = vpop.f32.mrf.mxu2  ;;  %v798_v5 = vpop.f32.mrf.mxu3 }
 0x4bf   :  { %v2140_v6 = vpop.eup %2139 }
 0x4c0   :  { %v2142_v7 = vpop.eup %2141  ;;  %v819_v8 = vadd.f32 1.0, %v2140_v6 }
 0x4c1   :  { %v841_v46 = vadd.f32 1.0, %v2142_v7 }
 0x4c2   :  { %2143 = vrcp.f32 %v819_v8  ;;  %v831_v52 = vand.u32 2147483648, %v819_v8  ;;  %v829_v55 = vand.u32 2147483647, %v819_v8  ;;  %vm825_vm13 = vweird.f32 %v819_v8 }
 0x4c3   :  { %2145 = vrcp.f32 %v841_v46  ;;  %v853_v2 = vand.u32 2147483648, %v841_v46  ;;  %vm847_vm3 = vweird.f32 %v841_v46  ;;  %v851_v14 = vand.u32 2147483647, %v841_v46 }
 0x4c4   :  { %v832_v58 = vor.u32 1.1754944e-38, %v831_v52  ;;  %vm830_vm15 = vcmp.eq.f32.partialorder %v829_v55, 8.507059e+37 }
 0x4c5   :  { %v854_v17 = vor.u32 1.1754944e-38, %v853_v2  ;;  %vm852_vm5 = vcmp.eq.f32.partialorder %v851_v14, 8.507059e+37 }
 0x4c8   :  { %v2144_v47 = vpop.eup %2143 }
 0x4c9   :  { %v2146_v48 = vpop.eup %2145  ;;  %v821_v49 = vmul.f32 %v2144_v47, %v819_v8  ;;  %vm826_vm12 = vweird.f32 %v2144_v47 }
 0x4ca   :  { %v843_v50 = vmul.f32 %v2146_v48, %v841_v46  ;;  %vm827_vm14 = vmor %vm825_vm13, %vm826_vm12  ;;  %vm848_vm2 = vweird.f32 %v2146_v48 }
 0x4cb   :  { %v822_v51 = vsub.f32 1.0, %v821_v49  ;;  %vm849_vm4 = vmor %vm847_vm3, %vm848_vm2 }
 0x4cc   :  { %v844_v53 = vsub.f32 1.0, %v843_v50 }
 0x4cd   :  { %v823_v54 = vmul.f32 %v2144_v47, %v822_v51 }
 0x4ce   :  { %v845_v56 = vmul.f32 %v2146_v48, %v844_v53  ;;  %v2797_v53 = vld [vmem:[%s3127_s4] ss:$0 sm:$0xff] }
 0x4cf   :  { %v824_v57 = vadd.f32 %v2144_v47, %v823_v54 }
 0x4d0   :  { %v846_v62 = vadd.f32 %v2146_v48, %v845_v56 }
 0x4d1   :  { %v828_v60 = vsel %vm827_vm14, %v2144_v47, %v824_v57  ;;  %v1981_v57 = vld [vmem:[%s3123_s0 + $0x4e] sm:$0x3] }
 0x4d2   :  { %v833_v61 = vsel %vm830_vm15, %v832_v58, %v828_v60  ;;  %v850_v16 = vsel %vm849_vm4, %v2146_v48, %v846_v62 }
 0x4d3   :  { %v859_v12 = vmul.f32 %v833_v61, %v810_v59  ;;  %v855_v35 = vsel %vm852_vm5, %v854_v17, %v850_v16 }
 0x4d4   :  { %v862_v18 = vsub.f32 1.0, %v855_v35  ;;  %v864_v21 = vmul.f32 %v855_v35, %v2657_v31 }
 0x4d5   :  { %v860_v15 = vadd.f32 %v1971_v63, %v859_v12 }
 0x4d7   :  { %2147 = vtanh.f32 %v860_v15 }
 0x4dd   :  { %v2148_v19 = vpop.eup %2147 }
 0x4de   :  { %v863_v20 = vmul.f32 %v2148_v19, %v862_v18 }
 0x4e0   :  { %v2738_v22 = vadd.f32 %v864_v21, %v863_v20  ;;  %v1987_v21 = vld [vmem:[%s3123_s0 + $0x10] sm:$0x3] }
 0x4e2   :  { %869 = vrot.lane.b32.xlu0 %v2738_v22, %s2282_s10  ;;  %1972 = vst.msk [vmem:[%s3128_s5 + $0xc] sm:$0x3] %vm242_vm10, %v2738_v22  ;;  %v874_v23 = vpack.c.bf16 %v2738_v22, %v2738_v22 }
 0x4e4   :  { %1974 = vmatmul.msk.bf16.vlgmr.msrb.gmra.mxu1 %vm96_vm1, %v874_v23  ;;  %1975 = vmatmul.msk.bf16.vlgmr.msrb.gmra.mxu2 %vm96_vm1, %v874_v23 }
 0x4e5   :  { %1976 = vmatmul.msk.bf16.vlgmr.msrb.gmra.mxu3 %vm96_vm1, %v874_v23  ;;  %1116 = vmatpush.bf16.msrb.mxu1 %v2674_v33 }
 0x4e6   :  { %1194 = vmatpush.bf16.msrb.mxu2 %v2680_v34  ;;  %1207 = vmatpush.bf16.msrb.mxu3 %v2686_v36 }
 0x4e9   :  { %1117 = vmatpush.bf16.msrb.mxu1 %v2692_v37 }
 0x4ea   :  { %1195 = vmatpush.bf16.msrb.mxu2 %v2698_v38  ;;  %1208 = vmatpush.bf16.msrb.mxu3 %v2704_v39 }
 0x4ed   :  { %1118 = vmatpush.bf16.msrb.mxu1 %v2761_v24 }
 0x4ee   :  { %1196 = vmatpush.bf16.msrb.mxu2 %v2711_v40  ;;  %1209 = vmatpush.bf16.msrb.mxu3 %v2717_v41 }
 0x4f1   :  { %1119 = vmatpush.bf16.msrb.mxu1 %v2769_v25 }
 0x4f2   :  { %1197 = vmatpush.bf16.msrb.mxu2 %v2775_v26  ;;  %1210 = vmatpush.bf16.msrb.mxu3 %v2781_v27 }
 0x554   :  { %v870_v28 = vpop.permute.xlu0 %869 }
 0x555   :  { %1973 = vst.msk [vmem:[%s3129_s6 + $0x12] sm:$0x3] %vm242_vm10, %v870_v28 }
 0x561   :  { %v887_v30 = vpop.f32.mrf.mxu1 }
 0x562   :  { %v919_v31 = vadd.f32 %v1977_v29, %v887_v30 }
 0x564   :  { %v1978_v32 = vmul.f32 -1.442695, %v919_v31 }
 0x566   :  { %2149 = vpow2.f32 %v1978_v32 }
 0x567   :  { %v900_v42 = vpop.f32.mrf.mxu2 }
 0x568   :  { %v941_v43 = vadd.f32 %v1979_v9, %v900_v42  ;;  %v913_v44 = vpop.f32.mrf.mxu3 }
 0x569   :  { %v889_v13 = vpop.f32.mrf.mxu1  ;;  %v914_v54 = vadd.f32 %v2797_v53, %v913_v44 }
 0x56a   :  { %v1980_v45 = vmul.f32 -1.442695, %v941_v43 }
 0x56c   :  { %v2150_v10 = vpop.eup %2149  ;;  %2151 = vpow2.f32 %v1980_v45 }
 0x56d   :  { %v923_v0 = vadd.f32 1.0, %v2150_v10 }
 0x56f   :  { %2153 = vrcp.f32 %v923_v0  ;;  %v902_v11 = vpop.f32.mrf.mxu2  ;;  %v935_v8 = vand.u32 2147483648, %v923_v0  ;;  %v933_v47 = vand.u32 2147483647, %v923_v0  ;;  %vm929_vm7 = vweird.f32 %v923_v0 }
 0x570   :  { %v915_v1 = vpop.f32.mrf.mxu3 }
 0x571   :  { %v936_v51 = vor.u32 1.1754944e-38, %v935_v8  ;;  %vm934_vm9 = vcmp.eq.f32.partialorder %v933_v47, 8.507059e+37 }
 0x572   :  { %v2152_v3 = vpop.eup %2151 }
 0x573   :  { %v945_v4 = vadd.f32 1.0, %v2152_v3 }
 0x575   :  { %v2154_v5 = vpop.eup %2153  ;;  %2155 = vrcp.f32 %v945_v4  ;;  %v957_v60 = vand.u32 2147483648, %v945_v4  ;;  %v955_v61 = vand.u32 2147483647, %v945_v4  ;;  %vm951_vm12 = vweird.f32 %v945_v4 }
 0x576   :  { %v925_v6 = vmul.f32 %v2154_v5, %v923_v0  ;;  %vm930_vm6 = vweird.f32 %v2154_v5 }
 0x577   :  { %vm931_vm8 = vmor %vm929_vm7, %vm930_vm6  ;;  %v958_v12 = vor.u32 1.1754944e-38, %v957_v60  ;;  %vm956_vm14 = vcmp.eq.f32.partialorder %v955_v61, 8.507059e+37 }
 0x578   :  { %v926_v7 = vsub.f32 1.0, %v925_v6 }
 0x57a   :  { %v927_v46 = vmul.f32 %v2154_v5, %v926_v7 }
 0x57b   :  { %v2156_v48 = vpop.eup %2155 }
 0x57c   :  { %v947_v49 = vmul.f32 %v2156_v48, %v945_v4  ;;  %v928_v50 = vadd.f32 %v2154_v5, %v927_v46  ;;  %vm952_vm11 = vweird.f32 %v2156_v48 }
 0x57d   :  { %vm953_vm13 = vmor %vm951_vm12, %vm952_vm11 }
 0x57e   :  { %v948_v52 = vsub.f32 1.0, %v947_v49  ;;  %v932_v55 = vsel %vm931_vm8, %v2154_v5, %v928_v50 }
 0x57f   :  { %v937_v56 = vsel %vm934_vm9, %v936_v51, %v932_v55 }
 0x580   :  { %v949_v58 = vmul.f32 %v2156_v48, %v948_v52  ;;  %v963_v59 = vmul.f32 %v937_v56, %v914_v54  ;;  %v1991_v54 = vld [vmem:[%s3123_s0 + $0x50] sm:$0x3] }
 0x582   :  { %v964_v62 = vadd.f32 %v1981_v57, %v963_v59  ;;  %v950_v63 = vadd.f32 %v2156_v48, %v949_v58 }
 0x584   :  { %2157 = vtanh.f32 %v964_v62  ;;  %v954_v2 = vsel %vm953_vm13, %v2156_v48, %v950_v63 }
 0x585   :  { %v959_v14 = vsel %vm956_vm14, %v958_v12, %v954_v2 }
 0x586   :  { %v966_v15 = vsub.f32 1.0, %v959_v14  ;;  %v968_v35 = vmul.f32 %v959_v14, %v2738_v22  ;;  %v1989_v22 = vld [vmem:[%s3123_s0 + $0x30] sm:$0x3] }
 0x58a   :  { %v2158_v16 = vpop.eup %2157 }
 0x58b   :  { %v967_v17 = vmul.f32 %v2158_v16, %v966_v15 }
 0x58d   :  { %v2804_v18 = vadd.f32 %v968_v35, %v967_v17  ;;  %v1999_v35 = vld [vmem:[%s3123_s0 + $0x32] sm:$0x3] }
 0x58f   :  { %973 = vrot.lane.b32.xlu1 %v2804_v18, %s2282_s10  ;;  %1982 = vst.msk [vmem:[%s3128_s5 + $0xe] sm:$0x3] %vm242_vm10, %v2804_v18  ;;  %v978_v19 = vpack.c.bf16 %v2804_v18, %v2804_v18 }
 0x591   :  { %1984 = vmatmul.msk.bf16.vlgmr.msra.gmra.mxu0 %vm96_vm1, %v978_v19  ;;  %1985 = vmatmul.msk.bf16.vlgmr.msra.gmra.mxu1 %vm96_vm1, %v978_v19 }
 0x592   :  { %1986 = vmatmul.msk.bf16.vlgmr.msra.gmra.mxu2 %vm96_vm1, %v978_v19  ;;  %1220 = vmatpush.bf16.msra.mxu0 %v2674_v33 }
 0x593   :  { %1298 = vmatpush.bf16.msra.mxu1 %v2680_v34  ;;  %1311 = vmatpush.bf16.msra.mxu2 %v2686_v36 }
 0x596   :  { %1221 = vmatpush.bf16.msra.mxu0 %v2692_v37 }
 0x597   :  { %1299 = vmatpush.bf16.msra.mxu1 %v2698_v38  ;;  %1312 = vmatpush.bf16.msra.mxu2 %v2704_v39 }
 0x59a   :  { %1222 = vmatpush.bf16.msra.mxu0 %v2761_v24 }
 0x59b   :  { %1300 = vmatpush.bf16.msra.mxu1 %v2711_v40  ;;  %1313 = vmatpush.bf16.msra.mxu2 %v2717_v41 }
 0x59e   :  { %1223 = vmatpush.bf16.msra.mxu0 %v2769_v25 }
 0x59f   :  { %1301 = vmatpush.bf16.msra.mxu1 %v2775_v26  ;;  %1314 = vmatpush.bf16.msra.mxu2 %v2781_v27 }
 0x601   :  { %v974_v20 = vpop.permute.xlu1 %973 }
 0x602   :  { %1983 = vst.msk [vmem:[%s3129_s6 + $0x10] sm:$0x3] %vm242_vm10, %v974_v20 }
 0x60e   :  { %v991_v23 = vpop.f32.mrf.mxu0  ;;  %v1004_v28 = vpop.f32.mrf.mxu1 }
 0x60f   :  { %v1023_v29 = vadd.f32 %v1987_v21, %v991_v23  ;;  %v1045_v30 = vadd.f32 %v1989_v22, %v1004_v28  ;;  %v1997_v22 = vld [vmem:[%s3123_s0 + $0x12] sm:$0x3] }
 0x611   :  { %v1988_v31 = vmul.f32 -1.442695, %v1023_v29  ;;  %v1990_v32 = vmul.f32 -1.442695, %v1045_v30 }
 0x613   :  { %2159 = vpow2.f32 %v1988_v31 }
 0x614   :  { %2161 = vpow2.f32 %v1990_v32 }
 0x615   :  { %v1017_v9 = vpop.f32.mrf.mxu2 }
 0x616   :  { %v993_v42 = vpop.f32.mrf.mxu0  ;;  %v1006_v43 = vpop.f32.mrf.mxu1  ;;  %v1018_v50 = vadd.f32 %v2797_v53, %v1017_v9 }
 0x619   :  { %v2160_v44 = vpop.eup %2159 }
 0x61a   :  { %v2162_v13 = vpop.eup %2161  ;;  %v1027_v45 = vadd.f32 1.0, %v2160_v44 }
 0x61b   :  { %v1049_v10 = vadd.f32 1.0, %v2162_v13 }
 0x61c   :  { %2163 = vrcp.f32 %v1027_v45  ;;  %v1039_v7 = vand.u32 2147483648, %v1027_v45  ;;  %v1037_v46 = vand.u32 2147483647, %v1027_v45  ;;  %vm1033_vm2 = vweird.f32 %v1027_v45 }
 0x61d   :  { %2165 = vrcp.f32 %v1049_v10  ;;  %v1019_v0 = vpop.f32.mrf.mxu2  ;;  %v1061_v57 = vand.u32 2147483648, %v1049_v10  ;;  %vm1055_vm6 = vweird.f32 %v1049_v10  ;;  %v1059_v58 = vand.u32 2147483647, %v1049_v10 }
 0x61e   :  { %v1040_v49 = vor.u32 1.1754944e-38, %v1039_v7  ;;  %vm1038_vm4 = vcmp.eq.f32.partialorder %v1037_v46, 8.507059e+37 }
 0x61f   :  { %v1062_v61 = vor.u32 1.1754944e-38, %v1061_v57  ;;  %vm1060_vm8 = vcmp.eq.f32.partialorder %v1059_v58, 8.507059e+37 }
 0x622   :  { %v2164_v11 = vpop.eup %2163 }
 0x623   :  { %v2166_v1 = vpop.eup %2165  ;;  %v1029_v3 = vmul.f32 %v2164_v11, %v1027_v45  ;;  %vm1034_vm15 = vweird.f32 %v2164_v11 }
 0x624   :  { %v1051_v4 = vmul.f32 %v2166_v1, %v1049_v10  ;;  %vm1035_vm3 = vmor %vm1033_vm2, %vm1034_vm15  ;;  %vm1056_vm5 = vweird.f32 %v2166_v1 }
 0x625   :  { %v1030_v5 = vsub.f32 1.0, %v1029_v3  ;;  %vm1057_vm7 = vmor %vm1055_vm6, %vm1056_vm5 }
 0x626   :  { %v1052_v6 = vsub.f32 1.0, %v1051_v4 }
 0x627   :  { %v1031_v8 = vmul.f32 %v2164_v11, %v1030_v5 }
 0x628   :  { %v1053_v47 = vmul.f32 %v2166_v1, %v1052_v6 }
 0x629   :  { %v1032_v48 = vadd.f32 %v2164_v11, %v1031_v8 }
 0x62a   :  { %v1054_v55 = vadd.f32 %v2166_v1, %v1053_v47 }
 0x62b   :  { %v1036_v51 = vsel %vm1035_vm3, %v2164_v11, %v1032_v48 }
 0x62c   :  { %v1041_v52 = vsel %vm1038_vm4, %v1040_v49, %v1036_v51  ;;  %v1058_v60 = vsel %vm1057_vm7, %v2166_v1, %v1054_v55 }
 0x62d   :  { %v1067_v56 = vmul.f32 %v1041_v52, %v1018_v50  ;;  %v1063_v62 = vsel %vm1060_vm8, %v1062_v61, %v1058_v60  ;;  %v2001_v50 = vld [vmem:[%s3123_s0 + $0x52] sm:$0x3] }
 0x62e   :  { %v1070_v63 = vsub.f32 1.0, %v1063_v62  ;;  %v1072_v14 = vmul.f32 %v1063_v62, %v2804_v18 }
 0x62f   :  { %v1068_v59 = vadd.f32 %v1991_v54, %v1067_v56 }
 0x631   :  { %2167 = vtanh.f32 %v1068_v59 }
 0x637   :  { %v2168_v2 = vpop.eup %2167 }
 0x638   :  { %v1071_v12 = vmul.f32 %v2168_v2, %v1070_v63 }
 0x63a   :  { %v2845_v15 = vadd.f32 %v1072_v14, %v1071_v12 }
 0x63c   :  { %1077 = vrot.lane.b32.xlu2 %v2845_v15, %s2282_s10  ;;  %1992 = vst.msk [vmem:[%s3128_s5 + $0x10] sm:$0x3] %vm242_vm10, %v2845_v15  ;;  %v1082_v16 = vpack.c.bf16 %v2845_v15, %v2845_v15 }
 0x63e   :  { %1994 = vmatmul.msk.bf16.vlgmr.msra.gmra.mxu3 %vm96_vm1, %v1082_v16  ;;  %1995 = vmatmul.msk.bf16.vlgmr.msrb.gmra.mxu0 %vm96_vm1, %v1082_v16 }
 0x63f   :  { %1996 = vmatmul.msk.bf16.vlgmr.msrb.gmra.mxu1 %vm96_vm1, %v1082_v16  ;;  %1324 = vmatpush.bf16.msra.mxu3 %v2674_v33  ;;  %v2009_v16 = vld [vmem:[%s3123_s0 + $0x34] sm:$0x3] }
 0x640   :  { %1402 = vmatpush.bf16.msrb.mxu0 %v2680_v34  ;;  %1415 = vmatpush.bf16.msrb.mxu1 %v2686_v36 }
 0x643   :  { %1325 = vmatpush.bf16.msra.mxu3 %v2692_v37 }
 0x644   :  { %1403 = vmatpush.bf16.msrb.mxu0 %v2698_v38  ;;  %1416 = vmatpush.bf16.msrb.mxu1 %v2704_v39 }
 0x647   :  { %1326 = vmatpush.bf16.msra.mxu3 %v2761_v24 }
 0x648   :  { %1404 = vmatpush.bf16.msrb.mxu0 %v2711_v40  ;;  %1417 = vmatpush.bf16.msrb.mxu1 %v2717_v41 }
 0x64b   :  { %1327 = vmatpush.bf16.msra.mxu3 %v2769_v25 }
 0x64c   :  { %1405 = vmatpush.bf16.msrb.mxu0 %v2775_v26  ;;  %1418 = vmatpush.bf16.msrb.mxu1 %v2781_v27 }
 0x696   :  { %v1078_v17 = vpop.permute.xlu2 %1077 }
 0x697   :  { %1993 = vst.msk [vmem:[%s3129_s6 + $0xe] sm:$0x3] %vm242_vm10, %v1078_v17 }
 0x6bb   :  { %v1108_v18 = vpop.f32.mrf.mxu0 }
 0x6bc   :  { %v1149_v19 = vadd.f32 %v1999_v35, %v1108_v18  ;;  %v1121_v20 = vpop.f32.mrf.mxu1 }
 0x6bd   :  { %v1122_v46 = vadd.f32 %v2797_v53, %v1121_v20 }
 0x6be   :  { %v2000_v21 = vmul.f32 -1.442695, %v1149_v19 }
 0x6c0   :  { %2169 = vpow2.f32 %v2000_v21 }
 0x6c1   :  { %v1095_v23 = vpop.f32.mrf.mxu3 }
 0x6c2   :  { %v1127_v28 = vadd.f32 %v1997_v22, %v1095_v23 }
 0x6c3   :  { %v1110_v29 = vpop.f32.mrf.mxu0 }
 0x6c4   :  { %v1998_v30 = vmul.f32 -1.442695, %v1127_v28  ;;  %v1123_v31 = vpop.f32.mrf.mxu1 }
 0x6c6   :  { %v2170_v32 = vpop.eup %2169  ;;  %2171 = vpow2.f32 %v1998_v30 }
 0x6c7   :  { %v1153_v9 = vadd.f32 1.0, %v2170_v32 }
 0x6c9   :  { %v1097_v42 = vpop.f32.mrf.mxu3  ;;  %2173 = vrcp.f32 %v1153_v9  ;;  %v1165_v51 = vand.u32 2147483648, %v1153_v9  ;;  %vm1159_vm15 = vweird.f32 %v1153_v9  ;;  %v1163_v54 = vand.u32 2147483647, %v1153_v9 }
 0x6cb   :  { %v1166_v57 = vor.u32 1.1754944e-38, %v1165_v51  ;;  %vm1164_vm3 = vcmp.eq.f32.partialorder %v1163_v54, 8.507059e+37 }
 0x6cc   :  { %v2172_v43 = vpop.eup %2171 }
 0x6cd   :  { %v1131_v44 = vadd.f32 1.0, %v2172_v43 }
 0x6cf   :  { %2175 = vrcp.f32 %v1131_v44  ;;  %v2174_v13 = vpop.eup %2173  ;;  %v1143_v3 = vand.u32 2147483648, %v1131_v44  ;;  %v1141_v5 = vand.u32 2147483647, %v1131_v44  ;;  %vm1137_vm11 = vweird.f32 %v1131_v44 }
 0x6d0   :  { %v1155_v45 = vmul.f32 %v2174_v13, %v1153_v9  ;;  %vm1160_vm14 = vweird.f32 %v2174_v13 }
 0x6d1   :  { %v1144_v8 = vor.u32 1.1754944e-38, %v1143_v3  ;;  %vm1142_vm13 = vcmp.eq.f32.partialorder %v1141_v5, 8.507059e+37  ;;  %vm1161_vm2 = vmor %vm1159_vm15, %vm1160_vm14 }
 0x6d2   :  { %v1156_v11 = vsub.f32 1.0, %v1155_v45 }
 0x6d4   :  { %v1157_v6 = vmul.f32 %v2174_v13, %v1156_v11 }
 0x6d5   :  { %v2176_v10 = vpop.eup %2175 }
 0x6d6   :  { %v1133_v0 = vmul.f32 %v2176_v10, %v1131_v44  ;;  %vm1138_vm9 = vweird.f32 %v2176_v10  ;;  %v1158_v49 = vadd.f32 %v2174_v13, %v1157_v6 }
 0x6d7   :  { %vm1139_vm12 = vmor %vm1137_vm11, %vm1138_vm9 }
 0x6d8   :  { %v1134_v1 = vsub.f32 1.0, %v1133_v0  ;;  %v1162_v56 = vsel %vm1161_vm2, %v2174_v13, %v1158_v49 }
 0x6d9   :  { %v1167_v58 = vsel %vm1164_vm3, %v1166_v57, %v1162_v56 }
 0x6da   :  { %v1135_v4 = vmul.f32 %v2176_v10, %v1134_v1  ;;  %v1174_v59 = vsub.f32 1.0, %v1167_v58  ;;  %v1176_v62 = vmul.f32 %v1167_v58, %v2845_v15  ;;  %v2007_v15 = vld [vmem:[%s3123_s0 + $0x14] sm:$0x3] }
 0x6dc   :  { %v1136_v7 = vadd.f32 %v2176_v10, %v1135_v4 }
 0x6de   :  { %v1140_v47 = vsel %vm1139_vm12, %v2176_v10, %v1136_v7 }
 0x6df   :  { %v1145_v48 = vsel %vm1142_vm13, %v1144_v8, %v1140_v47 }
 0x6e0   :  { %v1171_v52 = vmul.f32 %v1145_v48, %v1122_v46  ;;  %v2011_v46 = vld [vmem:[%s3123_s0 + $0x54] sm:$0x3] }
 0x6e2   :  { %v1172_v55 = vadd.f32 %v2001_v50, %v1171_v52 }
 0x6e4   :  { %2177 = vtanh.f32 %v1172_v55 }
 0x6ea   :  { %v2178_v60 = vpop.eup %2177 }
 0x6eb   :  { %v1175_v61 = vmul.f32 %v2178_v60, %v1174_v59 }
 0x6ed   :  { %v2886_v63 = vadd.f32 %v1176_v62, %v1175_v61  ;;  %v2017_v62 = vld [vmem:[%s3123_s0 + $0x16] sm:$0x3] }
 0x6ef   :  { %1181 = vrot.lane.b32.xlu0 %v2886_v63, %s2282_s10  ;;  %2002 = vst.msk [vmem:[%s3128_s5 + $0x12] sm:$0x3] %vm242_vm10, %v2886_v63  ;;  %v1186_v2 = vpack.c.bf16 %v2886_v63, %v2886_v63 }
 0x6f1   :  { %2004 = vmatmul.msk.bf16.vlgmr.msrb.gmra.mxu2 %vm96_vm1, %v1186_v2  ;;  %2005 = vmatmul.msk.bf16.vlgmr.msrb.gmra.mxu3 %vm96_vm1, %v1186_v2 }
 0x6f2   :  { %2006 = vmatmul.msk.bf16.vlgmr.msra.gmra.mxu0 %vm96_vm1, %v1186_v2  ;;  %1428 = vmatpush.bf16.msrb.mxu2 %v2674_v33 }
 0x6f3   :  { %1506 = vmatpush.bf16.msrb.mxu3 %v2680_v34  ;;  %1519 = vmatpush.bf16.msra.mxu0 %v2686_v36 }
 0x6f6   :  { %1429 = vmatpush.bf16.msrb.mxu2 %v2692_v37 }
 0x6f7   :  { %1507 = vmatpush.bf16.msrb.mxu3 %v2698_v38  ;;  %1520 = vmatpush.bf16.msra.mxu0 %v2704_v39 }
 0x6fa   :  { %1430 = vmatpush.bf16.msrb.mxu2 %v2761_v24 }
 0x6fb   :  { %1508 = vmatpush.bf16.msrb.mxu3 %v2711_v40  ;;  %1521 = vmatpush.bf16.msra.mxu0 %v2717_v41 }
 0x6fe   :  { %1431 = vmatpush.bf16.msrb.mxu2 %v2769_v25 }
 0x6ff   :  { %1509 = vmatpush.bf16.msrb.mxu3 %v2775_v26  ;;  %1522 = vmatpush.bf16.msra.mxu0 %v2781_v27 }
 0x761   :  { %v1182_v12 = vpop.permute.xlu0 %1181 }
 0x762   :  { %2003 = vst.msk [vmem:[%s3129_s6 + $0xc] sm:$0x3] %vm242_vm10, %v1182_v12 }
 0x76f   :  { %v1225_v14 = vpop.f32.mrf.mxu0 }
 0x770   :  { %v1226_v5 = vadd.f32 %v2797_v53, %v1225_v14  ;;  %v2019_v14 = vld [vmem:[%s3123_s0 + $0x36] sm:$0x3] }
 0x774   :  { %v1199_v17 = vpop.f32.mrf.mxu2  ;;  %v1212_v35 = vpop.f32.mrf.mxu3 }
 0x775   :  { %v1231_v18 = vadd.f32 %v2007_v15, %v1199_v17  ;;  %v1253_v19 = vadd.f32 %v2009_v16, %v1212_v35 }
 0x777   :  { %v2008_v20 = vmul.f32 -1.442695, %v1231_v18  ;;  %v2010_v21 = vmul.f32 -1.442695, %v1253_v19  ;;  %v1227_v22 = vpop.f32.mrf.mxu0 }
 0x779   :  { %2179 = vpow2.f32 %v2008_v20 }
 0x77a   :  { %2181 = vpow2.f32 %v2010_v21 }
 0x77c   :  { %v1201_v23 = vpop.f32.mrf.mxu2  ;;  %v1214_v28 = vpop.f32.mrf.mxu3 }
 0x77f   :  { %v2180_v29 = vpop.eup %2179 }
 0x780   :  { %v2182_v30 = vpop.eup %2181  ;;  %v1235_v31 = vadd.f32 1.0, %v2180_v29 }
 0x781   :  { %v1257_v32 = vadd.f32 1.0, %v2182_v30 }
 0x782   :  { %2183 = vrcp.f32 %v1235_v31  ;;  %v1247_v45 = vand.u32 2147483648, %v1235_v31  ;;  %v1245_v11 = vand.u32 2147483647, %v1235_v31  ;;  %vm1241_vm5 = vweird.f32 %v1235_v31 }
 0x783   :  { %2185 = vrcp.f32 %v1257_v32  ;;  %v1269_v47 = vand.u32 2147483648, %v1257_v32  ;;  %vm1263_vm9 = vweird.f32 %v1257_v32  ;;  %v1267_v49 = vand.u32 2147483647, %v1257_v32 }
 0x784   :  { %v1248_v4 = vor.u32 1.1754944e-38, %v1247_v45  ;;  %vm1246_vm7 = vcmp.eq.f32.partialorder %v1245_v11, 8.507059e+37 }
 0x785   :  { %v1270_v52 = vor.u32 1.1754944e-38, %v1269_v47  ;;  %vm1268_vm12 = vcmp.eq.f32.partialorder %v1267_v49, 8.507059e+37 }
 0x788   :  { %v2184_v9 = vpop.eup %2183 }
 0x789   :  { %v2186_v42 = vpop.eup %2185  ;;  %v1237_v43 = vmul.f32 %v2184_v9, %v1235_v31  ;;  %vm1242_vm4 = vweird.f32 %v2184_v9 }
 0x78a   :  { %v1259_v44 = vmul.f32 %v2186_v42, %v1257_v32  ;;  %vm1243_vm6 = vmor %vm1241_vm5, %vm1242_vm4  ;;  %vm1264_vm8 = vweird.f32 %v2186_v42 }
 0x78b   :  { %v1238_v13 = vsub.f32 1.0, %v1237_v43  ;;  %vm1265_vm11 = vmor %vm1263_vm9, %vm1264_vm8 }
 0x78c   :  { %v1260_v10 = vsub.f32 1.0, %v1259_v44 }
 0x78d   :  { %v1239_v0 = vmul.f32 %v2184_v9, %v1238_v13 }
 0x78e   :  { %v1261_v1 = vmul.f32 %v2186_v42, %v1260_v10 }
 0x78f   :  { %v1240_v3 = vadd.f32 %v2184_v9, %v1239_v0 }
 0x790   :  { %v1262_v8 = vadd.f32 %v2186_v42, %v1261_v1 }
 0x791   :  { %v1244_v6 = vsel %vm1243_vm6, %v2184_v9, %v1240_v3  ;;  %v2021_v3 = vld [vmem:[%s3123_s0 + $0x56] sm:$0x3] }
 0x792   :  { %v1249_v7 = vsel %vm1246_vm7, %v1248_v4, %v1244_v6  ;;  %v1266_v51 = vsel %vm1265_vm11, %v2186_v42, %v1262_v8 }
 0x793   :  { %v1275_v48 = vmul.f32 %v1249_v7, %v1226_v5  ;;  %v1271_v54 = vsel %vm1268_vm12, %v1270_v52, %v1266_v51 }
 0x794   :  { %v1278_v55 = vsub.f32 1.0, %v1271_v54  ;;  %v1280_v58 = vmul.f32 %v1271_v54, %v2886_v63 }
 0x795   :  { %v1276_v50 = vadd.f32 %v2011_v46, %v1275_v48 }
 0x797   :  { %2187 = vtanh.f32 %v1276_v50 }
 0x79d   :  { %v2188_v56 = vpop.eup %2187 }
 0x79e   :  { %v1279_v57 = vmul.f32 %v2188_v56, %v1278_v55 }
 0x7a0   :  { %v2927_v59 = vadd.f32 %v1280_v58, %v1279_v57 }
 0x7a2   :  { %1285 = vrot.lane.b32.xlu1 %v2927_v59, %s2282_s10  ;;  %2012 = vst.msk [vmem:[%s3128_s5 + $0x14] sm:$0x3] %vm242_vm10, %v2927_v59  ;;  %v1290_v60 = vpack.c.bf16 %v2927_v59, %v2927_v59 }
 0x7a4   :  { %2014 = vmatmul.msk.bf16.vlgmr.msra.gmra.mxu1 %vm96_vm1, %v1290_v60  ;;  %2015 = vmatmul.msk.bf16.vlgmr.msra.gmra.mxu2 %vm96_vm1, %v1290_v60 }
 0x7a5   :  { %2016 = vmatmul.msk.bf16.vlgmr.msra.gmra.mxu3 %vm96_vm1, %v1290_v60  ;;  %1532 = vmatpush.bf16.msra.mxu1 %v2674_v33 }
 0x7a6   :  { %1610 = vmatpush.bf16.msra.mxu2 %v2680_v34  ;;  %1623 = vmatpush.bf16.msra.mxu3 %v2686_v36 }
 0x7a9   :  { %1533 = vmatpush.bf16.msra.mxu1 %v2692_v37 }
 0x7aa   :  { %1611 = vmatpush.bf16.msra.mxu2 %v2698_v38  ;;  %1624 = vmatpush.bf16.msra.mxu3 %v2704_v39 }
 0x7ad   :  { %1534 = vmatpush.bf16.msra.mxu1 %v2761_v24 }
 0x7ae   :  { %1612 = vmatpush.bf16.msra.mxu2 %v2711_v40  ;;  %1625 = vmatpush.bf16.msra.mxu3 %v2717_v41 }
 0x7b1   :  { %1535 = vmatpush.bf16.msra.mxu1 %v2769_v25 }
 0x7b2   :  { %1613 = vmatpush.bf16.msra.mxu2 %v2775_v26  ;;  %1626 = vmatpush.bf16.msra.mxu3 %v2781_v27 }
 0x814   :  { %v1286_v61 = vpop.permute.xlu1 %1285 }
 0x815   :  { %2013 = vst.msk [vmem:[%s3129_s6 + $0xa] sm:$0x3] %vm242_vm10, %v1286_v61 }
 0x821   :  { %v1303_v63 = vpop.f32.mrf.mxu1 }
 0x822   :  { %v1335_v2 = vadd.f32 %v2017_v62, %v1303_v63 }
 0x824   :  { %v2018_v12 = vmul.f32 -1.442695, %v1335_v2 }
 0x826   :  { %2189 = vpow2.f32 %v2018_v12 }
 0x827   :  { %v1316_v15 = vpop.f32.mrf.mxu2 }
 0x828   :  { %v1357_v16 = vadd.f32 %v2019_v14, %v1316_v15  ;;  %v1329_v17 = vpop.f32.mrf.mxu3 }
 0x829   :  { %v1305_v35 = vpop.f32.mrf.mxu1  ;;  %v1330_v0 = vadd.f32 %v2797_v53, %v1329_v17 }
 0x82a   :  { %v2020_v18 = vmul.f32 -1.442695, %v1357_v16 }
 0x82c   :  { %v2190_v19 = vpop.eup %2189  ;;  %2191 = vpow2.f32 %v2020_v18 }
 0x82d   :  { %v1339_v20 = vadd.f32 1.0, %v2190_v19 }
 0x82f   :  { %2193 = vrcp.f32 %v1339_v20  ;;  %v1318_v21 = vpop.f32.mrf.mxu2  ;;  %v1351_v32 = vand.u32 2147483648, %v1339_v20  ;;  %v1349_v42 = vand.u32 2147483647, %v1339_v20  ;;  %vm1345_vm14 = vweird.f32 %v1339_v20 }
 0x830   :  { %v1331_v22 = vpop.f32.mrf.mxu3 }
 0x831   :  { %v1352_v45 = vor.u32 1.1754944e-38, %v1351_v32  ;;  %vm1350_vm2 = vcmp.eq.f32.partialorder %v1349_v42, 8.507059e+37 }
 0x832   :  { %v2192_v23 = vpop.eup %2191 }
 0x833   :  { %v1361_v28 = vadd.f32 1.0, %v2192_v23 }
 0x835   :  { %v2194_v29 = vpop.eup %2193  ;;  %2195 = vrcp.f32 %v1361_v28  ;;  %v1373_v6 = vand.u32 2147483648, %v1361_v28  ;;  %v1371_v7 = vand.u32 2147483647, %v1361_v28  ;;  %vm1367_vm4 = vweird.f32 %v1361_v28 }
 0x836   :  { %v1341_v30 = vmul.f32 %v2194_v29, %v1339_v20  ;;  %vm1346_vm13 = vweird.f32 %v2194_v29 }
 0x837   :  { %vm1347_vm15 = vmor %vm1345_vm14, %vm1346_vm13  ;;  %v1374_v48 = vor.u32 1.1754944e-38, %v1373_v6  ;;  %vm1372_vm6 = vcmp.eq.f32.partialorder %v1371_v7, 8.507059e+37  ;;  %v2253_v6 = vld [vmem:[%s3126_s3 + $0x10] sm:$0xff] }
 0x838   :  { %v1342_v31 = vsub.f32 1.0, %v1341_v30  ;;  %v2031_v30 = vld [vmem:[%s3123_s0 + $0x58] sm:$0x3] }
 0x83a   :  { %v1343_v9 = vmul.f32 %v2194_v29, %v1342_v31 }
 0x83b   :  { %v2196_v43 = vpop.eup %2195 }
 0x83c   :  { %v1363_v44 = vmul.f32 %v2196_v43, %v1361_v28  ;;  %v1344_v13 = vadd.f32 %v2194_v29, %v1343_v9  ;;  %vm1368_vm3 = vweird.f32 %v2196_v43 }
 0x83d   :  { %vm1369_vm5 = vmor %vm1367_vm4, %vm1368_vm3 }
 0x83e   :  { %v1364_v10 = vsub.f32 1.0, %v1363_v44  ;;  %v1348_v11 = vsel %vm1347_vm15, %v2194_v29, %v1344_v13 }
 0x83f   :  { %v1353_v1 = vsel %vm1350_vm2, %v1352_v45, %v1348_v11 }
 0x840   :  { %v1365_v4 = vmul.f32 %v2196_v43, %v1364_v10  ;;  %v1379_v5 = vmul.f32 %v1353_v1, %v1330_v0 }
 0x842   :  { %v1380_v8 = vadd.f32 %v2021_v3, %v1379_v5  ;;  %v1366_v46 = vadd.f32 %v2196_v43, %v1365_v4  ;;  %v2252_v5 = vld [vmem:[%s3126_s3 + $0x18] sm:$0xff] }
 0x844   :  { %2197 = vtanh.f32 %v1380_v8  ;;  %v1370_v47 = vsel %vm1369_vm5, %v2196_v43, %v1366_v46  ;;  %v2039_v8 = vld [vmem:[%s3123_s0 + $0x3a] sm:$0x3] }
 0x845   :  { %v1375_v49 = vsel %vm1372_vm6, %v1374_v48, %v1370_v47 }
 0x846   :  { %v1382_v50 = vsub.f32 1.0, %v1375_v49  ;;  %v1384_v54 = vmul.f32 %v1375_v49, %v2927_v59 }
 0x84a   :  { %v2198_v51 = vpop.eup %2197 }
 0x84b   :  { %v1383_v52 = vmul.f32 %v2198_v51, %v1382_v50 }
 0x84d   :  { %v2968_v55 = vadd.f32 %v1384_v54, %v1383_v52 }
 0x84f   :  { %1389 = vrot.lane.b32.xlu2 %v2968_v55, %s2282_s10  ;;  %2022 = vst.msk [vmem:[%s3128_s5 + $0x16] sm:$0x3] %vm242_vm10, %v2968_v55  ;;  %v1394_v56 = vpack.c.bf16 %v2968_v55, %v2968_v55 }
 0x851   :  { %2024 = vmatmul.msk.bf16.vlgmr.msrb.gmra.mxu0 %vm96_vm1, %v1394_v56  ;;  %2025 = vmatmul.msk.bf16.vlgmr.msrb.gmra.mxu1 %vm96_vm1, %v1394_v56 }
 0x852   :  { %2026 = vmatmul.msk.bf16.vlgmr.msrb.gmra.mxu2 %vm96_vm1, %v1394_v56  ;;  %1636 = vmatpush.bf16.msrb.mxu0 %v2674_v33 }
 0x853   :  { %1714 = vmatpush.bf16.msrb.mxu1 %v2680_v34  ;;  %1727 = vmatpush.bf16.msrb.mxu2 %v2686_v36  ;;  %v2027_v34 = vld [vmem:[%s3123_s0 + $0x18] sm:$0x3] }
 0x854   :  { %v2029_v36 = vld [vmem:[%s3123_s0 + $0x38] sm:$0x3] }
 0x856   :  { %1637 = vmatpush.bf16.msrb.mxu0 %v2692_v37 }
 0x857   :  { %1715 = vmatpush.bf16.msrb.mxu1 %v2698_v38  ;;  %1728 = vmatpush.bf16.msrb.mxu2 %v2704_v39 }
 0x85a   :  { %1638 = vmatpush.bf16.msrb.mxu0 %v2761_v24 }
 0x85b   :  { %1716 = vmatpush.bf16.msrb.mxu1 %v2711_v40  ;;  %1729 = vmatpush.bf16.msrb.mxu2 %v2717_v41 }
 0x85e   :  { %1639 = vmatpush.bf16.msrb.mxu0 %v2769_v25 }
 0x85f   :  { %1717 = vmatpush.bf16.msrb.mxu1 %v2775_v26  ;;  %1730 = vmatpush.bf16.msrb.mxu2 %v2781_v27 }
 0x8a9   :  { %v1390_v33 = vpop.permute.xlu2 %1389 }
 0x8aa   :  { %2023 = vst.msk [vmem:[%s3129_s6 + $0x8] sm:$0x3] %vm242_vm10, %v1390_v33 }
 0x8ce   :  { %v1407_v37 = vpop.f32.mrf.mxu0  ;;  %v1420_v38 = vpop.f32.mrf.mxu1 }
 0x8cf   :  { %v1439_v39 = vadd.f32 %v2027_v34, %v1407_v37  ;;  %v1461_v40 = vadd.f32 %v2029_v36, %v1420_v38 }
 0x8d1   :  { %v2028_v41 = vmul.f32 -1.442695, %v1439_v39  ;;  %v2030_v26 = vmul.f32 -1.442695, %v1461_v40 }
 0x8d3   :  { %2199 = vpow2.f32 %v2028_v41 }
 0x8d4   :  { %2201 = vpow2.f32 %v2030_v26 }
 0x8d5   :  { %v1433_v27 = vpop.f32.mrf.mxu2 }
 0x8d6   :  { %v1409_v57 = vpop.f32.mrf.mxu0  ;;  %v1422_v58 = vpop.f32.mrf.mxu1  ;;  %v1434_v23 = vadd.f32 %v2797_v53, %v1433_v27 }
 0x8d9   :  { %v2200_v59 = vpop.eup %2199 }
 0x8da   :  { %v2202_v60 = vpop.eup %2201  ;;  %v1443_v61 = vadd.f32 1.0, %v2200_v59 }
 0x8db   :  { %v1465_v62 = vadd.f32 1.0, %v2202_v60 }
 0x8dc   :  { %2203 = vrcp.f32 %v1443_v61  ;;  %v1455_v35 = vand.u32 2147483648, %v1443_v61  ;;  %v1453_v19 = vand.u32 2147483647, %v1443_v61  ;;  %vm1449_vm8 = vweird.f32 %v1443_v61 }
 0x8dd   :  { %2205 = vrcp.f32 %v1465_v62  ;;  %v1435_v63 = vpop.f32.mrf.mxu2  ;;  %v1477_v9 = vand.u32 2147483648, %v1465_v62  ;;  %vm1471_vm13 = vweird.f32 %v1465_v62  ;;  %v1475_v42 = vand.u32 2147483647, %v1465_v62 }
 0x8de   :  { %v1456_v22 = vor.u32 1.1754944e-38, %v1455_v35  ;;  %vm1454_vm11 = vcmp.eq.f32.partialorder %v1453_v19, 8.507059e+37 }
 0x8df   :  { %v1478_v13 = vor.u32 1.1754944e-38, %v1477_v9  ;;  %vm1476_vm15 = vcmp.eq.f32.partialorder %v1475_v42, 8.507059e+37  ;;  %v2049_v9 = vld [vmem:[%s3123_s0 + $0x3c] sm:$0x3] }
 0x8e2   :  { %v2204_v2 = vpop.eup %2203 }
 0x8e3   :  { %v2206_v12 = vpop.eup %2205  ;;  %v1445_v14 = vmul.f32 %v2204_v2, %v1443_v61  ;;  %vm1450_vm7 = vweird.f32 %v2204_v2 }
 0x8e4   :  { %v1467_v15 = vmul.f32 %v2206_v12, %v1465_v62  ;;  %vm1451_vm9 = vmor %vm1449_vm8, %vm1450_vm7  ;;  %vm1472_vm12 = vweird.f32 %v2206_v12 }
 0x8e5   :  { %v1446_v16 = vsub.f32 1.0, %v1445_v14  ;;  %vm1473_vm14 = vmor %vm1471_vm13, %vm1472_vm12  ;;  %v2041_v14 = vld [vmem:[%s3123_s0 + $0x5a] sm:$0x3] }
 0x8e6   :  { %v1468_v17 = vsub.f32 1.0, %v1467_v15 }
 0x8e7   :  { %v1447_v18 = vmul.f32 %v2204_v2, %v1446_v16 }
 0x8e8   :  { %v1469_v20 = vmul.f32 %v2206_v12, %v1468_v17 }
 0x8e9   :  { %v1448_v21 = vadd.f32 %v2204_v2, %v1447_v18 }
 0x8ea   :  { %v1470_v31 = vadd.f32 %v2206_v12, %v1469_v20 }
 0x8eb   :  { %v1452_v28 = vsel %vm1451_vm9, %v2204_v2, %v1448_v21 }
 0x8ec   :  { %v1457_v29 = vsel %vm1454_vm11, %v1456_v22, %v1452_v28  ;;  %v1474_v44 = vsel %vm1473_vm14, %v2206_v12, %v1470_v31 }
 0x8ed   :  { %v1483_v32 = vmul.f32 %v1457_v29, %v1434_v23  ;;  %v1479_v45 = vsel %vm1476_vm15, %v1478_v13, %v1474_v44 }
 0x8ee   :  { %v1486_v10 = vsub.f32 1.0, %v1479_v45  ;;  %v1488_v1 = vmul.f32 %v1479_v45, %v2968_v55 }
 0x8ef   :  { %v1484_v43 = vadd.f32 %v2031_v30, %v1483_v32  ;;  %v2047_v32 = vld [vmem:[%s3123_s0 + $0x1c] sm:$0x3] }
 0x8f1   :  { %2207 = vtanh.f32 %v1484_v43 }
 0x8f7   :  { %v2208_v0 = vpop.eup %2207 }
 0x8f8   :  { %v1487_v11 = vmul.f32 %v2208_v0, %v1486_v10 }
 0x8fa   :  { %v3009_v3 = vadd.f32 %v1488_v1, %v1487_v11 }
 0x8fc   :  { %1493 = vrot.lane.b32.xlu0 %v3009_v3, %s2282_s10  ;;  %2032 = vst.msk [vmem:[%s3128_s5 + $0x18] sm:$0x3] %vm242_vm10, %v3009_v3  ;;  %v1498_v4 = vpack.c.bf16 %v3009_v3, %v3009_v3 }
 0x8fe   :  { %2034 = vmatmul.msk.bf16.vlgmr.msrb.gmra.mxu3 %vm96_vm1, %v1498_v4  ;;  %2035 = vmatmul.msk.bf16.vlgmr.msra.gmra.mxu0 %vm96_vm1, %v1498_v4 }
 0x8ff   :  { %2036 = vmatmul.msk.bf16.vlgmr.msra.gmra.mxu1 %vm96_vm1, %v1498_v4  ;;  %1740 = vmatpush.bf16.msrb.mxu3 %v2252_v5 }
 0x903   :  { %1741 = vmatpush.bf16.msrb.mxu3 %v2253_v6 }
 0x907   :  { %1742 = vmatpush.bf16.msrb.mxu3 %v2761_v24  ;;  %v2037_v24 = vld [vmem:[%s3123_s0 + $0x1a] sm:$0x3] }
 0x90b   :  { %1743 = vmatpush.bf16.msrb.mxu3 %v2769_v25 }
 0x96e   :  { %v1494_v7 = vpop.permute.xlu0 %1493 }
 0x96f   :  { %2033 = vst.msk [vmem:[%s3129_s6 + $0x6] sm:$0x3] %vm242_vm10, %v1494_v7 }
 0x97b   :  { %v1524_v46 = vpop.f32.mrf.mxu0 }
 0x97c   :  { %v1565_v47 = vadd.f32 %v2039_v8, %v1524_v46  ;;  %v1537_v48 = vpop.f32.mrf.mxu1 }
 0x97d   :  { %v1538_v62 = vadd.f32 %v2797_v53, %v1537_v48 }
 0x97e   :  { %v2040_v49 = vmul.f32 -1.442695, %v1565_v47 }
 0x980   :  { %2209 = vpow2.f32 %v2040_v49 }
 0x981   :  { %v1511_v25 = vpop.f32.mrf.mxu3 }
 0x982   :  { %v1543_v50 = vadd.f32 %v2037_v24, %v1511_v25 }
 0x983   :  { %v1526_v51 = vpop.f32.mrf.mxu0 }
 0x984   :  { %v2038_v52 = vmul.f32 -1.442695, %v1543_v50  ;;  %v1539_v54 = vpop.f32.mrf.mxu1 }
 0x986   :  { %v2210_v55 = vpop.eup %2209  ;;  %2211 = vpow2.f32 %v2038_v52 }
 0x987   :  { %v1569_v56 = vadd.f32 1.0, %v2210_v55  ;;  %v3073_v55 = vld [vmem:[%s3127_s4] ss:$0 sm:$0xff] }
 0x989   :  { %v1513_v33 = vpop.f32.mrf.mxu3  ;;  %2213 = vrcp.f32 %v1569_v56  ;;  %v1581_v15 = vand.u32 2147483648, %v1569_v56  ;;  %vm1575_vm7 = vweird.f32 %v1569_v56  ;;  %v1579_v17 = vand.u32 2147483647, %v1569_v56 }
 0x98b   :  { %v1582_v19 = vor.u32 1.1754944e-38, %v1581_v15  ;;  %vm1580_vm9 = vcmp.eq.f32.partialorder %v1579_v17, 8.507059e+37  ;;  %v2059_v17 = vld [vmem:[%s3123_s0 + $0x3e] sm:$0x3] }
 0x98c   :  { %v2212_v34 = vpop.eup %2211 }
 0x98d   :  { %v1547_v36 = vadd.f32 1.0, %v2212_v34 }
 0x98f   :  { %2215 = vrcp.f32 %v1547_v36  ;;  %v2214_v37 = vpop.eup %2213  ;;  %v1559_v27 = vand.u32 2147483648, %v1547_v36  ;;  %v1557_v58 = vand.u32 2147483647, %v1547_v36  ;;  %vm1553_vm3 = vweird.f32 %v1547_v36 }
 0x990   :  { %v1571_v38 = vmul.f32 %v2214_v37, %v1569_v56  ;;  %vm1576_vm6 = vweird.f32 %v2214_v37 }
 0x991   :  { %v1560_v61 = vor.u32 1.1754944e-38, %v1559_v27  ;;  %vm1558_vm5 = vcmp.eq.f32.partialorder %v1557_v58, 8.507059e+37  ;;  %vm1577_vm8 = vmor %vm1575_vm7, %vm1576_vm6 }
 0x992   :  { %v1572_v41 = vsub.f32 1.0, %v1571_v38 }
 0x994   :  { %v1573_v59 = vmul.f32 %v2214_v37, %v1572_v41 }
 0x995   :  { %v2216_v39 = vpop.eup %2215 }
 0x996   :  { %v1549_v40 = vmul.f32 %v2216_v39, %v1547_v36  ;;  %vm1554_vm2 = vweird.f32 %v2216_v39  ;;  %v1574_v12 = vadd.f32 %v2214_v37, %v1573_v59 }
 0x997   :  { %vm1555_vm4 = vmor %vm1553_vm3, %vm1554_vm2 }
 0x998   :  { %v1550_v26 = vsub.f32 1.0, %v1549_v40  ;;  %v1578_v18 = vsel %vm1577_vm8, %v2214_v37, %v1574_v12  ;;  %v2051_v37 = vld [vmem:[%s3123_s0 + $0x5c] sm:$0x3]  ;;  %v2057_v12 = vld [vmem:[%s3123_s0 + $0x1e] sm:$0x3] }
 0x999   :  { %v1583_v53 = vsel %vm1580_vm9, %v1582_v19, %v1578_v18 }
 0x99a   :  { %v1551_v57 = vmul.f32 %v2216_v39, %v1550_v26  ;;  %v1590_v20 = vsub.f32 1.0, %v1583_v53  ;;  %v1592_v23 = vmul.f32 %v1583_v53, %v3009_v3 }
 0x99c   :  { %v1552_v60 = vadd.f32 %v2216_v39, %v1551_v57 }
 0x99e   :  { %v1556_v63 = vsel %vm1555_vm4, %v2216_v39, %v1552_v60 }
 0x99f   :  { %v1561_v2 = vsel %vm1558_vm5, %v1560_v61, %v1556_v63 }
 0x9a0   :  { %v1587_v16 = vmul.f32 %v1561_v2, %v1538_v62 }
 0x9a2   :  { %v1588_v35 = vadd.f32 %v2041_v14, %v1587_v16 }
 0x9a4   :  { %2217 = vtanh.f32 %v1588_v35 }
 0x9aa   :  { %v2218_v21 = vpop.eup %2217 }
 0x9ab   :  { %v1591_v22 = vmul.f32 %v2218_v21, %v1590_v20 }
 0x9ad   :  { %v3046_v28 = vadd.f32 %v1592_v23, %v1591_v22 }
 0x9af   :  { %1597 = vrot.lane.b32.xlu1 %v3046_v28, %s2282_s10  ;;  %2042 = vst.msk [vmem:[%s3128_s5 + $0x1a] sm:$0x3] %vm242_vm10, %v3046_v28  ;;  %v1602_v29 = vpack.c.bf16 %v3046_v28, %v3046_v28 }
 0x9b1   :  { %2044 = vmatmul.msk.bf16.vlgmr.msra.gmra.mxu2 %vm96_vm1, %v1602_v29  ;;  %2045 = vmatmul.msk.bf16.vlgmr.msra.gmra.mxu3 %vm96_vm1, %v1602_v29 }
 0x9b2   :  { %2046 = vmatmul.msk.bf16.vlgmr.msrb.gmra.mxu0 %vm96_vm1, %v1602_v29 }
 0xa21   :  { %v1598_v30 = vpop.permute.xlu1 %1597 }
 0xa22   :  { %2043 = vst.msk [vmem:[%s3129_s6 + $0x4] sm:$0x3] %vm242_vm10, %v1598_v30 }
 0xa2f   :  { %v1641_v31 = vpop.f32.mrf.mxu0 }
 0xa30   :  { %v1642_v56 = vadd.f32 %v3073_v55, %v1641_v31 }
 0xa34   :  { %v1615_v42 = vpop.f32.mrf.mxu2  ;;  %v1628_v43 = vpop.f32.mrf.mxu3 }
 0xa35   :  { %v1647_v44 = vadd.f32 %v2047_v32, %v1615_v42  ;;  %v1669_v13 = vadd.f32 %v2049_v9, %v1628_v43 }
 0xa37   :  { %v2048_v45 = vmul.f32 -1.442695, %v1647_v44  ;;  %v2050_v10 = vmul.f32 -1.442695, %v1669_v13  ;;  %v1643_v0 = vpop.f32.mrf.mxu0 }
 0xa39   :  { %2219 = vpow2.f32 %v2048_v45 }
 0xa3a   :  { %2221 = vpow2.f32 %v2050_v10 }
 0xa3c   :  { %v1617_v11 = vpop.f32.mrf.mxu2  ;;  %v1630_v1 = vpop.f32.mrf.mxu3 }
 0xa3f   :  { %v2220_v3 = vpop.eup %2219 }
 0xa40   :  { %v2222_v4 = vpop.eup %2221  ;;  %v1651_v5 = vadd.f32 1.0, %v2220_v3 }
 0xa41   :  { %v1673_v6 = vadd.f32 1.0, %v2222_v4 }
 0xa42   :  { %2223 = vrcp.f32 %v1651_v5  ;;  %v1663_v49 = vand.u32 2147483648, %v1651_v5  ;;  %v1661_v50 = vand.u32 2147483647, %v1651_v5  ;;  %vm1657_vm12 = vweird.f32 %v1651_v5 }
 0xa43   :  { %2225 = vrcp.f32 %v1673_v6  ;;  %v1685_v38 = vand.u32 2147483648, %v1673_v6  ;;  %vm1679_vm2 = vweird.f32 %v1673_v6  ;;  %v1683_v40 = vand.u32 2147483647, %v1673_v6 }
 0xa44   :  { %v1664_v54 = vor.u32 1.1754944e-38, %v1663_v49  ;;  %vm1662_vm14 = vcmp.eq.f32.partialorder %v1661_v50, 8.507059e+37 }
 0xa45   :  { %v1686_v27 = vor.u32 1.1754944e-38, %v1685_v38  ;;  %vm1684_vm4 = vcmp.eq.f32.partialorder %v1683_v40, 8.507059e+37 }
 0xa48   :  { %v2224_v7 = vpop.eup %2223 }
 0xa49   :  { %v2226_v8 = vpop.eup %2225  ;;  %v1653_v46 = vmul.f32 %v2224_v7, %v1651_v5  ;;  %vm1658_vm11 = vweird.f32 %v2224_v7  ;;  %v2061_v5 = vld [vmem:[%s3123_s0 + $0x5e] sm:$0x3]  ;;  %s2283_s0 = smov [#allocation3]  }
 0xa4a   :  { %v1675_v47 = vmul.f32 %v2226_v8, %v1673_v6  ;;  %vm1659_vm13 = vmor %vm1657_vm12, %vm1658_vm11  ;;  %vm1680_vm15 = vweird.f32 %v2226_v8  ;;  %s1829_s3 = sshll.u32 %s2283_s0, 4  ;;  %s1830_s3 = int_to_ptr.vmem [resolvable:$true] %s1829_s3 }
 0xa4b   :  { %v1654_v48 = vsub.f32 1.0, %v1653_v46  ;;  %vm1681_vm3 = vmor %vm1679_vm2, %vm1680_vm15 }
 0xa4c   :  { %v1676_v24 = vsub.f32 1.0, %v1675_v47 }
 0xa4d   :  { %v1655_v25 = vmul.f32 %v2224_v7, %v1654_v48 }
 0xa4e   :  { %v1677_v51 = vmul.f32 %v2226_v8, %v1676_v24 }
 0xa4f   :  { %v1656_v52 = vadd.f32 %v2224_v7, %v1655_v25 }
 0xa50   :  { %v1678_v36 = vadd.f32 %v2226_v8, %v1677_v51 }
 0xa51   :  { %v1660_v33 = vsel %vm1659_vm13, %v2224_v7, %v1656_v52 }
 0xa52   :  { %v1665_v34 = vsel %vm1662_vm14, %v1664_v54, %v1660_v33  ;;  %v1682_v26 = vsel %vm1681_vm3, %v2226_v8, %v1678_v36 }
 0xa53   :  { %v1691_v39 = vmul.f32 %v1665_v34, %v1642_v56  ;;  %v1687_v57 = vsel %vm1684_vm4, %v1686_v27, %v1682_v26 }
 0xa54   :  { %v1694_v58 = vsub.f32 1.0, %v1687_v57  ;;  %v1696_v61 = vmul.f32 %v1687_v57, %v3046_v28 }
 0xa55   :  { %v1692_v41 = vadd.f32 %v2051_v37, %v1691_v39 }
 0xa57   :  { %2227 = vtanh.f32 %v1692_v41 }
 0xa5d   :  { %v2228_v59 = vpop.eup %2227 }
 0xa5e   :  { %v1695_v60 = vmul.f32 %v2228_v59, %v1694_v58 }
 0xa60   :  { %v3080_v62 = vadd.f32 %v1696_v61, %v1695_v60 }
 0xa62   :  { %1701 = vrot.lane.b32.xlu2 %v3080_v62, %s2282_s10  ;;  %2052 = vst.msk [vmem:[%s3128_s5 + $0x1c] sm:$0x3] %vm242_vm10, %v3080_v62  ;;  %v1706_v63 = vpack.c.bf16 %v3080_v62, %v3080_v62 }
 0xa64   :  { %2054 = vmatmul.msk.bf16.vlgmr.msrb.gmra.mxu1 %vm96_vm1, %v1706_v63  ;;  %2055 = vmatmul.msk.bf16.vlgmr.msrb.gmra.mxu2 %vm96_vm1, %v1706_v63 }
 0xa65   :  { %2056 = vmatmul.msk.bf16.vlgmr.msrb.gmra.mxu3 %vm96_vm1, %v1706_v63 }
 0xabc   :  { %v1702_v2 = vpop.permute.xlu2 %1701 }
 0xabd   :  { %2053 = vst.msk [vmem:[%s3129_s6 + $0x2] sm:$0x3] %vm242_vm10, %v1702_v2 }
 0xae1   :  { %v1719_v14 = vpop.f32.mrf.mxu1 }
 0xae2   :  { %v1751_v15 = vadd.f32 %v2057_v12, %v1719_v14 }
 0xae4   :  { %v2058_v16 = vmul.f32 -1.442695, %v1751_v15 }
 0xae6   :  { %2229 = vpow2.f32 %v2058_v16 }
 0xae7   :  { %v1732_v35 = vpop.f32.mrf.mxu2 }
 0xae8   :  { %v1773_v18 = vadd.f32 %v2059_v17, %v1732_v35  ;;  %v1745_v19 = vpop.f32.mrf.mxu3 }
 0xae9   :  { %v1721_v53 = vpop.f32.mrf.mxu1  ;;  %v1746_v1 = vadd.f32 %v3073_v55, %v1745_v19 }
 0xaea   :  { %v2060_v20 = vmul.f32 -1.442695, %v1773_v18 }
 0xaec   :  { %v2230_v21 = vpop.eup %2229  ;;  %2231 = vpow2.f32 %v2060_v20 }
 0xaed   :  { %v1755_v22 = vadd.f32 1.0, %v2230_v21 }
 0xaef   :  { %2233 = vrcp.f32 %v1755_v22  ;;  %v1734_v23 = vpop.f32.mrf.mxu2  ;;  %v1767_v42 = vand.u32 2147483648, %v1755_v22  ;;  %v1765_v44 = vand.u32 2147483647, %v1755_v22  ;;  %vm1761_vm5 = vweird.f32 %v1755_v22 }
 0xaf0   :  { %v1747_v28 = vpop.f32.mrf.mxu3 }
 0xaf1   :  { %v1768_v0 = vor.u32 1.1754944e-38, %v1767_v42  ;;  %vm1766_vm7 = vcmp.eq.f32.partialorder %v1765_v44, 8.507059e+37 }
 0xaf2   :  { %v2232_v29 = vpop.eup %2231 }
 0xaf3   :  { %v1777_v30 = vadd.f32 1.0, %v2232_v29 }
 0xaf5   :  { %v2234_v31 = vpop.eup %2233  ;;  %2235 = vrcp.f32 %v1777_v30  ;;  %v1789_v8 = vand.u32 2147483648, %v1777_v30  ;;  %v1787_v46 = vand.u32 2147483647, %v1777_v30  ;;  %vm1783_vm9 = vweird.f32 %v1777_v30 }
 0xaf6   :  { %v1757_v32 = vmul.f32 %v2234_v31, %v1755_v22  ;;  %vm1762_vm1 = vweird.f32 %v2234_v31 }
 0xaf7   :  { %vm1763_vm6 = vmor %vm1761_vm5, %vm1762_vm1  ;;  %v1790_v24 = vor.u32 1.1754944e-38, %v1789_v8  ;;  %vm1788_vm12 = vcmp.eq.f32.partialorder %v1787_v46, 8.507059e+37 }
 0xaf8   :  { %v1758_v9 = vsub.f32 1.0, %v1757_v32 }
 0xafa   :  { %v1759_v43 = vmul.f32 %v2234_v31, %v1758_v9 }
 0xafb   :  { %v2236_v13 = vpop.eup %2235 }
 0xafc   :  { %v1779_v45 = vmul.f32 %v2236_v13, %v1777_v30  ;;  %v1760_v10 = vadd.f32 %v2234_v31, %v1759_v43  ;;  %vm1784_vm8 = vweird.f32 %v2236_v13 }
 0xafd   :  { %vm1785_vm11 = vmor %vm1783_vm9, %vm1784_vm8 }
 0xafe   :  { %v1780_v11 = vsub.f32 1.0, %v1779_v45  ;;  %v1764_v3 = vsel %vm1763_vm6, %v2234_v31, %v1760_v10 }
 0xaff   :  { %v1769_v4 = vsel %vm1766_vm7, %v1768_v0, %v1764_v3 }
 0xb00   :  { %v1781_v6 = vmul.f32 %v2236_v13, %v1780_v11  ;;  %v1795_v7 = vmul.f32 %v1769_v4, %v1746_v1 }
 0xb02   :  { %v1796_v47 = vadd.f32 %v2061_v5, %v1795_v7  ;;  %v1782_v48 = vadd.f32 %v2236_v13, %v1781_v6 }
 0xb04   :  { %2237 = vtanh.f32 %v1796_v47  ;;  %v1786_v49 = vsel %vm1785_vm11, %v2236_v13, %v1782_v48 }
 0xb05   :  { %v1791_v25 = vsel %vm1788_vm12, %v1790_v24, %v1786_v49 }
 0xb06   :  { %v1798_v50 = vsub.f32 1.0, %v1791_v25  ;;  %v1800_v54 = vmul.f32 %v1791_v25, %v3080_v62 }
 0xb0a   :  { %v2238_v51 = vpop.eup %2237 }
 0xb0b   :  { %v1799_v52 = vmul.f32 %v2238_v51, %v1798_v50 }
 0xb0d   :  { %v1801_v55 = vadd.f32 %v1800_v54, %v1799_v52 }
 0xb0f   :  { %1805 = vrot.lane.b32.xlu0 %v1801_v55, %s2282_s10  ;;  %2062 = vst.msk [vmem:[%s3128_s5 + $0x1e] sm:$0x3] %vm242_vm10, %v1801_v55 }
 0xb10   :  { %1810 = vst.msk [vmem:[#allocation2] sm:$0x3] %vm43_vm0, %v1801_v55 }
 0xb11   :  { %1811 = vst.msk [vmem:[#allocation3] sm:$0x3] %vm43_vm0, %v1801_v55 }
 0xb12   :  { %1834 = dma.vmem_to_hbm [thread:$0]  %s1830_s3, 32, %s1832_s8, [#allocation4]  }
 0xb81   :  { %v1806_v56 = vpop.permute.xlu0 %1805 }
 0xb82   :  { %1808 = vst.msk [vmem:[%s3129_s6] sm:$0x3] %vm242_vm10, %v1806_v56 }
 0xb83   :  { %2279 = dma.done.wait [#allocation4], 32  }
 0xb84   :  { %2280 = vsyncadd [#allocation4], 4294967264 }
 0xb85   :  { %1849 = vsyncpa [#allocation4], 1 }

</bundles_post_ra>
